<compile_context>
chip_gen: v7x
topology: tpu7x:2x2x1
jax: 0.10.0
libtpu: 0.0.40
codegen_flags: <defaults>
</compile_context>

<pallas_src>
import jax
import jax.numpy as jnp
from jax.experimental import pallas as pl
from jax.experimental.pallas import tpu as pltpu


def _round_up(n, m):
    return ((n + m - 1) // m) * m


def bow_kernel(x_ids, len_ref, emb_hbm, o_ref, gbuf, sem):
    # Grid: (batch tiles,) -- "parallel".
    # x_ids:   (BP*S,)                 int32, SMEM (scalar prefetch, whole array)
    # len_ref: (b_tile, 1)             f32, VMEM
    # emb_hbm: (V, HP)                 f32, HBM (pl.ANY) -- manual DMA gather source
    # o_ref:   (b_tile, HP)            f32, VMEM output block (written once per row)
    # gbuf:    (2, S, r_chunk, HP)     f32, VMEM double-buffered gather buffer
    # sem:     DMA semaphores, shape (2,) -- one per buffer slot
    bt = pl.program_id(0)
    b_tile = o_ref.shape[0]
    _, S, r_chunk, _ = gbuf.shape
    n_chunks = b_tile // r_chunk            # static (enforced by the wrapper)

    def start_chunk(c, slot):
        # Issue r_chunk * S row-gather DMAs for chunk `c` into buffer `slot`.
        # (S and r_chunk are small here; for large S switch these Python loops
        #  to pl.loop to keep the program size bounded.)
        row0 = bt * b_tile + c * r_chunk
        for r in range(r_chunk):
            base = (row0 + r) * S
            for s in range(S):
                tok = x_ids[base + s]                         # SMEM scalar read
                pltpu.make_async_copy(
                    emb_hbm.at[tok],                          # (HP,) row in HBM
                    gbuf.at[slot, s, r],                      # (HP,) row in VMEM
                    sem.at[slot],
                ).start()

    def wait_chunk(slot):
        # All chunk DMAs signal the same per-slot semaphore with identical
        # transfer sizes, so waiting once per issued copy drains the chunk.
        for _ in range(r_chunk * S):
            pltpu.make_async_copy(
                emb_hbm.at[0], gbuf.at[slot, 0, 0], sem.at[slot]
            ).wait()

    start_chunk(0, 0)                        # prime slot 0

    @pl.loop(0, n_chunks)
    def _(c):
        slot = c % 2

        @pl.when(c + 1 < n_chunks)
        def _():
            start_chunk(c + 1, 1 - slot)     # prefetch next chunk before waiting

        wait_chunk(slot)

        # Sum over the S gathered rows: leading-axis reduction -> pure VPU adds.
        sums = jnp.sum(gbuf[slot], axis=0)   # (r_chunk, HP)

        r0 = pl.multiple_of(c * r_chunk, r_chunk)
        inv_len = pl.reciprocal(len_ref[pl.ds(r0, r_chunk), :], approx=False)
        o_ref[pl.ds(r0, r_chunk), :] = sums * inv_len


def bag_of_words(x, emb_weight, length, *, b_tile=None, rows_per_chunk=8):
    """x: (B, S) int ids, emb_weight: (V, H) f32, length: (B,) -> (B, H) f32.

    HBM traffic is B*S*HP*4 bytes regardless of b_tile (no table re-streaming).
    b_tile only amortizes per-grid-step overhead; on v7x pick b_tile <= B/2 so
    the "parallel" batch axis shards across both TensorCores.
    """
    B, S = x.shape
    V, H = emb_weight.shape
    HP = _round_up(H, 128)                   # lane-dense gathered rows / output

    if b_tile is None:
        # Small default keeps padding waste low for tiny B; real B >= 128 gets
        # >= 2 batch tiles automatically (v7x megacore).
        b_tile = min(64, _round_up(B, 8))
    rows_per_chunk = min(rows_per_chunk, b_tile)
    b_tile = _round_up(b_tile, rows_per_chunk)
    BP = _round_up(B, b_tile)

    # Padded batch rows keep token id 0 (a valid row -- their outputs are
    # sliced off) and length 1.0 (keeps the reciprocal finite).
    x_p = jnp.zeros((BP, S), jnp.int32).at[:B].set(x.astype(jnp.int32))
    x_flat = x_p.reshape(-1)                 # 1-D => minimal SMEM padding
    emb_p = jnp.zeros((V, HP), jnp.float32).at[:, :H].set(
        emb_weight.astype(jnp.float32)
    )
    len_p = jnp.ones((BP, 1), jnp.float32).at[:B, 0].set(
        length.astype(jnp.float32)
    )

    grid = (BP // b_tile,)

    out = pl.pallas_call(
        bow_kernel,
        out_shape=jax.ShapeDtypeStruct((BP, HP), jnp.float32),
        grid_spec=pltpu.PrefetchScalarGridSpec(
            num_scalar_prefetch=1,           # token ids -> SMEM
            grid=grid,
            in_specs=[
                pl.BlockSpec((b_tile, 1), lambda b, x_ids: (b, 0)),   # lengths
                pl.BlockSpec(memory_space=pl.ANY),                    # emb table in HBM
            ],
            out_specs=pl.BlockSpec((b_tile, HP), lambda b, x_ids: (b, 0)),
            scratch_shapes=[
                pltpu.VMEM((2, S, rows_per_chunk, HP), jnp.float32),  # gather buffer
                pltpu.SemaphoreType.DMA((2,)),                        # one sem per slot
            ],
        ),
        compiler_params=pltpu.CompilerParams(
            dimension_semantics=("parallel",),
        ),
    )(x_flat, len_p, emb_p)

    return out[:B, :H]


if __name__ == "__main__":
    # Small synthetic shapes consistent with the module:
    #   vocab size V=50, hidden_dims H=32, batch B=4, sequence length S=8
    B, S, V, H = 4, 8, 50, 32
    PAD_IDX = 0  # field.vocab.stoi[field.pad_token]

    key = jax.random.PRNGKey(0)
    k_emb, k_x, k_len = jax.random.split(key, 3)

    # nn.init.xavier_uniform_ on the embedding weight: U(-a, a), a=sqrt(6/(V+H)).
    # As in the PyTorch code, xavier_uniform_ runs AFTER Embedding() zeroes the
    # padding row, so the padding row is non-zero and IS included in the sum --
    # reproduced exactly here.
    bound = (6.0 / (V + H)) ** 0.5
    emb_weight = jax.random.uniform(
        k_emb, (V, H), dtype=jnp.float32, minval=-bound, maxval=bound
    )

    # Token ids (include some padding tokens) and lengths.
    x = jax.random.randint(k_x, (B, S), minval=0, maxval=V, dtype=jnp.int32)
    length = jax.random.randint(k_len, (B,), minval=1, maxval=S + 1, dtype=jnp.int32)

    out = bag_of_words(x, emb_weight, length)
    out = jax.block_until_ready(out)

    # Pure-JAX reference: emb(x).sum(1) / length.unsqueeze(1).float()
    ref = emb_weight[x].sum(axis=1) / length.astype(jnp.float32)[:, None]
    assert out.shape == (B, H)
    assert jnp.allclose(out, ref, atol=1e-5, rtol=1e-5)

    print("KERNEL_OK")
</pallas_src>

<mosaic_0001>
module attributes {stable_mosaic.version = 11 : i64} {
  func.func @bow_kernel(%arg0: i32, %arg1: memref<64xi32, #tpu.memory_space<smem>>, %arg2: memref<8x1xf32, #tpu.memory_space<vmem>>, %arg3: memref<50x128xf32, #tpu.memory_space<any>>, %arg4: memref<8x128xf32, #tpu.memory_space<vmem>>, %arg5: memref<2x8x8x128xf32, #tpu.memory_space<vmem>>, %arg6: memref<2x!tpu.dma_semaphore, #tpu.memory_space<semaphore_mem>>) attributes {dimension_semantics = [#tpu.dimension_semantics<parallel>], iteration_bounds = array<i64: 1>, scalar_prefetch = 1 : i64, scratch_operands = 2 : i64, tpu.core_type = #tpu.core_type<tc>, window_params = [{transform_indices = @transform_0, window_bounds = array<i64: 8, 1>}, {}, {transform_indices = @transform_2, window_bounds = array<i64: 8, 128>}]} {
    %c8_i32 = arith.constant 8 : i32
    %0 = arith.muli %arg0, %c8_i32 : i32
    %c0_i32 = arith.constant 0 : i32
    %1 = arith.addi %0, %c0_i32 : i32
    %c0_i32_0 = arith.constant 0 : i32
    %2 = arith.addi %1, %c0_i32_0 : i32
    %c8_i32_1 = arith.constant 8 : i32
    %3 = arith.muli %2, %c8_i32_1 : i32
    %c0_i32_2 = arith.constant 0 : i32
    %4 = arith.addi %3, %c0_i32_2 : i32
    %5 = arith.index_cast %4 : i32 to index
    %6 = memref.load %arg1[%5] : memref<64xi32, #tpu.memory_space<smem>>
    %c0_i32_3 = arith.constant 0 : i32
    %c0_i32_4 = arith.constant 0 : i32
    %c0_i32_5 = arith.constant 0 : i32
    %c0_i32_6 = arith.constant 0 : i32
    %c0_i32_7 = arith.constant 0 : i32
    %7 = tpu.memref_slice %arg3[%6, %c0_i32_7] : memref<50x128xf32, #tpu.memory_space<any>> -> memref<1x128xf32, #tpu.memory_space<any>>
    %8 = tpu.memref_squeeze %7 : memref<1x128xf32, #tpu.memory_space<any>> -> memref<128xf32, #tpu.memory_space<any>>
    %c0_i32_8 = arith.constant 0 : i32
    %9 = tpu.memref_slice %arg5[%c0_i32_3, %c0_i32_4, %c0_i32_5, %c0_i32_8] : memref<2x8x8x128xf32, #tpu.memory_space<vmem>> -> memref<1x1x1x128xf32, #tpu.memory_space<vmem>>
    %10 = tpu.memref_squeeze %9 : memref<1x1x1x128xf32, #tpu.memory_space<vmem>> -> memref<128xf32, #tpu.memory_space<vmem>>
    %11 = tpu.memref_slice %arg6[%c0_i32_6] : memref<2x!tpu.dma_semaphore, #tpu.memory_space<semaphore_mem>> -> memref<1x!tpu.dma_semaphore, #tpu.memory_space<semaphore_mem>>
    %12 = tpu.memref_squeeze %11 : memref<1x!tpu.dma_semaphore, #tpu.memory_space<semaphore_mem>> -> memref<!tpu.dma_semaphore, #tpu.memory_space<semaphore_mem>>
    tpu.enqueue_dma source(%8 : memref<128xf32, #tpu.memory_space<any>>) target(%10 : memref<128xf32, #tpu.memory_space<vmem>>) target_semaphore(%12 : memref<!tpu.dma_semaphore, #tpu.memory_space<semaphore_mem>>)
    %c1_i32 = arith.constant 1 : i32
    %13 = arith.addi %3, %c1_i32 : i32
    %14 = arith.index_cast %13 : i32 to index
    %15 = memref.load %arg1[%14] : memref<64xi32, #tpu.memory_space<smem>>
    %c0_i32_9 = arith.constant 0 : i32
    %c1_i32_10 = arith.constant 1 : i32
    %c0_i32_11 = arith.constant 0 : i32
    %c0_i32_12 = arith.constant 0 : i32
    %c0_i32_13 = arith.constant 0 : i32
    %16 = tpu.memref_slice %arg3[%15, %c0_i32_13] : memref<50x128xf32, #tpu.memory_space<any>> -> memref<1x128xf32, #tpu.memory_space<any>>
    %17 = tpu.memref_squeeze %16 : memref<1x128xf32, #tpu.memory_space<any>> -> memref<128xf32, #tpu.memory_space<any>>
    %c0_i32_14 = arith.constant 0 : i32
    %18 = tpu.memref_slice %arg5[%c0_i32_9, %c1_i32_10, %c0_i32_11, %c0_i32_14] : memref<2x8x8x128xf32, #tpu.memory_space<vmem>> -> memref<1x1x1x128xf32, #tpu.memory_space<vmem>>
    %19 = tpu.memref_squeeze %18 : memref<1x1x1x128xf32, #tpu.memory_space<vmem>> -> memref<128xf32, #tpu.memory_space<vmem>>
    %20 = tpu.memref_slice %arg6[%c0_i32_12] : memref<2x!tpu.dma_semaphore, #tpu.memory_space<semaphore_mem>> -> memref<1x!tpu.dma_semaphore, #tpu.memory_space<semaphore_mem>>
    %21 = tpu.memref_squeeze %20 : memref<1x!tpu.dma_semaphore, #tpu.memory_space<semaphore_mem>> -> memref<!tpu.dma_semaphore, #tpu.memory_space<semaphore_mem>>
    tpu.enqueue_dma source(%17 : memref<128xf32, #tpu.memory_space<any>>) target(%19 : memref<128xf32, #tpu.memory_space<vmem>>) target_semaphore(%21 : memref<!tpu.dma_semaphore, #tpu.memory_space<semaphore_mem>>)
    %c2_i32 = arith.constant 2 : i32
    %22 = arith.addi %3, %c2_i32 : i32
    %23 = arith.index_cast %22 : i32 to index
    %24 = memref.load %arg1[%23] : memref<64xi32, #tpu.memory_space<smem>>
    %c0_i32_15 = arith.constant 0 : i32
    %c2_i32_16 = arith.constant 2 : i32
    %c0_i32_17 = arith.constant 0 : i32
    %c0_i32_18 = arith.constant 0 : i32
    %c0_i32_19 = arith.constant 0 : i32
    %25 = tpu.memref_slice %arg3[%24, %c0_i32_19] : memref<50x128xf32, #tpu.memory_space<any>> -> memref<1x128xf32, #tpu.memory_space<any>>
    %26 = tpu.memref_squeeze %25 : memref<1x128xf32, #tpu.memory_space<any>> -> memref<128xf32, #tpu.memory_space<any>>
    %c0_i32_20 = arith.constant 0 : i32
    %27 = tpu.memref_slice %arg5[%c0_i32_15, %c2_i32_16, %c0_i32_17, %c0_i32_20] : memref<2x8x8x128xf32, #tpu.memory_space<vmem>> -> memref<1x1x1x128xf32, #tpu.memory_space<vmem>>
    %28 = tpu.memref_squeeze %27 : memref<1x1x1x128xf32, #tpu.memory_space<vmem>> -> memref<128xf32, #tpu.memory_space<vmem>>
    %29 = tpu.memref_slice %arg6[%c0_i32_18] : memref<2x!tpu.dma_semaphore, #tpu.memory_space<semaphore_mem>> -> memref<1x!tpu.dma_semaphore, #tpu.memory_space<semaphore_mem>>
    %30 = tpu.memref_squeeze %29 : memref<1x!tpu.dma_semaphore, #tpu.memory_space<semaphore_mem>> -> memref<!tpu.dma_semaphore, #tpu.memory_space<semaphore_mem>>
    tpu.enqueue_dma source(%26 : memref<128xf32, #tpu.memory_space<any>>) target(%28 : memref<128xf32, #tpu.memory_space<vmem>>) target_semaphore(%30 : memref<!tpu.dma_semaphore, #tpu.memory_space<semaphore_mem>>)
    %c3_i32 = arith.constant 3 : i32
    %31 = arith.addi %3, %c3_i32 : i32
    %32 = arith.index_cast %31 : i32 to index
    %33 = memref.load %arg1[%32] : memref<64xi32, #tpu.memory_space<smem>>
    %c0_i32_21 = arith.constant 0 : i32
    %c3_i32_22 = arith.constant 3 : i32
    %c0_i32_23 = arith.constant 0 : i32
    %c0_i32_24 = arith.constant 0 : i32
    %c0_i32_25 = arith.constant 0 : i32
    %34 = tpu.memref_slice %arg3[%33, %c0_i32_25] : memref<50x128xf32, #tpu.memory_space<any>> -> memref<1x128xf32, #tpu.memory_space<any>>
    %35 = tpu.memref_squeeze %34 : memref<1x128xf32, #tpu.memory_space<any>> -> memref<128xf32, #tpu.memory_space<any>>
    %c0_i32_26 = arith.constant 0 : i32
    %36 = tpu.memref_slice %arg5[%c0_i32_21, %c3_i32_22, %c0_i32_23, %c0_i32_26] : memref<2x8x8x128xf32, #tpu.memory_space<vmem>> -> memref<1x1x1x128xf32, #tpu.memory_space<vmem>>
    %37 = tpu.memref_squeeze %36 : memref<1x1x1x128xf32, #tpu.memory_space<vmem>> -> memref<128xf32, #tpu.memory_space<vmem>>
    %38 = tpu.memref_slice %arg6[%c0_i32_24] : memref<2x!tpu.dma_semaphore, #tpu.memory_space<semaphore_mem>> -> memref<1x!tpu.dma_semaphore, #tpu.memory_space<semaphore_mem>>
    %39 = tpu.memref_squeeze %38 : memref<1x!tpu.dma_semaphore, #tpu.memory_space<semaphore_mem>> -> memref<!tpu.dma_semaphore, #tpu.memory_space<semaphore_mem>>
    tpu.enqueue_dma source(%35 : memref<128xf32, #tpu.memory_space<any>>) target(%37 : memref<128xf32, #tpu.memory_space<vmem>>) target_semaphore(%39 : memref<!tpu.dma_semaphore, #tpu.memory_space<semaphore_mem>>)
    %c4_i32 = arith.constant 4 : i32
    %40 = arith.addi %3, %c4_i32 : i32
    %41 = arith.index_cast %40 : i32 to index
    %42 = memref.load %arg1[%41] : memref<64xi32, #tpu.memory_space<smem>>
    %c0_i32_27 = arith.constant 0 : i32
    %c4_i32_28 = arith.constant 4 : i32
    %c0_i32_29 = arith.constant 0 : i32
    %c0_i32_30 = arith.constant 0 : i32
    %c0_i32_31 = arith.constant 0 : i32
    %43 = tpu.memref_slice %arg3[%42, %c0_i32_31] : memref<50x128xf32, #tpu.memory_space<any>> -> memref<1x128xf32, #tpu.memory_space<any>>
    %44 = tpu.memref_squeeze %43 : memref<1x128xf32, #tpu.memory_space<any>> -> memref<128xf32, #tpu.memory_space<any>>
    %c0_i32_32 = arith.constant 0 : i32
    %45 = tpu.memref_slice %arg5[%c0_i32_27, %c4_i32_28, %c0_i32_29, %c0_i32_32] : memref<2x8x8x128xf32, #tpu.memory_space<vmem>> -> memref<1x1x1x128xf32, #tpu.memory_space<vmem>>
    %46 = tpu.memref_squeeze %45 : memref<1x1x1x128xf32, #tpu.memory_space<vmem>> -> memref<128xf32, #tpu.memory_space<vmem>>
    %47 = tpu.memref_slice %arg6[%c0_i32_30] : memref<2x!tpu.dma_semaphore, #tpu.memory_space<semaphore_mem>> -> memref<1x!tpu.dma_semaphore, #tpu.memory_space<semaphore_mem>>
    %48 = tpu.memref_squeeze %47 : memref<1x!tpu.dma_semaphore, #tpu.memory_space<semaphore_mem>> -> memref<!tpu.dma_semaphore, #tpu.memory_space<semaphore_mem>>
    tpu.enqueue_dma source(%44 : memref<128xf32, #tpu.memory_space<any>>) target(%46 : memref<128xf32, #tpu.memory_space<vmem>>) target_semaphore(%48 : memref<!tpu.dma_semaphore, #tpu.memory_space<semaphore_mem>>)
    %c5_i32 = arith.constant 5 : i32
    %49 = arith.addi %3, %c5_i32 : i32
    %50 = arith.index_cast %49 : i32 to index
    %51 = memref.load %arg1[%50] : memref<64xi32, #tpu.memory_space<smem>>
    %c0_i32_33 = arith.constant 0 : i32
    %c5_i32_34 = arith.constant 5 : i32
    %c0_i32_35 = arith.constant 0 : i32
    %c0_i32_36 = arith.constant 0 : i32
    %c0_i32_37 = arith.constant 0 : i32
    %52 = tpu.memref_slice %arg3[%51, %c0_i32_37] : memref<50x128xf32, #tpu.memory_space<any>> -> memref<1x128xf32, #tpu.memory_space<any>>
    %53 = tpu.memref_squeeze %52 : memref<1x128xf32, #tpu.memory_space<any>> -> memref<128xf32, #tpu.memory_space<any>>
    %c0_i32_38 = arith.constant 0 : i32
    %54 = tpu.memref_slice %arg5[%c0_i32_33, %c5_i32_34, %c0_i32_35, %c0_i32_38] : memref<2x8x8x128xf32, #tpu.memory_space<vmem>> -> memref<1x1x1x128xf32, #tpu.memory_space<vmem>>
    %55 = tpu.memref_squeeze %54 : memref<1x1x1x128xf32, #tpu.memory_space<vmem>> -> memref<128xf32, #tpu.memory_space<vmem>>
    %56 = tpu.memref_slice %arg6[%c0_i32_36] : memref<2x!tpu.dma_semaphore, #tpu.memory_space<semaphore_mem>> -> memref<1x!tpu.dma_semaphore, #tpu.memory_space<semaphore_mem>>
    %57 = tpu.memref_squeeze %56 : memref<1x!tpu.dma_semaphore, #tpu.memory_space<semaphore_mem>> -> memref<!tpu.dma_semaphore, #tpu.memory_space<semaphore_mem>>
    tpu.enqueue_dma source(%53 : memref<128xf32, #tpu.memory_space<any>>) target(%55 : memref<128xf32, #tpu.memory_space<vmem>>) target_semaphore(%57 : memref<!tpu.dma_semaphore, #tpu.memory_space<semaphore_mem>>)
    %c6_i32 = arith.constant 6 : i32
    %58 = arith.addi %3, %c6_i32 : i32
    %59 = arith.index_cast %58 : i32 to index
    %60 = memref.load %arg1[%59] : memref<64xi32, #tpu.memory_space<smem>>
    %c0_i32_39 = arith.constant 0 : i32
    %c6_i32_40 = arith.constant 6 : i32
    %c0_i32_41 = arith.constant 0 : i32
    %c0_i32_42 = arith.constant 0 : i32
    %c0_i32_43 = arith.constant 0 : i32
    %61 = tpu.memref_slice %arg3[%60, %c0_i32_43] : memref<50x128xf32, #tpu.memory_space<any>> -> memref<1x128xf32, #tpu.memory_space<any>>
    %62 = tpu.memref_squeeze %61 : memref<1x128xf32, #tpu.memory_space<any>> -> memref<128xf32, #tpu.memory_space<any>>
    %c0_i32_44 = arith.constant 0 : i32
    %63 = tpu.memref_slice %arg5[%c0_i32_39, %c6_i32_40, %c0_i32_41, %c0_i32_44] : memref<2x8x8x128xf32, #tpu.memory_space<vmem>> -> memref<1x1x1x128xf32, #tpu.memory_space<vmem>>
    %64 = tpu.memref_squeeze %63 : memref<1x1x1x128xf32, #tpu.memory_space<vmem>> -> memref<128xf32, #tpu.memory_space<vmem>>
    %65 = tpu.memref_slice %arg6[%c0_i32_42] : memref<2x!tpu.dma_semaphore, #tpu.memory_space<semaphore_mem>> -> memref<1x!tpu.dma_semaphore, #tpu.memory_space<semaphore_mem>>
    %66 = tpu.memref_squeeze %65 : memref<1x!tpu.dma_semaphore, #tpu.memory_space<semaphore_mem>> -> memref<!tpu.dma_semaphore, #tpu.memory_space<semaphore_mem>>
    tpu.enqueue_dma source(%62 : memref<128xf32, #tpu.memory_space<any>>) target(%64 : memref<128xf32, #tpu.memory_space<vmem>>) target_semaphore(%66 : memref<!tpu.dma_semaphore, #tpu.memory_space<semaphore_mem>>)
    %c7_i32 = arith.constant 7 : i32
    %67 = arith.addi %3, %c7_i32 : i32
    %68 = arith.index_cast %67 : i32 to index
    %69 = memref.load %arg1[%68] : memref<64xi32, #tpu.memory_space<smem>>
    %c0_i32_45 = arith.constant 0 : i32
    %c7_i32_46 = arith.constant 7 : i32
    %c0_i32_47 = arith.constant 0 : i32
    %c0_i32_48 = arith.constant 0 : i32
    %c0_i32_49 = arith.constant 0 : i32
    %70 = tpu.memref_slice %arg3[%69, %c0_i32_49] : memref<50x128xf32, #tpu.memory_space<any>> -> memref<1x128xf32, #tpu.memory_space<any>>
    %71 = tpu.memref_squeeze %70 : memref<1x128xf32, #tpu.memory_space<any>> -> memref<128xf32, #tpu.memory_space<any>>
    %c0_i32_50 = arith.constant 0 : i32
    %72 = tpu.memref_slice %arg5[%c0_i32_45, %c7_i32_46, %c0_i32_47, %c0_i32_50] : memref<2x8x8x128xf32, #tpu.memory_space<vmem>> -> memref<1x1x1x128xf32, #tpu.memory_space<vmem>>
    %73 = tpu.memref_squeeze %72 : memref<1x1x1x128xf32, #tpu.memory_space<vmem>> -> memref<128xf32, #tpu.memory_space<vmem>>
    %74 = tpu.memref_slice %arg6[%c0_i32_48] : memref<2x!tpu.dma_semaphore, #tpu.memory_space<semaphore_mem>> -> memref<1x!tpu.dma_semaphore, #tpu.memory_space<semaphore_mem>>
    %75 = tpu.memref_squeeze %74 : memref<1x!tpu.dma_semaphore, #tpu.memory_space<semaphore_mem>> -> memref<!tpu.dma_semaphore, #tpu.memory_space<semaphore_mem>>
    tpu.enqueue_dma source(%71 : memref<128xf32, #tpu.memory_space<any>>) target(%73 : memref<128xf32, #tpu.memory_space<vmem>>) target_semaphore(%75 : memref<!tpu.dma_semaphore, #tpu.memory_space<semaphore_mem>>)
    %c1_i32_51 = arith.constant 1 : i32
    %76 = arith.addi %1, %c1_i32_51 : i32
    %c8_i32_52 = arith.constant 8 : i32
    %77 = arith.muli %76, %c8_i32_52 : i32
    %c0_i32_53 = arith.constant 0 : i32
    %78 = arith.addi %77, %c0_i32_53 : i32
    %79 = arith.index_cast %78 : i32 to index
    %80 = memref.load %arg1[%79] : memref<64xi32, #tpu.memory_space<smem>>
    %c0_i32_54 = arith.constant 0 : i32
    %c0_i32_55 = arith.constant 0 : i32
    %c1_i32_56 = arith.constant 1 : i32
    %c0_i32_57 = arith.constant 0 : i32
    %c0_i32_58 = arith.constant 0 : i32
    %81 = tpu.memref_slice %arg3[%80, %c0_i32_58] : memref<50x128xf32, #tpu.memory_space<any>> -> memref<1x128xf32, #tpu.memory_space<any>>
    %82 = tpu.memref_squeeze %81 : memref<1x128xf32, #tpu.memory_space<any>> -> memref<128xf32, #tpu.memory_space<any>>
    %c0_i32_59 = arith.constant 0 : i32
    %83 = tpu.memref_slice %arg5[%c0_i32_54, %c0_i32_55, %c1_i32_56, %c0_i32_59] : memref<2x8x8x128xf32, #tpu.memory_space<vmem>> -> memref<1x1x1x128xf32, #tpu.memory_space<vmem>>
    %84 = tpu.memref_squeeze %83 : memref<1x1x1x128xf32, #tpu.memory_space<vmem>> -> memref<128xf32, #tpu.memory_space<vmem>>
    %85 = tpu.memref_slice %arg6[%c0_i32_57] : memref<2x!tpu.dma_semaphore, #tpu.memory_space<semaphore_mem>> -> memref<1x!tpu.dma_semaphore, #tpu.memory_space<semaphore_mem>>
    %86 = tpu.memref_squeeze %85 : memref<1x!tpu.dma_semaphore, #tpu.memory_space<semaphore_mem>> -> memref<!tpu.dma_semaphore, #tpu.memory_space<semaphore_mem>>
    tpu.enqueue_dma source(%82 : memref<128xf32, #tpu.memory_space<any>>) target(%84 : memref<128xf32, #tpu.memory_space<vmem>>) target_semaphore(%86 : memref<!tpu.dma_semaphore, #tpu.memory_space<semaphore_mem>>)
    %c1_i32_60 = arith.constant 1 : i32
    %87 = arith.addi %77, %c1_i32_60 : i32
    %88 = arith.index_cast %87 : i32 to index
    %89 = memref.load %arg1[%88] : memref<64xi32, #tpu.memory_space<smem>>
    %c0_i32_61 = arith.constant 0 : i32
    %c1_i32_62 = arith.constant 1 : i32
    %c1_i32_63 = arith.constant 1 : i32
    %c0_i32_64 = arith.constant 0 : i32
    %c0_i32_65 = arith.constant 0 : i32
    %90 = tpu.memref_slice %arg3[%89, %c0_i32_65] : memref<50x128xf32, #tpu.memory_space<any>> -> memref<1x128xf32, #tpu.memory_space<any>>
    %91 = tpu.memref_squeeze %90 : memref<1x128xf32, #tpu.memory_space<any>> -> memref<128xf32, #tpu.memory_space<any>>
    %c0_i32_66 = arith.constant 0 : i32
    %92 = tpu.memref_slice %arg5[%c0_i32_61, %c1_i32_62, %c1_i32_63, %c0_i32_66] : memref<2x8x8x128xf32, #tpu.memory_space<vmem>> -> memref<1x1x1x128xf32, #tpu.memory_space<vmem>>
    %93 = tpu.memref_squeeze %92 : memref<1x1x1x128xf32, #tpu.memory_space<vmem>> -> memref<128xf32, #tpu.memory_space<vmem>>
    %94 = tpu.memref_slice %arg6[%c0_i32_64] : memref<2x!tpu.dma_semaphore, #tpu.memory_space<semaphore_mem>> -> memref<1x!tpu.dma_semaphore, #tpu.memory_space<semaphore_mem>>
    %95 = tpu.memref_squeeze %94 : memref<1x!tpu.dma_semaphore, #tpu.memory_space<semaphore_mem>> -> memref<!tpu.dma_semaphore, #tpu.memory_space<semaphore_mem>>
    tpu.enqueue_dma source(%91 : memref<128xf32, #tpu.memory_space<any>>) target(%93 : memref<128xf32, #tpu.memory_space<vmem>>) target_semaphore(%95 : memref<!tpu.dma_semaphore, #tpu.memory_space<semaphore_mem>>)
    %c2_i32_67 = arith.constant 2 : i32
    %96 = arith.addi %77, %c2_i32_67 : i32
    %97 = arith.index_cast %96 : i32 to index
    %98 = memref.load %arg1[%97] : memref<64xi32, #tpu.memory_space<smem>>
    %c0_i32_68 = arith.constant 0 : i32
    %c2_i32_69 = arith.constant 2 : i32
    %c1_i32_70 = arith.constant 1 : i32
    %c0_i32_71 = arith.constant 0 : i32
    %c0_i32_72 = arith.constant 0 : i32
    %99 = tpu.memref_slice %arg3[%98, %c0_i32_72] : memref<50x128xf32, #tpu.memory_space<any>> -> memref<1x128xf32, #tpu.memory_space<any>>
    %100 = tpu.memref_squeeze %99 : memref<1x128xf32, #tpu.memory_space<any>> -> memref<128xf32, #tpu.memory_space<any>>
    %c0_i32_73 = arith.constant 0 : i32
    %101 = tpu.memref_slice %arg5[%c0_i32_68, %c2_i32_69, %c1_i32_70, %c0_i32_73] : memref<2x8x8x128xf32, #tpu.memory_space<vmem>> -> memref<1x1x1x128xf32, #tpu.memory_space<vmem>>
    %102 = tpu.memref_squeeze %101 : memref<1x1x1x128xf32, #tpu.memory_space<vmem>> -> memref<128xf32, #tpu.memory_space<vmem>>
    %103 = tpu.memref_slice %arg6[%c0_i32_71] : memref<2x!tpu.dma_semaphore, #tpu.memory_space<semaphore_mem>> -> memref<1x!tpu.dma_semaphore, #tpu.memory_space<semaphore_mem>>
    %104 = tpu.memref_squeeze %103 : memref<1x!tpu.dma_semaphore, #tpu.memory_space<semaphore_mem>> -> memref<!tpu.dma_semaphore, #tpu.memory_space<semaphore_mem>>
    tpu.enqueue_dma source(%100 : memref<128xf32, #tpu.memory_space<any>>) target(%102 : memref<128xf32, #tpu.memory_space<vmem>>) target_semaphore(%104 : memref<!tpu.dma_semaphore, #tpu.memory_space<semaphore_mem>>)
    %c3_i32_74 = arith.constant 3 : i32
    %105 = arith.addi %77, %c3_i32_74 : i32
    %106 = arith.index_cast %105 : i32 to index
    %107 = memref.load %arg1[%106] : memref<64xi32, #tpu.memory_space<smem>>
    %c0_i32_75 = arith.constant 0 : i32
    %c3_i32_76 = arith.constant 3 : i32
    %c1_i32_77 = arith.constant 1 : i32
    %c0_i32_78 = arith.constant 0 : i32
    %c0_i32_79 = arith.constant 0 : i32
    %108 = tpu.memref_slice %arg3[%107, %c0_i32_79] : memref<50x128xf32, #tpu.memory_space<any>> -> memref<1x128xf32, #tpu.memory_space<any>>
    %109 = tpu.memref_squeeze %108 : memref<1x128xf32, #tpu.memory_space<any>> -> memref<128xf32, #tpu.memory_space<any>>
    %c0_i32_80 = arith.constant 0 : i32
    %110 = tpu.memref_slice %arg5[%c0_i32_75, %c3_i32_76, %c1_i32_77, %c0_i32_80] : memref<2x8x8x128xf32, #tpu.memory_space<vmem>> -> memref<1x1x1x128xf32, #tpu.memory_space<vmem>>
    %111 = tpu.memref_squeeze %110 : memref<1x1x1x128xf32, #tpu.memory_space<vmem>> -> memref<128xf32, #tpu.memory_space<vmem>>
    %112 = tpu.memref_slice %arg6[%c0_i32_78] : memref<2x!tpu.dma_semaphore, #tpu.memory_space<semaphore_mem>> -> memref<1x!tpu.dma_semaphore, #tpu.memory_space<semaphore_mem>>
    %113 = tpu.memref_squeeze %112 : memref<1x!tpu.dma_semaphore, #tpu.memory_space<semaphore_mem>> -> memref<!tpu.dma_semaphore, #tpu.memory_space<semaphore_mem>>
    tpu.enqueue_dma source(%109 : memref<128xf32, #tpu.memory_space<any>>) target(%111 : memref<128xf32, #tpu.memory_space<vmem>>) target_semaphore(%113 : memref<!tpu.dma_semaphore, #tpu.memory_space<semaphore_mem>>)
    %c4_i32_81 = arith.constant 4 : i32
    %114 = arith.addi %77, %c4_i32_81 : i32
    %115 = arith.index_cast %114 : i32 to index
    %116 = memref.load %arg1[%115] : memref<64xi32, #tpu.memory_space<smem>>
    %c0_i32_82 = arith.constant 0 : i32
    %c4_i32_83 = arith.constant 4 : i32
    %c1_i32_84 = arith.constant 1 : i32
    %c0_i32_85 = arith.constant 0 : i32
    %c0_i32_86 = arith.constant 0 : i32
    %117 = tpu.memref_slice %arg3[%116, %c0_i32_86] : memref<50x128xf32, #tpu.memory_space<any>> -> memref<1x128xf32, #tpu.memory_space<any>>
    %118 = tpu.memref_squeeze %117 : memref<1x128xf32, #tpu.memory_space<any>> -> memref<128xf32, #tpu.memory_space<any>>
    %c0_i32_87 = arith.constant 0 : i32
    %119 = tpu.memref_slice %arg5[%c0_i32_82, %c4_i32_83, %c1_i32_84, %c0_i32_87] : memref<2x8x8x128xf32, #tpu.memory_space<vmem>> -> memref<1x1x1x128xf32, #tpu.memory_space<vmem>>
    %120 = tpu.memref_squeeze %119 : memref<1x1x1x128xf32, #tpu.memory_space<vmem>> -> memref<128xf32, #tpu.memory_space<vmem>>
    %121 = tpu.memref_slice %arg6[%c0_i32_85] : memref<2x!tpu.dma_semaphore, #tpu.memory_space<semaphore_mem>> -> memref<1x!tpu.dma_semaphore, #tpu.memory_space<semaphore_mem>>
    %122 = tpu.memref_squeeze %121 : memref<1x!tpu.dma_semaphore, #tpu.memory_space<semaphore_mem>> -> memref<!tpu.dma_semaphore, #tpu.memory_space<semaphore_mem>>
    tpu.enqueue_dma source(%118 : memref<128xf32, #tpu.memory_space<any>>) target(%120 : memref<128xf32, #tpu.memory_space<vmem>>) target_semaphore(%122 : memref<!tpu.dma_semaphore, #tpu.memory_space<semaphore_mem>>)
    %c5_i32_88 = arith.constant 5 : i32
    %123 = arith.addi %77, %c5_i32_88 : i32
    %124 = arith.index_cast %123 : i32 to index
    %125 = memref.load %arg1[%124] : memref<64xi32, #tpu.memory_space<smem>>
    %c0_i32_89 = arith.constant 0 : i32
    %c5_i32_90 = arith.constant 5 : i32
    %c1_i32_91 = arith.constant 1 : i32
    %c0_i32_92 = arith.constant 0 : i32
    %c0_i32_93 = arith.constant 0 : i32
    %126 = tpu.memref_slice %arg3[%125, %c0_i32_93] : memref<50x128xf32, #tpu.memory_space<any>> -> memref<1x128xf32, #tpu.memory_space<any>>
    %127 = tpu.memref_squeeze %126 : memref<1x128xf32, #tpu.memory_space<any>> -> memref<128xf32, #tpu.memory_space<any>>
    %c0_i32_94 = arith.constant 0 : i32
    %128 = tpu.memref_slice %arg5[%c0_i32_89, %c5_i32_90, %c1_i32_91, %c0_i32_94] : memref<2x8x8x128xf32, #tpu.memory_space<vmem>> -> memref<1x1x1x128xf32, #tpu.memory_space<vmem>>
    %129 = tpu.memref_squeeze %128 : memref<1x1x1x128xf32, #tpu.memory_space<vmem>> -> memref<128xf32, #tpu.memory_space<vmem>>
    %130 = tpu.memref_slice %arg6[%c0_i32_92] : memref<2x!tpu.dma_semaphore, #tpu.memory_space<semaphore_mem>> -> memref<1x!tpu.dma_semaphore, #tpu.memory_space<semaphore_mem>>
    %131 = tpu.memref_squeeze %130 : memref<1x!tpu.dma_semaphore, #tpu.memory_space<semaphore_mem>> -> memref<!tpu.dma_semaphore, #tpu.memory_space<semaphore_mem>>
    tpu.enqueue_dma source(%127 : memref<128xf32, #tpu.memory_space<any>>) target(%129 : memref<128xf32, #tpu.memory_space<vmem>>) target_semaphore(%131 : memref<!tpu.dma_semaphore, #tpu.memory_space<semaphore_mem>>)
    %c6_i32_95 = arith.constant 6 : i32
    %132 = arith.addi %77, %c6_i32_95 : i32
    %133 = arith.index_cast %132 : i32 to index
    %134 = memref.load %arg1[%133] : memref<64xi32, #tpu.memory_space<smem>>
    %c0_i32_96 = arith.constant 0 : i32
    %c6_i32_97 = arith.constant 6 : i32
    %c1_i32_98 = arith.constant 1 : i32
    %c0_i32_99 = arith.constant 0 : i32
    %c0_i32_100 = arith.constant 0 : i32
    %135 = tpu.memref_slice %arg3[%134, %c0_i32_100] : memref<50x128xf32, #tpu.memory_space<any>> -> memref<1x128xf32, #tpu.memory_space<any>>
    %136 = tpu.memref_squeeze %135 : memref<1x128xf32, #tpu.memory_space<any>> -> memref<128xf32, #tpu.memory_space<any>>
    %c0_i32_101 = arith.constant 0 : i32
    %137 = tpu.memref_slice %arg5[%c0_i32_96, %c6_i32_97, %c1_i32_98, %c0_i32_101] : memref<2x8x8x128xf32, #tpu.memory_space<vmem>> -> memref<1x1x1x128xf32, #tpu.memory_space<vmem>>
    %138 = tpu.memref_squeeze %137 : memref<1x1x1x128xf32, #tpu.memory_space<vmem>> -> memref<128xf32, #tpu.memory_space<vmem>>
    %139 = tpu.memref_slice %arg6[%c0_i32_99] : memref<2x!tpu.dma_semaphore, #tpu.memory_space<semaphore_mem>> -> memref<1x!tpu.dma_semaphore, #tpu.memory_space<semaphore_mem>>
    %140 = tpu.memref_squeeze %139 : memref<1x!tpu.dma_semaphore, #tpu.memory_space<semaphore_mem>> -> memref<!tpu.dma_semaphore, #tpu.memory_space<semaphore_mem>>
    tpu.enqueue_dma source(%136 : memref<128xf32, #tpu.memory_space<any>>) target(%138 : memref<128xf32, #tpu.memory_space<vmem>>) target_semaphore(%140 : memref<!tpu.dma_semaphore, #tpu.memory_space<semaphore_mem>>)
    %c7_i32_102 = arith.constant 7 : i32
    %141 = arith.addi %77, %c7_i32_102 : i32
    %142 = arith.index_cast %141 : i32 to index
    %143 = memref.load %arg1[%142] : memref<64xi32, #tpu.memory_space<smem>>
    %c0_i32_103 = arith.constant 0 : i32
    %c7_i32_104 = arith.constant 7 : i32
    %c1_i32_105 = arith.constant 1 : i32
    %c0_i32_106 = arith.constant 0 : i32
    %c0_i32_107 = arith.constant 0 : i32
    %144 = tpu.memref_slice %arg3[%143, %c0_i32_107] : memref<50x128xf32, #tpu.memory_space<any>> -> memref<1x128xf32, #tpu.memory_space<any>>
    %145 = tpu.memref_squeeze %144 : memref<1x128xf32, #tpu.memory_space<any>> -> memref<128xf32, #tpu.memory_space<any>>
    %c0_i32_108 = arith.constant 0 : i32
    %146 = tpu.memref_slice %arg5[%c0_i32_103, %c7_i32_104, %c1_i32_105, %c0_i32_108] : memref<2x8x8x128xf32, #tpu.memory_space<vmem>> -> memref<1x1x1x128xf32, #tpu.memory_space<vmem>>
    %147 = tpu.memref_squeeze %146 : memref<1x1x1x128xf32, #tpu.memory_space<vmem>> -> memref<128xf32, #tpu.memory_space<vmem>>
    %148 = tpu.memref_slice %arg6[%c0_i32_106] : memref<2x!tpu.dma_semaphore, #tpu.memory_space<semaphore_mem>> -> memref<1x!tpu.dma_semaphore, #tpu.memory_space<semaphore_mem>>
    %149 = tpu.memref_squeeze %148 : memref<1x!tpu.dma_semaphore, #tpu.memory_space<semaphore_mem>> -> memref<!tpu.dma_semaphore, #tpu.memory_space<semaphore_mem>>
    tpu.enqueue_dma source(%145 : memref<128xf32, #tpu.memory_space<any>>) target(%147 : memref<128xf32, #tpu.memory_space<vmem>>) target_semaphore(%149 : memref<!tpu.dma_semaphore, #tpu.memory_space<semaphore_mem>>)
    %c2_i32_109 = arith.constant 2 : i32
    %150 = arith.addi %1, %c2_i32_109 : i32
    %c8_i32_110 = arith.constant 8 : i32
    %151 = arith.muli %150, %c8_i32_110 : i32
    %c0_i32_111 = arith.constant 0 : i32
    %152 = arith.addi %151, %c0_i32_111 : i32
    %153 = arith.index_cast %152 : i32 to index
    %154 = memref.load %arg1[%153] : memref<64xi32, #tpu.memory_space<smem>>
    %c0_i32_112 = arith.constant 0 : i32
    %c0_i32_113 = arith.constant 0 : i32
    %c2_i32_114 = arith.constant 2 : i32
    %c0_i32_115 = arith.constant 0 : i32
    %c0_i32_116 = arith.constant 0 : i32
    %155 = tpu.memref_slice %arg3[%154, %c0_i32_116] : memref<50x128xf32, #tpu.memory_space<any>> -> memref<1x128xf32, #tpu.memory_space<any>>
    %156 = tpu.memref_squeeze %155 : memref<1x128xf32, #tpu.memory_space<any>> -> memref<128xf32, #tpu.memory_space<any>>
    %c0_i32_117 = arith.constant 0 : i32
    %157 = tpu.memref_slice %arg5[%c0_i32_112, %c0_i32_113, %c2_i32_114, %c0_i32_117] : memref<2x8x8x128xf32, #tpu.memory_space<vmem>> -> memref<1x1x1x128xf32, #tpu.memory_space<vmem>>
    %158 = tpu.memref_squeeze %157 : memref<1x1x1x128xf32, #tpu.memory_space<vmem>> -> memref<128xf32, #tpu.memory_space<vmem>>
    %159 = tpu.memref_slice %arg6[%c0_i32_115] : memref<2x!tpu.dma_semaphore, #tpu.memory_space<semaphore_mem>> -> memref<1x!tpu.dma_semaphore, #tpu.memory_space<semaphore_mem>>
    %160 = tpu.memref_squeeze %159 : memref<1x!tpu.dma_semaphore, #tpu.memory_space<semaphore_mem>> -> memref<!tpu.dma_semaphore, #tpu.memory_space<semaphore_mem>>
    tpu.enqueue_dma source(%156 : memref<128xf32, #tpu.memory_space<any>>) target(%158 : memref<128xf32, #tpu.memory_space<vmem>>) target_semaphore(%160 : memref<!tpu.dma_semaphore, #tpu.memory_space<semaphore_mem>>)
    %c1_i32_118 = arith.constant 1 : i32
    %161 = arith.addi %151, %c1_i32_118 : i32
    %162 = arith.index_cast %161 : i32 to index
    %163 = memref.load %arg1[%162] : memref<64xi32, #tpu.memory_space<smem>>
    %c0_i32_119 = arith.constant 0 : i32
    %c1_i32_120 = arith.constant 1 : i32
    %c2_i32_121 = arith.constant 2 : i32
    %c0_i32_122 = arith.constant 0 : i32
    %c0_i32_123 = arith.constant 0 : i32
    %164 = tpu.memref_slice %arg3[%163, %c0_i32_123] : memref<50x128xf32, #tpu.memory_space<any>> -> memref<1x128xf32, #tpu.memory_space<any>>
    %165 = tpu.memref_squeeze %164 : memref<1x128xf32, #tpu.memory_space<any>> -> memref<128xf32, #tpu.memory_space<any>>
    %c0_i32_124 = arith.constant 0 : i32
    %166 = tpu.memref_slice %arg5[%c0_i32_119, %c1_i32_120, %c2_i32_121, %c0_i32_124] : memref<2x8x8x128xf32, #tpu.memory_space<vmem>> -> memref<1x1x1x128xf32, #tpu.memory_space<vmem>>
    %167 = tpu.memref_squeeze %166 : memref<1x1x1x128xf32, #tpu.memory_space<vmem>> -> memref<128xf32, #tpu.memory_space<vmem>>
    %168 = tpu.memref_slice %arg6[%c0_i32_122] : memref<2x!tpu.dma_semaphore, #tpu.memory_space<semaphore_mem>> -> memref<1x!tpu.dma_semaphore, #tpu.memory_space<semaphore_mem>>
    %169 = tpu.memref_squeeze %168 : memref<1x!tpu.dma_semaphore, #tpu.memory_space<semaphore_mem>> -> memref<!tpu.dma_semaphore, #tpu.memory_space<semaphore_mem>>
    tpu.enqueue_dma source(%165 : memref<128xf32, #tpu.memory_space<any>>) target(%167 : memref<128xf32, #tpu.memory_space<vmem>>) target_semaphore(%169 : memref<!tpu.dma_semaphore, #tpu.memory_space<semaphore_mem>>)
    %c2_i32_125 = arith.constant 2 : i32
    %170 = arith.addi %151, %c2_i32_125 : i32
    %171 = arith.index_cast %170 : i32 to index
    %172 = memref.load %arg1[%171] : memref<64xi32, #tpu.memory_space<smem>>
    %c0_i32_126 = arith.constant 0 : i32
    %c2_i32_127 = arith.constant 2 : i32
    %c2_i32_128 = arith.constant 2 : i32
    %c0_i32_129 = arith.constant 0 : i32
    %c0_i32_130 = arith.constant 0 : i32
    %173 = tpu.memref_slice %arg3[%172, %c0_i32_130] : memref<50x128xf32, #tpu.memory_space<any>> -> memref<1x128xf32, #tpu.memory_space<any>>
    %174 = tpu.memref_squeeze %173 : memref<1x128xf32, #tpu.memory_space<any>> -> memref<128xf32, #tpu.memory_space<any>>
    %c0_i32_131 = arith.constant 0 : i32
    %175 = tpu.memref_slice %arg5[%c0_i32_126, %c2_i32_127, %c2_i32_128, %c0_i32_131] : memref<2x8x8x128xf32, #tpu.memory_space<vmem>> -> memref<1x1x1x128xf32, #tpu.memory_space<vmem>>
    %176 = tpu.memref_squeeze %175 : memref<1x1x1x128xf32, #tpu.memory_space<vmem>> -> memref<128xf32, #tpu.memory_space<vmem>>
    %177 = tpu.memref_slice %arg6[%c0_i32_129] : memref<2x!tpu.dma_semaphore, #tpu.memory_space<semaphore_mem>> -> memref<1x!tpu.dma_semaphore, #tpu.memory_space<semaphore_mem>>
    %178 = tpu.memref_squeeze %177 : memref<1x!tpu.dma_semaphore, #tpu.memory_space<semaphore_mem>> -> memref<!tpu.dma_semaphore, #tpu.memory_space<semaphore_mem>>
    tpu.enqueue_dma source(%174 : memref<128xf32, #tpu.memory_space<any>>) target(%176 : memref<128xf32, #tpu.memory_space<vmem>>) target_semaphore(%178 : memref<!tpu.dma_semaphore, #tpu.memory_space<semaphore_mem>>)
    %c3_i32_132 = arith.constant 3 : i32
    %179 = arith.addi %151, %c3_i32_132 : i32
    %180 = arith.index_cast %179 : i32 to index
    %181 = memref.load %arg1[%180] : memref<64xi32, #tpu.memory_space<smem>>
    %c0_i32_133 = arith.constant 0 : i32
    %c3_i32_134 = arith.constant 3 : i32
    %c2_i32_135 = arith.constant 2 : i32
    %c0_i32_136 = arith.constant 0 : i32
    %c0_i32_137 = arith.constant 0 : i32
    %182 = tpu.memref_slice %arg3[%181, %c0_i32_137] : memref<50x128xf32, #tpu.memory_space<any>> -> memref<1x128xf32, #tpu.memory_space<any>>
    %183 = tpu.memref_squeeze %182 : memref<1x128xf32, #tpu.memory_space<any>> -> memref<128xf32, #tpu.memory_space<any>>
    %c0_i32_138 = arith.constant 0 : i32
    %184 = tpu.memref_slice %arg5[%c0_i32_133, %c3_i32_134, %c2_i32_135, %c0_i32_138] : memref<2x8x8x128xf32, #tpu.memory_space<vmem>> -> memref<1x1x1x128xf32, #tpu.memory_space<vmem>>
    %185 = tpu.memref_squeeze %184 : memref<1x1x1x128xf32, #tpu.memory_space<vmem>> -> memref<128xf32, #tpu.memory_space<vmem>>
    %186 = tpu.memref_slice %arg6[%c0_i32_136] : memref<2x!tpu.dma_semaphore, #tpu.memory_space<semaphore_mem>> -> memref<1x!tpu.dma_semaphore, #tpu.memory_space<semaphore_mem>>
    %187 = tpu.memref_squeeze %186 : memref<1x!tpu.dma_semaphore, #tpu.memory_space<semaphore_mem>> -> memref<!tpu.dma_semaphore, #tpu.memory_space<semaphore_mem>>
    tpu.enqueue_dma source(%183 : memref<128xf32, #tpu.memory_space<any>>) target(%185 : memref<128xf32, #tpu.memory_space<vmem>>) target_semaphore(%187 : memref<!tpu.dma_semaphore, #tpu.memory_space<semaphore_mem>>)
    %c4_i32_139 = arith.constant 4 : i32
    %188 = arith.addi %151, %c4_i32_139 : i32
    %189 = arith.index_cast %188 : i32 to index
    %190 = memref.load %arg1[%189] : memref<64xi32, #tpu.memory_space<smem>>
    %c0_i32_140 = arith.constant 0 : i32
    %c4_i32_141 = arith.constant 4 : i32
    %c2_i32_142 = arith.constant 2 : i32
    %c0_i32_143 = arith.constant 0 : i32
    %c0_i32_144 = arith.constant 0 : i32
    %191 = tpu.memref_slice %arg3[%190, %c0_i32_144] : memref<50x128xf32, #tpu.memory_space<any>> -> memref<1x128xf32, #tpu.memory_space<any>>
    %192 = tpu.memref_squeeze %191 : memref<1x128xf32, #tpu.memory_space<any>> -> memref<128xf32, #tpu.memory_space<any>>
    %c0_i32_145 = arith.constant 0 : i32
    %193 = tpu.memref_slice %arg5[%c0_i32_140, %c4_i32_141, %c2_i32_142, %c0_i32_145] : memref<2x8x8x128xf32, #tpu.memory_space<vmem>> -> memref<1x1x1x128xf32, #tpu.memory_space<vmem>>
    %194 = tpu.memref_squeeze %193 : memref<1x1x1x128xf32, #tpu.memory_space<vmem>> -> memref<128xf32, #tpu.memory_space<vmem>>
    %195 = tpu.memref_slice %arg6[%c0_i32_143] : memref<2x!tpu.dma_semaphore, #tpu.memory_space<semaphore_mem>> -> memref<1x!tpu.dma_semaphore, #tpu.memory_space<semaphore_mem>>
    %196 = tpu.memref_squeeze %195 : memref<1x!tpu.dma_semaphore, #tpu.memory_space<semaphore_mem>> -> memref<!tpu.dma_semaphore, #tpu.memory_space<semaphore_mem>>
    tpu.enqueue_dma source(%192 : memref<128xf32, #tpu.memory_space<any>>) target(%194 : memref<128xf32, #tpu.memory_space<vmem>>) target_semaphore(%196 : memref<!tpu.dma_semaphore, #tpu.memory_space<semaphore_mem>>)
    %c5_i32_146 = arith.constant 5 : i32
    %197 = arith.addi %151, %c5_i32_146 : i32
    %198 = arith.index_cast %197 : i32 to index
    %199 = memref.load %arg1[%198] : memref<64xi32, #tpu.memory_space<smem>>
    %c0_i32_147 = arith.constant 0 : i32
    %c5_i32_148 = arith.constant 5 : i32
    %c2_i32_149 = arith.constant 2 : i32
    %c0_i32_150 = arith.constant 0 : i32
    %c0_i32_151 = arith.constant 0 : i32
    %200 = tpu.memref_slice %arg3[%199, %c0_i32_151] : memref<50x128xf32, #tpu.memory_space<any>> -> memref<1x128xf32, #tpu.memory_space<any>>
    %201 = tpu.memref_squeeze %200 : memref<1x128xf32, #tpu.memory_space<any>> -> memref<128xf32, #tpu.memory_space<any>>
    %c0_i32_152 = arith.constant 0 : i32
    %202 = tpu.memref_slice %arg5[%c0_i32_147, %c5_i32_148, %c2_i32_149, %c0_i32_152] : memref<2x8x8x128xf32, #tpu.memory_space<vmem>> -> memref<1x1x1x128xf32, #tpu.memory_space<vmem>>
    %203 = tpu.memref_squeeze %202 : memref<1x1x1x128xf32, #tpu.memory_space<vmem>> -> memref<128xf32, #tpu.memory_space<vmem>>
    %204 = tpu.memref_slice %arg6[%c0_i32_150] : memref<2x!tpu.dma_semaphore, #tpu.memory_space<semaphore_mem>> -> memref<1x!tpu.dma_semaphore, #tpu.memory_space<semaphore_mem>>
    %205 = tpu.memref_squeeze %204 : memref<1x!tpu.dma_semaphore, #tpu.memory_space<semaphore_mem>> -> memref<!tpu.dma_semaphore, #tpu.memory_space<semaphore_mem>>
    tpu.enqueue_dma source(%201 : memref<128xf32, #tpu.memory_space<any>>) target(%203 : memref<128xf32, #tpu.memory_space<vmem>>) target_semaphore(%205 : memref<!tpu.dma_semaphore, #tpu.memory_space<semaphore_mem>>)
    %c6_i32_153 = arith.constant 6 : i32
    %206 = arith.addi %151, %c6_i32_153 : i32
    %207 = arith.index_cast %206 : i32 to index
    %208 = memref.load %arg1[%207] : memref<64xi32, #tpu.memory_space<smem>>
    %c0_i32_154 = arith.constant 0 : i32
    %c6_i32_155 = arith.constant 6 : i32
    %c2_i32_156 = arith.constant 2 : i32
    %c0_i32_157 = arith.constant 0 : i32
    %c0_i32_158 = arith.constant 0 : i32
    %209 = tpu.memref_slice %arg3[%208, %c0_i32_158] : memref<50x128xf32, #tpu.memory_space<any>> -> memref<1x128xf32, #tpu.memory_space<any>>
    %210 = tpu.memref_squeeze %209 : memref<1x128xf32, #tpu.memory_space<any>> -> memref<128xf32, #tpu.memory_space<any>>
    %c0_i32_159 = arith.constant 0 : i32
    %211 = tpu.memref_slice %arg5[%c0_i32_154, %c6_i32_155, %c2_i32_156, %c0_i32_159] : memref<2x8x8x128xf32, #tpu.memory_space<vmem>> -> memref<1x1x1x128xf32, #tpu.memory_space<vmem>>
    %212 = tpu.memref_squeeze %211 : memref<1x1x1x128xf32, #tpu.memory_space<vmem>> -> memref<128xf32, #tpu.memory_space<vmem>>
    %213 = tpu.memref_slice %arg6[%c0_i32_157] : memref<2x!tpu.dma_semaphore, #tpu.memory_space<semaphore_mem>> -> memref<1x!tpu.dma_semaphore, #tpu.memory_space<semaphore_mem>>
    %214 = tpu.memref_squeeze %213 : memref<1x!tpu.dma_semaphore, #tpu.memory_space<semaphore_mem>> -> memref<!tpu.dma_semaphore, #tpu.memory_space<semaphore_mem>>
    tpu.enqueue_dma source(%210 : memref<128xf32, #tpu.memory_space<any>>) target(%212 : memref<128xf32, #tpu.memory_space<vmem>>) target_semaphore(%214 : memref<!tpu.dma_semaphore, #tpu.memory_space<semaphore_mem>>)
    %c7_i32_160 = arith.constant 7 : i32
    %215 = arith.addi %151, %c7_i32_160 : i32
    %216 = arith.index_cast %215 : i32 to index
    %217 = memref.load %arg1[%216] : memref<64xi32, #tpu.memory_space<smem>>
    %c0_i32_161 = arith.constant 0 : i32
    %c7_i32_162 = arith.constant 7 : i32
    %c2_i32_163 = arith.constant 2 : i32
    %c0_i32_164 = arith.constant 0 : i32
    %c0_i32_165 = arith.constant 0 : i32
    %218 = tpu.memref_slice %arg3[%217, %c0_i32_165] : memref<50x128xf32, #tpu.memory_space<any>> -> memref<1x128xf32, #tpu.memory_space<any>>
    %219 = tpu.memref_squeeze %218 : memref<1x128xf32, #tpu.memory_space<any>> -> memref<128xf32, #tpu.memory_space<any>>
    %c0_i32_166 = arith.constant 0 : i32
    %220 = tpu.memref_slice %arg5[%c0_i32_161, %c7_i32_162, %c2_i32_163, %c0_i32_166] : memref<2x8x8x128xf32, #tpu.memory_space<vmem>> -> memref<1x1x1x128xf32, #tpu.memory_space<vmem>>
    %221 = tpu.memref_squeeze %220 : memref<1x1x1x128xf32, #tpu.memory_space<vmem>> -> memref<128xf32, #tpu.memory_space<vmem>>
    %222 = tpu.memref_slice %arg6[%c0_i32_164] : memref<2x!tpu.dma_semaphore, #tpu.memory_space<semaphore_mem>> -> memref<1x!tpu.dma_semaphore, #tpu.memory_space<semaphore_mem>>
    %223 = tpu.memref_squeeze %222 : memref<1x!tpu.dma_semaphore, #tpu.memory_space<semaphore_mem>> -> memref<!tpu.dma_semaphore, #tpu.memory_space<semaphore_mem>>
    tpu.enqueue_dma source(%219 : memref<128xf32, #tpu.memory_space<any>>) target(%221 : memref<128xf32, #tpu.memory_space<vmem>>) target_semaphore(%223 : memref<!tpu.dma_semaphore, #tpu.memory_space<semaphore_mem>>)
    %c3_i32_167 = arith.constant 3 : i32
    %224 = arith.addi %1, %c3_i32_167 : i32
    %c8_i32_168 = arith.constant 8 : i32
    %225 = arith.muli %224, %c8_i32_168 : i32
    %c0_i32_169 = arith.constant 0 : i32
    %226 = arith.addi %225, %c0_i32_169 : i32
    %227 = arith.index_cast %226 : i32 to index
    %228 = memref.load %arg1[%227] : memref<64xi32, #tpu.memory_space<smem>>
    %c0_i32_170 = arith.constant 0 : i32
    %c0_i32_171 = arith.constant 0 : i32
    %c3_i32_172 = arith.constant 3 : i32
    %c0_i32_173 = arith.constant 0 : i32
    %c0_i32_174 = arith.constant 0 : i32
    %229 = tpu.memref_slice %arg3[%228, %c0_i32_174] : memref<50x128xf32, #tpu.memory_space<any>> -> memref<1x128xf32, #tpu.memory_space<any>>
    %230 = tpu.memref_squeeze %229 : memref<1x128xf32, #tpu.memory_space<any>> -> memref<128xf32, #tpu.memory_space<any>>
    %c0_i32_175 = arith.constant 0 : i32
    %231 = tpu.memref_slice %arg5[%c0_i32_170, %c0_i32_171, %c3_i32_172, %c0_i32_175] : memref<2x8x8x128xf32, #tpu.memory_space<vmem>> -> memref<1x1x1x128xf32, #tpu.memory_space<vmem>>
    %232 = tpu.memref_squeeze %231 : memref<1x1x1x128xf32, #tpu.memory_space<vmem>> -> memref<128xf32, #tpu.memory_space<vmem>>
    %233 = tpu.memref_slice %arg6[%c0_i32_173] : memref<2x!tpu.dma_semaphore, #tpu.memory_space<semaphore_mem>> -> memref<1x!tpu.dma_semaphore, #tpu.memory_space<semaphore_mem>>
    %234 = tpu.memref_squeeze %233 : memref<1x!tpu.dma_semaphore, #tpu.memory_space<semaphore_mem>> -> memref<!tpu.dma_semaphore, #tpu.memory_space<semaphore_mem>>
    tpu.enqueue_dma source(%230 : memref<128xf32, #tpu.memory_space<any>>) target(%232 : memref<128xf32, #tpu.memory_space<vmem>>) target_semaphore(%234 : memref<!tpu.dma_semaphore, #tpu.memory_space<semaphore_mem>>)
    %c1_i32_176 = arith.constant 1 : i32
    %235 = arith.addi %225, %c1_i32_176 : i32
    %236 = arith.index_cast %235 : i32 to index
    %237 = memref.load %arg1[%236] : memref<64xi32, #tpu.memory_space<smem>>
    %c0_i32_177 = arith.constant 0 : i32
    %c1_i32_178 = arith.constant 1 : i32
    %c3_i32_179 = arith.constant 3 : i32
    %c0_i32_180 = arith.constant 0 : i32
    %c0_i32_181 = arith.constant 0 : i32
    %238 = tpu.memref_slice %arg3[%237, %c0_i32_181] : memref<50x128xf32, #tpu.memory_space<any>> -> memref<1x128xf32, #tpu.memory_space<any>>
    %239 = tpu.memref_squeeze %238 : memref<1x128xf32, #tpu.memory_space<any>> -> memref<128xf32, #tpu.memory_space<any>>
    %c0_i32_182 = arith.constant 0 : i32
    %240 = tpu.memref_slice %arg5[%c0_i32_177, %c1_i32_178, %c3_i32_179, %c0_i32_182] : memref<2x8x8x128xf32, #tpu.memory_space<vmem>> -> memref<1x1x1x128xf32, #tpu.memory_space<vmem>>
    %241 = tpu.memref_squeeze %240 : memref<1x1x1x128xf32, #tpu.memory_space<vmem>> -> memref<128xf32, #tpu.memory_space<vmem>>
    %242 = tpu.memref_slice %arg6[%c0_i32_180] : memref<2x!tpu.dma_semaphore, #tpu.memory_space<semaphore_mem>> -> memref<1x!tpu.dma_semaphore, #tpu.memory_space<semaphore_mem>>
    %243 = tpu.memref_squeeze %242 : memref<1x!tpu.dma_semaphore, #tpu.memory_space<semaphore_mem>> -> memref<!tpu.dma_semaphore, #tpu.memory_space<semaphore_mem>>
    tpu.enqueue_dma source(%239 : memref<128xf32, #tpu.memory_space<any>>) target(%241 : memref<128xf32, #tpu.memory_space<vmem>>) target_semaphore(%243 : memref<!tpu.dma_semaphore, #tpu.memory_space<semaphore_mem>>)
    %c2_i32_183 = arith.constant 2 : i32
    %244 = arith.addi %225, %c2_i32_183 : i32
    %245 = arith.index_cast %244 : i32 to index
    %246 = memref.load %arg1[%245] : memref<64xi32, #tpu.memory_space<smem>>
    %c0_i32_184 = arith.constant 0 : i32
    %c2_i32_185 = arith.constant 2 : i32
    %c3_i32_186 = arith.constant 3 : i32
    %c0_i32_187 = arith.constant 0 : i32
    %c0_i32_188 = arith.constant 0 : i32
    %247 = tpu.memref_slice %arg3[%246, %c0_i32_188] : memref<50x128xf32, #tpu.memory_space<any>> -> memref<1x128xf32, #tpu.memory_space<any>>
    %248 = tpu.memref_squeeze %247 : memref<1x128xf32, #tpu.memory_space<any>> -> memref<128xf32, #tpu.memory_space<any>>
    %c0_i32_189 = arith.constant 0 : i32
    %249 = tpu.memref_slice %arg5[%c0_i32_184, %c2_i32_185, %c3_i32_186, %c0_i32_189] : memref<2x8x8x128xf32, #tpu.memory_space<vmem>> -> memref<1x1x1x128xf32, #tpu.memory_space<vmem>>
    %250 = tpu.memref_squeeze %249 : memref<1x1x1x128xf32, #tpu.memory_space<vmem>> -> memref<128xf32, #tpu.memory_space<vmem>>
    %251 = tpu.memref_slice %arg6[%c0_i32_187] : memref<2x!tpu.dma_semaphore, #tpu.memory_space<semaphore_mem>> -> memref<1x!tpu.dma_semaphore, #tpu.memory_space<semaphore_mem>>
    %252 = tpu.memref_squeeze %251 : memref<1x!tpu.dma_semaphore, #tpu.memory_space<semaphore_mem>> -> memref<!tpu.dma_semaphore, #tpu.memory_space<semaphore_mem>>
    tpu.enqueue_dma source(%248 : memref<128xf32, #tpu.memory_space<any>>) target(%250 : memref<128xf32, #tpu.memory_space<vmem>>) target_semaphore(%252 : memref<!tpu.dma_semaphore, #tpu.memory_space<semaphore_mem>>)
    %c3_i32_190 = arith.constant 3 : i32
    %253 = arith.addi %225, %c3_i32_190 : i32
    %254 = arith.index_cast %253 : i32 to index
    %255 = memref.load %arg1[%254] : memref<64xi32, #tpu.memory_space<smem>>
    %c0_i32_191 = arith.constant 0 : i32
    %c3_i32_192 = arith.constant 3 : i32
    %c3_i32_193 = arith.constant 3 : i32
    %c0_i32_194 = arith.constant 0 : i32
    %c0_i32_195 = arith.constant 0 : i32
    %256 = tpu.memref_slice %arg3[%255, %c0_i32_195] : memref<50x128xf32, #tpu.memory_space<any>> -> memref<1x128xf32, #tpu.memory_space<any>>
    %257 = tpu.memref_squeeze %256 : memref<1x128xf32, #tpu.memory_space<any>> -> memref<128xf32, #tpu.memory_space<any>>
    %c0_i32_196 = arith.constant 0 : i32
    %258 = tpu.memref_slice %arg5[%c0_i32_191, %c3_i32_192, %c3_i32_193, %c0_i32_196] : memref<2x8x8x128xf32, #tpu.memory_space<vmem>> -> memref<1x1x1x128xf32, #tpu.memory_space<vmem>>
    %259 = tpu.memref_squeeze %258 : memref<1x1x1x128xf32, #tpu.memory_space<vmem>> -> memref<128xf32, #tpu.memory_space<vmem>>
    %260 = tpu.memref_slice %arg6[%c0_i32_194] : memref<2x!tpu.dma_semaphore, #tpu.memory_space<semaphore_mem>> -> memref<1x!tpu.dma_semaphore, #tpu.memory_space<semaphore_mem>>
    %261 = tpu.memref_squeeze %260 : memref<1x!tpu.dma_semaphore, #tpu.memory_space<semaphore_mem>> -> memref<!tpu.dma_semaphore, #tpu.memory_space<semaphore_mem>>
    tpu.enqueue_dma source(%257 : memref<128xf32, #tpu.memory_space<any>>) target(%259 : memref<128xf32, #tpu.memory_space<vmem>>) target_semaphore(%261 : memref<!tpu.dma_semaphore, #tpu.memory_space<semaphore_mem>>)
    %c4_i32_197 = arith.constant 4 : i32
    %262 = arith.addi %225, %c4_i32_197 : i32
    %263 = arith.index_cast %262 : i32 to index
    %264 = memref.load %arg1[%263] : memref<64xi32, #tpu.memory_space<smem>>
    %c0_i32_198 = arith.constant 0 : i32
    %c4_i32_199 = arith.constant 4 : i32
    %c3_i32_200 = arith.constant 3 : i32
    %c0_i32_201 = arith.constant 0 : i32
    %c0_i32_202 = arith.constant 0 : i32
    %265 = tpu.memref_slice %arg3[%264, %c0_i32_202] : memref<50x128xf32, #tpu.memory_space<any>> -> memref<1x128xf32, #tpu.memory_space<any>>
    %266 = tpu.memref_squeeze %265 : memref<1x128xf32, #tpu.memory_space<any>> -> memref<128xf32, #tpu.memory_space<any>>
    %c0_i32_203 = arith.constant 0 : i32
    %267 = tpu.memref_slice %arg5[%c0_i32_198, %c4_i32_199, %c3_i32_200, %c0_i32_203] : memref<2x8x8x128xf32, #tpu.memory_space<vmem>> -> memref<1x1x1x128xf32, #tpu.memory_space<vmem>>
    %268 = tpu.memref_squeeze %267 : memref<1x1x1x128xf32, #tpu.memory_space<vmem>> -> memref<128xf32, #tpu.memory_space<vmem>>
    %269 = tpu.memref_slice %arg6[%c0_i32_201] : memref<2x!tpu.dma_semaphore, #tpu.memory_space<semaphore_mem>> -> memref<1x!tpu.dma_semaphore, #tpu.memory_space<semaphore_mem>>
    %270 = tpu.memref_squeeze %269 : memref<1x!tpu.dma_semaphore, #tpu.memory_space<semaphore_mem>> -> memref<!tpu.dma_semaphore, #tpu.memory_space<semaphore_mem>>
    tpu.enqueue_dma source(%266 : memref<128xf32, #tpu.memory_space<any>>) target(%268 : memref<128xf32, #tpu.memory_space<vmem>>) target_semaphore(%270 : memref<!tpu.dma_semaphore, #tpu.memory_space<semaphore_mem>>)
    %c5_i32_204 = arith.constant 5 : i32
    %271 = arith.addi %225, %c5_i32_204 : i32
    %272 = arith.index_cast %271 : i32 to index
    %273 = memref.load %arg1[%272] : memref<64xi32, #tpu.memory_space<smem>>
    %c0_i32_205 = arith.constant 0 : i32
    %c5_i32_206 = arith.constant 5 : i32
    %c3_i32_207 = arith.constant 3 : i32
    %c0_i32_208 = arith.constant 0 : i32
    %c0_i32_209 = arith.constant 0 : i32
    %274 = tpu.memref_slice %arg3[%273, %c0_i32_209] : memref<50x128xf32, #tpu.memory_space<any>> -> memref<1x128xf32, #tpu.memory_space<any>>
    %275 = tpu.memref_squeeze %274 : memref<1x128xf32, #tpu.memory_space<any>> -> memref<128xf32, #tpu.memory_space<any>>
    %c0_i32_210 = arith.constant 0 : i32
    %276 = tpu.memref_slice %arg5[%c0_i32_205, %c5_i32_206, %c3_i32_207, %c0_i32_210] : memref<2x8x8x128xf32, #tpu.memory_space<vmem>> -> memref<1x1x1x128xf32, #tpu.memory_space<vmem>>
    %277 = tpu.memref_squeeze %276 : memref<1x1x1x128xf32, #tpu.memory_space<vmem>> -> memref<128xf32, #tpu.memory_space<vmem>>
    %278 = tpu.memref_slice %arg6[%c0_i32_208] : memref<2x!tpu.dma_semaphore, #tpu.memory_space<semaphore_mem>> -> memref<1x!tpu.dma_semaphore, #tpu.memory_space<semaphore_mem>>
    %279 = tpu.memref_squeeze %278 : memref<1x!tpu.dma_semaphore, #tpu.memory_space<semaphore_mem>> -> memref<!tpu.dma_semaphore, #tpu.memory_space<semaphore_mem>>
    tpu.enqueue_dma source(%275 : memref<128xf32, #tpu.memory_space<any>>) target(%277 : memref<128xf32, #tpu.memory_space<vmem>>) target_semaphore(%279 : memref<!tpu.dma_semaphore, #tpu.memory_space<semaphore_mem>>)
    %c6_i32_211 = arith.constant 6 : i32
    %280 = arith.addi %225, %c6_i32_211 : i32
    %281 = arith.index_cast %280 : i32 to index
    %282 = memref.load %arg1[%281] : memref<64xi32, #tpu.memory_space<smem>>
    %c0_i32_212 = arith.constant 0 : i32
    %c6_i32_213 = arith.constant 6 : i32
    %c3_i32_214 = arith.constant 3 : i32
    %c0_i32_215 = arith.constant 0 : i32
    %c0_i32_216 = arith.constant 0 : i32
    %283 = tpu.memref_slice %arg3[%282, %c0_i32_216] : memref<50x128xf32, #tpu.memory_space<any>> -> memref<1x128xf32, #tpu.memory_space<any>>
    %284 = tpu.memref_squeeze %283 : memref<1x128xf32, #tpu.memory_space<any>> -> memref<128xf32, #tpu.memory_space<any>>
    %c0_i32_217 = arith.constant 0 : i32
    %285 = tpu.memref_slice %arg5[%c0_i32_212, %c6_i32_213, %c3_i32_214, %c0_i32_217] : memref<2x8x8x128xf32, #tpu.memory_space<vmem>> -> memref<1x1x1x128xf32, #tpu.memory_space<vmem>>
    %286 = tpu.memref_squeeze %285 : memref<1x1x1x128xf32, #tpu.memory_space<vmem>> -> memref<128xf32, #tpu.memory_space<vmem>>
    %287 = tpu.memref_slice %arg6[%c0_i32_215] : memref<2x!tpu.dma_semaphore, #tpu.memory_space<semaphore_mem>> -> memref<1x!tpu.dma_semaphore, #tpu.memory_space<semaphore_mem>>
    %288 = tpu.memref_squeeze %287 : memref<1x!tpu.dma_semaphore, #tpu.memory_space<semaphore_mem>> -> memref<!tpu.dma_semaphore, #tpu.memory_space<semaphore_mem>>
    tpu.enqueue_dma source(%284 : memref<128xf32, #tpu.memory_space<any>>) target(%286 : memref<128xf32, #tpu.memory_space<vmem>>) target_semaphore(%288 : memref<!tpu.dma_semaphore, #tpu.memory_space<semaphore_mem>>)
    %c7_i32_218 = arith.constant 7 : i32
    %289 = arith.addi %225, %c7_i32_218 : i32
    %290 = arith.index_cast %289 : i32 to index
    %291 = memref.load %arg1[%290] : memref<64xi32, #tpu.memory_space<smem>>
    %c0_i32_219 = arith.constant 0 : i32
    %c7_i32_220 = arith.constant 7 : i32
    %c3_i32_221 = arith.constant 3 : i32
    %c0_i32_222 = arith.constant 0 : i32
    %c0_i32_223 = arith.constant 0 : i32
    %292 = tpu.memref_slice %arg3[%291, %c0_i32_223] : memref<50x128xf32, #tpu.memory_space<any>> -> memref<1x128xf32, #tpu.memory_space<any>>
    %293 = tpu.memref_squeeze %292 : memref<1x128xf32, #tpu.memory_space<any>> -> memref<128xf32, #tpu.memory_space<any>>
    %c0_i32_224 = arith.constant 0 : i32
    %294 = tpu.memref_slice %arg5[%c0_i32_219, %c7_i32_220, %c3_i32_221, %c0_i32_224] : memref<2x8x8x128xf32, #tpu.memory_space<vmem>> -> memref<1x1x1x128xf32, #tpu.memory_space<vmem>>
    %295 = tpu.memref_squeeze %294 : memref<1x1x1x128xf32, #tpu.memory_space<vmem>> -> memref<128xf32, #tpu.memory_space<vmem>>
    %296 = tpu.memref_slice %arg6[%c0_i32_222] : memref<2x!tpu.dma_semaphore, #tpu.memory_space<semaphore_mem>> -> memref<1x!tpu.dma_semaphore, #tpu.memory_space<semaphore_mem>>
    %297 = tpu.memref_squeeze %296 : memref<1x!tpu.dma_semaphore, #tpu.memory_space<semaphore_mem>> -> memref<!tpu.dma_semaphore, #tpu.memory_space<semaphore_mem>>
    tpu.enqueue_dma source(%293 : memref<128xf32, #tpu.memory_space<any>>) target(%295 : memref<128xf32, #tpu.memory_space<vmem>>) target_semaphore(%297 : memref<!tpu.dma_semaphore, #tpu.memory_space<semaphore_mem>>)
    %c4_i32_225 = arith.constant 4 : i32
    %298 = arith.addi %1, %c4_i32_225 : i32
    %c8_i32_226 = arith.constant 8 : i32
    %299 = arith.muli %298, %c8_i32_226 : i32
    %c0_i32_227 = arith.constant 0 : i32
    %300 = arith.addi %299, %c0_i32_227 : i32
    %301 = arith.index_cast %300 : i32 to index
    %302 = memref.load %arg1[%301] : memref<64xi32, #tpu.memory_space<smem>>
    %c0_i32_228 = arith.constant 0 : i32
    %c0_i32_229 = arith.constant 0 : i32
    %c4_i32_230 = arith.constant 4 : i32
    %c0_i32_231 = arith.constant 0 : i32
    %c0_i32_232 = arith.constant 0 : i32
    %303 = tpu.memref_slice %arg3[%302, %c0_i32_232] : memref<50x128xf32, #tpu.memory_space<any>> -> memref<1x128xf32, #tpu.memory_space<any>>
    %304 = tpu.memref_squeeze %303 : memref<1x128xf32, #tpu.memory_space<any>> -> memref<128xf32, #tpu.memory_space<any>>
    %c0_i32_233 = arith.constant 0 : i32
    %305 = tpu.memref_slice %arg5[%c0_i32_228, %c0_i32_229, %c4_i32_230, %c0_i32_233] : memref<2x8x8x128xf32, #tpu.memory_space<vmem>> -> memref<1x1x1x128xf32, #tpu.memory_space<vmem>>
    %306 = tpu.memref_squeeze %305 : memref<1x1x1x128xf32, #tpu.memory_space<vmem>> -> memref<128xf32, #tpu.memory_space<vmem>>
    %307 = tpu.memref_slice %arg6[%c0_i32_231] : memref<2x!tpu.dma_semaphore, #tpu.memory_space<semaphore_mem>> -> memref<1x!tpu.dma_semaphore, #tpu.memory_space<semaphore_mem>>
    %308 = tpu.memref_squeeze %307 : memref<1x!tpu.dma_semaphore, #tpu.memory_space<semaphore_mem>> -> memref<!tpu.dma_semaphore, #tpu.memory_space<semaphore_mem>>
    tpu.enqueue_dma source(%304 : memref<128xf32, #tpu.memory_space<any>>) target(%306 : memref<128xf32, #tpu.memory_space<vmem>>) target_semaphore(%308 : memref<!tpu.dma_semaphore, #tpu.memory_space<semaphore_mem>>)
    %c1_i32_234 = arith.constant 1 : i32
    %309 = arith.addi %299, %c1_i32_234 : i32
    %310 = arith.index_cast %309 : i32 to index
    %311 = memref.load %arg1[%310] : memref<64xi32, #tpu.memory_space<smem>>
    %c0_i32_235 = arith.constant 0 : i32
    %c1_i32_236 = arith.constant 1 : i32
    %c4_i32_237 = arith.constant 4 : i32
    %c0_i32_238 = arith.constant 0 : i32
    %c0_i32_239 = arith.constant 0 : i32
    %312 = tpu.memref_slice %arg3[%311, %c0_i32_239] : memref<50x128xf32, #tpu.memory_space<any>> -> memref<1x128xf32, #tpu.memory_space<any>>
    %313 = tpu.memref_squeeze %312 : memref<1x128xf32, #tpu.memory_space<any>> -> memref<128xf32, #tpu.memory_space<any>>
    %c0_i32_240 = arith.constant 0 : i32
    %314 = tpu.memref_slice %arg5[%c0_i32_235, %c1_i32_236, %c4_i32_237, %c0_i32_240] : memref<2x8x8x128xf32, #tpu.memory_space<vmem>> -> memref<1x1x1x128xf32, #tpu.memory_space<vmem>>
    %315 = tpu.memref_squeeze %314 : memref<1x1x1x128xf32, #tpu.memory_space<vmem>> -> memref<128xf32, #tpu.memory_space<vmem>>
    %316 = tpu.memref_slice %arg6[%c0_i32_238] : memref<2x!tpu.dma_semaphore, #tpu.memory_space<semaphore_mem>> -> memref<1x!tpu.dma_semaphore, #tpu.memory_space<semaphore_mem>>
    %317 = tpu.memref_squeeze %316 : memref<1x!tpu.dma_semaphore, #tpu.memory_space<semaphore_mem>> -> memref<!tpu.dma_semaphore, #tpu.memory_space<semaphore_mem>>
    tpu.enqueue_dma source(%313 : memref<128xf32, #tpu.memory_space<any>>) target(%315 : memref<128xf32, #tpu.memory_space<vmem>>) target_semaphore(%317 : memref<!tpu.dma_semaphore, #tpu.memory_space<semaphore_mem>>)
    %c2_i32_241 = arith.constant 2 : i32
    %318 = arith.addi %299, %c2_i32_241 : i32
    %319 = arith.index_cast %318 : i32 to index
    %320 = memref.load %arg1[%319] : memref<64xi32, #tpu.memory_space<smem>>
    %c0_i32_242 = arith.constant 0 : i32
    %c2_i32_243 = arith.constant 2 : i32
    %c4_i32_244 = arith.constant 4 : i32
    %c0_i32_245 = arith.constant 0 : i32
    %c0_i32_246 = arith.constant 0 : i32
    %321 = tpu.memref_slice %arg3[%320, %c0_i32_246] : memref<50x128xf32, #tpu.memory_space<any>> -> memref<1x128xf32, #tpu.memory_space<any>>
    %322 = tpu.memref_squeeze %321 : memref<1x128xf32, #tpu.memory_space<any>> -> memref<128xf32, #tpu.memory_space<any>>
    %c0_i32_247 = arith.constant 0 : i32
    %323 = tpu.memref_slice %arg5[%c0_i32_242, %c2_i32_243, %c4_i32_244, %c0_i32_247] : memref<2x8x8x128xf32, #tpu.memory_space<vmem>> -> memref<1x1x1x128xf32, #tpu.memory_space<vmem>>
    %324 = tpu.memref_squeeze %323 : memref<1x1x1x128xf32, #tpu.memory_space<vmem>> -> memref<128xf32, #tpu.memory_space<vmem>>
    %325 = tpu.memref_slice %arg6[%c0_i32_245] : memref<2x!tpu.dma_semaphore, #tpu.memory_space<semaphore_mem>> -> memref<1x!tpu.dma_semaphore, #tpu.memory_space<semaphore_mem>>
    %326 = tpu.memref_squeeze %325 : memref<1x!tpu.dma_semaphore, #tpu.memory_space<semaphore_mem>> -> memref<!tpu.dma_semaphore, #tpu.memory_space<semaphore_mem>>
    tpu.enqueue_dma source(%322 : memref<128xf32, #tpu.memory_space<any>>) target(%324 : memref<128xf32, #tpu.memory_space<vmem>>) target_semaphore(%326 : memref<!tpu.dma_semaphore, #tpu.memory_space<semaphore_mem>>)
    %c3_i32_248 = arith.constant 3 : i32
    %327 = arith.addi %299, %c3_i32_248 : i32
    %328 = arith.index_cast %327 : i32 to index
    %329 = memref.load %arg1[%328] : memref<64xi32, #tpu.memory_space<smem>>
    %c0_i32_249 = arith.constant 0 : i32
    %c3_i32_250 = arith.constant 3 : i32
    %c4_i32_251 = arith.constant 4 : i32
    %c0_i32_252 = arith.constant 0 : i32
    %c0_i32_253 = arith.constant 0 : i32
    %330 = tpu.memref_slice %arg3[%329, %c0_i32_253] : memref<50x128xf32, #tpu.memory_space<any>> -> memref<1x128xf32, #tpu.memory_space<any>>
    %331 = tpu.memref_squeeze %330 : memref<1x128xf32, #tpu.memory_space<any>> -> memref<128xf32, #tpu.memory_space<any>>
    %c0_i32_254 = arith.constant 0 : i32
    %332 = tpu.memref_slice %arg5[%c0_i32_249, %c3_i32_250, %c4_i32_251, %c0_i32_254] : memref<2x8x8x128xf32, #tpu.memory_space<vmem>> -> memref<1x1x1x128xf32, #tpu.memory_space<vmem>>
    %333 = tpu.memref_squeeze %332 : memref<1x1x1x128xf32, #tpu.memory_space<vmem>> -> memref<128xf32, #tpu.memory_space<vmem>>
    %334 = tpu.memref_slice %arg6[%c0_i32_252] : memref<2x!tpu.dma_semaphore, #tpu.memory_space<semaphore_mem>> -> memref<1x!tpu.dma_semaphore, #tpu.memory_space<semaphore_mem>>
    %335 = tpu.memref_squeeze %334 : memref<1x!tpu.dma_semaphore, #tpu.memory_space<semaphore_mem>> -> memref<!tpu.dma_semaphore, #tpu.memory_space<semaphore_mem>>
    tpu.enqueue_dma source(%331 : memref<128xf32, #tpu.memory_space<any>>) target(%333 : memref<128xf32, #tpu.memory_space<vmem>>) target_semaphore(%335 : memref<!tpu.dma_semaphore, #tpu.memory_space<semaphore_mem>>)
    %c4_i32_255 = arith.constant 4 : i32
    %336 = arith.addi %299, %c4_i32_255 : i32
    %337 = arith.index_cast %336 : i32 to index
    %338 = memref.load %arg1[%337] : memref<64xi32, #tpu.memory_space<smem>>
    %c0_i32_256 = arith.constant 0 : i32
    %c4_i32_257 = arith.constant 4 : i32
    %c4_i32_258 = arith.constant 4 : i32
    %c0_i32_259 = arith.constant 0 : i32
    %c0_i32_260 = arith.constant 0 : i32
    %339 = tpu.memref_slice %arg3[%338, %c0_i32_260] : memref<50x128xf32, #tpu.memory_space<any>> -> memref<1x128xf32, #tpu.memory_space<any>>
    %340 = tpu.memref_squeeze %339 : memref<1x128xf32, #tpu.memory_space<any>> -> memref<128xf32, #tpu.memory_space<any>>
    %c0_i32_261 = arith.constant 0 : i32
    %341 = tpu.memref_slice %arg5[%c0_i32_256, %c4_i32_257, %c4_i32_258, %c0_i32_261] : memref<2x8x8x128xf32, #tpu.memory_space<vmem>> -> memref<1x1x1x128xf32, #tpu.memory_space<vmem>>
    %342 = tpu.memref_squeeze %341 : memref<1x1x1x128xf32, #tpu.memory_space<vmem>> -> memref<128xf32, #tpu.memory_space<vmem>>
    %343 = tpu.memref_slice %arg6[%c0_i32_259] : memref<2x!tpu.dma_semaphore, #tpu.memory_space<semaphore_mem>> -> memref<1x!tpu.dma_semaphore, #tpu.memory_space<semaphore_mem>>
    %344 = tpu.memref_squeeze %343 : memref<1x!tpu.dma_semaphore, #tpu.memory_space<semaphore_mem>> -> memref<!tpu.dma_semaphore, #tpu.memory_space<semaphore_mem>>
    tpu.enqueue_dma source(%340 : memref<128xf32, #tpu.memory_space<any>>) target(%342 : memref<128xf32, #tpu.memory_space<vmem>>) target_semaphore(%344 : memref<!tpu.dma_semaphore, #tpu.memory_space<semaphore_mem>>)
    %c5_i32_262 = arith.constant 5 : i32
    %345 = arith.addi %299, %c5_i32_262 : i32
    %346 = arith.index_cast %345 : i32 to index
    %347 = memref.load %arg1[%346] : memref<64xi32, #tpu.memory_space<smem>>
    %c0_i32_263 = arith.constant 0 : i32
    %c5_i32_264 = arith.constant 5 : i32
    %c4_i32_265 = arith.constant 4 : i32
    %c0_i32_266 = arith.constant 0 : i32
    %c0_i32_267 = arith.constant 0 : i32
    %348 = tpu.memref_slice %arg3[%347, %c0_i32_267] : memref<50x128xf32, #tpu.memory_space<any>> -> memref<1x128xf32, #tpu.memory_space<any>>
    %349 = tpu.memref_squeeze %348 : memref<1x128xf32, #tpu.memory_space<any>> -> memref<128xf32, #tpu.memory_space<any>>
    %c0_i32_268 = arith.constant 0 : i32
    %350 = tpu.memref_slice %arg5[%c0_i32_263, %c5_i32_264, %c4_i32_265, %c0_i32_268] : memref<2x8x8x128xf32, #tpu.memory_space<vmem>> -> memref<1x1x1x128xf32, #tpu.memory_space<vmem>>
    %351 = tpu.memref_squeeze %350 : memref<1x1x1x128xf32, #tpu.memory_space<vmem>> -> memref<128xf32, #tpu.memory_space<vmem>>
    %352 = tpu.memref_slice %arg6[%c0_i32_266] : memref<2x!tpu.dma_semaphore, #tpu.memory_space<semaphore_mem>> -> memref<1x!tpu.dma_semaphore, #tpu.memory_space<semaphore_mem>>
    %353 = tpu.memref_squeeze %352 : memref<1x!tpu.dma_semaphore, #tpu.memory_space<semaphore_mem>> -> memref<!tpu.dma_semaphore, #tpu.memory_space<semaphore_mem>>
    tpu.enqueue_dma source(%349 : memref<128xf32, #tpu.memory_space<any>>) target(%351 : memref<128xf32, #tpu.memory_space<vmem>>) target_semaphore(%353 : memref<!tpu.dma_semaphore, #tpu.memory_space<semaphore_mem>>)
    %c6_i32_269 = arith.constant 6 : i32
    %354 = arith.addi %299, %c6_i32_269 : i32
    %355 = arith.index_cast %354 : i32 to index
    %356 = memref.load %arg1[%355] : memref<64xi32, #tpu.memory_space<smem>>
    %c0_i32_270 = arith.constant 0 : i32
    %c6_i32_271 = arith.constant 6 : i32
    %c4_i32_272 = arith.constant 4 : i32
    %c0_i32_273 = arith.constant 0 : i32
    %c0_i32_274 = arith.constant 0 : i32
    %357 = tpu.memref_slice %arg3[%356, %c0_i32_274] : memref<50x128xf32, #tpu.memory_space<any>> -> memref<1x128xf32, #tpu.memory_space<any>>
    %358 = tpu.memref_squeeze %357 : memref<1x128xf32, #tpu.memory_space<any>> -> memref<128xf32, #tpu.memory_space<any>>
    %c0_i32_275 = arith.constant 0 : i32
    %359 = tpu.memref_slice %arg5[%c0_i32_270, %c6_i32_271, %c4_i32_272, %c0_i32_275] : memref<2x8x8x128xf32, #tpu.memory_space<vmem>> -> memref<1x1x1x128xf32, #tpu.memory_space<vmem>>
    %360 = tpu.memref_squeeze %359 : memref<1x1x1x128xf32, #tpu.memory_space<vmem>> -> memref<128xf32, #tpu.memory_space<vmem>>
    %361 = tpu.memref_slice %arg6[%c0_i32_273] : memref<2x!tpu.dma_semaphore, #tpu.memory_space<semaphore_mem>> -> memref<1x!tpu.dma_semaphore, #tpu.memory_space<semaphore_mem>>
    %362 = tpu.memref_squeeze %361 : memref<1x!tpu.dma_semaphore, #tpu.memory_space<semaphore_mem>> -> memref<!tpu.dma_semaphore, #tpu.memory_space<semaphore_mem>>
    tpu.enqueue_dma source(%358 : memref<128xf32, #tpu.memory_space<any>>) target(%360 : memref<128xf32, #tpu.memory_space<vmem>>) target_semaphore(%362 : memref<!tpu.dma_semaphore, #tpu.memory_space<semaphore_mem>>)
    %c7_i32_276 = arith.constant 7 : i32
    %363 = arith.addi %299, %c7_i32_276 : i32
    %364 = arith.index_cast %363 : i32 to index
    %365 = memref.load %arg1[%364] : memref<64xi32, #tpu.memory_space<smem>>
    %c0_i32_277 = arith.constant 0 : i32
    %c7_i32_278 = arith.constant 7 : i32
    %c4_i32_279 = arith.constant 4 : i32
    %c0_i32_280 = arith.constant 0 : i32
    %c0_i32_281 = arith.constant 0 : i32
    %366 = tpu.memref_slice %arg3[%365, %c0_i32_281] : memref<50x128xf32, #tpu.memory_space<any>> -> memref<1x128xf32, #tpu.memory_space<any>>
    %367 = tpu.memref_squeeze %366 : memref<1x128xf32, #tpu.memory_space<any>> -> memref<128xf32, #tpu.memory_space<any>>
    %c0_i32_282 = arith.constant 0 : i32
    %368 = tpu.memref_slice %arg5[%c0_i32_277, %c7_i32_278, %c4_i32_279, %c0_i32_282] : memref<2x8x8x128xf32, #tpu.memory_space<vmem>> -> memref<1x1x1x128xf32, #tpu.memory_space<vmem>>
    %369 = tpu.memref_squeeze %368 : memref<1x1x1x128xf32, #tpu.memory_space<vmem>> -> memref<128xf32, #tpu.memory_space<vmem>>
    %370 = tpu.memref_slice %arg6[%c0_i32_280] : memref<2x!tpu.dma_semaphore, #tpu.memory_space<semaphore_mem>> -> memref<1x!tpu.dma_semaphore, #tpu.memory_space<semaphore_mem>>
    %371 = tpu.memref_squeeze %370 : memref<1x!tpu.dma_semaphore, #tpu.memory_space<semaphore_mem>> -> memref<!tpu.dma_semaphore, #tpu.memory_space<semaphore_mem>>
    tpu.enqueue_dma source(%367 : memref<128xf32, #tpu.memory_space<any>>) target(%369 : memref<128xf32, #tpu.memory_space<vmem>>) target_semaphore(%371 : memref<!tpu.dma_semaphore, #tpu.memory_space<semaphore_mem>>)
    %c5_i32_283 = arith.constant 5 : i32
    %372 = arith.addi %1, %c5_i32_283 : i32
    %c8_i32_284 = arith.constant 8 : i32
    %373 = arith.muli %372, %c8_i32_284 : i32
    %c0_i32_285 = arith.constant 0 : i32
    %374 = arith.addi %373, %c0_i32_285 : i32
    %375 = arith.index_cast %374 : i32 to index
    %376 = memref.load %arg1[%375] : memref<64xi32, #tpu.memory_space<smem>>
    %c0_i32_286 = arith.constant 0 : i32
    %c0_i32_287 = arith.constant 0 : i32
    %c5_i32_288 = arith.constant 5 : i32
    %c0_i32_289 = arith.constant 0 : i32
    %c0_i32_290 = arith.constant 0 : i32
    %377 = tpu.memref_slice %arg3[%376, %c0_i32_290] : memref<50x128xf32, #tpu.memory_space<any>> -> memref<1x128xf32, #tpu.memory_space<any>>
    %378 = tpu.memref_squeeze %377 : memref<1x128xf32, #tpu.memory_space<any>> -> memref<128xf32, #tpu.memory_space<any>>
    %c0_i32_291 = arith.constant 0 : i32
    %379 = tpu.memref_slice %arg5[%c0_i32_286, %c0_i32_287, %c5_i32_288, %c0_i32_291] : memref<2x8x8x128xf32, #tpu.memory_space<vmem>> -> memref<1x1x1x128xf32, #tpu.memory_space<vmem>>
    %380 = tpu.memref_squeeze %379 : memref<1x1x1x128xf32, #tpu.memory_space<vmem>> -> memref<128xf32, #tpu.memory_space<vmem>>
    %381 = tpu.memref_slice %arg6[%c0_i32_289] : memref<2x!tpu.dma_semaphore, #tpu.memory_space<semaphore_mem>> -> memref<1x!tpu.dma_semaphore, #tpu.memory_space<semaphore_mem>>
    %382 = tpu.memref_squeeze %381 : memref<1x!tpu.dma_semaphore, #tpu.memory_space<semaphore_mem>> -> memref<!tpu.dma_semaphore, #tpu.memory_space<semaphore_mem>>
    tpu.enqueue_dma source(%378 : memref<128xf32, #tpu.memory_space<any>>) target(%380 : memref<128xf32, #tpu.memory_space<vmem>>) target_semaphore(%382 : memref<!tpu.dma_semaphore, #tpu.memory_space<semaphore_mem>>)
    %c1_i32_292 = arith.constant 1 : i32
    %383 = arith.addi %373, %c1_i32_292 : i32
    %384 = arith.index_cast %383 : i32 to index
    %385 = memref.load %arg1[%384] : memref<64xi32, #tpu.memory_space<smem>>
    %c0_i32_293 = arith.constant 0 : i32
    %c1_i32_294 = arith.constant 1 : i32
    %c5_i32_295 = arith.constant 5 : i32
    %c0_i32_296 = arith.constant 0 : i32
    %c0_i32_297 = arith.constant 0 : i32
    %386 = tpu.memref_slice %arg3[%385, %c0_i32_297] : memref<50x128xf32, #tpu.memory_space<any>> -> memref<1x128xf32, #tpu.memory_space<any>>
    %387 = tpu.memref_squeeze %386 : memref<1x128xf32, #tpu.memory_space<any>> -> memref<128xf32, #tpu.memory_space<any>>
    %c0_i32_298 = arith.constant 0 : i32
    %388 = tpu.memref_slice %arg5[%c0_i32_293, %c1_i32_294, %c5_i32_295, %c0_i32_298] : memref<2x8x8x128xf32, #tpu.memory_space<vmem>> -> memref<1x1x1x128xf32, #tpu.memory_space<vmem>>
    %389 = tpu.memref_squeeze %388 : memref<1x1x1x128xf32, #tpu.memory_space<vmem>> -> memref<128xf32, #tpu.memory_space<vmem>>
    %390 = tpu.memref_slice %arg6[%c0_i32_296] : memref<2x!tpu.dma_semaphore, #tpu.memory_space<semaphore_mem>> -> memref<1x!tpu.dma_semaphore, #tpu.memory_space<semaphore_mem>>
    %391 = tpu.memref_squeeze %390 : memref<1x!tpu.dma_semaphore, #tpu.memory_space<semaphore_mem>> -> memref<!tpu.dma_semaphore, #tpu.memory_space<semaphore_mem>>
    tpu.enqueue_dma source(%387 : memref<128xf32, #tpu.memory_space<any>>) target(%389 : memref<128xf32, #tpu.memory_space<vmem>>) target_semaphore(%391 : memref<!tpu.dma_semaphore, #tpu.memory_space<semaphore_mem>>)
    %c2_i32_299 = arith.constant 2 : i32
    %392 = arith.addi %373, %c2_i32_299 : i32
    %393 = arith.index_cast %392 : i32 to index
    %394 = memref.load %arg1[%393] : memref<64xi32, #tpu.memory_space<smem>>
    %c0_i32_300 = arith.constant 0 : i32
    %c2_i32_301 = arith.constant 2 : i32
    %c5_i32_302 = arith.constant 5 : i32
    %c0_i32_303 = arith.constant 0 : i32
    %c0_i32_304 = arith.constant 0 : i32
    %395 = tpu.memref_slice %arg3[%394, %c0_i32_304] : memref<50x128xf32, #tpu.memory_space<any>> -> memref<1x128xf32, #tpu.memory_space<any>>
    %396 = tpu.memref_squeeze %395 : memref<1x128xf32, #tpu.memory_space<any>> -> memref<128xf32, #tpu.memory_space<any>>
    %c0_i32_305 = arith.constant 0 : i32
    %397 = tpu.memref_slice %arg5[%c0_i32_300, %c2_i32_301, %c5_i32_302, %c0_i32_305] : memref<2x8x8x128xf32, #tpu.memory_space<vmem>> -> memref<1x1x1x128xf32, #tpu.memory_space<vmem>>
    %398 = tpu.memref_squeeze %397 : memref<1x1x1x128xf32, #tpu.memory_space<vmem>> -> memref<128xf32, #tpu.memory_space<vmem>>
    %399 = tpu.memref_slice %arg6[%c0_i32_303] : memref<2x!tpu.dma_semaphore, #tpu.memory_space<semaphore_mem>> -> memref<1x!tpu.dma_semaphore, #tpu.memory_space<semaphore_mem>>
    %400 = tpu.memref_squeeze %399 : memref<1x!tpu.dma_semaphore, #tpu.memory_space<semaphore_mem>> -> memref<!tpu.dma_semaphore, #tpu.memory_space<semaphore_mem>>
    tpu.enqueue_dma source(%396 : memref<128xf32, #tpu.memory_space<any>>) target(%398 : memref<128xf32, #tpu.memory_space<vmem>>) target_semaphore(%400 : memref<!tpu.dma_semaphore, #tpu.memory_space<semaphore_mem>>)
    %c3_i32_306 = arith.constant 3 : i32
    %401 = arith.addi %373, %c3_i32_306 : i32
    %402 = arith.index_cast %401 : i32 to index
    %403 = memref.load %arg1[%402] : memref<64xi32, #tpu.memory_space<smem>>
    %c0_i32_307 = arith.constant 0 : i32
    %c3_i32_308 = arith.constant 3 : i32
    %c5_i32_309 = arith.constant 5 : i32
    %c0_i32_310 = arith.constant 0 : i32
    %c0_i32_311 = arith.constant 0 : i32
    %404 = tpu.memref_slice %arg3[%403, %c0_i32_311] : memref<50x128xf32, #tpu.memory_space<any>> -> memref<1x128xf32, #tpu.memory_space<any>>
    %405 = tpu.memref_squeeze %404 : memref<1x128xf32, #tpu.memory_space<any>> -> memref<128xf32, #tpu.memory_space<any>>
    %c0_i32_312 = arith.constant 0 : i32
    %406 = tpu.memref_slice %arg5[%c0_i32_307, %c3_i32_308, %c5_i32_309, %c0_i32_312] : memref<2x8x8x128xf32, #tpu.memory_space<vmem>> -> memref<1x1x1x128xf32, #tpu.memory_space<vmem>>
    %407 = tpu.memref_squeeze %406 : memref<1x1x1x128xf32, #tpu.memory_space<vmem>> -> memref<128xf32, #tpu.memory_space<vmem>>
    %408 = tpu.memref_slice %arg6[%c0_i32_310] : memref<2x!tpu.dma_semaphore, #tpu.memory_space<semaphore_mem>> -> memref<1x!tpu.dma_semaphore, #tpu.memory_space<semaphore_mem>>
    %409 = tpu.memref_squeeze %408 : memref<1x!tpu.dma_semaphore, #tpu.memory_space<semaphore_mem>> -> memref<!tpu.dma_semaphore, #tpu.memory_space<semaphore_mem>>
    tpu.enqueue_dma source(%405 : memref<128xf32, #tpu.memory_space<any>>) target(%407 : memref<128xf32, #tpu.memory_space<vmem>>) target_semaphore(%409 : memref<!tpu.dma_semaphore, #tpu.memory_space<semaphore_mem>>)
    %c4_i32_313 = arith.constant 4 : i32
    %410 = arith.addi %373, %c4_i32_313 : i32
    %411 = arith.index_cast %410 : i32 to index
    %412 = memref.load %arg1[%411] : memref<64xi32, #tpu.memory_space<smem>>
    %c0_i32_314 = arith.constant 0 : i32
    %c4_i32_315 = arith.constant 4 : i32
    %c5_i32_316 = arith.constant 5 : i32
    %c0_i32_317 = arith.constant 0 : i32
    %c0_i32_318 = arith.constant 0 : i32
    %413 = tpu.memref_slice %arg3[%412, %c0_i32_318] : memref<50x128xf32, #tpu.memory_space<any>> -> memref<1x128xf32, #tpu.memory_space<any>>
    %414 = tpu.memref_squeeze %413 : memref<1x128xf32, #tpu.memory_space<any>> -> memref<128xf32, #tpu.memory_space<any>>
    %c0_i32_319 = arith.constant 0 : i32
    %415 = tpu.memref_slice %arg5[%c0_i32_314, %c4_i32_315, %c5_i32_316, %c0_i32_319] : memref<2x8x8x128xf32, #tpu.memory_space<vmem>> -> memref<1x1x1x128xf32, #tpu.memory_space<vmem>>
    %416 = tpu.memref_squeeze %415 : memref<1x1x1x128xf32, #tpu.memory_space<vmem>> -> memref<128xf32, #tpu.memory_space<vmem>>
    %417 = tpu.memref_slice %arg6[%c0_i32_317] : memref<2x!tpu.dma_semaphore, #tpu.memory_space<semaphore_mem>> -> memref<1x!tpu.dma_semaphore, #tpu.memory_space<semaphore_mem>>
    %418 = tpu.memref_squeeze %417 : memref<1x!tpu.dma_semaphore, #tpu.memory_space<semaphore_mem>> -> memref<!tpu.dma_semaphore, #tpu.memory_space<semaphore_mem>>
    tpu.enqueue_dma source(%414 : memref<128xf32, #tpu.memory_space<any>>) target(%416 : memref<128xf32, #tpu.memory_space<vmem>>) target_semaphore(%418 : memref<!tpu.dma_semaphore, #tpu.memory_space<semaphore_mem>>)
    %c5_i32_320 = arith.constant 5 : i32
    %419 = arith.addi %373, %c5_i32_320 : i32
    %420 = arith.index_cast %419 : i32 to index
    %421 = memref.load %arg1[%420] : memref<64xi32, #tpu.memory_space<smem>>
    %c0_i32_321 = arith.constant 0 : i32
    %c5_i32_322 = arith.constant 5 : i32
    %c5_i32_323 = arith.constant 5 : i32
    %c0_i32_324 = arith.constant 0 : i32
    %c0_i32_325 = arith.constant 0 : i32
    %422 = tpu.memref_slice %arg3[%421, %c0_i32_325] : memref<50x128xf32, #tpu.memory_space<any>> -> memref<1x128xf32, #tpu.memory_space<any>>
    %423 = tpu.memref_squeeze %422 : memref<1x128xf32, #tpu.memory_space<any>> -> memref<128xf32, #tpu.memory_space<any>>
    %c0_i32_326 = arith.constant 0 : i32
    %424 = tpu.memref_slice %arg5[%c0_i32_321, %c5_i32_322, %c5_i32_323, %c0_i32_326] : memref<2x8x8x128xf32, #tpu.memory_space<vmem>> -> memref<1x1x1x128xf32, #tpu.memory_space<vmem>>
    %425 = tpu.memref_squeeze %424 : memref<1x1x1x128xf32, #tpu.memory_space<vmem>> -> memref<128xf32, #tpu.memory_space<vmem>>
    %426 = tpu.memref_slice %arg6[%c0_i32_324] : memref<2x!tpu.dma_semaphore, #tpu.memory_space<semaphore_mem>> -> memref<1x!tpu.dma_semaphore, #tpu.memory_space<semaphore_mem>>
    %427 = tpu.memref_squeeze %426 : memref<1x!tpu.dma_semaphore, #tpu.memory_space<semaphore_mem>> -> memref<!tpu.dma_semaphore, #tpu.memory_space<semaphore_mem>>
    tpu.enqueue_dma source(%423 : memref<128xf32, #tpu.memory_space<any>>) target(%425 : memref<128xf32, #tpu.memory_space<vmem>>) target_semaphore(%427 : memref<!tpu.dma_semaphore, #tpu.memory_space<semaphore_mem>>)
    %c6_i32_327 = arith.constant 6 : i32
    %428 = arith.addi %373, %c6_i32_327 : i32
    %429 = arith.index_cast %428 : i32 to index
    %430 = memref.load %arg1[%429] : memref<64xi32, #tpu.memory_space<smem>>
    %c0_i32_328 = arith.constant 0 : i32
    %c6_i32_329 = arith.constant 6 : i32
    %c5_i32_330 = arith.constant 5 : i32
    %c0_i32_331 = arith.constant 0 : i32
    %c0_i32_332 = arith.constant 0 : i32
    %431 = tpu.memref_slice %arg3[%430, %c0_i32_332] : memref<50x128xf32, #tpu.memory_space<any>> -> memref<1x128xf32, #tpu.memory_space<any>>
    %432 = tpu.memref_squeeze %431 : memref<1x128xf32, #tpu.memory_space<any>> -> memref<128xf32, #tpu.memory_space<any>>
    %c0_i32_333 = arith.constant 0 : i32
    %433 = tpu.memref_slice %arg5[%c0_i32_328, %c6_i32_329, %c5_i32_330, %c0_i32_333] : memref<2x8x8x128xf32, #tpu.memory_space<vmem>> -> memref<1x1x1x128xf32, #tpu.memory_space<vmem>>
    %434 = tpu.memref_squeeze %433 : memref<1x1x1x128xf32, #tpu.memory_space<vmem>> -> memref<128xf32, #tpu.memory_space<vmem>>
    %435 = tpu.memref_slice %arg6[%c0_i32_331] : memref<2x!tpu.dma_semaphore, #tpu.memory_space<semaphore_mem>> -> memref<1x!tpu.dma_semaphore, #tpu.memory_space<semaphore_mem>>
    %436 = tpu.memref_squeeze %435 : memref<1x!tpu.dma_semaphore, #tpu.memory_space<semaphore_mem>> -> memref<!tpu.dma_semaphore, #tpu.memory_space<semaphore_mem>>
    tpu.enqueue_dma source(%432 : memref<128xf32, #tpu.memory_space<any>>) target(%434 : memref<128xf32, #tpu.memory_space<vmem>>) target_semaphore(%436 : memref<!tpu.dma_semaphore, #tpu.memory_space<semaphore_mem>>)
    %c7_i32_334 = arith.constant 7 : i32
    %437 = arith.addi %373, %c7_i32_334 : i32
    %438 = arith.index_cast %437 : i32 to index
    %439 = memref.load %arg1[%438] : memref<64xi32, #tpu.memory_space<smem>>
    %c0_i32_335 = arith.constant 0 : i32
    %c7_i32_336 = arith.constant 7 : i32
    %c5_i32_337 = arith.constant 5 : i32
    %c0_i32_338 = arith.constant 0 : i32
    %c0_i32_339 = arith.constant 0 : i32
    %440 = tpu.memref_slice %arg3[%439, %c0_i32_339] : memref<50x128xf32, #tpu.memory_space<any>> -> memref<1x128xf32, #tpu.memory_space<any>>
    %441 = tpu.memref_squeeze %440 : memref<1x128xf32, #tpu.memory_space<any>> -> memref<128xf32, #tpu.memory_space<any>>
    %c0_i32_340 = arith.constant 0 : i32
    %442 = tpu.memref_slice %arg5[%c0_i32_335, %c7_i32_336, %c5_i32_337, %c0_i32_340] : memref<2x8x8x128xf32, #tpu.memory_space<vmem>> -> memref<1x1x1x128xf32, #tpu.memory_space<vmem>>
    %443 = tpu.memref_squeeze %442 : memref<1x1x1x128xf32, #tpu.memory_space<vmem>> -> memref<128xf32, #tpu.memory_space<vmem>>
    %444 = tpu.memref_slice %arg6[%c0_i32_338] : memref<2x!tpu.dma_semaphore, #tpu.memory_space<semaphore_mem>> -> memref<1x!tpu.dma_semaphore, #tpu.memory_space<semaphore_mem>>
    %445 = tpu.memref_squeeze %444 : memref<1x!tpu.dma_semaphore, #tpu.memory_space<semaphore_mem>> -> memref<!tpu.dma_semaphore, #tpu.memory_space<semaphore_mem>>
    tpu.enqueue_dma source(%441 : memref<128xf32, #tpu.memory_space<any>>) target(%443 : memref<128xf32, #tpu.memory_space<vmem>>) target_semaphore(%445 : memref<!tpu.dma_semaphore, #tpu.memory_space<semaphore_mem>>)
    %c6_i32_341 = arith.constant 6 : i32
    %446 = arith.addi %1, %c6_i32_341 : i32
    %c8_i32_342 = arith.constant 8 : i32
    %447 = arith.muli %446, %c8_i32_342 : i32
    %c0_i32_343 = arith.constant 0 : i32
    %448 = arith.addi %447, %c0_i32_343 : i32
    %449 = arith.index_cast %448 : i32 to index
    %450 = memref.load %arg1[%449] : memref<64xi32, #tpu.memory_space<smem>>
    %c0_i32_344 = arith.constant 0 : i32
    %c0_i32_345 = arith.constant 0 : i32
    %c6_i32_346 = arith.constant 6 : i32
    %c0_i32_347 = arith.constant 0 : i32
    %c0_i32_348 = arith.constant 0 : i32
    %451 = tpu.memref_slice %arg3[%450, %c0_i32_348] : memref<50x128xf32, #tpu.memory_space<any>> -> memref<1x128xf32, #tpu.memory_space<any>>
    %452 = tpu.memref_squeeze %451 : memref<1x128xf32, #tpu.memory_space<any>> -> memref<128xf32, #tpu.memory_space<any>>
    %c0_i32_349 = arith.constant 0 : i32
    %453 = tpu.memref_slice %arg5[%c0_i32_344, %c0_i32_345, %c6_i32_346, %c0_i32_349] : memref<2x8x8x128xf32, #tpu.memory_space<vmem>> -> memref<1x1x1x128xf32, #tpu.memory_space<vmem>>
    %454 = tpu.memref_squeeze %453 : memref<1x1x1x128xf32, #tpu.memory_space<vmem>> -> memref<128xf32, #tpu.memory_space<vmem>>
    %455 = tpu.memref_slice %arg6[%c0_i32_347] : memref<2x!tpu.dma_semaphore, #tpu.memory_space<semaphore_mem>> -> memref<1x!tpu.dma_semaphore, #tpu.memory_space<semaphore_mem>>
    %456 = tpu.memref_squeeze %455 : memref<1x!tpu.dma_semaphore, #tpu.memory_space<semaphore_mem>> -> memref<!tpu.dma_semaphore, #tpu.memory_space<semaphore_mem>>
    tpu.enqueue_dma source(%452 : memref<128xf32, #tpu.memory_space<any>>) target(%454 : memref<128xf32, #tpu.memory_space<vmem>>) target_semaphore(%456 : memref<!tpu.dma_semaphore, #tpu.memory_space<semaphore_mem>>)
    %c1_i32_350 = arith.constant 1 : i32
    %457 = arith.addi %447, %c1_i32_350 : i32
    %458 = arith.index_cast %457 : i32 to index
    %459 = memref.load %arg1[%458] : memref<64xi32, #tpu.memory_space<smem>>
    %c0_i32_351 = arith.constant 0 : i32
    %c1_i32_352 = arith.constant 1 : i32
    %c6_i32_353 = arith.constant 6 : i32
    %c0_i32_354 = arith.constant 0 : i32
    %c0_i32_355 = arith.constant 0 : i32
    %460 = tpu.memref_slice %arg3[%459, %c0_i32_355] : memref<50x128xf32, #tpu.memory_space<any>> -> memref<1x128xf32, #tpu.memory_space<any>>
    %461 = tpu.memref_squeeze %460 : memref<1x128xf32, #tpu.memory_space<any>> -> memref<128xf32, #tpu.memory_space<any>>
    %c0_i32_356 = arith.constant 0 : i32
    %462 = tpu.memref_slice %arg5[%c0_i32_351, %c1_i32_352, %c6_i32_353, %c0_i32_356] : memref<2x8x8x128xf32, #tpu.memory_space<vmem>> -> memref<1x1x1x128xf32, #tpu.memory_space<vmem>>
    %463 = tpu.memref_squeeze %462 : memref<1x1x1x128xf32, #tpu.memory_space<vmem>> -> memref<128xf32, #tpu.memory_space<vmem>>
    %464 = tpu.memref_slice %arg6[%c0_i32_354] : memref<2x!tpu.dma_semaphore, #tpu.memory_space<semaphore_mem>> -> memref<1x!tpu.dma_semaphore, #tpu.memory_space<semaphore_mem>>
    %465 = tpu.memref_squeeze %464 : memref<1x!tpu.dma_semaphore, #tpu.memory_space<semaphore_mem>> -> memref<!tpu.dma_semaphore, #tpu.memory_space<semaphore_mem>>
    tpu.enqueue_dma source(%461 : memref<128xf32, #tpu.memory_space<any>>) target(%463 : memref<128xf32, #tpu.memory_space<vmem>>) target_semaphore(%465 : memref<!tpu.dma_semaphore, #tpu.memory_space<semaphore_mem>>)
    %c2_i32_357 = arith.constant 2 : i32
    %466 = arith.addi %447, %c2_i32_357 : i32
    %467 = arith.index_cast %466 : i32 to index
    %468 = memref.load %arg1[%467] : memref<64xi32, #tpu.memory_space<smem>>
    %c0_i32_358 = arith.constant 0 : i32
    %c2_i32_359 = arith.constant 2 : i32
    %c6_i32_360 = arith.constant 6 : i32
    %c0_i32_361 = arith.constant 0 : i32
    %c0_i32_362 = arith.constant 0 : i32
    %469 = tpu.memref_slice %arg3[%468, %c0_i32_362] : memref<50x128xf32, #tpu.memory_space<any>> -> memref<1x128xf32, #tpu.memory_space<any>>
    %470 = tpu.memref_squeeze %469 : memref<1x128xf32, #tpu.memory_space<any>> -> memref<128xf32, #tpu.memory_space<any>>
    %c0_i32_363 = arith.constant 0 : i32
    %471 = tpu.memref_slice %arg5[%c0_i32_358, %c2_i32_359, %c6_i32_360, %c0_i32_363] : memref<2x8x8x128xf32, #tpu.memory_space<vmem>> -> memref<1x1x1x128xf32, #tpu.memory_space<vmem>>
    %472 = tpu.memref_squeeze %471 : memref<1x1x1x128xf32, #tpu.memory_space<vmem>> -> memref<128xf32, #tpu.memory_space<vmem>>
    %473 = tpu.memref_slice %arg6[%c0_i32_361] : memref<2x!tpu.dma_semaphore, #tpu.memory_space<semaphore_mem>> -> memref<1x!tpu.dma_semaphore, #tpu.memory_space<semaphore_mem>>
    %474 = tpu.memref_squeeze %473 : memref<1x!tpu.dma_semaphore, #tpu.memory_space<semaphore_mem>> -> memref<!tpu.dma_semaphore, #tpu.memory_space<semaphore_mem>>
    tpu.enqueue_dma source(%470 : memref<128xf32, #tpu.memory_space<any>>) target(%472 : memref<128xf32, #tpu.memory_space<vmem>>) target_semaphore(%474 : memref<!tpu.dma_semaphore, #tpu.memory_space<semaphore_mem>>)
    %c3_i32_364 = arith.constant 3 : i32
    %475 = arith.addi %447, %c3_i32_364 : i32
    %476 = arith.index_cast %475 : i32 to index
    %477 = memref.load %arg1[%476] : memref<64xi32, #tpu.memory_space<smem>>
    %c0_i32_365 = arith.constant 0 : i32
    %c3_i32_366 = arith.constant 3 : i32
    %c6_i32_367 = arith.constant 6 : i32
    %c0_i32_368 = arith.constant 0 : i32
    %c0_i32_369 = arith.constant 0 : i32
    %478 = tpu.memref_slice %arg3[%477, %c0_i32_369] : memref<50x128xf32, #tpu.memory_space<any>> -> memref<1x128xf32, #tpu.memory_space<any>>
    %479 = tpu.memref_squeeze %478 : memref<1x128xf32, #tpu.memory_space<any>> -> memref<128xf32, #tpu.memory_space<any>>
    %c0_i32_370 = arith.constant 0 : i32
    %480 = tpu.memref_slice %arg5[%c0_i32_365, %c3_i32_366, %c6_i32_367, %c0_i32_370] : memref<2x8x8x128xf32, #tpu.memory_space<vmem>> -> memref<1x1x1x128xf32, #tpu.memory_space<vmem>>
    %481 = tpu.memref_squeeze %480 : memref<1x1x1x128xf32, #tpu.memory_space<vmem>> -> memref<128xf32, #tpu.memory_space<vmem>>
    %482 = tpu.memref_slice %arg6[%c0_i32_368] : memref<2x!tpu.dma_semaphore, #tpu.memory_space<semaphore_mem>> -> memref<1x!tpu.dma_semaphore, #tpu.memory_space<semaphore_mem>>
    %483 = tpu.memref_squeeze %482 : memref<1x!tpu.dma_semaphore, #tpu.memory_space<semaphore_mem>> -> memref<!tpu.dma_semaphore, #tpu.memory_space<semaphore_mem>>
    tpu.enqueue_dma source(%479 : memref<128xf32, #tpu.memory_space<any>>) target(%481 : memref<128xf32, #tpu.memory_space<vmem>>) target_semaphore(%483 : memref<!tpu.dma_semaphore, #tpu.memory_space<semaphore_mem>>)
    %c4_i32_371 = arith.constant 4 : i32
    %484 = arith.addi %447, %c4_i32_371 : i32
    %485 = arith.index_cast %484 : i32 to index
    %486 = memref.load %arg1[%485] : memref<64xi32, #tpu.memory_space<smem>>
    %c0_i32_372 = arith.constant 0 : i32
    %c4_i32_373 = arith.constant 4 : i32
    %c6_i32_374 = arith.constant 6 : i32
    %c0_i32_375 = arith.constant 0 : i32
    %c0_i32_376 = arith.constant 0 : i32
    %487 = tpu.memref_slice %arg3[%486, %c0_i32_376] : memref<50x128xf32, #tpu.memory_space<any>> -> memref<1x128xf32, #tpu.memory_space<any>>
    %488 = tpu.memref_squeeze %487 : memref<1x128xf32, #tpu.memory_space<any>> -> memref<128xf32, #tpu.memory_space<any>>
    %c0_i32_377 = arith.constant 0 : i32
    %489 = tpu.memref_slice %arg5[%c0_i32_372, %c4_i32_373, %c6_i32_374, %c0_i32_377] : memref<2x8x8x128xf32, #tpu.memory_space<vmem>> -> memref<1x1x1x128xf32, #tpu.memory_space<vmem>>
    %490 = tpu.memref_squeeze %489 : memref<1x1x1x128xf32, #tpu.memory_space<vmem>> -> memref<128xf32, #tpu.memory_space<vmem>>
    %491 = tpu.memref_slice %arg6[%c0_i32_375] : memref<2x!tpu.dma_semaphore, #tpu.memory_space<semaphore_mem>> -> memref<1x!tpu.dma_semaphore, #tpu.memory_space<semaphore_mem>>
    %492 = tpu.memref_squeeze %491 : memref<1x!tpu.dma_semaphore, #tpu.memory_space<semaphore_mem>> -> memref<!tpu.dma_semaphore, #tpu.memory_space<semaphore_mem>>
    tpu.enqueue_dma source(%488 : memref<128xf32, #tpu.memory_space<any>>) target(%490 : memref<128xf32, #tpu.memory_space<vmem>>) target_semaphore(%492 : memref<!tpu.dma_semaphore, #tpu.memory_space<semaphore_mem>>)
    %c5_i32_378 = arith.constant 5 : i32
    %493 = arith.addi %447, %c5_i32_378 : i32
    %494 = arith.index_cast %493 : i32 to index
    %495 = memref.load %arg1[%494] : memref<64xi32, #tpu.memory_space<smem>>
    %c0_i32_379 = arith.constant 0 : i32
    %c5_i32_380 = arith.constant 5 : i32
    %c6_i32_381 = arith.constant 6 : i32
    %c0_i32_382 = arith.constant 0 : i32
    %c0_i32_383 = arith.constant 0 : i32
    %496 = tpu.memref_slice %arg3[%495, %c0_i32_383] : memref<50x128xf32, #tpu.memory_space<any>> -> memref<1x128xf32, #tpu.memory_space<any>>
    %497 = tpu.memref_squeeze %496 : memref<1x128xf32, #tpu.memory_space<any>> -> memref<128xf32, #tpu.memory_space<any>>
    %c0_i32_384 = arith.constant 0 : i32
    %498 = tpu.memref_slice %arg5[%c0_i32_379, %c5_i32_380, %c6_i32_381, %c0_i32_384] : memref<2x8x8x128xf32, #tpu.memory_space<vmem>> -> memref<1x1x1x128xf32, #tpu.memory_space<vmem>>
    %499 = tpu.memref_squeeze %498 : memref<1x1x1x128xf32, #tpu.memory_space<vmem>> -> memref<128xf32, #tpu.memory_space<vmem>>
    %500 = tpu.memref_slice %arg6[%c0_i32_382] : memref<2x!tpu.dma_semaphore, #tpu.memory_space<semaphore_mem>> -> memref<1x!tpu.dma_semaphore, #tpu.memory_space<semaphore_mem>>
    %501 = tpu.memref_squeeze %500 : memref<1x!tpu.dma_semaphore, #tpu.memory_space<semaphore_mem>> -> memref<!tpu.dma_semaphore, #tpu.memory_space<semaphore_mem>>
    tpu.enqueue_dma source(%497 : memref<128xf32, #tpu.memory_space<any>>) target(%499 : memref<128xf32, #tpu.memory_space<vmem>>) target_semaphore(%501 : memref<!tpu.dma_semaphore, #tpu.memory_space<semaphore_mem>>)
    %c6_i32_385 = arith.constant 6 : i32
    %502 = arith.addi %447, %c6_i32_385 : i32
    %503 = arith.index_cast %502 : i32 to index
    %504 = memref.load %arg1[%503] : memref<64xi32, #tpu.memory_space<smem>>
    %c0_i32_386 = arith.constant 0 : i32
    %c6_i32_387 = arith.constant 6 : i32
    %c6_i32_388 = arith.constant 6 : i32
    %c0_i32_389 = arith.constant 0 : i32
    %c0_i32_390 = arith.constant 0 : i32
    %505 = tpu.memref_slice %arg3[%504, %c0_i32_390] : memref<50x128xf32, #tpu.memory_space<any>> -> memref<1x128xf32, #tpu.memory_space<any>>
    %506 = tpu.memref_squeeze %505 : memref<1x128xf32, #tpu.memory_space<any>> -> memref<128xf32, #tpu.memory_space<any>>
    %c0_i32_391 = arith.constant 0 : i32
    %507 = tpu.memref_slice %arg5[%c0_i32_386, %c6_i32_387, %c6_i32_388, %c0_i32_391] : memref<2x8x8x128xf32, #tpu.memory_space<vmem>> -> memref<1x1x1x128xf32, #tpu.memory_space<vmem>>
    %508 = tpu.memref_squeeze %507 : memref<1x1x1x128xf32, #tpu.memory_space<vmem>> -> memref<128xf32, #tpu.memory_space<vmem>>
    %509 = tpu.memref_slice %arg6[%c0_i32_389] : memref<2x!tpu.dma_semaphore, #tpu.memory_space<semaphore_mem>> -> memref<1x!tpu.dma_semaphore, #tpu.memory_space<semaphore_mem>>
    %510 = tpu.memref_squeeze %509 : memref<1x!tpu.dma_semaphore, #tpu.memory_space<semaphore_mem>> -> memref<!tpu.dma_semaphore, #tpu.memory_space<semaphore_mem>>
    tpu.enqueue_dma source(%506 : memref<128xf32, #tpu.memory_space<any>>) target(%508 : memref<128xf32, #tpu.memory_space<vmem>>) target_semaphore(%510 : memref<!tpu.dma_semaphore, #tpu.memory_space<semaphore_mem>>)
    %c7_i32_392 = arith.constant 7 : i32
    %511 = arith.addi %447, %c7_i32_392 : i32
    %512 = arith.index_cast %511 : i32 to index
    %513 = memref.load %arg1[%512] : memref<64xi32, #tpu.memory_space<smem>>
    %c0_i32_393 = arith.constant 0 : i32
    %c7_i32_394 = arith.constant 7 : i32
    %c6_i32_395 = arith.constant 6 : i32
    %c0_i32_396 = arith.constant 0 : i32
    %c0_i32_397 = arith.constant 0 : i32
    %514 = tpu.memref_slice %arg3[%513, %c0_i32_397] : memref<50x128xf32, #tpu.memory_space<any>> -> memref<1x128xf32, #tpu.memory_space<any>>
    %515 = tpu.memref_squeeze %514 : memref<1x128xf32, #tpu.memory_space<any>> -> memref<128xf32, #tpu.memory_space<any>>
    %c0_i32_398 = arith.constant 0 : i32
    %516 = tpu.memref_slice %arg5[%c0_i32_393, %c7_i32_394, %c6_i32_395, %c0_i32_398] : memref<2x8x8x128xf32, #tpu.memory_space<vmem>> -> memref<1x1x1x128xf32, #tpu.memory_space<vmem>>
    %517 = tpu.memref_squeeze %516 : memref<1x1x1x128xf32, #tpu.memory_space<vmem>> -> memref<128xf32, #tpu.memory_space<vmem>>
    %518 = tpu.memref_slice %arg6[%c0_i32_396] : memref<2x!tpu.dma_semaphore, #tpu.memory_space<semaphore_mem>> -> memref<1x!tpu.dma_semaphore, #tpu.memory_space<semaphore_mem>>
    %519 = tpu.memref_squeeze %518 : memref<1x!tpu.dma_semaphore, #tpu.memory_space<semaphore_mem>> -> memref<!tpu.dma_semaphore, #tpu.memory_space<semaphore_mem>>
    tpu.enqueue_dma source(%515 : memref<128xf32, #tpu.memory_space<any>>) target(%517 : memref<128xf32, #tpu.memory_space<vmem>>) target_semaphore(%519 : memref<!tpu.dma_semaphore, #tpu.memory_space<semaphore_mem>>)
    %c7_i32_399 = arith.constant 7 : i32
    %520 = arith.addi %1, %c7_i32_399 : i32
    %c8_i32_400 = arith.constant 8 : i32
    %521 = arith.muli %520, %c8_i32_400 : i32
    %c0_i32_401 = arith.constant 0 : i32
    %522 = arith.addi %521, %c0_i32_401 : i32
    %523 = arith.index_cast %522 : i32 to index
    %524 = memref.load %arg1[%523] : memref<64xi32, #tpu.memory_space<smem>>
    %c0_i32_402 = arith.constant 0 : i32
    %c0_i32_403 = arith.constant 0 : i32
    %c7_i32_404 = arith.constant 7 : i32
    %c0_i32_405 = arith.constant 0 : i32
    %c0_i32_406 = arith.constant 0 : i32
    %525 = tpu.memref_slice %arg3[%524, %c0_i32_406] : memref<50x128xf32, #tpu.memory_space<any>> -> memref<1x128xf32, #tpu.memory_space<any>>
    %526 = tpu.memref_squeeze %525 : memref<1x128xf32, #tpu.memory_space<any>> -> memref<128xf32, #tpu.memory_space<any>>
    %c0_i32_407 = arith.constant 0 : i32
    %527 = tpu.memref_slice %arg5[%c0_i32_402, %c0_i32_403, %c7_i32_404, %c0_i32_407] : memref<2x8x8x128xf32, #tpu.memory_space<vmem>> -> memref<1x1x1x128xf32, #tpu.memory_space<vmem>>
    %528 = tpu.memref_squeeze %527 : memref<1x1x1x128xf32, #tpu.memory_space<vmem>> -> memref<128xf32, #tpu.memory_space<vmem>>
    %529 = tpu.memref_slice %arg6[%c0_i32_405] : memref<2x!tpu.dma_semaphore, #tpu.memory_space<semaphore_mem>> -> memref<1x!tpu.dma_semaphore, #tpu.memory_space<semaphore_mem>>
    %530 = tpu.memref_squeeze %529 : memref<1x!tpu.dma_semaphore, #tpu.memory_space<semaphore_mem>> -> memref<!tpu.dma_semaphore, #tpu.memory_space<semaphore_mem>>
    tpu.enqueue_dma source(%526 : memref<128xf32, #tpu.memory_space<any>>) target(%528 : memref<128xf32, #tpu.memory_space<vmem>>) target_semaphore(%530 : memref<!tpu.dma_semaphore, #tpu.memory_space<semaphore_mem>>)
    %c1_i32_408 = arith.constant 1 : i32
    %531 = arith.addi %521, %c1_i32_408 : i32
    %532 = arith.index_cast %531 : i32 to index
    %533 = memref.load %arg1[%532] : memref<64xi32, #tpu.memory_space<smem>>
    %c0_i32_409 = arith.constant 0 : i32
    %c1_i32_410 = arith.constant 1 : i32
    %c7_i32_411 = arith.constant 7 : i32
    %c0_i32_412 = arith.constant 0 : i32
    %c0_i32_413 = arith.constant 0 : i32
    %534 = tpu.memref_slice %arg3[%533, %c0_i32_413] : memref<50x128xf32, #tpu.memory_space<any>> -> memref<1x128xf32, #tpu.memory_space<any>>
    %535 = tpu.memref_squeeze %534 : memref<1x128xf32, #tpu.memory_space<any>> -> memref<128xf32, #tpu.memory_space<any>>
    %c0_i32_414 = arith.constant 0 : i32
    %536 = tpu.memref_slice %arg5[%c0_i32_409, %c1_i32_410, %c7_i32_411, %c0_i32_414] : memref<2x8x8x128xf32, #tpu.memory_space<vmem>> -> memref<1x1x1x128xf32, #tpu.memory_space<vmem>>
    %537 = tpu.memref_squeeze %536 : memref<1x1x1x128xf32, #tpu.memory_space<vmem>> -> memref<128xf32, #tpu.memory_space<vmem>>
    %538 = tpu.memref_slice %arg6[%c0_i32_412] : memref<2x!tpu.dma_semaphore, #tpu.memory_space<semaphore_mem>> -> memref<1x!tpu.dma_semaphore, #tpu.memory_space<semaphore_mem>>
    %539 = tpu.memref_squeeze %538 : memref<1x!tpu.dma_semaphore, #tpu.memory_space<semaphore_mem>> -> memref<!tpu.dma_semaphore, #tpu.memory_space<semaphore_mem>>
    tpu.enqueue_dma source(%535 : memref<128xf32, #tpu.memory_space<any>>) target(%537 : memref<128xf32, #tpu.memory_space<vmem>>) target_semaphore(%539 : memref<!tpu.dma_semaphore, #tpu.memory_space<semaphore_mem>>)
    %c2_i32_415 = arith.constant 2 : i32
    %540 = arith.addi %521, %c2_i32_415 : i32
    %541 = arith.index_cast %540 : i32 to index
    %542 = memref.load %arg1[%541] : memref<64xi32, #tpu.memory_space<smem>>
    %c0_i32_416 = arith.constant 0 : i32
    %c2_i32_417 = arith.constant 2 : i32
    %c7_i32_418 = arith.constant 7 : i32
    %c0_i32_419 = arith.constant 0 : i32
    %c0_i32_420 = arith.constant 0 : i32
    %543 = tpu.memref_slice %arg3[%542, %c0_i32_420] : memref<50x128xf32, #tpu.memory_space<any>> -> memref<1x128xf32, #tpu.memory_space<any>>
    %544 = tpu.memref_squeeze %543 : memref<1x128xf32, #tpu.memory_space<any>> -> memref<128xf32, #tpu.memory_space<any>>
    %c0_i32_421 = arith.constant 0 : i32
    %545 = tpu.memref_slice %arg5[%c0_i32_416, %c2_i32_417, %c7_i32_418, %c0_i32_421] : memref<2x8x8x128xf32, #tpu.memory_space<vmem>> -> memref<1x1x1x128xf32, #tpu.memory_space<vmem>>
    %546 = tpu.memref_squeeze %545 : memref<1x1x1x128xf32, #tpu.memory_space<vmem>> -> memref<128xf32, #tpu.memory_space<vmem>>
    %547 = tpu.memref_slice %arg6[%c0_i32_419] : memref<2x!tpu.dma_semaphore, #tpu.memory_space<semaphore_mem>> -> memref<1x!tpu.dma_semaphore, #tpu.memory_space<semaphore_mem>>
    %548 = tpu.memref_squeeze %547 : memref<1x!tpu.dma_semaphore, #tpu.memory_space<semaphore_mem>> -> memref<!tpu.dma_semaphore, #tpu.memory_space<semaphore_mem>>
    tpu.enqueue_dma source(%544 : memref<128xf32, #tpu.memory_space<any>>) target(%546 : memref<128xf32, #tpu.memory_space<vmem>>) target_semaphore(%548 : memref<!tpu.dma_semaphore, #tpu.memory_space<semaphore_mem>>)
    %c3_i32_422 = arith.constant 3 : i32
    %549 = arith.addi %521, %c3_i32_422 : i32
    %550 = arith.index_cast %549 : i32 to index
    %551 = memref.load %arg1[%550] : memref<64xi32, #tpu.memory_space<smem>>
    %c0_i32_423 = arith.constant 0 : i32
    %c3_i32_424 = arith.constant 3 : i32
    %c7_i32_425 = arith.constant 7 : i32
    %c0_i32_426 = arith.constant 0 : i32
    %c0_i32_427 = arith.constant 0 : i32
    %552 = tpu.memref_slice %arg3[%551, %c0_i32_427] : memref<50x128xf32, #tpu.memory_space<any>> -> memref<1x128xf32, #tpu.memory_space<any>>
    %553 = tpu.memref_squeeze %552 : memref<1x128xf32, #tpu.memory_space<any>> -> memref<128xf32, #tpu.memory_space<any>>
    %c0_i32_428 = arith.constant 0 : i32
    %554 = tpu.memref_slice %arg5[%c0_i32_423, %c3_i32_424, %c7_i32_425, %c0_i32_428] : memref<2x8x8x128xf32, #tpu.memory_space<vmem>> -> memref<1x1x1x128xf32, #tpu.memory_space<vmem>>
    %555 = tpu.memref_squeeze %554 : memref<1x1x1x128xf32, #tpu.memory_space<vmem>> -> memref<128xf32, #tpu.memory_space<vmem>>
    %556 = tpu.memref_slice %arg6[%c0_i32_426] : memref<2x!tpu.dma_semaphore, #tpu.memory_space<semaphore_mem>> -> memref<1x!tpu.dma_semaphore, #tpu.memory_space<semaphore_mem>>
    %557 = tpu.memref_squeeze %556 : memref<1x!tpu.dma_semaphore, #tpu.memory_space<semaphore_mem>> -> memref<!tpu.dma_semaphore, #tpu.memory_space<semaphore_mem>>
    tpu.enqueue_dma source(%553 : memref<128xf32, #tpu.memory_space<any>>) target(%555 : memref<128xf32, #tpu.memory_space<vmem>>) target_semaphore(%557 : memref<!tpu.dma_semaphore, #tpu.memory_space<semaphore_mem>>)
    %c4_i32_429 = arith.constant 4 : i32
    %558 = arith.addi %521, %c4_i32_429 : i32
    %559 = arith.index_cast %558 : i32 to index
    %560 = memref.load %arg1[%559] : memref<64xi32, #tpu.memory_space<smem>>
    %c0_i32_430 = arith.constant 0 : i32
    %c4_i32_431 = arith.constant 4 : i32
    %c7_i32_432 = arith.constant 7 : i32
    %c0_i32_433 = arith.constant 0 : i32
    %c0_i32_434 = arith.constant 0 : i32
    %561 = tpu.memref_slice %arg3[%560, %c0_i32_434] : memref<50x128xf32, #tpu.memory_space<any>> -> memref<1x128xf32, #tpu.memory_space<any>>
    %562 = tpu.memref_squeeze %561 : memref<1x128xf32, #tpu.memory_space<any>> -> memref<128xf32, #tpu.memory_space<any>>
    %c0_i32_435 = arith.constant 0 : i32
    %563 = tpu.memref_slice %arg5[%c0_i32_430, %c4_i32_431, %c7_i32_432, %c0_i32_435] : memref<2x8x8x128xf32, #tpu.memory_space<vmem>> -> memref<1x1x1x128xf32, #tpu.memory_space<vmem>>
    %564 = tpu.memref_squeeze %563 : memref<1x1x1x128xf32, #tpu.memory_space<vmem>> -> memref<128xf32, #tpu.memory_space<vmem>>
    %565 = tpu.memref_slice %arg6[%c0_i32_433] : memref<2x!tpu.dma_semaphore, #tpu.memory_space<semaphore_mem>> -> memref<1x!tpu.dma_semaphore, #tpu.memory_space<semaphore_mem>>
    %566 = tpu.memref_squeeze %565 : memref<1x!tpu.dma_semaphore, #tpu.memory_space<semaphore_mem>> -> memref<!tpu.dma_semaphore, #tpu.memory_space<semaphore_mem>>
    tpu.enqueue_dma source(%562 : memref<128xf32, #tpu.memory_space<any>>) target(%564 : memref<128xf32, #tpu.memory_space<vmem>>) target_semaphore(%566 : memref<!tpu.dma_semaphore, #tpu.memory_space<semaphore_mem>>)
    %c5_i32_436 = arith.constant 5 : i32
    %567 = arith.addi %521, %c5_i32_436 : i32
    %568 = arith.index_cast %567 : i32 to index
    %569 = memref.load %arg1[%568] : memref<64xi32, #tpu.memory_space<smem>>
    %c0_i32_437 = arith.constant 0 : i32
    %c5_i32_438 = arith.constant 5 : i32
    %c7_i32_439 = arith.constant 7 : i32
    %c0_i32_440 = arith.constant 0 : i32
    %c0_i32_441 = arith.constant 0 : i32
    %570 = tpu.memref_slice %arg3[%569, %c0_i32_441] : memref<50x128xf32, #tpu.memory_space<any>> -> memref<1x128xf32, #tpu.memory_space<any>>
    %571 = tpu.memref_squeeze %570 : memref<1x128xf32, #tpu.memory_space<any>> -> memref<128xf32, #tpu.memory_space<any>>
    %c0_i32_442 = arith.constant 0 : i32
    %572 = tpu.memref_slice %arg5[%c0_i32_437, %c5_i32_438, %c7_i32_439, %c0_i32_442] : memref<2x8x8x128xf32, #tpu.memory_space<vmem>> -> memref<1x1x1x128xf32, #tpu.memory_space<vmem>>
    %573 = tpu.memref_squeeze %572 : memref<1x1x1x128xf32, #tpu.memory_space<vmem>> -> memref<128xf32, #tpu.memory_space<vmem>>
    %574 = tpu.memref_slice %arg6[%c0_i32_440] : memref<2x!tpu.dma_semaphore, #tpu.memory_space<semaphore_mem>> -> memref<1x!tpu.dma_semaphore, #tpu.memory_space<semaphore_mem>>
    %575 = tpu.memref_squeeze %574 : memref<1x!tpu.dma_semaphore, #tpu.memory_space<semaphore_mem>> -> memref<!tpu.dma_semaphore, #tpu.memory_space<semaphore_mem>>
    tpu.enqueue_dma source(%571 : memref<128xf32, #tpu.memory_space<any>>) target(%573 : memref<128xf32, #tpu.memory_space<vmem>>) target_semaphore(%575 : memref<!tpu.dma_semaphore, #tpu.memory_space<semaphore_mem>>)
    %c6_i32_443 = arith.constant 6 : i32
    %576 = arith.addi %521, %c6_i32_443 : i32
    %577 = arith.index_cast %576 : i32 to index
    %578 = memref.load %arg1[%577] : memref<64xi32, #tpu.memory_space<smem>>
    %c0_i32_444 = arith.constant 0 : i32
    %c6_i32_445 = arith.constant 6 : i32
    %c7_i32_446 = arith.constant 7 : i32
    %c0_i32_447 = arith.constant 0 : i32
    %c0_i32_448 = arith.constant 0 : i32
    %579 = tpu.memref_slice %arg3[%578, %c0_i32_448] : memref<50x128xf32, #tpu.memory_space<any>> -> memref<1x128xf32, #tpu.memory_space<any>>
    %580 = tpu.memref_squeeze %579 : memref<1x128xf32, #tpu.memory_space<any>> -> memref<128xf32, #tpu.memory_space<any>>
    %c0_i32_449 = arith.constant 0 : i32
    %581 = tpu.memref_slice %arg5[%c0_i32_444, %c6_i32_445, %c7_i32_446, %c0_i32_449] : memref<2x8x8x128xf32, #tpu.memory_space<vmem>> -> memref<1x1x1x128xf32, #tpu.memory_space<vmem>>
    %582 = tpu.memref_squeeze %581 : memref<1x1x1x128xf32, #tpu.memory_space<vmem>> -> memref<128xf32, #tpu.memory_space<vmem>>
    %583 = tpu.memref_slice %arg6[%c0_i32_447] : memref<2x!tpu.dma_semaphore, #tpu.memory_space<semaphore_mem>> -> memref<1x!tpu.dma_semaphore, #tpu.memory_space<semaphore_mem>>
    %584 = tpu.memref_squeeze %583 : memref<1x!tpu.dma_semaphore, #tpu.memory_space<semaphore_mem>> -> memref<!tpu.dma_semaphore, #tpu.memory_space<semaphore_mem>>
    tpu.enqueue_dma source(%580 : memref<128xf32, #tpu.memory_space<any>>) target(%582 : memref<128xf32, #tpu.memory_space<vmem>>) target_semaphore(%584 : memref<!tpu.dma_semaphore, #tpu.memory_space<semaphore_mem>>)
    %c7_i32_450 = arith.constant 7 : i32
    %585 = arith.addi %521, %c7_i32_450 : i32
    %586 = arith.index_cast %585 : i32 to index
    %587 = memref.load %arg1[%586] : memref<64xi32, #tpu.memory_space<smem>>
    %c0_i32_451 = arith.constant 0 : i32
    %c7_i32_452 = arith.constant 7 : i32
    %c7_i32_453 = arith.constant 7 : i32
    %c0_i32_454 = arith.constant 0 : i32
    %c0_i32_455 = arith.constant 0 : i32
    %588 = tpu.memref_slice %arg3[%587, %c0_i32_455] : memref<50x128xf32, #tpu.memory_space<any>> -> memref<1x128xf32, #tpu.memory_space<any>>
    %589 = tpu.memref_squeeze %588 : memref<1x128xf32, #tpu.memory_space<any>> -> memref<128xf32, #tpu.memory_space<any>>
    %c0_i32_456 = arith.constant 0 : i32
    %590 = tpu.memref_slice %arg5[%c0_i32_451, %c7_i32_452, %c7_i32_453, %c0_i32_456] : memref<2x8x8x128xf32, #tpu.memory_space<vmem>> -> memref<1x1x1x128xf32, #tpu.memory_space<vmem>>
    %591 = tpu.memref_squeeze %590 : memref<1x1x1x128xf32, #tpu.memory_space<vmem>> -> memref<128xf32, #tpu.memory_space<vmem>>
    %592 = tpu.memref_slice %arg6[%c0_i32_454] : memref<2x!tpu.dma_semaphore, #tpu.memory_space<semaphore_mem>> -> memref<1x!tpu.dma_semaphore, #tpu.memory_space<semaphore_mem>>
    %593 = tpu.memref_squeeze %592 : memref<1x!tpu.dma_semaphore, #tpu.memory_space<semaphore_mem>> -> memref<!tpu.dma_semaphore, #tpu.memory_space<semaphore_mem>>
    tpu.enqueue_dma source(%589 : memref<128xf32, #tpu.memory_space<any>>) target(%591 : memref<128xf32, #tpu.memory_space<vmem>>) target_semaphore(%593 : memref<!tpu.dma_semaphore, #tpu.memory_space<semaphore_mem>>)
    %c0_i32_457 = arith.constant 0 : i32
    %c1_i32_458 = arith.constant 1 : i32
    %594 = arith.muli %c0_i32_457, %c1_i32_458 : i32
    %c0_i32_459 = arith.constant 0 : i32
    %595 = arith.addi %c0_i32_459, %594 : i32
    %c2_i32_460 = arith.constant 2 : i32
    %c0_i32_461 = arith.constant 0 : i32
    %596 = arith.cmpi eq, %c2_i32_460, %c0_i32_461 : i32
    %c1_i32_462 = arith.constant 1 : i32
    %597 = arith.select %596, %c1_i32_462, %c2_i32_460 : i32
    %598 = arith.remsi %595, %597 : i32
    %c0_i32_463 = arith.constant 0 : i32
    %599 = arith.cmpi ne, %598, %c0_i32_463 : i32
    %c0_i32_464 = arith.constant 0 : i32
    %600 = arith.cmpi slt, %598, %c0_i32_464 : i32
    %c0_i32_465 = arith.constant 0 : i32
    %601 = arith.cmpi slt, %597, %c0_i32_465 : i32
    %602 = arith.xori %600, %601 : i1
    %603 = arith.andi %602, %599 : i1
    %604 = arith.addi %598, %597 : i32
    %605 = arith.select %603, %604, %598 : i32
    %c1_i32_466 = arith.constant 1 : i32
    %606 = arith.addi %595, %c1_i32_466 : i32
    %c1_i32_467 = arith.constant 1 : i32
    %607 = arith.cmpi slt, %606, %c1_i32_467 : i32
    %608 = arith.extui %607 : i1 to i32
    %c0_i32_468 = arith.constant 0 : i32
    %609 = arith.cmpi ne, %608, %c0_i32_468 : i32
    scf.if %609 {
      %c1_i32_795 = arith.constant 1 : i32
      %1007 = arith.addi %595, %c1_i32_795 : i32
      %c1_i32_796 = arith.constant 1 : i32
      %1008 = arith.subi %c1_i32_796, %605 : i32
      %c8_i32_797 = arith.constant 8 : i32
      %1009 = arith.muli %arg0, %c8_i32_797 : i32
      %c8_i32_798 = arith.constant 8 : i32
      %1010 = arith.muli %1007, %c8_i32_798 : i32
      %1011 = arith.addi %1009, %1010 : i32
      %c0_i32_799 = arith.constant 0 : i32
      %1012 = arith.addi %1011, %c0_i32_799 : i32
      %c8_i32_800 = arith.constant 8 : i32
      %1013 = arith.muli %1012, %c8_i32_800 : i32
      %c0_i32_801 = arith.constant 0 : i32
      %1014 = arith.addi %1013, %c0_i32_801 : i32
      %1015 = arith.index_cast %1014 : i32 to index
      %1016 = memref.load %arg1[%1015] : memref<64xi32, #tpu.memory_space<smem>>
      %c0_i32_802 = arith.constant 0 : i32
      %c0_i32_803 = arith.constant 0 : i32
      %c0_i32_804 = arith.constant 0 : i32
      %1017 = tpu.memref_slice %arg3[%1016, %c0_i32_804] : memref<50x128xf32, #tpu.memory_space<any>> -> memref<1x128xf32, #tpu.memory_space<any>>
      %1018 = tpu.memref_squeeze %1017 : memref<1x128xf32, #tpu.memory_space<any>> -> memref<128xf32, #tpu.memory_space<any>>
      %c0_i32_805 = arith.constant 0 : i32
      %1019 = tpu.memref_slice %arg5[%1008, %c0_i32_802, %c0_i32_803, %c0_i32_805] : memref<2x8x8x128xf32, #tpu.memory_space<vmem>> -> memref<1x1x1x128xf32, #tpu.memory_space<vmem>>
      %1020 = tpu.memref_squeeze %1019 : memref<1x1x1x128xf32, #tpu.memory_space<vmem>> -> memref<128xf32, #tpu.memory_space<vmem>>
      %1021 = tpu.memref_slice %arg6[%1008] : memref<2x!tpu.dma_semaphore, #tpu.memory_space<semaphore_mem>> -> memref<1x!tpu.dma_semaphore, #tpu.memory_space<semaphore_mem>>
      %1022 = tpu.memref_squeeze %1021 : memref<1x!tpu.dma_semaphore, #tpu.memory_space<semaphore_mem>> -> memref<!tpu.dma_semaphore, #tpu.memory_space<semaphore_mem>>
      tpu.enqueue_dma source(%1018 : memref<128xf32, #tpu.memory_space<any>>) target(%1020 : memref<128xf32, #tpu.memory_space<vmem>>) target_semaphore(%1022 : memref<!tpu.dma_semaphore, #tpu.memory_space<semaphore_mem>>)
      %c1_i32_806 = arith.constant 1 : i32
      %1023 = arith.addi %1013, %c1_i32_806 : i32
      %1024 = arith.index_cast %1023 : i32 to index
      %1025 = memref.load %arg1[%1024] : memref<64xi32, #tpu.memory_space<smem>>
      %c1_i32_807 = arith.constant 1 : i32
      %c0_i32_808 = arith.constant 0 : i32
      %c0_i32_809 = arith.constant 0 : i32
      %1026 = tpu.memref_slice %arg3[%1025, %c0_i32_809] : memref<50x128xf32, #tpu.memory_space<any>> -> memref<1x128xf32, #tpu.memory_space<any>>
      %1027 = tpu.memref_squeeze %1026 : memref<1x128xf32, #tpu.memory_space<any>> -> memref<128xf32, #tpu.memory_space<any>>
      %c0_i32_810 = arith.constant 0 : i32
      %1028 = tpu.memref_slice %arg5[%1008, %c1_i32_807, %c0_i32_808, %c0_i32_810] : memref<2x8x8x128xf32, #tpu.memory_space<vmem>> -> memref<1x1x1x128xf32, #tpu.memory_space<vmem>>
      %1029 = tpu.memref_squeeze %1028 : memref<1x1x1x128xf32, #tpu.memory_space<vmem>> -> memref<128xf32, #tpu.memory_space<vmem>>
      %1030 = tpu.memref_slice %arg6[%1008] : memref<2x!tpu.dma_semaphore, #tpu.memory_space<semaphore_mem>> -> memref<1x!tpu.dma_semaphore, #tpu.memory_space<semaphore_mem>>
      %1031 = tpu.memref_squeeze %1030 : memref<1x!tpu.dma_semaphore, #tpu.memory_space<semaphore_mem>> -> memref<!tpu.dma_semaphore, #tpu.memory_space<semaphore_mem>>
      tpu.enqueue_dma source(%1027 : memref<128xf32, #tpu.memory_space<any>>) target(%1029 : memref<128xf32, #tpu.memory_space<vmem>>) target_semaphore(%1031 : memref<!tpu.dma_semaphore, #tpu.memory_space<semaphore_mem>>)
      %c2_i32_811 = arith.constant 2 : i32
      %1032 = arith.addi %1013, %c2_i32_811 : i32
      %1033 = arith.index_cast %1032 : i32 to index
      %1034 = memref.load %arg1[%1033] : memref<64xi32, #tpu.memory_space<smem>>
      %c2_i32_812 = arith.constant 2 : i32
      %c0_i32_813 = arith.constant 0 : i32
      %c0_i32_814 = arith.constant 0 : i32
      %1035 = tpu.memref_slice %arg3[%1034, %c0_i32_814] : memref<50x128xf32, #tpu.memory_space<any>> -> memref<1x128xf32, #tpu.memory_space<any>>
      %1036 = tpu.memref_squeeze %1035 : memref<1x128xf32, #tpu.memory_space<any>> -> memref<128xf32, #tpu.memory_space<any>>
      %c0_i32_815 = arith.constant 0 : i32
      %1037 = tpu.memref_slice %arg5[%1008, %c2_i32_812, %c0_i32_813, %c0_i32_815] : memref<2x8x8x128xf32, #tpu.memory_space<vmem>> -> memref<1x1x1x128xf32, #tpu.memory_space<vmem>>
      %1038 = tpu.memref_squeeze %1037 : memref<1x1x1x128xf32, #tpu.memory_space<vmem>> -> memref<128xf32, #tpu.memory_space<vmem>>
      %1039 = tpu.memref_slice %arg6[%1008] : memref<2x!tpu.dma_semaphore, #tpu.memory_space<semaphore_mem>> -> memref<1x!tpu.dma_semaphore, #tpu.memory_space<semaphore_mem>>
      %1040 = tpu.memref_squeeze %1039 : memref<1x!tpu.dma_semaphore, #tpu.memory_space<semaphore_mem>> -> memref<!tpu.dma_semaphore, #tpu.memory_space<semaphore_mem>>
      tpu.enqueue_dma source(%1036 : memref<128xf32, #tpu.memory_space<any>>) target(%1038 : memref<128xf32, #tpu.memory_space<vmem>>) target_semaphore(%1040 : memref<!tpu.dma_semaphore, #tpu.memory_space<semaphore_mem>>)
      %c3_i32_816 = arith.constant 3 : i32
      %1041 = arith.addi %1013, %c3_i32_816 : i32
      %1042 = arith.index_cast %1041 : i32 to index
      %1043 = memref.load %arg1[%1042] : memref<64xi32, #tpu.memory_space<smem>>
      %c3_i32_817 = arith.constant 3 : i32
      %c0_i32_818 = arith.constant 0 : i32
      %c0_i32_819 = arith.constant 0 : i32
      %1044 = tpu.memref_slice %arg3[%1043, %c0_i32_819] : memref<50x128xf32, #tpu.memory_space<any>> -> memref<1x128xf32, #tpu.memory_space<any>>
      %1045 = tpu.memref_squeeze %1044 : memref<1x128xf32, #tpu.memory_space<any>> -> memref<128xf32, #tpu.memory_space<any>>
      %c0_i32_820 = arith.constant 0 : i32
      %1046 = tpu.memref_slice %arg5[%1008, %c3_i32_817, %c0_i32_818, %c0_i32_820] : memref<2x8x8x128xf32, #tpu.memory_space<vmem>> -> memref<1x1x1x128xf32, #tpu.memory_space<vmem>>
      %1047 = tpu.memref_squeeze %1046 : memref<1x1x1x128xf32, #tpu.memory_space<vmem>> -> memref<128xf32, #tpu.memory_space<vmem>>
      %1048 = tpu.memref_slice %arg6[%1008] : memref<2x!tpu.dma_semaphore, #tpu.memory_space<semaphore_mem>> -> memref<1x!tpu.dma_semaphore, #tpu.memory_space<semaphore_mem>>
      %1049 = tpu.memref_squeeze %1048 : memref<1x!tpu.dma_semaphore, #tpu.memory_space<semaphore_mem>> -> memref<!tpu.dma_semaphore, #tpu.memory_space<semaphore_mem>>
      tpu.enqueue_dma source(%1045 : memref<128xf32, #tpu.memory_space<any>>) target(%1047 : memref<128xf32, #tpu.memory_space<vmem>>) target_semaphore(%1049 : memref<!tpu.dma_semaphore, #tpu.memory_space<semaphore_mem>>)
      %c4_i32_821 = arith.constant 4 : i32
      %1050 = arith.addi %1013, %c4_i32_821 : i32
      %1051 = arith.index_cast %1050 : i32 to index
      %1052 = memref.load %arg1[%1051] : memref<64xi32, #tpu.memory_space<smem>>
      %c4_i32_822 = arith.constant 4 : i32
      %c0_i32_823 = arith.constant 0 : i32
      %c0_i32_824 = arith.constant 0 : i32
      %1053 = tpu.memref_slice %arg3[%1052, %c0_i32_824] : memref<50x128xf32, #tpu.memory_space<any>> -> memref<1x128xf32, #tpu.memory_space<any>>
      %1054 = tpu.memref_squeeze %1053 : memref<1x128xf32, #tpu.memory_space<any>> -> memref<128xf32, #tpu.memory_space<any>>
      %c0_i32_825 = arith.constant 0 : i32
      %1055 = tpu.memref_slice %arg5[%1008, %c4_i32_822, %c0_i32_823, %c0_i32_825] : memref<2x8x8x128xf32, #tpu.memory_space<vmem>> -> memref<1x1x1x128xf32, #tpu.memory_space<vmem>>
      %1056 = tpu.memref_squeeze %1055 : memref<1x1x1x128xf32, #tpu.memory_space<vmem>> -> memref<128xf32, #tpu.memory_space<vmem>>
      %1057 = tpu.memref_slice %arg6[%1008] : memref<2x!tpu.dma_semaphore, #tpu.memory_space<semaphore_mem>> -> memref<1x!tpu.dma_semaphore, #tpu.memory_space<semaphore_mem>>
      %1058 = tpu.memref_squeeze %1057 : memref<1x!tpu.dma_semaphore, #tpu.memory_space<semaphore_mem>> -> memref<!tpu.dma_semaphore, #tpu.memory_space<semaphore_mem>>
      tpu.enqueue_dma source(%1054 : memref<128xf32, #tpu.memory_space<any>>) target(%1056 : memref<128xf32, #tpu.memory_space<vmem>>) target_semaphore(%1058 : memref<!tpu.dma_semaphore, #tpu.memory_space<semaphore_mem>>)
      %c5_i32_826 = arith.constant 5 : i32
      %1059 = arith.addi %1013, %c5_i32_826 : i32
      %1060 = arith.index_cast %1059 : i32 to index
      %1061 = memref.load %arg1[%1060] : memref<64xi32, #tpu.memory_space<smem>>
      %c5_i32_827 = arith.constant 5 : i32
      %c0_i32_828 = arith.constant 0 : i32
      %c0_i32_829 = arith.constant 0 : i32
      %1062 = tpu.memref_slice %arg3[%1061, %c0_i32_829] : memref<50x128xf32, #tpu.memory_space<any>> -> memref<1x128xf32, #tpu.memory_space<any>>
      %1063 = tpu.memref_squeeze %1062 : memref<1x128xf32, #tpu.memory_space<any>> -> memref<128xf32, #tpu.memory_space<any>>
      %c0_i32_830 = arith.constant 0 : i32
      %1064 = tpu.memref_slice %arg5[%1008, %c5_i32_827, %c0_i32_828, %c0_i32_830] : memref<2x8x8x128xf32, #tpu.memory_space<vmem>> -> memref<1x1x1x128xf32, #tpu.memory_space<vmem>>
      %1065 = tpu.memref_squeeze %1064 : memref<1x1x1x128xf32, #tpu.memory_space<vmem>> -> memref<128xf32, #tpu.memory_space<vmem>>
      %1066 = tpu.memref_slice %arg6[%1008] : memref<2x!tpu.dma_semaphore, #tpu.memory_space<semaphore_mem>> -> memref<1x!tpu.dma_semaphore, #tpu.memory_space<semaphore_mem>>
      %1067 = tpu.memref_squeeze %1066 : memref<1x!tpu.dma_semaphore, #tpu.memory_space<semaphore_mem>> -> memref<!tpu.dma_semaphore, #tpu.memory_space<semaphore_mem>>
      tpu.enqueue_dma source(%1063 : memref<128xf32, #tpu.memory_space<any>>) target(%1065 : memref<128xf32, #tpu.memory_space<vmem>>) target_semaphore(%1067 : memref<!tpu.dma_semaphore, #tpu.memory_space<semaphore_mem>>)
      %c6_i32_831 = arith.constant 6 : i32
      %1068 = arith.addi %1013, %c6_i32_831 : i32
      %1069 = arith.index_cast %1068 : i32 to index
      %1070 = memref.load %arg1[%1069] : memref<64xi32, #tpu.memory_space<smem>>
      %c6_i32_832 = arith.constant 6 : i32
      %c0_i32_833 = arith.constant 0 : i32
      %c0_i32_834 = arith.constant 0 : i32
      %1071 = tpu.memref_slice %arg3[%1070, %c0_i32_834] : memref<50x128xf32, #tpu.memory_space<any>> -> memref<1x128xf32, #tpu.memory_space<any>>
      %1072 = tpu.memref_squeeze %1071 : memref<1x128xf32, #tpu.memory_space<any>> -> memref<128xf32, #tpu.memory_space<any>>
      %c0_i32_835 = arith.constant 0 : i32
      %1073 = tpu.memref_slice %arg5[%1008, %c6_i32_832, %c0_i32_833, %c0_i32_835] : memref<2x8x8x128xf32, #tpu.memory_space<vmem>> -> memref<1x1x1x128xf32, #tpu.memory_space<vmem>>
      %1074 = tpu.memref_squeeze %1073 : memref<1x1x1x128xf32, #tpu.memory_space<vmem>> -> memref<128xf32, #tpu.memory_space<vmem>>
      %1075 = tpu.memref_slice %arg6[%1008] : memref<2x!tpu.dma_semaphore, #tpu.memory_space<semaphore_mem>> -> memref<1x!tpu.dma_semaphore, #tpu.memory_space<semaphore_mem>>
      %1076 = tpu.memref_squeeze %1075 : memref<1x!tpu.dma_semaphore, #tpu.memory_space<semaphore_mem>> -> memref<!tpu.dma_semaphore, #tpu.memory_space<semaphore_mem>>
      tpu.enqueue_dma source(%1072 : memref<128xf32, #tpu.memory_space<any>>) target(%1074 : memref<128xf32, #tpu.memory_space<vmem>>) target_semaphore(%1076 : memref<!tpu.dma_semaphore, #tpu.memory_space<semaphore_mem>>)
      %c7_i32_836 = arith.constant 7 : i32
      %1077 = arith.addi %1013, %c7_i32_836 : i32
      %1078 = arith.index_cast %1077 : i32 to index
      %1079 = memref.load %arg1[%1078] : memref<64xi32, #tpu.memory_space<smem>>
      %c7_i32_837 = arith.constant 7 : i32
      %c0_i32_838 = arith.constant 0 : i32
      %c0_i32_839 = arith.constant 0 : i32
      %1080 = tpu.memref_slice %arg3[%1079, %c0_i32_839] : memref<50x128xf32, #tpu.memory_space<any>> -> memref<1x128xf32, #tpu.memory_space<any>>
      %1081 = tpu.memref_squeeze %1080 : memref<1x128xf32, #tpu.memory_space<any>> -> memref<128xf32, #tpu.memory_space<any>>
      %c0_i32_840 = arith.constant 0 : i32
      %1082 = tpu.memref_slice %arg5[%1008, %c7_i32_837, %c0_i32_838, %c0_i32_840] : memref<2x8x8x128xf32, #tpu.memory_space<vmem>> -> memref<1x1x1x128xf32, #tpu.memory_space<vmem>>
      %1083 = tpu.memref_squeeze %1082 : memref<1x1x1x128xf32, #tpu.memory_space<vmem>> -> memref<128xf32, #tpu.memory_space<vmem>>
      %1084 = tpu.memref_slice %arg6[%1008] : memref<2x!tpu.dma_semaphore, #tpu.memory_space<semaphore_mem>> -> memref<1x!tpu.dma_semaphore, #tpu.memory_space<semaphore_mem>>
      %1085 = tpu.memref_squeeze %1084 : memref<1x!tpu.dma_semaphore, #tpu.memory_space<semaphore_mem>> -> memref<!tpu.dma_semaphore, #tpu.memory_space<semaphore_mem>>
      tpu.enqueue_dma source(%1081 : memref<128xf32, #tpu.memory_space<any>>) target(%1083 : memref<128xf32, #tpu.memory_space<vmem>>) target_semaphore(%1085 : memref<!tpu.dma_semaphore, #tpu.memory_space<semaphore_mem>>)
      %c1_i32_841 = arith.constant 1 : i32
      %1086 = arith.addi %1011, %c1_i32_841 : i32
      %c8_i32_842 = arith.constant 8 : i32
      %1087 = arith.muli %1086, %c8_i32_842 : i32
      %c0_i32_843 = arith.constant 0 : i32
      %1088 = arith.addi %1087, %c0_i32_843 : i32
      %1089 = arith.index_cast %1088 : i32 to index
      %1090 = memref.load %arg1[%1089] : memref<64xi32, #tpu.memory_space<smem>>
      %c0_i32_844 = arith.constant 0 : i32
      %c1_i32_845 = arith.constant 1 : i32
      %c0_i32_846 = arith.constant 0 : i32
      %1091 = tpu.memref_slice %arg3[%1090, %c0_i32_846] : memref<50x128xf32, #tpu.memory_space<any>> -> memref<1x128xf32, #tpu.memory_space<any>>
      %1092 = tpu.memref_squeeze %1091 : memref<1x128xf32, #tpu.memory_space<any>> -> memref<128xf32, #tpu.memory_space<any>>
      %c0_i32_847 = arith.constant 0 : i32
      %1093 = tpu.memref_slice %arg5[%1008, %c0_i32_844, %c1_i32_845, %c0_i32_847] : memref<2x8x8x128xf32, #tpu.memory_space<vmem>> -> memref<1x1x1x128xf32, #tpu.memory_space<vmem>>
      %1094 = tpu.memref_squeeze %1093 : memref<1x1x1x128xf32, #tpu.memory_space<vmem>> -> memref<128xf32, #tpu.memory_space<vmem>>
      %1095 = tpu.memref_slice %arg6[%1008] : memref<2x!tpu.dma_semaphore, #tpu.memory_space<semaphore_mem>> -> memref<1x!tpu.dma_semaphore, #tpu.memory_space<semaphore_mem>>
      %1096 = tpu.memref_squeeze %1095 : memref<1x!tpu.dma_semaphore, #tpu.memory_space<semaphore_mem>> -> memref<!tpu.dma_semaphore, #tpu.memory_space<semaphore_mem>>
      tpu.enqueue_dma source(%1092 : memref<128xf32, #tpu.memory_space<any>>) target(%1094 : memref<128xf32, #tpu.memory_space<vmem>>) target_semaphore(%1096 : memref<!tpu.dma_semaphore, #tpu.memory_space<semaphore_mem>>)
      %c1_i32_848 = arith.constant 1 : i32
      %1097 = arith.addi %1087, %c1_i32_848 : i32
      %1098 = arith.index_cast %1097 : i32 to index
      %1099 = memref.load %arg1[%1098] : memref<64xi32, #tpu.memory_space<smem>>
      %c1_i32_849 = arith.constant 1 : i32
      %c1_i32_850 = arith.constant 1 : i32
      %c0_i32_851 = arith.constant 0 : i32
      %1100 = tpu.memref_slice %arg3[%1099, %c0_i32_851] : memref<50x128xf32, #tpu.memory_space<any>> -> memref<1x128xf32, #tpu.memory_space<any>>
      %1101 = tpu.memref_squeeze %1100 : memref<1x128xf32, #tpu.memory_space<any>> -> memref<128xf32, #tpu.memory_space<any>>
      %c0_i32_852 = arith.constant 0 : i32
      %1102 = tpu.memref_slice %arg5[%1008, %c1_i32_849, %c1_i32_850, %c0_i32_852] : memref<2x8x8x128xf32, #tpu.memory_space<vmem>> -> memref<1x1x1x128xf32, #tpu.memory_space<vmem>>
      %1103 = tpu.memref_squeeze %1102 : memref<1x1x1x128xf32, #tpu.memory_space<vmem>> -> memref<128xf32, #tpu.memory_space<vmem>>
      %1104 = tpu.memref_slice %arg6[%1008] : memref<2x!tpu.dma_semaphore, #tpu.memory_space<semaphore_mem>> -> memref<1x!tpu.dma_semaphore, #tpu.memory_space<semaphore_mem>>
      %1105 = tpu.memref_squeeze %1104 : memref<1x!tpu.dma_semaphore, #tpu.memory_space<semaphore_mem>> -> memref<!tpu.dma_semaphore, #tpu.memory_space<semaphore_mem>>
      tpu.enqueue_dma source(%1101 : memref<128xf32, #tpu.memory_space<any>>) target(%1103 : memref<128xf32, #tpu.memory_space<vmem>>) target_semaphore(%1105 : memref<!tpu.dma_semaphore, #tpu.memory_space<semaphore_mem>>)
      %c2_i32_853 = arith.constant 2 : i32
      %1106 = arith.addi %1087, %c2_i32_853 : i32
      %1107 = arith.index_cast %1106 : i32 to index
      %1108 = memref.load %arg1[%1107] : memref<64xi32, #tpu.memory_space<smem>>
      %c2_i32_854 = arith.constant 2 : i32
      %c1_i32_855 = arith.constant 1 : i32
      %c0_i32_856 = arith.constant 0 : i32
      %1109 = tpu.memref_slice %arg3[%1108, %c0_i32_856] : memref<50x128xf32, #tpu.memory_space<any>> -> memref<1x128xf32, #tpu.memory_space<any>>
      %1110 = tpu.memref_squeeze %1109 : memref<1x128xf32, #tpu.memory_space<any>> -> memref<128xf32, #tpu.memory_space<any>>
      %c0_i32_857 = arith.constant 0 : i32
      %1111 = tpu.memref_slice %arg5[%1008, %c2_i32_854, %c1_i32_855, %c0_i32_857] : memref<2x8x8x128xf32, #tpu.memory_space<vmem>> -> memref<1x1x1x128xf32, #tpu.memory_space<vmem>>
      %1112 = tpu.memref_squeeze %1111 : memref<1x1x1x128xf32, #tpu.memory_space<vmem>> -> memref<128xf32, #tpu.memory_space<vmem>>
      %1113 = tpu.memref_slice %arg6[%1008] : memref<2x!tpu.dma_semaphore, #tpu.memory_space<semaphore_mem>> -> memref<1x!tpu.dma_semaphore, #tpu.memory_space<semaphore_mem>>
      %1114 = tpu.memref_squeeze %1113 : memref<1x!tpu.dma_semaphore, #tpu.memory_space<semaphore_mem>> -> memref<!tpu.dma_semaphore, #tpu.memory_space<semaphore_mem>>
      tpu.enqueue_dma source(%1110 : memref<128xf32, #tpu.memory_space<any>>) target(%1112 : memref<128xf32, #tpu.memory_space<vmem>>) target_semaphore(%1114 : memref<!tpu.dma_semaphore, #tpu.memory_space<semaphore_mem>>)
      %c3_i32_858 = arith.constant 3 : i32
      %1115 = arith.addi %1087, %c3_i32_858 : i32
      %1116 = arith.index_cast %1115 : i32 to index
      %1117 = memref.load %arg1[%1116] : memref<64xi32, #tpu.memory_space<smem>>
      %c3_i32_859 = arith.constant 3 : i32
      %c1_i32_860 = arith.constant 1 : i32
      %c0_i32_861 = arith.constant 0 : i32
      %1118 = tpu.memref_slice %arg3[%1117, %c0_i32_861] : memref<50x128xf32, #tpu.memory_space<any>> -> memref<1x128xf32, #tpu.memory_space<any>>
      %1119 = tpu.memref_squeeze %1118 : memref<1x128xf32, #tpu.memory_space<any>> -> memref<128xf32, #tpu.memory_space<any>>
      %c0_i32_862 = arith.constant 0 : i32
      %1120 = tpu.memref_slice %arg5[%1008, %c3_i32_859, %c1_i32_860, %c0_i32_862] : memref<2x8x8x128xf32, #tpu.memory_space<vmem>> -> memref<1x1x1x128xf32, #tpu.memory_space<vmem>>
      %1121 = tpu.memref_squeeze %1120 : memref<1x1x1x128xf32, #tpu.memory_space<vmem>> -> memref<128xf32, #tpu.memory_space<vmem>>
      %1122 = tpu.memref_slice %arg6[%1008] : memref<2x!tpu.dma_semaphore, #tpu.memory_space<semaphore_mem>> -> memref<1x!tpu.dma_semaphore, #tpu.memory_space<semaphore_mem>>
      %1123 = tpu.memref_squeeze %1122 : memref<1x!tpu.dma_semaphore, #tpu.memory_space<semaphore_mem>> -> memref<!tpu.dma_semaphore, #tpu.memory_space<semaphore_mem>>
      tpu.enqueue_dma source(%1119 : memref<128xf32, #tpu.memory_space<any>>) target(%1121 : memref<128xf32, #tpu.memory_space<vmem>>) target_semaphore(%1123 : memref<!tpu.dma_semaphore, #tpu.memory_space<semaphore_mem>>)
      %c4_i32_863 = arith.constant 4 : i32
      %1124 = arith.addi %1087, %c4_i32_863 : i32
      %1125 = arith.index_cast %1124 : i32 to index
      %1126 = memref.load %arg1[%1125] : memref<64xi32, #tpu.memory_space<smem>>
      %c4_i32_864 = arith.constant 4 : i32
      %c1_i32_865 = arith.constant 1 : i32
      %c0_i32_866 = arith.constant 0 : i32
      %1127 = tpu.memref_slice %arg3[%1126, %c0_i32_866] : memref<50x128xf32, #tpu.memory_space<any>> -> memref<1x128xf32, #tpu.memory_space<any>>
      %1128 = tpu.memref_squeeze %1127 : memref<1x128xf32, #tpu.memory_space<any>> -> memref<128xf32, #tpu.memory_space<any>>
      %c0_i32_867 = arith.constant 0 : i32
      %1129 = tpu.memref_slice %arg5[%1008, %c4_i32_864, %c1_i32_865, %c0_i32_867] : memref<2x8x8x128xf32, #tpu.memory_space<vmem>> -> memref<1x1x1x128xf32, #tpu.memory_space<vmem>>
      %1130 = tpu.memref_squeeze %1129 : memref<1x1x1x128xf32, #tpu.memory_space<vmem>> -> memref<128xf32, #tpu.memory_space<vmem>>
      %1131 = tpu.memref_slice %arg6[%1008] : memref<2x!tpu.dma_semaphore, #tpu.memory_space<semaphore_mem>> -> memref<1x!tpu.dma_semaphore, #tpu.memory_space<semaphore_mem>>
      %1132 = tpu.memref_squeeze %1131 : memref<1x!tpu.dma_semaphore, #tpu.memory_space<semaphore_mem>> -> memref<!tpu.dma_semaphore, #tpu.memory_space<semaphore_mem>>
      tpu.enqueue_dma source(%1128 : memref<128xf32, #tpu.memory_space<any>>) target(%1130 : memref<128xf32, #tpu.memory_space<vmem>>) target_semaphore(%1132 : memref<!tpu.dma_semaphore, #tpu.memory_space<semaphore_mem>>)
      %c5_i32_868 = arith.constant 5 : i32
      %1133 = arith.addi %1087, %c5_i32_868 : i32
      %1134 = arith.index_cast %1133 : i32 to index
      %1135 = memref.load %arg1[%1134] : memref<64xi32, #tpu.memory_space<smem>>
      %c5_i32_869 = arith.constant 5 : i32
      %c1_i32_870 = arith.constant 1 : i32
      %c0_i32_871 = arith.constant 0 : i32
      %1136 = tpu.memref_slice %arg3[%1135, %c0_i32_871] : memref<50x128xf32, #tpu.memory_space<any>> -> memref<1x128xf32, #tpu.memory_space<any>>
      %1137 = tpu.memref_squeeze %1136 : memref<1x128xf32, #tpu.memory_space<any>> -> memref<128xf32, #tpu.memory_space<any>>
      %c0_i32_872 = arith.constant 0 : i32
      %1138 = tpu.memref_slice %arg5[%1008, %c5_i32_869, %c1_i32_870, %c0_i32_872] : memref<2x8x8x128xf32, #tpu.memory_space<vmem>> -> memref<1x1x1x128xf32, #tpu.memory_space<vmem>>
      %1139 = tpu.memref_squeeze %1138 : memref<1x1x1x128xf32, #tpu.memory_space<vmem>> -> memref<128xf32, #tpu.memory_space<vmem>>
      %1140 = tpu.memref_slice %arg6[%1008] : memref<2x!tpu.dma_semaphore, #tpu.memory_space<semaphore_mem>> -> memref<1x!tpu.dma_semaphore, #tpu.memory_space<semaphore_mem>>
      %1141 = tpu.memref_squeeze %1140 : memref<1x!tpu.dma_semaphore, #tpu.memory_space<semaphore_mem>> -> memref<!tpu.dma_semaphore, #tpu.memory_space<semaphore_mem>>
      tpu.enqueue_dma source(%1137 : memref<128xf32, #tpu.memory_space<any>>) target(%1139 : memref<128xf32, #tpu.memory_space<vmem>>) target_semaphore(%1141 : memref<!tpu.dma_semaphore, #tpu.memory_space<semaphore_mem>>)
      %c6_i32_873 = arith.constant 6 : i32
      %1142 = arith.addi %1087, %c6_i32_873 : i32
      %1143 = arith.index_cast %1142 : i32 to index
      %1144 = memref.load %arg1[%1143] : memref<64xi32, #tpu.memory_space<smem>>
      %c6_i32_874 = arith.constant 6 : i32
      %c1_i32_875 = arith.constant 1 : i32
      %c0_i32_876 = arith.constant 0 : i32
      %1145 = tpu.memref_slice %arg3[%1144, %c0_i32_876] : memref<50x128xf32, #tpu.memory_space<any>> -> memref<1x128xf32, #tpu.memory_space<any>>
      %1146 = tpu.memref_squeeze %1145 : memref<1x128xf32, #tpu.memory_space<any>> -> memref<128xf32, #tpu.memory_space<any>>
      %c0_i32_877 = arith.constant 0 : i32
      %1147 = tpu.memref_slice %arg5[%1008, %c6_i32_874, %c1_i32_875, %c0_i32_877] : memref<2x8x8x128xf32, #tpu.memory_space<vmem>> -> memref<1x1x1x128xf32, #tpu.memory_space<vmem>>
      %1148 = tpu.memref_squeeze %1147 : memref<1x1x1x128xf32, #tpu.memory_space<vmem>> -> memref<128xf32, #tpu.memory_space<vmem>>
      %1149 = tpu.memref_slice %arg6[%1008] : memref<2x!tpu.dma_semaphore, #tpu.memory_space<semaphore_mem>> -> memref<1x!tpu.dma_semaphore, #tpu.memory_space<semaphore_mem>>
      %1150 = tpu.memref_squeeze %1149 : memref<1x!tpu.dma_semaphore, #tpu.memory_space<semaphore_mem>> -> memref<!tpu.dma_semaphore, #tpu.memory_space<semaphore_mem>>
      tpu.enqueue_dma source(%1146 : memref<128xf32, #tpu.memory_space<any>>) target(%1148 : memref<128xf32, #tpu.memory_space<vmem>>) target_semaphore(%1150 : memref<!tpu.dma_semaphore, #tpu.memory_space<semaphore_mem>>)
      %c7_i32_878 = arith.constant 7 : i32
      %1151 = arith.addi %1087, %c7_i32_878 : i32
      %1152 = arith.index_cast %1151 : i32 to index
      %1153 = memref.load %arg1[%1152] : memref<64xi32, #tpu.memory_space<smem>>
      %c7_i32_879 = arith.constant 7 : i32
      %c1_i32_880 = arith.constant 1 : i32
      %c0_i32_881 = arith.constant 0 : i32
      %1154 = tpu.memref_slice %arg3[%1153, %c0_i32_881] : memref<50x128xf32, #tpu.memory_space<any>> -> memref<1x128xf32, #tpu.memory_space<any>>
      %1155 = tpu.memref_squeeze %1154 : memref<1x128xf32, #tpu.memory_space<any>> -> memref<128xf32, #tpu.memory_space<any>>
      %c0_i32_882 = arith.constant 0 : i32
      %1156 = tpu.memref_slice %arg5[%1008, %c7_i32_879, %c1_i32_880, %c0_i32_882] : memref<2x8x8x128xf32, #tpu.memory_space<vmem>> -> memref<1x1x1x128xf32, #tpu.memory_space<vmem>>
      %1157 = tpu.memref_squeeze %1156 : memref<1x1x1x128xf32, #tpu.memory_space<vmem>> -> memref<128xf32, #tpu.memory_space<vmem>>
      %1158 = tpu.memref_slice %arg6[%1008] : memref<2x!tpu.dma_semaphore, #tpu.memory_space<semaphore_mem>> -> memref<1x!tpu.dma_semaphore, #tpu.memory_space<semaphore_mem>>
      %1159 = tpu.memref_squeeze %1158 : memref<1x!tpu.dma_semaphore, #tpu.memory_space<semaphore_mem>> -> memref<!tpu.dma_semaphore, #tpu.memory_space<semaphore_mem>>
      tpu.enqueue_dma source(%1155 : memref<128xf32, #tpu.memory_space<any>>) target(%1157 : memref<128xf32, #tpu.memory_space<vmem>>) target_semaphore(%1159 : memref<!tpu.dma_semaphore, #tpu.memory_space<semaphore_mem>>)
      %c2_i32_883 = arith.constant 2 : i32
      %1160 = arith.addi %1011, %c2_i32_883 : i32
      %c8_i32_884 = arith.constant 8 : i32
      %1161 = arith.muli %1160, %c8_i32_884 : i32
      %c0_i32_885 = arith.constant 0 : i32
      %1162 = arith.addi %1161, %c0_i32_885 : i32
      %1163 = arith.index_cast %1162 : i32 to index
      %1164 = memref.load %arg1[%1163] : memref<64xi32, #tpu.memory_space<smem>>
      %c0_i32_886 = arith.constant 0 : i32
      %c2_i32_887 = arith.constant 2 : i32
      %c0_i32_888 = arith.constant 0 : i32
      %1165 = tpu.memref_slice %arg3[%1164, %c0_i32_888] : memref<50x128xf32, #tpu.memory_space<any>> -> memref<1x128xf32, #tpu.memory_space<any>>
      %1166 = tpu.memref_squeeze %1165 : memref<1x128xf32, #tpu.memory_space<any>> -> memref<128xf32, #tpu.memory_space<any>>
      %c0_i32_889 = arith.constant 0 : i32
      %1167 = tpu.memref_slice %arg5[%1008, %c0_i32_886, %c2_i32_887, %c0_i32_889] : memref<2x8x8x128xf32, #tpu.memory_space<vmem>> -> memref<1x1x1x128xf32, #tpu.memory_space<vmem>>
      %1168 = tpu.memref_squeeze %1167 : memref<1x1x1x128xf32, #tpu.memory_space<vmem>> -> memref<128xf32, #tpu.memory_space<vmem>>
      %1169 = tpu.memref_slice %arg6[%1008] : memref<2x!tpu.dma_semaphore, #tpu.memory_space<semaphore_mem>> -> memref<1x!tpu.dma_semaphore, #tpu.memory_space<semaphore_mem>>
      %1170 = tpu.memref_squeeze %1169 : memref<1x!tpu.dma_semaphore, #tpu.memory_space<semaphore_mem>> -> memref<!tpu.dma_semaphore, #tpu.memory_space<semaphore_mem>>
      tpu.enqueue_dma source(%1166 : memref<128xf32, #tpu.memory_space<any>>) target(%1168 : memref<128xf32, #tpu.memory_space<vmem>>) target_semaphore(%1170 : memref<!tpu.dma_semaphore, #tpu.memory_space<semaphore_mem>>)
      %c1_i32_890 = arith.constant 1 : i32
      %1171 = arith.addi %1161, %c1_i32_890 : i32
      %1172 = arith.index_cast %1171 : i32 to index
      %1173 = memref.load %arg1[%1172] : memref<64xi32, #tpu.memory_space<smem>>
      %c1_i32_891 = arith.constant 1 : i32
      %c2_i32_892 = arith.constant 2 : i32
      %c0_i32_893 = arith.constant 0 : i32
      %1174 = tpu.memref_slice %arg3[%1173, %c0_i32_893] : memref<50x128xf32, #tpu.memory_space<any>> -> memref<1x128xf32, #tpu.memory_space<any>>
      %1175 = tpu.memref_squeeze %1174 : memref<1x128xf32, #tpu.memory_space<any>> -> memref<128xf32, #tpu.memory_space<any>>
      %c0_i32_894 = arith.constant 0 : i32
      %1176 = tpu.memref_slice %arg5[%1008, %c1_i32_891, %c2_i32_892, %c0_i32_894] : memref<2x8x8x128xf32, #tpu.memory_space<vmem>> -> memref<1x1x1x128xf32, #tpu.memory_space<vmem>>
      %1177 = tpu.memref_squeeze %1176 : memref<1x1x1x128xf32, #tpu.memory_space<vmem>> -> memref<128xf32, #tpu.memory_space<vmem>>
      %1178 = tpu.memref_slice %arg6[%1008] : memref<2x!tpu.dma_semaphore, #tpu.memory_space<semaphore_mem>> -> memref<1x!tpu.dma_semaphore, #tpu.memory_space<semaphore_mem>>
      %1179 = tpu.memref_squeeze %1178 : memref<1x!tpu.dma_semaphore, #tpu.memory_space<semaphore_mem>> -> memref<!tpu.dma_semaphore, #tpu.memory_space<semaphore_mem>>
      tpu.enqueue_dma source(%1175 : memref<128xf32, #tpu.memory_space<any>>) target(%1177 : memref<128xf32, #tpu.memory_space<vmem>>) target_semaphore(%1179 : memref<!tpu.dma_semaphore, #tpu.memory_space<semaphore_mem>>)
      %c2_i32_895 = arith.constant 2 : i32
      %1180 = arith.addi %1161, %c2_i32_895 : i32
      %1181 = arith.index_cast %1180 : i32 to index
      %1182 = memref.load %arg1[%1181] : memref<64xi32, #tpu.memory_space<smem>>
      %c2_i32_896 = arith.constant 2 : i32
      %c2_i32_897 = arith.constant 2 : i32
      %c0_i32_898 = arith.constant 0 : i32
      %1183 = tpu.memref_slice %arg3[%1182, %c0_i32_898] : memref<50x128xf32, #tpu.memory_space<any>> -> memref<1x128xf32, #tpu.memory_space<any>>
      %1184 = tpu.memref_squeeze %1183 : memref<1x128xf32, #tpu.memory_space<any>> -> memref<128xf32, #tpu.memory_space<any>>
      %c0_i32_899 = arith.constant 0 : i32
      %1185 = tpu.memref_slice %arg5[%1008, %c2_i32_896, %c2_i32_897, %c0_i32_899] : memref<2x8x8x128xf32, #tpu.memory_space<vmem>> -> memref<1x1x1x128xf32, #tpu.memory_space<vmem>>
      %1186 = tpu.memref_squeeze %1185 : memref<1x1x1x128xf32, #tpu.memory_space<vmem>> -> memref<128xf32, #tpu.memory_space<vmem>>
      %1187 = tpu.memref_slice %arg6[%1008] : memref<2x!tpu.dma_semaphore, #tpu.memory_space<semaphore_mem>> -> memref<1x!tpu.dma_semaphore, #tpu.memory_space<semaphore_mem>>
      %1188 = tpu.memref_squeeze %1187 : memref<1x!tpu.dma_semaphore, #tpu.memory_space<semaphore_mem>> -> memref<!tpu.dma_semaphore, #tpu.memory_space<semaphore_mem>>
      tpu.enqueue_dma source(%1184 : memref<128xf32, #tpu.memory_space<any>>) target(%1186 : memref<128xf32, #tpu.memory_space<vmem>>) target_semaphore(%1188 : memref<!tpu.dma_semaphore, #tpu.memory_space<semaphore_mem>>)
      %c3_i32_900 = arith.constant 3 : i32
      %1189 = arith.addi %1161, %c3_i32_900 : i32
      %1190 = arith.index_cast %1189 : i32 to index
      %1191 = memref.load %arg1[%1190] : memref<64xi32, #tpu.memory_space<smem>>
      %c3_i32_901 = arith.constant 3 : i32
      %c2_i32_902 = arith.constant 2 : i32
      %c0_i32_903 = arith.constant 0 : i32
      %1192 = tpu.memref_slice %arg3[%1191, %c0_i32_903] : memref<50x128xf32, #tpu.memory_space<any>> -> memref<1x128xf32, #tpu.memory_space<any>>
      %1193 = tpu.memref_squeeze %1192 : memref<1x128xf32, #tpu.memory_space<any>> -> memref<128xf32, #tpu.memory_space<any>>
      %c0_i32_904 = arith.constant 0 : i32
      %1194 = tpu.memref_slice %arg5[%1008, %c3_i32_901, %c2_i32_902, %c0_i32_904] : memref<2x8x8x128xf32, #tpu.memory_space<vmem>> -> memref<1x1x1x128xf32, #tpu.memory_space<vmem>>
      %1195 = tpu.memref_squeeze %1194 : memref<1x1x1x128xf32, #tpu.memory_space<vmem>> -> memref<128xf32, #tpu.memory_space<vmem>>
      %1196 = tpu.memref_slice %arg6[%1008] : memref<2x!tpu.dma_semaphore, #tpu.memory_space<semaphore_mem>> -> memref<1x!tpu.dma_semaphore, #tpu.memory_space<semaphore_mem>>
      %1197 = tpu.memref_squeeze %1196 : memref<1x!tpu.dma_semaphore, #tpu.memory_space<semaphore_mem>> -> memref<!tpu.dma_semaphore, #tpu.memory_space<semaphore_mem>>
      tpu.enqueue_dma source(%1193 : memref<128xf32, #tpu.memory_space<any>>) target(%1195 : memref<128xf32, #tpu.memory_space<vmem>>) target_semaphore(%1197 : memref<!tpu.dma_semaphore, #tpu.memory_space<semaphore_mem>>)
      %c4_i32_905 = arith.constant 4 : i32
      %1198 = arith.addi %1161, %c4_i32_905 : i32
      %1199 = arith.index_cast %1198 : i32 to index
      %1200 = memref.load %arg1[%1199] : memref<64xi32, #tpu.memory_space<smem>>
      %c4_i32_906 = arith.constant 4 : i32
      %c2_i32_907 = arith.constant 2 : i32
      %c0_i32_908 = arith.constant 0 : i32
      %1201 = tpu.memref_slice %arg3[%1200, %c0_i32_908] : memref<50x128xf32, #tpu.memory_space<any>> -> memref<1x128xf32, #tpu.memory_space<any>>
      %1202 = tpu.memref_squeeze %1201 : memref<1x128xf32, #tpu.memory_space<any>> -> memref<128xf32, #tpu.memory_space<any>>
      %c0_i32_909 = arith.constant 0 : i32
      %1203 = tpu.memref_slice %arg5[%1008, %c4_i32_906, %c2_i32_907, %c0_i32_909] : memref<2x8x8x128xf32, #tpu.memory_space<vmem>> -> memref<1x1x1x128xf32, #tpu.memory_space<vmem>>
      %1204 = tpu.memref_squeeze %1203 : memref<1x1x1x128xf32, #tpu.memory_space<vmem>> -> memref<128xf32, #tpu.memory_space<vmem>>
      %1205 = tpu.memref_slice %arg6[%1008] : memref<2x!tpu.dma_semaphore, #tpu.memory_space<semaphore_mem>> -> memref<1x!tpu.dma_semaphore, #tpu.memory_space<semaphore_mem>>
      %1206 = tpu.memref_squeeze %1205 : memref<1x!tpu.dma_semaphore, #tpu.memory_space<semaphore_mem>> -> memref<!tpu.dma_semaphore, #tpu.memory_space<semaphore_mem>>
      tpu.enqueue_dma source(%1202 : memref<128xf32, #tpu.memory_space<any>>) target(%1204 : memref<128xf32, #tpu.memory_space<vmem>>) target_semaphore(%1206 : memref<!tpu.dma_semaphore, #tpu.memory_space<semaphore_mem>>)
      %c5_i32_910 = arith.constant 5 : i32
      %1207 = arith.addi %1161, %c5_i32_910 : i32
      %1208 = arith.index_cast %1207 : i32 to index
      %1209 = memref.load %arg1[%1208] : memref<64xi32, #tpu.memory_space<smem>>
      %c5_i32_911 = arith.constant 5 : i32
      %c2_i32_912 = arith.constant 2 : i32
      %c0_i32_913 = arith.constant 0 : i32
      %1210 = tpu.memref_slice %arg3[%1209, %c0_i32_913] : memref<50x128xf32, #tpu.memory_space<any>> -> memref<1x128xf32, #tpu.memory_space<any>>
      %1211 = tpu.memref_squeeze %1210 : memref<1x128xf32, #tpu.memory_space<any>> -> memref<128xf32, #tpu.memory_space<any>>
      %c0_i32_914 = arith.constant 0 : i32
      %1212 = tpu.memref_slice %arg5[%1008, %c5_i32_911, %c2_i32_912, %c0_i32_914] : memref<2x8x8x128xf32, #tpu.memory_space<vmem>> -> memref<1x1x1x128xf32, #tpu.memory_space<vmem>>
      %1213 = tpu.memref_squeeze %1212 : memref<1x1x1x128xf32, #tpu.memory_space<vmem>> -> memref<128xf32, #tpu.memory_space<vmem>>
      %1214 = tpu.memref_slice %arg6[%1008] : memref<2x!tpu.dma_semaphore, #tpu.memory_space<semaphore_mem>> -> memref<1x!tpu.dma_semaphore, #tpu.memory_space<semaphore_mem>>
      %1215 = tpu.memref_squeeze %1214 : memref<1x!tpu.dma_semaphore, #tpu.memory_space<semaphore_mem>> -> memref<!tpu.dma_semaphore, #tpu.memory_space<semaphore_mem>>
      tpu.enqueue_dma source(%1211 : memref<128xf32, #tpu.memory_space<any>>) target(%1213 : memref<128xf32, #tpu.memory_space<vmem>>) target_semaphore(%1215 : memref<!tpu.dma_semaphore, #tpu.memory_space<semaphore_mem>>)
      %c6_i32_915 = arith.constant 6 : i32
      %1216 = arith.addi %1161, %c6_i32_915 : i32
      %1217 = arith.index_cast %1216 : i32 to index
      %1218 = memref.load %arg1[%1217] : memref<64xi32, #tpu.memory_space<smem>>
      %c6_i32_916 = arith.constant 6 : i32
      %c2_i32_917 = arith.constant 2 : i32
      %c0_i32_918 = arith.constant 0 : i32
      %1219 = tpu.memref_slice %arg3[%1218, %c0_i32_918] : memref<50x128xf32, #tpu.memory_space<any>> -> memref<1x128xf32, #tpu.memory_space<any>>
      %1220 = tpu.memref_squeeze %1219 : memref<1x128xf32, #tpu.memory_space<any>> -> memref<128xf32, #tpu.memory_space<any>>
      %c0_i32_919 = arith.constant 0 : i32
      %1221 = tpu.memref_slice %arg5[%1008, %c6_i32_916, %c2_i32_917, %c0_i32_919] : memref<2x8x8x128xf32, #tpu.memory_space<vmem>> -> memref<1x1x1x128xf32, #tpu.memory_space<vmem>>
      %1222 = tpu.memref_squeeze %1221 : memref<1x1x1x128xf32, #tpu.memory_space<vmem>> -> memref<128xf32, #tpu.memory_space<vmem>>
      %1223 = tpu.memref_slice %arg6[%1008] : memref<2x!tpu.dma_semaphore, #tpu.memory_space<semaphore_mem>> -> memref<1x!tpu.dma_semaphore, #tpu.memory_space<semaphore_mem>>
      %1224 = tpu.memref_squeeze %1223 : memref<1x!tpu.dma_semaphore, #tpu.memory_space<semaphore_mem>> -> memref<!tpu.dma_semaphore, #tpu.memory_space<semaphore_mem>>
      tpu.enqueue_dma source(%1220 : memref<128xf32, #tpu.memory_space<any>>) target(%1222 : memref<128xf32, #tpu.memory_space<vmem>>) target_semaphore(%1224 : memref<!tpu.dma_semaphore, #tpu.memory_space<semaphore_mem>>)
      %c7_i32_920 = arith.constant 7 : i32
      %1225 = arith.addi %1161, %c7_i32_920 : i32
      %1226 = arith.index_cast %1225 : i32 to index
      %1227 = memref.load %arg1[%1226] : memref<64xi32, #tpu.memory_space<smem>>
      %c7_i32_921 = arith.constant 7 : i32
      %c2_i32_922 = arith.constant 2 : i32
      %c0_i32_923 = arith.constant 0 : i32
      %1228 = tpu.memref_slice %arg3[%1227, %c0_i32_923] : memref<50x128xf32, #tpu.memory_space<any>> -> memref<1x128xf32, #tpu.memory_space<any>>
      %1229 = tpu.memref_squeeze %1228 : memref<1x128xf32, #tpu.memory_space<any>> -> memref<128xf32, #tpu.memory_space<any>>
      %c0_i32_924 = arith.constant 0 : i32
      %1230 = tpu.memref_slice %arg5[%1008, %c7_i32_921, %c2_i32_922, %c0_i32_924] : memref<2x8x8x128xf32, #tpu.memory_space<vmem>> -> memref<1x1x1x128xf32, #tpu.memory_space<vmem>>
      %1231 = tpu.memref_squeeze %1230 : memref<1x1x1x128xf32, #tpu.memory_space<vmem>> -> memref<128xf32, #tpu.memory_space<vmem>>
      %1232 = tpu.memref_slice %arg6[%1008] : memref<2x!tpu.dma_semaphore, #tpu.memory_space<semaphore_mem>> -> memref<1x!tpu.dma_semaphore, #tpu.memory_space<semaphore_mem>>
      %1233 = tpu.memref_squeeze %1232 : memref<1x!tpu.dma_semaphore, #tpu.memory_space<semaphore_mem>> -> memref<!tpu.dma_semaphore, #tpu.memory_space<semaphore_mem>>
      tpu.enqueue_dma source(%1229 : memref<128xf32, #tpu.memory_space<any>>) target(%1231 : memref<128xf32, #tpu.memory_space<vmem>>) target_semaphore(%1233 : memref<!tpu.dma_semaphore, #tpu.memory_space<semaphore_mem>>)
      %c3_i32_925 = arith.constant 3 : i32
      %1234 = arith.addi %1011, %c3_i32_925 : i32
      %c8_i32_926 = arith.constant 8 : i32
      %1235 = arith.muli %1234, %c8_i32_926 : i32
      %c0_i32_927 = arith.constant 0 : i32
      %1236 = arith.addi %1235, %c0_i32_927 : i32
      %1237 = arith.index_cast %1236 : i32 to index
      %1238 = memref.load %arg1[%1237] : memref<64xi32, #tpu.memory_space<smem>>
      %c0_i32_928 = arith.constant 0 : i32
      %c3_i32_929 = arith.constant 3 : i32
      %c0_i32_930 = arith.constant 0 : i32
      %1239 = tpu.memref_slice %arg3[%1238, %c0_i32_930] : memref<50x128xf32, #tpu.memory_space<any>> -> memref<1x128xf32, #tpu.memory_space<any>>
      %1240 = tpu.memref_squeeze %1239 : memref<1x128xf32, #tpu.memory_space<any>> -> memref<128xf32, #tpu.memory_space<any>>
      %c0_i32_931 = arith.constant 0 : i32
      %1241 = tpu.memref_slice %arg5[%1008, %c0_i32_928, %c3_i32_929, %c0_i32_931] : memref<2x8x8x128xf32, #tpu.memory_space<vmem>> -> memref<1x1x1x128xf32, #tpu.memory_space<vmem>>
      %1242 = tpu.memref_squeeze %1241 : memref<1x1x1x128xf32, #tpu.memory_space<vmem>> -> memref<128xf32, #tpu.memory_space<vmem>>
      %1243 = tpu.memref_slice %arg6[%1008] : memref<2x!tpu.dma_semaphore, #tpu.memory_space<semaphore_mem>> -> memref<1x!tpu.dma_semaphore, #tpu.memory_space<semaphore_mem>>
      %1244 = tpu.memref_squeeze %1243 : memref<1x!tpu.dma_semaphore, #tpu.memory_space<semaphore_mem>> -> memref<!tpu.dma_semaphore, #tpu.memory_space<semaphore_mem>>
      tpu.enqueue_dma source(%1240 : memref<128xf32, #tpu.memory_space<any>>) target(%1242 : memref<128xf32, #tpu.memory_space<vmem>>) target_semaphore(%1244 : memref<!tpu.dma_semaphore, #tpu.memory_space<semaphore_mem>>)
      %c1_i32_932 = arith.constant 1 : i32
      %1245 = arith.addi %1235, %c1_i32_932 : i32
      %1246 = arith.index_cast %1245 : i32 to index
      %1247 = memref.load %arg1[%1246] : memref<64xi32, #tpu.memory_space<smem>>
      %c1_i32_933 = arith.constant 1 : i32
      %c3_i32_934 = arith.constant 3 : i32
      %c0_i32_935 = arith.constant 0 : i32
      %1248 = tpu.memref_slice %arg3[%1247, %c0_i32_935] : memref<50x128xf32, #tpu.memory_space<any>> -> memref<1x128xf32, #tpu.memory_space<any>>
      %1249 = tpu.memref_squeeze %1248 : memref<1x128xf32, #tpu.memory_space<any>> -> memref<128xf32, #tpu.memory_space<any>>
      %c0_i32_936 = arith.constant 0 : i32
      %1250 = tpu.memref_slice %arg5[%1008, %c1_i32_933, %c3_i32_934, %c0_i32_936] : memref<2x8x8x128xf32, #tpu.memory_space<vmem>> -> memref<1x1x1x128xf32, #tpu.memory_space<vmem>>
      %1251 = tpu.memref_squeeze %1250 : memref<1x1x1x128xf32, #tpu.memory_space<vmem>> -> memref<128xf32, #tpu.memory_space<vmem>>
      %1252 = tpu.memref_slice %arg6[%1008] : memref<2x!tpu.dma_semaphore, #tpu.memory_space<semaphore_mem>> -> memref<1x!tpu.dma_semaphore, #tpu.memory_space<semaphore_mem>>
      %1253 = tpu.memref_squeeze %1252 : memref<1x!tpu.dma_semaphore, #tpu.memory_space<semaphore_mem>> -> memref<!tpu.dma_semaphore, #tpu.memory_space<semaphore_mem>>
      tpu.enqueue_dma source(%1249 : memref<128xf32, #tpu.memory_space<any>>) target(%1251 : memref<128xf32, #tpu.memory_space<vmem>>) target_semaphore(%1253 : memref<!tpu.dma_semaphore, #tpu.memory_space<semaphore_mem>>)
      %c2_i32_937 = arith.constant 2 : i32
      %1254 = arith.addi %1235, %c2_i32_937 : i32
      %1255 = arith.index_cast %1254 : i32 to index
      %1256 = memref.load %arg1[%1255] : memref<64xi32, #tpu.memory_space<smem>>
      %c2_i32_938 = arith.constant 2 : i32
      %c3_i32_939 = arith.constant 3 : i32
      %c0_i32_940 = arith.constant 0 : i32
      %1257 = tpu.memref_slice %arg3[%1256, %c0_i32_940] : memref<50x128xf32, #tpu.memory_space<any>> -> memref<1x128xf32, #tpu.memory_space<any>>
      %1258 = tpu.memref_squeeze %1257 : memref<1x128xf32, #tpu.memory_space<any>> -> memref<128xf32, #tpu.memory_space<any>>
      %c0_i32_941 = arith.constant 0 : i32
      %1259 = tpu.memref_slice %arg5[%1008, %c2_i32_938, %c3_i32_939, %c0_i32_941] : memref<2x8x8x128xf32, #tpu.memory_space<vmem>> -> memref<1x1x1x128xf32, #tpu.memory_space<vmem>>
      %1260 = tpu.memref_squeeze %1259 : memref<1x1x1x128xf32, #tpu.memory_space<vmem>> -> memref<128xf32, #tpu.memory_space<vmem>>
      %1261 = tpu.memref_slice %arg6[%1008] : memref<2x!tpu.dma_semaphore, #tpu.memory_space<semaphore_mem>> -> memref<1x!tpu.dma_semaphore, #tpu.memory_space<semaphore_mem>>
      %1262 = tpu.memref_squeeze %1261 : memref<1x!tpu.dma_semaphore, #tpu.memory_space<semaphore_mem>> -> memref<!tpu.dma_semaphore, #tpu.memory_space<semaphore_mem>>
      tpu.enqueue_dma source(%1258 : memref<128xf32, #tpu.memory_space<any>>) target(%1260 : memref<128xf32, #tpu.memory_space<vmem>>) target_semaphore(%1262 : memref<!tpu.dma_semaphore, #tpu.memory_space<semaphore_mem>>)
      %c3_i32_942 = arith.constant 3 : i32
      %1263 = arith.addi %1235, %c3_i32_942 : i32
      %1264 = arith.index_cast %1263 : i32 to index
      %1265 = memref.load %arg1[%1264] : memref<64xi32, #tpu.memory_space<smem>>
      %c3_i32_943 = arith.constant 3 : i32
      %c3_i32_944 = arith.constant 3 : i32
      %c0_i32_945 = arith.constant 0 : i32
      %1266 = tpu.memref_slice %arg3[%1265, %c0_i32_945] : memref<50x128xf32, #tpu.memory_space<any>> -> memref<1x128xf32, #tpu.memory_space<any>>
      %1267 = tpu.memref_squeeze %1266 : memref<1x128xf32, #tpu.memory_space<any>> -> memref<128xf32, #tpu.memory_space<any>>
      %c0_i32_946 = arith.constant 0 : i32
      %1268 = tpu.memref_slice %arg5[%1008, %c3_i32_943, %c3_i32_944, %c0_i32_946] : memref<2x8x8x128xf32, #tpu.memory_space<vmem>> -> memref<1x1x1x128xf32, #tpu.memory_space<vmem>>
      %1269 = tpu.memref_squeeze %1268 : memref<1x1x1x128xf32, #tpu.memory_space<vmem>> -> memref<128xf32, #tpu.memory_space<vmem>>
      %1270 = tpu.memref_slice %arg6[%1008] : memref<2x!tpu.dma_semaphore, #tpu.memory_space<semaphore_mem>> -> memref<1x!tpu.dma_semaphore, #tpu.memory_space<semaphore_mem>>
      %1271 = tpu.memref_squeeze %1270 : memref<1x!tpu.dma_semaphore, #tpu.memory_space<semaphore_mem>> -> memref<!tpu.dma_semaphore, #tpu.memory_space<semaphore_mem>>
      tpu.enqueue_dma source(%1267 : memref<128xf32, #tpu.memory_space<any>>) target(%1269 : memref<128xf32, #tpu.memory_space<vmem>>) target_semaphore(%1271 : memref<!tpu.dma_semaphore, #tpu.memory_space<semaphore_mem>>)
      %c4_i32_947 = arith.constant 4 : i32
      %1272 = arith.addi %1235, %c4_i32_947 : i32
      %1273 = arith.index_cast %1272 : i32 to index
      %1274 = memref.load %arg1[%1273] : memref<64xi32, #tpu.memory_space<smem>>
      %c4_i32_948 = arith.constant 4 : i32
      %c3_i32_949 = arith.constant 3 : i32
      %c0_i32_950 = arith.constant 0 : i32
      %1275 = tpu.memref_slice %arg3[%1274, %c0_i32_950] : memref<50x128xf32, #tpu.memory_space<any>> -> memref<1x128xf32, #tpu.memory_space<any>>
      %1276 = tpu.memref_squeeze %1275 : memref<1x128xf32, #tpu.memory_space<any>> -> memref<128xf32, #tpu.memory_space<any>>
      %c0_i32_951 = arith.constant 0 : i32
      %1277 = tpu.memref_slice %arg5[%1008, %c4_i32_948, %c3_i32_949, %c0_i32_951] : memref<2x8x8x128xf32, #tpu.memory_space<vmem>> -> memref<1x1x1x128xf32, #tpu.memory_space<vmem>>
      %1278 = tpu.memref_squeeze %1277 : memref<1x1x1x128xf32, #tpu.memory_space<vmem>> -> memref<128xf32, #tpu.memory_space<vmem>>
      %1279 = tpu.memref_slice %arg6[%1008] : memref<2x!tpu.dma_semaphore, #tpu.memory_space<semaphore_mem>> -> memref<1x!tpu.dma_semaphore, #tpu.memory_space<semaphore_mem>>
      %1280 = tpu.memref_squeeze %1279 : memref<1x!tpu.dma_semaphore, #tpu.memory_space<semaphore_mem>> -> memref<!tpu.dma_semaphore, #tpu.memory_space<semaphore_mem>>
      tpu.enqueue_dma source(%1276 : memref<128xf32, #tpu.memory_space<any>>) target(%1278 : memref<128xf32, #tpu.memory_space<vmem>>) target_semaphore(%1280 : memref<!tpu.dma_semaphore, #tpu.memory_space<semaphore_mem>>)
      %c5_i32_952 = arith.constant 5 : i32
      %1281 = arith.addi %1235, %c5_i32_952 : i32
      %1282 = arith.index_cast %1281 : i32 to index
      %1283 = memref.load %arg1[%1282] : memref<64xi32, #tpu.memory_space<smem>>
      %c5_i32_953 = arith.constant 5 : i32
      %c3_i32_954 = arith.constant 3 : i32
      %c0_i32_955 = arith.constant 0 : i32
      %1284 = tpu.memref_slice %arg3[%1283, %c0_i32_955] : memref<50x128xf32, #tpu.memory_space<any>> -> memref<1x128xf32, #tpu.memory_space<any>>
      %1285 = tpu.memref_squeeze %1284 : memref<1x128xf32, #tpu.memory_space<any>> -> memref<128xf32, #tpu.memory_space<any>>
      %c0_i32_956 = arith.constant 0 : i32
      %1286 = tpu.memref_slice %arg5[%1008, %c5_i32_953, %c3_i32_954, %c0_i32_956] : memref<2x8x8x128xf32, #tpu.memory_space<vmem>> -> memref<1x1x1x128xf32, #tpu.memory_space<vmem>>
      %1287 = tpu.memref_squeeze %1286 : memref<1x1x1x128xf32, #tpu.memory_space<vmem>> -> memref<128xf32, #tpu.memory_space<vmem>>
      %1288 = tpu.memref_slice %arg6[%1008] : memref<2x!tpu.dma_semaphore, #tpu.memory_space<semaphore_mem>> -> memref<1x!tpu.dma_semaphore, #tpu.memory_space<semaphore_mem>>
      %1289 = tpu.memref_squeeze %1288 : memref<1x!tpu.dma_semaphore, #tpu.memory_space<semaphore_mem>> -> memref<!tpu.dma_semaphore, #tpu.memory_space<semaphore_mem>>
      tpu.enqueue_dma source(%1285 : memref<128xf32, #tpu.memory_space<any>>) target(%1287 : memref<128xf32, #tpu.memory_space<vmem>>) target_semaphore(%1289 : memref<!tpu.dma_semaphore, #tpu.memory_space<semaphore_mem>>)
      %c6_i32_957 = arith.constant 6 : i32
      %1290 = arith.addi %1235, %c6_i32_957 : i32
      %1291 = arith.index_cast %1290 : i32 to index
      %1292 = memref.load %arg1[%1291] : memref<64xi32, #tpu.memory_space<smem>>
      %c6_i32_958 = arith.constant 6 : i32
      %c3_i32_959 = arith.constant 3 : i32
      %c0_i32_960 = arith.constant 0 : i32
      %1293 = tpu.memref_slice %arg3[%1292, %c0_i32_960] : memref<50x128xf32, #tpu.memory_space<any>> -> memref<1x128xf32, #tpu.memory_space<any>>
      %1294 = tpu.memref_squeeze %1293 : memref<1x128xf32, #tpu.memory_space<any>> -> memref<128xf32, #tpu.memory_space<any>>
      %c0_i32_961 = arith.constant 0 : i32
      %1295 = tpu.memref_slice %arg5[%1008, %c6_i32_958, %c3_i32_959, %c0_i32_961] : memref<2x8x8x128xf32, #tpu.memory_space<vmem>> -> memref<1x1x1x128xf32, #tpu.memory_space<vmem>>
      %1296 = tpu.memref_squeeze %1295 : memref<1x1x1x128xf32, #tpu.memory_space<vmem>> -> memref<128xf32, #tpu.memory_space<vmem>>
      %1297 = tpu.memref_slice %arg6[%1008] : memref<2x!tpu.dma_semaphore, #tpu.memory_space<semaphore_mem>> -> memref<1x!tpu.dma_semaphore, #tpu.memory_space<semaphore_mem>>
      %1298 = tpu.memref_squeeze %1297 : memref<1x!tpu.dma_semaphore, #tpu.memory_space<semaphore_mem>> -> memref<!tpu.dma_semaphore, #tpu.memory_space<semaphore_mem>>
      tpu.enqueue_dma source(%1294 : memref<128xf32, #tpu.memory_space<any>>) target(%1296 : memref<128xf32, #tpu.memory_space<vmem>>) target_semaphore(%1298 : memref<!tpu.dma_semaphore, #tpu.memory_space<semaphore_mem>>)
      %c7_i32_962 = arith.constant 7 : i32
      %1299 = arith.addi %1235, %c7_i32_962 : i32
      %1300 = arith.index_cast %1299 : i32 to index
      %1301 = memref.load %arg1[%1300] : memref<64xi32, #tpu.memory_space<smem>>
      %c7_i32_963 = arith.constant 7 : i32
      %c3_i32_964 = arith.constant 3 : i32
      %c0_i32_965 = arith.constant 0 : i32
      %1302 = tpu.memref_slice %arg3[%1301, %c0_i32_965] : memref<50x128xf32, #tpu.memory_space<any>> -> memref<1x128xf32, #tpu.memory_space<any>>
      %1303 = tpu.memref_squeeze %1302 : memref<1x128xf32, #tpu.memory_space<any>> -> memref<128xf32, #tpu.memory_space<any>>
      %c0_i32_966 = arith.constant 0 : i32
      %1304 = tpu.memref_slice %arg5[%1008, %c7_i32_963, %c3_i32_964, %c0_i32_966] : memref<2x8x8x128xf32, #tpu.memory_space<vmem>> -> memref<1x1x1x128xf32, #tpu.memory_space<vmem>>
      %1305 = tpu.memref_squeeze %1304 : memref<1x1x1x128xf32, #tpu.memory_space<vmem>> -> memref<128xf32, #tpu.memory_space<vmem>>
      %1306 = tpu.memref_slice %arg6[%1008] : memref<2x!tpu.dma_semaphore, #tpu.memory_space<semaphore_mem>> -> memref<1x!tpu.dma_semaphore, #tpu.memory_space<semaphore_mem>>
      %1307 = tpu.memref_squeeze %1306 : memref<1x!tpu.dma_semaphore, #tpu.memory_space<semaphore_mem>> -> memref<!tpu.dma_semaphore, #tpu.memory_space<semaphore_mem>>
      tpu.enqueue_dma source(%1303 : memref<128xf32, #tpu.memory_space<any>>) target(%1305 : memref<128xf32, #tpu.memory_space<vmem>>) target_semaphore(%1307 : memref<!tpu.dma_semaphore, #tpu.memory_space<semaphore_mem>>)
      %c4_i32_967 = arith.constant 4 : i32
      %1308 = arith.addi %1011, %c4_i32_967 : i32
      %c8_i32_968 = arith.constant 8 : i32
      %1309 = arith.muli %1308, %c8_i32_968 : i32
      %c0_i32_969 = arith.constant 0 : i32
      %1310 = arith.addi %1309, %c0_i32_969 : i32
      %1311 = arith.index_cast %1310 : i32 to index
      %1312 = memref.load %arg1[%1311] : memref<64xi32, #tpu.memory_space<smem>>
      %c0_i32_970 = arith.constant 0 : i32
      %c4_i32_971 = arith.constant 4 : i32
      %c0_i32_972 = arith.constant 0 : i32
      %1313 = tpu.memref_slice %arg3[%1312, %c0_i32_972] : memref<50x128xf32, #tpu.memory_space<any>> -> memref<1x128xf32, #tpu.memory_space<any>>
      %1314 = tpu.memref_squeeze %1313 : memref<1x128xf32, #tpu.memory_space<any>> -> memref<128xf32, #tpu.memory_space<any>>
      %c0_i32_973 = arith.constant 0 : i32
      %1315 = tpu.memref_slice %arg5[%1008, %c0_i32_970, %c4_i32_971, %c0_i32_973] : memref<2x8x8x128xf32, #tpu.memory_space<vmem>> -> memref<1x1x1x128xf32, #tpu.memory_space<vmem>>
      %1316 = tpu.memref_squeeze %1315 : memref<1x1x1x128xf32, #tpu.memory_space<vmem>> -> memref<128xf32, #tpu.memory_space<vmem>>
      %1317 = tpu.memref_slice %arg6[%1008] : memref<2x!tpu.dma_semaphore, #tpu.memory_space<semaphore_mem>> -> memref<1x!tpu.dma_semaphore, #tpu.memory_space<semaphore_mem>>
      %1318 = tpu.memref_squeeze %1317 : memref<1x!tpu.dma_semaphore, #tpu.memory_space<semaphore_mem>> -> memref<!tpu.dma_semaphore, #tpu.memory_space<semaphore_mem>>
      tpu.enqueue_dma source(%1314 : memref<128xf32, #tpu.memory_space<any>>) target(%1316 : memref<128xf32, #tpu.memory_space<vmem>>) target_semaphore(%1318 : memref<!tpu.dma_semaphore, #tpu.memory_space<semaphore_mem>>)
      %c1_i32_974 = arith.constant 1 : i32
      %1319 = arith.addi %1309, %c1_i32_974 : i32
      %1320 = arith.index_cast %1319 : i32 to index
      %1321 = memref.load %arg1[%1320] : memref<64xi32, #tpu.memory_space<smem>>
      %c1_i32_975 = arith.constant 1 : i32
      %c4_i32_976 = arith.constant 4 : i32
      %c0_i32_977 = arith.constant 0 : i32
      %1322 = tpu.memref_slice %arg3[%1321, %c0_i32_977] : memref<50x128xf32, #tpu.memory_space<any>> -> memref<1x128xf32, #tpu.memory_space<any>>
      %1323 = tpu.memref_squeeze %1322 : memref<1x128xf32, #tpu.memory_space<any>> -> memref<128xf32, #tpu.memory_space<any>>
      %c0_i32_978 = arith.constant 0 : i32
      %1324 = tpu.memref_slice %arg5[%1008, %c1_i32_975, %c4_i32_976, %c0_i32_978] : memref<2x8x8x128xf32, #tpu.memory_space<vmem>> -> memref<1x1x1x128xf32, #tpu.memory_space<vmem>>
      %1325 = tpu.memref_squeeze %1324 : memref<1x1x1x128xf32, #tpu.memory_space<vmem>> -> memref<128xf32, #tpu.memory_space<vmem>>
      %1326 = tpu.memref_slice %arg6[%1008] : memref<2x!tpu.dma_semaphore, #tpu.memory_space<semaphore_mem>> -> memref<1x!tpu.dma_semaphore, #tpu.memory_space<semaphore_mem>>
      %1327 = tpu.memref_squeeze %1326 : memref<1x!tpu.dma_semaphore, #tpu.memory_space<semaphore_mem>> -> memref<!tpu.dma_semaphore, #tpu.memory_space<semaphore_mem>>
      tpu.enqueue_dma source(%1323 : memref<128xf32, #tpu.memory_space<any>>) target(%1325 : memref<128xf32, #tpu.memory_space<vmem>>) target_semaphore(%1327 : memref<!tpu.dma_semaphore, #tpu.memory_space<semaphore_mem>>)
      %c2_i32_979 = arith.constant 2 : i32
      %1328 = arith.addi %1309, %c2_i32_979 : i32
      %1329 = arith.index_cast %1328 : i32 to index
      %1330 = memref.load %arg1[%1329] : memref<64xi32, #tpu.memory_space<smem>>
      %c2_i32_980 = arith.constant 2 : i32
      %c4_i32_981 = arith.constant 4 : i32
      %c0_i32_982 = arith.constant 0 : i32
      %1331 = tpu.memref_slice %arg3[%1330, %c0_i32_982] : memref<50x128xf32, #tpu.memory_space<any>> -> memref<1x128xf32, #tpu.memory_space<any>>
      %1332 = tpu.memref_squeeze %1331 : memref<1x128xf32, #tpu.memory_space<any>> -> memref<128xf32, #tpu.memory_space<any>>
      %c0_i32_983 = arith.constant 0 : i32
      %1333 = tpu.memref_slice %arg5[%1008, %c2_i32_980, %c4_i32_981, %c0_i32_983] : memref<2x8x8x128xf32, #tpu.memory_space<vmem>> -> memref<1x1x1x128xf32, #tpu.memory_space<vmem>>
      %1334 = tpu.memref_squeeze %1333 : memref<1x1x1x128xf32, #tpu.memory_space<vmem>> -> memref<128xf32, #tpu.memory_space<vmem>>
      %1335 = tpu.memref_slice %arg6[%1008] : memref<2x!tpu.dma_semaphore, #tpu.memory_space<semaphore_mem>> -> memref<1x!tpu.dma_semaphore, #tpu.memory_space<semaphore_mem>>
      %1336 = tpu.memref_squeeze %1335 : memref<1x!tpu.dma_semaphore, #tpu.memory_space<semaphore_mem>> -> memref<!tpu.dma_semaphore, #tpu.memory_space<semaphore_mem>>
      tpu.enqueue_dma source(%1332 : memref<128xf32, #tpu.memory_space<any>>) target(%1334 : memref<128xf32, #tpu.memory_space<vmem>>) target_semaphore(%1336 : memref<!tpu.dma_semaphore, #tpu.memory_space<semaphore_mem>>)
      %c3_i32_984 = arith.constant 3 : i32
      %1337 = arith.addi %1309, %c3_i32_984 : i32
      %1338 = arith.index_cast %1337 : i32 to index
      %1339 = memref.load %arg1[%1338] : memref<64xi32, #tpu.memory_space<smem>>
      %c3_i32_985 = arith.constant 3 : i32
      %c4_i32_986 = arith.constant 4 : i32
      %c0_i32_987 = arith.constant 0 : i32
      %1340 = tpu.memref_slice %arg3[%1339, %c0_i32_987] : memref<50x128xf32, #tpu.memory_space<any>> -> memref<1x128xf32, #tpu.memory_space<any>>
      %1341 = tpu.memref_squeeze %1340 : memref<1x128xf32, #tpu.memory_space<any>> -> memref<128xf32, #tpu.memory_space<any>>
      %c0_i32_988 = arith.constant 0 : i32
      %1342 = tpu.memref_slice %arg5[%1008, %c3_i32_985, %c4_i32_986, %c0_i32_988] : memref<2x8x8x128xf32, #tpu.memory_space<vmem>> -> memref<1x1x1x128xf32, #tpu.memory_space<vmem>>
      %1343 = tpu.memref_squeeze %1342 : memref<1x1x1x128xf32, #tpu.memory_space<vmem>> -> memref<128xf32, #tpu.memory_space<vmem>>
      %1344 = tpu.memref_slice %arg6[%1008] : memref<2x!tpu.dma_semaphore, #tpu.memory_space<semaphore_mem>> -> memref<1x!tpu.dma_semaphore, #tpu.memory_space<semaphore_mem>>
      %1345 = tpu.memref_squeeze %1344 : memref<1x!tpu.dma_semaphore, #tpu.memory_space<semaphore_mem>> -> memref<!tpu.dma_semaphore, #tpu.memory_space<semaphore_mem>>
      tpu.enqueue_dma source(%1341 : memref<128xf32, #tpu.memory_space<any>>) target(%1343 : memref<128xf32, #tpu.memory_space<vmem>>) target_semaphore(%1345 : memref<!tpu.dma_semaphore, #tpu.memory_space<semaphore_mem>>)
      %c4_i32_989 = arith.constant 4 : i32
      %1346 = arith.addi %1309, %c4_i32_989 : i32
      %1347 = arith.index_cast %1346 : i32 to index
      %1348 = memref.load %arg1[%1347] : memref<64xi32, #tpu.memory_space<smem>>
      %c4_i32_990 = arith.constant 4 : i32
      %c4_i32_991 = arith.constant 4 : i32
      %c0_i32_992 = arith.constant 0 : i32
      %1349 = tpu.memref_slice %arg3[%1348, %c0_i32_992] : memref<50x128xf32, #tpu.memory_space<any>> -> memref<1x128xf32, #tpu.memory_space<any>>
      %1350 = tpu.memref_squeeze %1349 : memref<1x128xf32, #tpu.memory_space<any>> -> memref<128xf32, #tpu.memory_space<any>>
      %c0_i32_993 = arith.constant 0 : i32
      %1351 = tpu.memref_slice %arg5[%1008, %c4_i32_990, %c4_i32_991, %c0_i32_993] : memref<2x8x8x128xf32, #tpu.memory_space<vmem>> -> memref<1x1x1x128xf32, #tpu.memory_space<vmem>>
      %1352 = tpu.memref_squeeze %1351 : memref<1x1x1x128xf32, #tpu.memory_space<vmem>> -> memref<128xf32, #tpu.memory_space<vmem>>
      %1353 = tpu.memref_slice %arg6[%1008] : memref<2x!tpu.dma_semaphore, #tpu.memory_space<semaphore_mem>> -> memref<1x!tpu.dma_semaphore, #tpu.memory_space<semaphore_mem>>
      %1354 = tpu.memref_squeeze %1353 : memref<1x!tpu.dma_semaphore, #tpu.memory_space<semaphore_mem>> -> memref<!tpu.dma_semaphore, #tpu.memory_space<semaphore_mem>>
      tpu.enqueue_dma source(%1350 : memref<128xf32, #tpu.memory_space<any>>) target(%1352 : memref<128xf32, #tpu.memory_space<vmem>>) target_semaphore(%1354 : memref<!tpu.dma_semaphore, #tpu.memory_space<semaphore_mem>>)
      %c5_i32_994 = arith.constant 5 : i32
      %1355 = arith.addi %1309, %c5_i32_994 : i32
      %1356 = arith.index_cast %1355 : i32 to index
      %1357 = memref.load %arg1[%1356] : memref<64xi32, #tpu.memory_space<smem>>
      %c5_i32_995 = arith.constant 5 : i32
      %c4_i32_996 = arith.constant 4 : i32
      %c0_i32_997 = arith.constant 0 : i32
      %1358 = tpu.memref_slice %arg3[%1357, %c0_i32_997] : memref<50x128xf32, #tpu.memory_space<any>> -> memref<1x128xf32, #tpu.memory_space<any>>
      %1359 = tpu.memref_squeeze %1358 : memref<1x128xf32, #tpu.memory_space<any>> -> memref<128xf32, #tpu.memory_space<any>>
      %c0_i32_998 = arith.constant 0 : i32
      %1360 = tpu.memref_slice %arg5[%1008, %c5_i32_995, %c4_i32_996, %c0_i32_998] : memref<2x8x8x128xf32, #tpu.memory_space<vmem>> -> memref<1x1x1x128xf32, #tpu.memory_space<vmem>>
      %1361 = tpu.memref_squeeze %1360 : memref<1x1x1x128xf32, #tpu.memory_space<vmem>> -> memref<128xf32, #tpu.memory_space<vmem>>
      %1362 = tpu.memref_slice %arg6[%1008] : memref<2x!tpu.dma_semaphore, #tpu.memory_space<semaphore_mem>> -> memref<1x!tpu.dma_semaphore, #tpu.memory_space<semaphore_mem>>
      %1363 = tpu.memref_squeeze %1362 : memref<1x!tpu.dma_semaphore, #tpu.memory_space<semaphore_mem>> -> memref<!tpu.dma_semaphore, #tpu.memory_space<semaphore_mem>>
      tpu.enqueue_dma source(%1359 : memref<128xf32, #tpu.memory_space<any>>) target(%1361 : memref<128xf32, #tpu.memory_space<vmem>>) target_semaphore(%1363 : memref<!tpu.dma_semaphore, #tpu.memory_space<semaphore_mem>>)
      %c6_i32_999 = arith.constant 6 : i32
      %1364 = arith.addi %1309, %c6_i32_999 : i32
      %1365 = arith.index_cast %1364 : i32 to index
      %1366 = memref.load %arg1[%1365] : memref<64xi32, #tpu.memory_space<smem>>
      %c6_i32_1000 = arith.constant 6 : i32
      %c4_i32_1001 = arith.constant 4 : i32
      %c0_i32_1002 = arith.constant 0 : i32
      %1367 = tpu.memref_slice %arg3[%1366, %c0_i32_1002] : memref<50x128xf32, #tpu.memory_space<any>> -> memref<1x128xf32, #tpu.memory_space<any>>
      %1368 = tpu.memref_squeeze %1367 : memref<1x128xf32, #tpu.memory_space<any>> -> memref<128xf32, #tpu.memory_space<any>>
      %c0_i32_1003 = arith.constant 0 : i32
      %1369 = tpu.memref_slice %arg5[%1008, %c6_i32_1000, %c4_i32_1001, %c0_i32_1003] : memref<2x8x8x128xf32, #tpu.memory_space<vmem>> -> memref<1x1x1x128xf32, #tpu.memory_space<vmem>>
      %1370 = tpu.memref_squeeze %1369 : memref<1x1x1x128xf32, #tpu.memory_space<vmem>> -> memref<128xf32, #tpu.memory_space<vmem>>
      %1371 = tpu.memref_slice %arg6[%1008] : memref<2x!tpu.dma_semaphore, #tpu.memory_space<semaphore_mem>> -> memref<1x!tpu.dma_semaphore, #tpu.memory_space<semaphore_mem>>
      %1372 = tpu.memref_squeeze %1371 : memref<1x!tpu.dma_semaphore, #tpu.memory_space<semaphore_mem>> -> memref<!tpu.dma_semaphore, #tpu.memory_space<semaphore_mem>>
      tpu.enqueue_dma source(%1368 : memref<128xf32, #tpu.memory_space<any>>) target(%1370 : memref<128xf32, #tpu.memory_space<vmem>>) target_semaphore(%1372 : memref<!tpu.dma_semaphore, #tpu.memory_space<semaphore_mem>>)
      %c7_i32_1004 = arith.constant 7 : i32
      %1373 = arith.addi %1309, %c7_i32_1004 : i32
      %1374 = arith.index_cast %1373 : i32 to index
      %1375 = memref.load %arg1[%1374] : memref<64xi32, #tpu.memory_space<smem>>
      %c7_i32_1005 = arith.constant 7 : i32
      %c4_i32_1006 = arith.constant 4 : i32
      %c0_i32_1007 = arith.constant 0 : i32
      %1376 = tpu.memref_slice %arg3[%1375, %c0_i32_1007] : memref<50x128xf32, #tpu.memory_space<any>> -> memref<1x128xf32, #tpu.memory_space<any>>
      %1377 = tpu.memref_squeeze %1376 : memref<1x128xf32, #tpu.memory_space<any>> -> memref<128xf32, #tpu.memory_space<any>>
      %c0_i32_1008 = arith.constant 0 : i32
      %1378 = tpu.memref_slice %arg5[%1008, %c7_i32_1005, %c4_i32_1006, %c0_i32_1008] : memref<2x8x8x128xf32, #tpu.memory_space<vmem>> -> memref<1x1x1x128xf32, #tpu.memory_space<vmem>>
      %1379 = tpu.memref_squeeze %1378 : memref<1x1x1x128xf32, #tpu.memory_space<vmem>> -> memref<128xf32, #tpu.memory_space<vmem>>
      %1380 = tpu.memref_slice %arg6[%1008] : memref<2x!tpu.dma_semaphore, #tpu.memory_space<semaphore_mem>> -> memref<1x!tpu.dma_semaphore, #tpu.memory_space<semaphore_mem>>
      %1381 = tpu.memref_squeeze %1380 : memref<1x!tpu.dma_semaphore, #tpu.memory_space<semaphore_mem>> -> memref<!tpu.dma_semaphore, #tpu.memory_space<semaphore_mem>>
      tpu.enqueue_dma source(%1377 : memref<128xf32, #tpu.memory_space<any>>) target(%1379 : memref<128xf32, #tpu.memory_space<vmem>>) target_semaphore(%1381 : memref<!tpu.dma_semaphore, #tpu.memory_space<semaphore_mem>>)
      %c5_i32_1009 = arith.constant 5 : i32
      %1382 = arith.addi %1011, %c5_i32_1009 : i32
      %c8_i32_1010 = arith.constant 8 : i32
      %1383 = arith.muli %1382, %c8_i32_1010 : i32
      %c0_i32_1011 = arith.constant 0 : i32
      %1384 = arith.addi %1383, %c0_i32_1011 : i32
      %1385 = arith.index_cast %1384 : i32 to index
      %1386 = memref.load %arg1[%1385] : memref<64xi32, #tpu.memory_space<smem>>
      %c0_i32_1012 = arith.constant 0 : i32
      %c5_i32_1013 = arith.constant 5 : i32
      %c0_i32_1014 = arith.constant 0 : i32
      %1387 = tpu.memref_slice %arg3[%1386, %c0_i32_1014] : memref<50x128xf32, #tpu.memory_space<any>> -> memref<1x128xf32, #tpu.memory_space<any>>
      %1388 = tpu.memref_squeeze %1387 : memref<1x128xf32, #tpu.memory_space<any>> -> memref<128xf32, #tpu.memory_space<any>>
      %c0_i32_1015 = arith.constant 0 : i32
      %1389 = tpu.memref_slice %arg5[%1008, %c0_i32_1012, %c5_i32_1013, %c0_i32_1015] : memref<2x8x8x128xf32, #tpu.memory_space<vmem>> -> memref<1x1x1x128xf32, #tpu.memory_space<vmem>>
      %1390 = tpu.memref_squeeze %1389 : memref<1x1x1x128xf32, #tpu.memory_space<vmem>> -> memref<128xf32, #tpu.memory_space<vmem>>
      %1391 = tpu.memref_slice %arg6[%1008] : memref<2x!tpu.dma_semaphore, #tpu.memory_space<semaphore_mem>> -> memref<1x!tpu.dma_semaphore, #tpu.memory_space<semaphore_mem>>
      %1392 = tpu.memref_squeeze %1391 : memref<1x!tpu.dma_semaphore, #tpu.memory_space<semaphore_mem>> -> memref<!tpu.dma_semaphore, #tpu.memory_space<semaphore_mem>>
      tpu.enqueue_dma source(%1388 : memref<128xf32, #tpu.memory_space<any>>) target(%1390 : memref<128xf32, #tpu.memory_space<vmem>>) target_semaphore(%1392 : memref<!tpu.dma_semaphore, #tpu.memory_space<semaphore_mem>>)
      %c1_i32_1016 = arith.constant 1 : i32
      %1393 = arith.addi %1383, %c1_i32_1016 : i32
      %1394 = arith.index_cast %1393 : i32 to index
      %1395 = memref.load %arg1[%1394] : memref<64xi32, #tpu.memory_space<smem>>
      %c1_i32_1017 = arith.constant 1 : i32
      %c5_i32_1018 = arith.constant 5 : i32
      %c0_i32_1019 = arith.constant 0 : i32
      %1396 = tpu.memref_slice %arg3[%1395, %c0_i32_1019] : memref<50x128xf32, #tpu.memory_space<any>> -> memref<1x128xf32, #tpu.memory_space<any>>
      %1397 = tpu.memref_squeeze %1396 : memref<1x128xf32, #tpu.memory_space<any>> -> memref<128xf32, #tpu.memory_space<any>>
      %c0_i32_1020 = arith.constant 0 : i32
      %1398 = tpu.memref_slice %arg5[%1008, %c1_i32_1017, %c5_i32_1018, %c0_i32_1020] : memref<2x8x8x128xf32, #tpu.memory_space<vmem>> -> memref<1x1x1x128xf32, #tpu.memory_space<vmem>>
      %1399 = tpu.memref_squeeze %1398 : memref<1x1x1x128xf32, #tpu.memory_space<vmem>> -> memref<128xf32, #tpu.memory_space<vmem>>
      %1400 = tpu.memref_slice %arg6[%1008] : memref<2x!tpu.dma_semaphore, #tpu.memory_space<semaphore_mem>> -> memref<1x!tpu.dma_semaphore, #tpu.memory_space<semaphore_mem>>
      %1401 = tpu.memref_squeeze %1400 : memref<1x!tpu.dma_semaphore, #tpu.memory_space<semaphore_mem>> -> memref<!tpu.dma_semaphore, #tpu.memory_space<semaphore_mem>>
      tpu.enqueue_dma source(%1397 : memref<128xf32, #tpu.memory_space<any>>) target(%1399 : memref<128xf32, #tpu.memory_space<vmem>>) target_semaphore(%1401 : memref<!tpu.dma_semaphore, #tpu.memory_space<semaphore_mem>>)
      %c2_i32_1021 = arith.constant 2 : i32
      %1402 = arith.addi %1383, %c2_i32_1021 : i32
      %1403 = arith.index_cast %1402 : i32 to index
      %1404 = memref.load %arg1[%1403] : memref<64xi32, #tpu.memory_space<smem>>
      %c2_i32_1022 = arith.constant 2 : i32
      %c5_i32_1023 = arith.constant 5 : i32
      %c0_i32_1024 = arith.constant 0 : i32
      %1405 = tpu.memref_slice %arg3[%1404, %c0_i32_1024] : memref<50x128xf32, #tpu.memory_space<any>> -> memref<1x128xf32, #tpu.memory_space<any>>
      %1406 = tpu.memref_squeeze %1405 : memref<1x128xf32, #tpu.memory_space<any>> -> memref<128xf32, #tpu.memory_space<any>>
      %c0_i32_1025 = arith.constant 0 : i32
      %1407 = tpu.memref_slice %arg5[%1008, %c2_i32_1022, %c5_i32_1023, %c0_i32_1025] : memref<2x8x8x128xf32, #tpu.memory_space<vmem>> -> memref<1x1x1x128xf32, #tpu.memory_space<vmem>>
      %1408 = tpu.memref_squeeze %1407 : memref<1x1x1x128xf32, #tpu.memory_space<vmem>> -> memref<128xf32, #tpu.memory_space<vmem>>
      %1409 = tpu.memref_slice %arg6[%1008] : memref<2x!tpu.dma_semaphore, #tpu.memory_space<semaphore_mem>> -> memref<1x!tpu.dma_semaphore, #tpu.memory_space<semaphore_mem>>
      %1410 = tpu.memref_squeeze %1409 : memref<1x!tpu.dma_semaphore, #tpu.memory_space<semaphore_mem>> -> memref<!tpu.dma_semaphore, #tpu.memory_space<semaphore_mem>>
      tpu.enqueue_dma source(%1406 : memref<128xf32, #tpu.memory_space<any>>) target(%1408 : memref<128xf32, #tpu.memory_space<vmem>>) target_semaphore(%1410 : memref<!tpu.dma_semaphore, #tpu.memory_space<semaphore_mem>>)
      %c3_i32_1026 = arith.constant 3 : i32
      %1411 = arith.addi %1383, %c3_i32_1026 : i32
      %1412 = arith.index_cast %1411 : i32 to index
      %1413 = memref.load %arg1[%1412] : memref<64xi32, #tpu.memory_space<smem>>
      %c3_i32_1027 = arith.constant 3 : i32
      %c5_i32_1028 = arith.constant 5 : i32
      %c0_i32_1029 = arith.constant 0 : i32
      %1414 = tpu.memref_slice %arg3[%1413, %c0_i32_1029] : memref<50x128xf32, #tpu.memory_space<any>> -> memref<1x128xf32, #tpu.memory_space<any>>
      %1415 = tpu.memref_squeeze %1414 : memref<1x128xf32, #tpu.memory_space<any>> -> memref<128xf32, #tpu.memory_space<any>>
      %c0_i32_1030 = arith.constant 0 : i32
      %1416 = tpu.memref_slice %arg5[%1008, %c3_i32_1027, %c5_i32_1028, %c0_i32_1030] : memref<2x8x8x128xf32, #tpu.memory_space<vmem>> -> memref<1x1x1x128xf32, #tpu.memory_space<vmem>>
      %1417 = tpu.memref_squeeze %1416 : memref<1x1x1x128xf32, #tpu.memory_space<vmem>> -> memref<128xf32, #tpu.memory_space<vmem>>
      %1418 = tpu.memref_slice %arg6[%1008] : memref<2x!tpu.dma_semaphore, #tpu.memory_space<semaphore_mem>> -> memref<1x!tpu.dma_semaphore, #tpu.memory_space<semaphore_mem>>
      %1419 = tpu.memref_squeeze %1418 : memref<1x!tpu.dma_semaphore, #tpu.memory_space<semaphore_mem>> -> memref<!tpu.dma_semaphore, #tpu.memory_space<semaphore_mem>>
      tpu.enqueue_dma source(%1415 : memref<128xf32, #tpu.memory_space<any>>) target(%1417 : memref<128xf32, #tpu.memory_space<vmem>>) target_semaphore(%1419 : memref<!tpu.dma_semaphore, #tpu.memory_space<semaphore_mem>>)
      %c4_i32_1031 = arith.constant 4 : i32
      %1420 = arith.addi %1383, %c4_i32_1031 : i32
      %1421 = arith.index_cast %1420 : i32 to index
      %1422 = memref.load %arg1[%1421] : memref<64xi32, #tpu.memory_space<smem>>
      %c4_i32_1032 = arith.constant 4 : i32
      %c5_i32_1033 = arith.constant 5 : i32
      %c0_i32_1034 = arith.constant 0 : i32
      %1423 = tpu.memref_slice %arg3[%1422, %c0_i32_1034] : memref<50x128xf32, #tpu.memory_space<any>> -> memref<1x128xf32, #tpu.memory_space<any>>
      %1424 = tpu.memref_squeeze %1423 : memref<1x128xf32, #tpu.memory_space<any>> -> memref<128xf32, #tpu.memory_space<any>>
      %c0_i32_1035 = arith.constant 0 : i32
      %1425 = tpu.memref_slice %arg5[%1008, %c4_i32_1032, %c5_i32_1033, %c0_i32_1035] : memref<2x8x8x128xf32, #tpu.memory_space<vmem>> -> memref<1x1x1x128xf32, #tpu.memory_space<vmem>>
      %1426 = tpu.memref_squeeze %1425 : memref<1x1x1x128xf32, #tpu.memory_space<vmem>> -> memref<128xf32, #tpu.memory_space<vmem>>
      %1427 = tpu.memref_slice %arg6[%1008] : memref<2x!tpu.dma_semaphore, #tpu.memory_space<semaphore_mem>> -> memref<1x!tpu.dma_semaphore, #tpu.memory_space<semaphore_mem>>
      %1428 = tpu.memref_squeeze %1427 : memref<1x!tpu.dma_semaphore, #tpu.memory_space<semaphore_mem>> -> memref<!tpu.dma_semaphore, #tpu.memory_space<semaphore_mem>>
      tpu.enqueue_dma source(%1424 : memref<128xf32, #tpu.memory_space<any>>) target(%1426 : memref<128xf32, #tpu.memory_space<vmem>>) target_semaphore(%1428 : memref<!tpu.dma_semaphore, #tpu.memory_space<semaphore_mem>>)
      %c5_i32_1036 = arith.constant 5 : i32
      %1429 = arith.addi %1383, %c5_i32_1036 : i32
      %1430 = arith.index_cast %1429 : i32 to index
      %1431 = memref.load %arg1[%1430] : memref<64xi32, #tpu.memory_space<smem>>
      %c5_i32_1037 = arith.constant 5 : i32
      %c5_i32_1038 = arith.constant 5 : i32
      %c0_i32_1039 = arith.constant 0 : i32
      %1432 = tpu.memref_slice %arg3[%1431, %c0_i32_1039] : memref<50x128xf32, #tpu.memory_space<any>> -> memref<1x128xf32, #tpu.memory_space<any>>
      %1433 = tpu.memref_squeeze %1432 : memref<1x128xf32, #tpu.memory_space<any>> -> memref<128xf32, #tpu.memory_space<any>>
      %c0_i32_1040 = arith.constant 0 : i32
      %1434 = tpu.memref_slice %arg5[%1008, %c5_i32_1037, %c5_i32_1038, %c0_i32_1040] : memref<2x8x8x128xf32, #tpu.memory_space<vmem>> -> memref<1x1x1x128xf32, #tpu.memory_space<vmem>>
      %1435 = tpu.memref_squeeze %1434 : memref<1x1x1x128xf32, #tpu.memory_space<vmem>> -> memref<128xf32, #tpu.memory_space<vmem>>
      %1436 = tpu.memref_slice %arg6[%1008] : memref<2x!tpu.dma_semaphore, #tpu.memory_space<semaphore_mem>> -> memref<1x!tpu.dma_semaphore, #tpu.memory_space<semaphore_mem>>
      %1437 = tpu.memref_squeeze %1436 : memref<1x!tpu.dma_semaphore, #tpu.memory_space<semaphore_mem>> -> memref<!tpu.dma_semaphore, #tpu.memory_space<semaphore_mem>>
      tpu.enqueue_dma source(%1433 : memref<128xf32, #tpu.memory_space<any>>) target(%1435 : memref<128xf32, #tpu.memory_space<vmem>>) target_semaphore(%1437 : memref<!tpu.dma_semaphore, #tpu.memory_space<semaphore_mem>>)
      %c6_i32_1041 = arith.constant 6 : i32
      %1438 = arith.addi %1383, %c6_i32_1041 : i32
      %1439 = arith.index_cast %1438 : i32 to index
      %1440 = memref.load %arg1[%1439] : memref<64xi32, #tpu.memory_space<smem>>
      %c6_i32_1042 = arith.constant 6 : i32
      %c5_i32_1043 = arith.constant 5 : i32
      %c0_i32_1044 = arith.constant 0 : i32
      %1441 = tpu.memref_slice %arg3[%1440, %c0_i32_1044] : memref<50x128xf32, #tpu.memory_space<any>> -> memref<1x128xf32, #tpu.memory_space<any>>
      %1442 = tpu.memref_squeeze %1441 : memref<1x128xf32, #tpu.memory_space<any>> -> memref<128xf32, #tpu.memory_space<any>>
      %c0_i32_1045 = arith.constant 0 : i32
      %1443 = tpu.memref_slice %arg5[%1008, %c6_i32_1042, %c5_i32_1043, %c0_i32_1045] : memref<2x8x8x128xf32, #tpu.memory_space<vmem>> -> memref<1x1x1x128xf32, #tpu.memory_space<vmem>>
      %1444 = tpu.memref_squeeze %1443 : memref<1x1x1x128xf32, #tpu.memory_space<vmem>> -> memref<128xf32, #tpu.memory_space<vmem>>
      %1445 = tpu.memref_slice %arg6[%1008] : memref<2x!tpu.dma_semaphore, #tpu.memory_space<semaphore_mem>> -> memref<1x!tpu.dma_semaphore, #tpu.memory_space<semaphore_mem>>
      %1446 = tpu.memref_squeeze %1445 : memref<1x!tpu.dma_semaphore, #tpu.memory_space<semaphore_mem>> -> memref<!tpu.dma_semaphore, #tpu.memory_space<semaphore_mem>>
      tpu.enqueue_dma source(%1442 : memref<128xf32, #tpu.memory_space<any>>) target(%1444 : memref<128xf32, #tpu.memory_space<vmem>>) target_semaphore(%1446 : memref<!tpu.dma_semaphore, #tpu.memory_space<semaphore_mem>>)
      %c7_i32_1046 = arith.constant 7 : i32
      %1447 = arith.addi %1383, %c7_i32_1046 : i32
      %1448 = arith.index_cast %1447 : i32 to index
      %1449 = memref.load %arg1[%1448] : memref<64xi32, #tpu.memory_space<smem>>
      %c7_i32_1047 = arith.constant 7 : i32
      %c5_i32_1048 = arith.constant 5 : i32
      %c0_i32_1049 = arith.constant 0 : i32
      %1450 = tpu.memref_slice %arg3[%1449, %c0_i32_1049] : memref<50x128xf32, #tpu.memory_space<any>> -> memref<1x128xf32, #tpu.memory_space<any>>
      %1451 = tpu.memref_squeeze %1450 : memref<1x128xf32, #tpu.memory_space<any>> -> memref<128xf32, #tpu.memory_space<any>>
      %c0_i32_1050 = arith.constant 0 : i32
      %1452 = tpu.memref_slice %arg5[%1008, %c7_i32_1047, %c5_i32_1048, %c0_i32_1050] : memref<2x8x8x128xf32, #tpu.memory_space<vmem>> -> memref<1x1x1x128xf32, #tpu.memory_space<vmem>>
      %1453 = tpu.memref_squeeze %1452 : memref<1x1x1x128xf32, #tpu.memory_space<vmem>> -> memref<128xf32, #tpu.memory_space<vmem>>
      %1454 = tpu.memref_slice %arg6[%1008] : memref<2x!tpu.dma_semaphore, #tpu.memory_space<semaphore_mem>> -> memref<1x!tpu.dma_semaphore, #tpu.memory_space<semaphore_mem>>
      %1455 = tpu.memref_squeeze %1454 : memref<1x!tpu.dma_semaphore, #tpu.memory_space<semaphore_mem>> -> memref<!tpu.dma_semaphore, #tpu.memory_space<semaphore_mem>>
      tpu.enqueue_dma source(%1451 : memref<128xf32, #tpu.memory_space<any>>) target(%1453 : memref<128xf32, #tpu.memory_space<vmem>>) target_semaphore(%1455 : memref<!tpu.dma_semaphore, #tpu.memory_space<semaphore_mem>>)
      %c6_i32_1051 = arith.constant 6 : i32
      %1456 = arith.addi %1011, %c6_i32_1051 : i32
      %c8_i32_1052 = arith.constant 8 : i32
      %1457 = arith.muli %1456, %c8_i32_1052 : i32
      %c0_i32_1053 = arith.constant 0 : i32
      %1458 = arith.addi %1457, %c0_i32_1053 : i32
      %1459 = arith.index_cast %1458 : i32 to index
      %1460 = memref.load %arg1[%1459] : memref<64xi32, #tpu.memory_space<smem>>
      %c0_i32_1054 = arith.constant 0 : i32
      %c6_i32_1055 = arith.constant 6 : i32
      %c0_i32_1056 = arith.constant 0 : i32
      %1461 = tpu.memref_slice %arg3[%1460, %c0_i32_1056] : memref<50x128xf32, #tpu.memory_space<any>> -> memref<1x128xf32, #tpu.memory_space<any>>
      %1462 = tpu.memref_squeeze %1461 : memref<1x128xf32, #tpu.memory_space<any>> -> memref<128xf32, #tpu.memory_space<any>>
      %c0_i32_1057 = arith.constant 0 : i32
      %1463 = tpu.memref_slice %arg5[%1008, %c0_i32_1054, %c6_i32_1055, %c0_i32_1057] : memref<2x8x8x128xf32, #tpu.memory_space<vmem>> -> memref<1x1x1x128xf32, #tpu.memory_space<vmem>>
      %1464 = tpu.memref_squeeze %1463 : memref<1x1x1x128xf32, #tpu.memory_space<vmem>> -> memref<128xf32, #tpu.memory_space<vmem>>
      %1465 = tpu.memref_slice %arg6[%1008] : memref<2x!tpu.dma_semaphore, #tpu.memory_space<semaphore_mem>> -> memref<1x!tpu.dma_semaphore, #tpu.memory_space<semaphore_mem>>
      %1466 = tpu.memref_squeeze %1465 : memref<1x!tpu.dma_semaphore, #tpu.memory_space<semaphore_mem>> -> memref<!tpu.dma_semaphore, #tpu.memory_space<semaphore_mem>>
      tpu.enqueue_dma source(%1462 : memref<128xf32, #tpu.memory_space<any>>) target(%1464 : memref<128xf32, #tpu.memory_space<vmem>>) target_semaphore(%1466 : memref<!tpu.dma_semaphore, #tpu.memory_space<semaphore_mem>>)
      %c1_i32_1058 = arith.constant 1 : i32
      %1467 = arith.addi %1457, %c1_i32_1058 : i32
      %1468 = arith.index_cast %1467 : i32 to index
      %1469 = memref.load %arg1[%1468] : memref<64xi32, #tpu.memory_space<smem>>
      %c1_i32_1059 = arith.constant 1 : i32
      %c6_i32_1060 = arith.constant 6 : i32
      %c0_i32_1061 = arith.constant 0 : i32
      %1470 = tpu.memref_slice %arg3[%1469, %c0_i32_1061] : memref<50x128xf32, #tpu.memory_space<any>> -> memref<1x128xf32, #tpu.memory_space<any>>
      %1471 = tpu.memref_squeeze %1470 : memref<1x128xf32, #tpu.memory_space<any>> -> memref<128xf32, #tpu.memory_space<any>>
      %c0_i32_1062 = arith.constant 0 : i32
      %1472 = tpu.memref_slice %arg5[%1008, %c1_i32_1059, %c6_i32_1060, %c0_i32_1062] : memref<2x8x8x128xf32, #tpu.memory_space<vmem>> -> memref<1x1x1x128xf32, #tpu.memory_space<vmem>>
      %1473 = tpu.memref_squeeze %1472 : memref<1x1x1x128xf32, #tpu.memory_space<vmem>> -> memref<128xf32, #tpu.memory_space<vmem>>
      %1474 = tpu.memref_slice %arg6[%1008] : memref<2x!tpu.dma_semaphore, #tpu.memory_space<semaphore_mem>> -> memref<1x!tpu.dma_semaphore, #tpu.memory_space<semaphore_mem>>
      %1475 = tpu.memref_squeeze %1474 : memref<1x!tpu.dma_semaphore, #tpu.memory_space<semaphore_mem>> -> memref<!tpu.dma_semaphore, #tpu.memory_space<semaphore_mem>>
      tpu.enqueue_dma source(%1471 : memref<128xf32, #tpu.memory_space<any>>) target(%1473 : memref<128xf32, #tpu.memory_space<vmem>>) target_semaphore(%1475 : memref<!tpu.dma_semaphore, #tpu.memory_space<semaphore_mem>>)
      %c2_i32_1063 = arith.constant 2 : i32
      %1476 = arith.addi %1457, %c2_i32_1063 : i32
      %1477 = arith.index_cast %1476 : i32 to index
      %1478 = memref.load %arg1[%1477] : memref<64xi32, #tpu.memory_space<smem>>
      %c2_i32_1064 = arith.constant 2 : i32
      %c6_i32_1065 = arith.constant 6 : i32
      %c0_i32_1066 = arith.constant 0 : i32
      %1479 = tpu.memref_slice %arg3[%1478, %c0_i32_1066] : memref<50x128xf32, #tpu.memory_space<any>> -> memref<1x128xf32, #tpu.memory_space<any>>
      %1480 = tpu.memref_squeeze %1479 : memref<1x128xf32, #tpu.memory_space<any>> -> memref<128xf32, #tpu.memory_space<any>>
      %c0_i32_1067 = arith.constant 0 : i32
      %1481 = tpu.memref_slice %arg5[%1008, %c2_i32_1064, %c6_i32_1065, %c0_i32_1067] : memref<2x8x8x128xf32, #tpu.memory_space<vmem>> -> memref<1x1x1x128xf32, #tpu.memory_space<vmem>>
      %1482 = tpu.memref_squeeze %1481 : memref<1x1x1x128xf32, #tpu.memory_space<vmem>> -> memref<128xf32, #tpu.memory_space<vmem>>
      %1483 = tpu.memref_slice %arg6[%1008] : memref<2x!tpu.dma_semaphore, #tpu.memory_space<semaphore_mem>> -> memref<1x!tpu.dma_semaphore, #tpu.memory_space<semaphore_mem>>
      %1484 = tpu.memref_squeeze %1483 : memref<1x!tpu.dma_semaphore, #tpu.memory_space<semaphore_mem>> -> memref<!tpu.dma_semaphore, #tpu.memory_space<semaphore_mem>>
      tpu.enqueue_dma source(%1480 : memref<128xf32, #tpu.memory_space<any>>) target(%1482 : memref<128xf32, #tpu.memory_space<vmem>>) target_semaphore(%1484 : memref<!tpu.dma_semaphore, #tpu.memory_space<semaphore_mem>>)
      %c3_i32_1068 = arith.constant 3 : i32
      %1485 = arith.addi %1457, %c3_i32_1068 : i32
      %1486 = arith.index_cast %1485 : i32 to index
      %1487 = memref.load %arg1[%1486] : memref<64xi32, #tpu.memory_space<smem>>
      %c3_i32_1069 = arith.constant 3 : i32
      %c6_i32_1070 = arith.constant 6 : i32
      %c0_i32_1071 = arith.constant 0 : i32
      %1488 = tpu.memref_slice %arg3[%1487, %c0_i32_1071] : memref<50x128xf32, #tpu.memory_space<any>> -> memref<1x128xf32, #tpu.memory_space<any>>
      %1489 = tpu.memref_squeeze %1488 : memref<1x128xf32, #tpu.memory_space<any>> -> memref<128xf32, #tpu.memory_space<any>>
      %c0_i32_1072 = arith.constant 0 : i32
      %1490 = tpu.memref_slice %arg5[%1008, %c3_i32_1069, %c6_i32_1070, %c0_i32_1072] : memref<2x8x8x128xf32, #tpu.memory_space<vmem>> -> memref<1x1x1x128xf32, #tpu.memory_space<vmem>>
      %1491 = tpu.memref_squeeze %1490 : memref<1x1x1x128xf32, #tpu.memory_space<vmem>> -> memref<128xf32, #tpu.memory_space<vmem>>
      %1492 = tpu.memref_slice %arg6[%1008] : memref<2x!tpu.dma_semaphore, #tpu.memory_space<semaphore_mem>> -> memref<1x!tpu.dma_semaphore, #tpu.memory_space<semaphore_mem>>
      %1493 = tpu.memref_squeeze %1492 : memref<1x!tpu.dma_semaphore, #tpu.memory_space<semaphore_mem>> -> memref<!tpu.dma_semaphore, #tpu.memory_space<semaphore_mem>>
      tpu.enqueue_dma source(%1489 : memref<128xf32, #tpu.memory_space<any>>) target(%1491 : memref<128xf32, #tpu.memory_space<vmem>>) target_semaphore(%1493 : memref<!tpu.dma_semaphore, #tpu.memory_space<semaphore_mem>>)
      %c4_i32_1073 = arith.constant 4 : i32
      %1494 = arith.addi %1457, %c4_i32_1073 : i32
      %1495 = arith.index_cast %1494 : i32 to index
      %1496 = memref.load %arg1[%1495] : memref<64xi32, #tpu.memory_space<smem>>
      %c4_i32_1074 = arith.constant 4 : i32
      %c6_i32_1075 = arith.constant 6 : i32
      %c0_i32_1076 = arith.constant 0 : i32
      %1497 = tpu.memref_slice %arg3[%1496, %c0_i32_1076] : memref<50x128xf32, #tpu.memory_space<any>> -> memref<1x128xf32, #tpu.memory_space<any>>
      %1498 = tpu.memref_squeeze %1497 : memref<1x128xf32, #tpu.memory_space<any>> -> memref<128xf32, #tpu.memory_space<any>>
      %c0_i32_1077 = arith.constant 0 : i32
      %1499 = tpu.memref_slice %arg5[%1008, %c4_i32_1074, %c6_i32_1075, %c0_i32_1077] : memref<2x8x8x128xf32, #tpu.memory_space<vmem>> -> memref<1x1x1x128xf32, #tpu.memory_space<vmem>>
      %1500 = tpu.memref_squeeze %1499 : memref<1x1x1x128xf32, #tpu.memory_space<vmem>> -> memref<128xf32, #tpu.memory_space<vmem>>
      %1501 = tpu.memref_slice %arg6[%1008] : memref<2x!tpu.dma_semaphore, #tpu.memory_space<semaphore_mem>> -> memref<1x!tpu.dma_semaphore, #tpu.memory_space<semaphore_mem>>
      %1502 = tpu.memref_squeeze %1501 : memref<1x!tpu.dma_semaphore, #tpu.memory_space<semaphore_mem>> -> memref<!tpu.dma_semaphore, #tpu.memory_space<semaphore_mem>>
      tpu.enqueue_dma source(%1498 : memref<128xf32, #tpu.memory_space<any>>) target(%1500 : memref<128xf32, #tpu.memory_space<vmem>>) target_semaphore(%1502 : memref<!tpu.dma_semaphore, #tpu.memory_space<semaphore_mem>>)
      %c5_i32_1078 = arith.constant 5 : i32
      %1503 = arith.addi %1457, %c5_i32_1078 : i32
      %1504 = arith.index_cast %1503 : i32 to index
      %1505 = memref.load %arg1[%1504] : memref<64xi32, #tpu.memory_space<smem>>
      %c5_i32_1079 = arith.constant 5 : i32
      %c6_i32_1080 = arith.constant 6 : i32
      %c0_i32_1081 = arith.constant 0 : i32
      %1506 = tpu.memref_slice %arg3[%1505, %c0_i32_1081] : memref<50x128xf32, #tpu.memory_space<any>> -> memref<1x128xf32, #tpu.memory_space<any>>
      %1507 = tpu.memref_squeeze %1506 : memref<1x128xf32, #tpu.memory_space<any>> -> memref<128xf32, #tpu.memory_space<any>>
      %c0_i32_1082 = arith.constant 0 : i32
      %1508 = tpu.memref_slice %arg5[%1008, %c5_i32_1079, %c6_i32_1080, %c0_i32_1082] : memref<2x8x8x128xf32, #tpu.memory_space<vmem>> -> memref<1x1x1x128xf32, #tpu.memory_space<vmem>>
      %1509 = tpu.memref_squeeze %1508 : memref<1x1x1x128xf32, #tpu.memory_space<vmem>> -> memref<128xf32, #tpu.memory_space<vmem>>
      %1510 = tpu.memref_slice %arg6[%1008] : memref<2x!tpu.dma_semaphore, #tpu.memory_space<semaphore_mem>> -> memref<1x!tpu.dma_semaphore, #tpu.memory_space<semaphore_mem>>
      %1511 = tpu.memref_squeeze %1510 : memref<1x!tpu.dma_semaphore, #tpu.memory_space<semaphore_mem>> -> memref<!tpu.dma_semaphore, #tpu.memory_space<semaphore_mem>>
      tpu.enqueue_dma source(%1507 : memref<128xf32, #tpu.memory_space<any>>) target(%1509 : memref<128xf32, #tpu.memory_space<vmem>>) target_semaphore(%1511 : memref<!tpu.dma_semaphore, #tpu.memory_space<semaphore_mem>>)
      %c6_i32_1083 = arith.constant 6 : i32
      %1512 = arith.addi %1457, %c6_i32_1083 : i32
      %1513 = arith.index_cast %1512 : i32 to index
      %1514 = memref.load %arg1[%1513] : memref<64xi32, #tpu.memory_space<smem>>
      %c6_i32_1084 = arith.constant 6 : i32
      %c6_i32_1085 = arith.constant 6 : i32
      %c0_i32_1086 = arith.constant 0 : i32
      %1515 = tpu.memref_slice %arg3[%1514, %c0_i32_1086] : memref<50x128xf32, #tpu.memory_space<any>> -> memref<1x128xf32, #tpu.memory_space<any>>
      %1516 = tpu.memref_squeeze %1515 : memref<1x128xf32, #tpu.memory_space<any>> -> memref<128xf32, #tpu.memory_space<any>>
      %c0_i32_1087 = arith.constant 0 : i32
      %1517 = tpu.memref_slice %arg5[%1008, %c6_i32_1084, %c6_i32_1085, %c0_i32_1087] : memref<2x8x8x128xf32, #tpu.memory_space<vmem>> -> memref<1x1x1x128xf32, #tpu.memory_space<vmem>>
      %1518 = tpu.memref_squeeze %1517 : memref<1x1x1x128xf32, #tpu.memory_space<vmem>> -> memref<128xf32, #tpu.memory_space<vmem>>
      %1519 = tpu.memref_slice %arg6[%1008] : memref<2x!tpu.dma_semaphore, #tpu.memory_space<semaphore_mem>> -> memref<1x!tpu.dma_semaphore, #tpu.memory_space<semaphore_mem>>
      %1520 = tpu.memref_squeeze %1519 : memref<1x!tpu.dma_semaphore, #tpu.memory_space<semaphore_mem>> -> memref<!tpu.dma_semaphore, #tpu.memory_space<semaphore_mem>>
      tpu.enqueue_dma source(%1516 : memref<128xf32, #tpu.memory_space<any>>) target(%1518 : memref<128xf32, #tpu.memory_space<vmem>>) target_semaphore(%1520 : memref<!tpu.dma_semaphore, #tpu.memory_space<semaphore_mem>>)
      %c7_i32_1088 = arith.constant 7 : i32
      %1521 = arith.addi %1457, %c7_i32_1088 : i32
      %1522 = arith.index_cast %1521 : i32 to index
      %1523 = memref.load %arg1[%1522] : memref<64xi32, #tpu.memory_space<smem>>
      %c7_i32_1089 = arith.constant 7 : i32
      %c6_i32_1090 = arith.constant 6 : i32
      %c0_i32_1091 = arith.constant 0 : i32
      %1524 = tpu.memref_slice %arg3[%1523, %c0_i32_1091] : memref<50x128xf32, #tpu.memory_space<any>> -> memref<1x128xf32, #tpu.memory_space<any>>
      %1525 = tpu.memref_squeeze %1524 : memref<1x128xf32, #tpu.memory_space<any>> -> memref<128xf32, #tpu.memory_space<any>>
      %c0_i32_1092 = arith.constant 0 : i32
      %1526 = tpu.memref_slice %arg5[%1008, %c7_i32_1089, %c6_i32_1090, %c0_i32_1092] : memref<2x8x8x128xf32, #tpu.memory_space<vmem>> -> memref<1x1x1x128xf32, #tpu.memory_space<vmem>>
      %1527 = tpu.memref_squeeze %1526 : memref<1x1x1x128xf32, #tpu.memory_space<vmem>> -> memref<128xf32, #tpu.memory_space<vmem>>
      %1528 = tpu.memref_slice %arg6[%1008] : memref<2x!tpu.dma_semaphore, #tpu.memory_space<semaphore_mem>> -> memref<1x!tpu.dma_semaphore, #tpu.memory_space<semaphore_mem>>
      %1529 = tpu.memref_squeeze %1528 : memref<1x!tpu.dma_semaphore, #tpu.memory_space<semaphore_mem>> -> memref<!tpu.dma_semaphore, #tpu.memory_space<semaphore_mem>>
      tpu.enqueue_dma source(%1525 : memref<128xf32, #tpu.memory_space<any>>) target(%1527 : memref<128xf32, #tpu.memory_space<vmem>>) target_semaphore(%1529 : memref<!tpu.dma_semaphore, #tpu.memory_space<semaphore_mem>>)
      %c7_i32_1093 = arith.constant 7 : i32
      %1530 = arith.addi %1011, %c7_i32_1093 : i32
      %c8_i32_1094 = arith.constant 8 : i32
      %1531 = arith.muli %1530, %c8_i32_1094 : i32
      %c0_i32_1095 = arith.constant 0 : i32
      %1532 = arith.addi %1531, %c0_i32_1095 : i32
      %1533 = arith.index_cast %1532 : i32 to index
      %1534 = memref.load %arg1[%1533] : memref<64xi32, #tpu.memory_space<smem>>
      %c0_i32_1096 = arith.constant 0 : i32
      %c7_i32_1097 = arith.constant 7 : i32
      %c0_i32_1098 = arith.constant 0 : i32
      %1535 = tpu.memref_slice %arg3[%1534, %c0_i32_1098] : memref<50x128xf32, #tpu.memory_space<any>> -> memref<1x128xf32, #tpu.memory_space<any>>
      %1536 = tpu.memref_squeeze %1535 : memref<1x128xf32, #tpu.memory_space<any>> -> memref<128xf32, #tpu.memory_space<any>>
      %c0_i32_1099 = arith.constant 0 : i32
      %1537 = tpu.memref_slice %arg5[%1008, %c0_i32_1096, %c7_i32_1097, %c0_i32_1099] : memref<2x8x8x128xf32, #tpu.memory_space<vmem>> -> memref<1x1x1x128xf32, #tpu.memory_space<vmem>>
      %1538 = tpu.memref_squeeze %1537 : memref<1x1x1x128xf32, #tpu.memory_space<vmem>> -> memref<128xf32, #tpu.memory_space<vmem>>
      %1539 = tpu.memref_slice %arg6[%1008] : memref<2x!tpu.dma_semaphore, #tpu.memory_space<semaphore_mem>> -> memref<1x!tpu.dma_semaphore, #tpu.memory_space<semaphore_mem>>
      %1540 = tpu.memref_squeeze %1539 : memref<1x!tpu.dma_semaphore, #tpu.memory_space<semaphore_mem>> -> memref<!tpu.dma_semaphore, #tpu.memory_space<semaphore_mem>>
      tpu.enqueue_dma source(%1536 : memref<128xf32, #tpu.memory_space<any>>) target(%1538 : memref<128xf32, #tpu.memory_space<vmem>>) target_semaphore(%1540 : memref<!tpu.dma_semaphore, #tpu.memory_space<semaphore_mem>>)
      %c1_i32_1100 = arith.constant 1 : i32
      %1541 = arith.addi %1531, %c1_i32_1100 : i32
      %1542 = arith.index_cast %1541 : i32 to index
      %1543 = memref.load %arg1[%1542] : memref<64xi32, #tpu.memory_space<smem>>
      %c1_i32_1101 = arith.constant 1 : i32
      %c7_i32_1102 = arith.constant 7 : i32
      %c0_i32_1103 = arith.constant 0 : i32
      %1544 = tpu.memref_slice %arg3[%1543, %c0_i32_1103] : memref<50x128xf32, #tpu.memory_space<any>> -> memref<1x128xf32, #tpu.memory_space<any>>
      %1545 = tpu.memref_squeeze %1544 : memref<1x128xf32, #tpu.memory_space<any>> -> memref<128xf32, #tpu.memory_space<any>>
      %c0_i32_1104 = arith.constant 0 : i32
      %1546 = tpu.memref_slice %arg5[%1008, %c1_i32_1101, %c7_i32_1102, %c0_i32_1104] : memref<2x8x8x128xf32, #tpu.memory_space<vmem>> -> memref<1x1x1x128xf32, #tpu.memory_space<vmem>>
      %1547 = tpu.memref_squeeze %1546 : memref<1x1x1x128xf32, #tpu.memory_space<vmem>> -> memref<128xf32, #tpu.memory_space<vmem>>
      %1548 = tpu.memref_slice %arg6[%1008] : memref<2x!tpu.dma_semaphore, #tpu.memory_space<semaphore_mem>> -> memref<1x!tpu.dma_semaphore, #tpu.memory_space<semaphore_mem>>
      %1549 = tpu.memref_squeeze %1548 : memref<1x!tpu.dma_semaphore, #tpu.memory_space<semaphore_mem>> -> memref<!tpu.dma_semaphore, #tpu.memory_space<semaphore_mem>>
      tpu.enqueue_dma source(%1545 : memref<128xf32, #tpu.memory_space<any>>) target(%1547 : memref<128xf32, #tpu.memory_space<vmem>>) target_semaphore(%1549 : memref<!tpu.dma_semaphore, #tpu.memory_space<semaphore_mem>>)
      %c2_i32_1105 = arith.constant 2 : i32
      %1550 = arith.addi %1531, %c2_i32_1105 : i32
      %1551 = arith.index_cast %1550 : i32 to index
      %1552 = memref.load %arg1[%1551] : memref<64xi32, #tpu.memory_space<smem>>
      %c2_i32_1106 = arith.constant 2 : i32
      %c7_i32_1107 = arith.constant 7 : i32
      %c0_i32_1108 = arith.constant 0 : i32
      %1553 = tpu.memref_slice %arg3[%1552, %c0_i32_1108] : memref<50x128xf32, #tpu.memory_space<any>> -> memref<1x128xf32, #tpu.memory_space<any>>
      %1554 = tpu.memref_squeeze %1553 : memref<1x128xf32, #tpu.memory_space<any>> -> memref<128xf32, #tpu.memory_space<any>>
      %c0_i32_1109 = arith.constant 0 : i32
      %1555 = tpu.memref_slice %arg5[%1008, %c2_i32_1106, %c7_i32_1107, %c0_i32_1109] : memref<2x8x8x128xf32, #tpu.memory_space<vmem>> -> memref<1x1x1x128xf32, #tpu.memory_space<vmem>>
      %1556 = tpu.memref_squeeze %1555 : memref<1x1x1x128xf32, #tpu.memory_space<vmem>> -> memref<128xf32, #tpu.memory_space<vmem>>
      %1557 = tpu.memref_slice %arg6[%1008] : memref<2x!tpu.dma_semaphore, #tpu.memory_space<semaphore_mem>> -> memref<1x!tpu.dma_semaphore, #tpu.memory_space<semaphore_mem>>
      %1558 = tpu.memref_squeeze %1557 : memref<1x!tpu.dma_semaphore, #tpu.memory_space<semaphore_mem>> -> memref<!tpu.dma_semaphore, #tpu.memory_space<semaphore_mem>>
      tpu.enqueue_dma source(%1554 : memref<128xf32, #tpu.memory_space<any>>) target(%1556 : memref<128xf32, #tpu.memory_space<vmem>>) target_semaphore(%1558 : memref<!tpu.dma_semaphore, #tpu.memory_space<semaphore_mem>>)
      %c3_i32_1110 = arith.constant 3 : i32
      %1559 = arith.addi %1531, %c3_i32_1110 : i32
      %1560 = arith.index_cast %1559 : i32 to index
      %1561 = memref.load %arg1[%1560] : memref<64xi32, #tpu.memory_space<smem>>
      %c3_i32_1111 = arith.constant 3 : i32
      %c7_i32_1112 = arith.constant 7 : i32
      %c0_i32_1113 = arith.constant 0 : i32
      %1562 = tpu.memref_slice %arg3[%1561, %c0_i32_1113] : memref<50x128xf32, #tpu.memory_space<any>> -> memref<1x128xf32, #tpu.memory_space<any>>
      %1563 = tpu.memref_squeeze %1562 : memref<1x128xf32, #tpu.memory_space<any>> -> memref<128xf32, #tpu.memory_space<any>>
      %c0_i32_1114 = arith.constant 0 : i32
      %1564 = tpu.memref_slice %arg5[%1008, %c3_i32_1111, %c7_i32_1112, %c0_i32_1114] : memref<2x8x8x128xf32, #tpu.memory_space<vmem>> -> memref<1x1x1x128xf32, #tpu.memory_space<vmem>>
      %1565 = tpu.memref_squeeze %1564 : memref<1x1x1x128xf32, #tpu.memory_space<vmem>> -> memref<128xf32, #tpu.memory_space<vmem>>
      %1566 = tpu.memref_slice %arg6[%1008] : memref<2x!tpu.dma_semaphore, #tpu.memory_space<semaphore_mem>> -> memref<1x!tpu.dma_semaphore, #tpu.memory_space<semaphore_mem>>
      %1567 = tpu.memref_squeeze %1566 : memref<1x!tpu.dma_semaphore, #tpu.memory_space<semaphore_mem>> -> memref<!tpu.dma_semaphore, #tpu.memory_space<semaphore_mem>>
      tpu.enqueue_dma source(%1563 : memref<128xf32, #tpu.memory_space<any>>) target(%1565 : memref<128xf32, #tpu.memory_space<vmem>>) target_semaphore(%1567 : memref<!tpu.dma_semaphore, #tpu.memory_space<semaphore_mem>>)
      %c4_i32_1115 = arith.constant 4 : i32
      %1568 = arith.addi %1531, %c4_i32_1115 : i32
      %1569 = arith.index_cast %1568 : i32 to index
      %1570 = memref.load %arg1[%1569] : memref<64xi32, #tpu.memory_space<smem>>
      %c4_i32_1116 = arith.constant 4 : i32
      %c7_i32_1117 = arith.constant 7 : i32
      %c0_i32_1118 = arith.constant 0 : i32
      %1571 = tpu.memref_slice %arg3[%1570, %c0_i32_1118] : memref<50x128xf32, #tpu.memory_space<any>> -> memref<1x128xf32, #tpu.memory_space<any>>
      %1572 = tpu.memref_squeeze %1571 : memref<1x128xf32, #tpu.memory_space<any>> -> memref<128xf32, #tpu.memory_space<any>>
      %c0_i32_1119 = arith.constant 0 : i32
      %1573 = tpu.memref_slice %arg5[%1008, %c4_i32_1116, %c7_i32_1117, %c0_i32_1119] : memref<2x8x8x128xf32, #tpu.memory_space<vmem>> -> memref<1x1x1x128xf32, #tpu.memory_space<vmem>>
      %1574 = tpu.memref_squeeze %1573 : memref<1x1x1x128xf32, #tpu.memory_space<vmem>> -> memref<128xf32, #tpu.memory_space<vmem>>
      %1575 = tpu.memref_slice %arg6[%1008] : memref<2x!tpu.dma_semaphore, #tpu.memory_space<semaphore_mem>> -> memref<1x!tpu.dma_semaphore, #tpu.memory_space<semaphore_mem>>
      %1576 = tpu.memref_squeeze %1575 : memref<1x!tpu.dma_semaphore, #tpu.memory_space<semaphore_mem>> -> memref<!tpu.dma_semaphore, #tpu.memory_space<semaphore_mem>>
      tpu.enqueue_dma source(%1572 : memref<128xf32, #tpu.memory_space<any>>) target(%1574 : memref<128xf32, #tpu.memory_space<vmem>>) target_semaphore(%1576 : memref<!tpu.dma_semaphore, #tpu.memory_space<semaphore_mem>>)
      %c5_i32_1120 = arith.constant 5 : i32
      %1577 = arith.addi %1531, %c5_i32_1120 : i32
      %1578 = arith.index_cast %1577 : i32 to index
      %1579 = memref.load %arg1[%1578] : memref<64xi32, #tpu.memory_space<smem>>
      %c5_i32_1121 = arith.constant 5 : i32
      %c7_i32_1122 = arith.constant 7 : i32
      %c0_i32_1123 = arith.constant 0 : i32
      %1580 = tpu.memref_slice %arg3[%1579, %c0_i32_1123] : memref<50x128xf32, #tpu.memory_space<any>> -> memref<1x128xf32, #tpu.memory_space<any>>
      %1581 = tpu.memref_squeeze %1580 : memref<1x128xf32, #tpu.memory_space<any>> -> memref<128xf32, #tpu.memory_space<any>>
      %c0_i32_1124 = arith.constant 0 : i32
      %1582 = tpu.memref_slice %arg5[%1008, %c5_i32_1121, %c7_i32_1122, %c0_i32_1124] : memref<2x8x8x128xf32, #tpu.memory_space<vmem>> -> memref<1x1x1x128xf32, #tpu.memory_space<vmem>>
      %1583 = tpu.memref_squeeze %1582 : memref<1x1x1x128xf32, #tpu.memory_space<vmem>> -> memref<128xf32, #tpu.memory_space<vmem>>
      %1584 = tpu.memref_slice %arg6[%1008] : memref<2x!tpu.dma_semaphore, #tpu.memory_space<semaphore_mem>> -> memref<1x!tpu.dma_semaphore, #tpu.memory_space<semaphore_mem>>
      %1585 = tpu.memref_squeeze %1584 : memref<1x!tpu.dma_semaphore, #tpu.memory_space<semaphore_mem>> -> memref<!tpu.dma_semaphore, #tpu.memory_space<semaphore_mem>>
      tpu.enqueue_dma source(%1581 : memref<128xf32, #tpu.memory_space<any>>) target(%1583 : memref<128xf32, #tpu.memory_space<vmem>>) target_semaphore(%1585 : memref<!tpu.dma_semaphore, #tpu.memory_space<semaphore_mem>>)
      %c6_i32_1125 = arith.constant 6 : i32
      %1586 = arith.addi %1531, %c6_i32_1125 : i32
      %1587 = arith.index_cast %1586 : i32 to index
      %1588 = memref.load %arg1[%1587] : memref<64xi32, #tpu.memory_space<smem>>
      %c6_i32_1126 = arith.constant 6 : i32
      %c7_i32_1127 = arith.constant 7 : i32
      %c0_i32_1128 = arith.constant 0 : i32
      %1589 = tpu.memref_slice %arg3[%1588, %c0_i32_1128] : memref<50x128xf32, #tpu.memory_space<any>> -> memref<1x128xf32, #tpu.memory_space<any>>
      %1590 = tpu.memref_squeeze %1589 : memref<1x128xf32, #tpu.memory_space<any>> -> memref<128xf32, #tpu.memory_space<any>>
      %c0_i32_1129 = arith.constant 0 : i32
      %1591 = tpu.memref_slice %arg5[%1008, %c6_i32_1126, %c7_i32_1127, %c0_i32_1129] : memref<2x8x8x128xf32, #tpu.memory_space<vmem>> -> memref<1x1x1x128xf32, #tpu.memory_space<vmem>>
      %1592 = tpu.memref_squeeze %1591 : memref<1x1x1x128xf32, #tpu.memory_space<vmem>> -> memref<128xf32, #tpu.memory_space<vmem>>
      %1593 = tpu.memref_slice %arg6[%1008] : memref<2x!tpu.dma_semaphore, #tpu.memory_space<semaphore_mem>> -> memref<1x!tpu.dma_semaphore, #tpu.memory_space<semaphore_mem>>
      %1594 = tpu.memref_squeeze %1593 : memref<1x!tpu.dma_semaphore, #tpu.memory_space<semaphore_mem>> -> memref<!tpu.dma_semaphore, #tpu.memory_space<semaphore_mem>>
      tpu.enqueue_dma source(%1590 : memref<128xf32, #tpu.memory_space<any>>) target(%1592 : memref<128xf32, #tpu.memory_space<vmem>>) target_semaphore(%1594 : memref<!tpu.dma_semaphore, #tpu.memory_space<semaphore_mem>>)
      %c7_i32_1130 = arith.constant 7 : i32
      %1595 = arith.addi %1531, %c7_i32_1130 : i32
      %1596 = arith.index_cast %1595 : i32 to index
      %1597 = memref.load %arg1[%1596] : memref<64xi32, #tpu.memory_space<smem>>
      %c7_i32_1131 = arith.constant 7 : i32
      %c7_i32_1132 = arith.constant 7 : i32
      %c0_i32_1133 = arith.constant 0 : i32
      %1598 = tpu.memref_slice %arg3[%1597, %c0_i32_1133] : memref<50x128xf32, #tpu.memory_space<any>> -> memref<1x128xf32, #tpu.memory_space<any>>
      %1599 = tpu.memref_squeeze %1598 : memref<1x128xf32, #tpu.memory_space<any>> -> memref<128xf32, #tpu.memory_space<any>>
      %c0_i32_1134 = arith.constant 0 : i32
      %1600 = tpu.memref_slice %arg5[%1008, %c7_i32_1131, %c7_i32_1132, %c0_i32_1134] : memref<2x8x8x128xf32, #tpu.memory_space<vmem>> -> memref<1x1x1x128xf32, #tpu.memory_space<vmem>>
      %1601 = tpu.memref_squeeze %1600 : memref<1x1x1x128xf32, #tpu.memory_space<vmem>> -> memref<128xf32, #tpu.memory_space<vmem>>
      %1602 = tpu.memref_slice %arg6[%1008] : memref<2x!tpu.dma_semaphore, #tpu.memory_space<semaphore_mem>> -> memref<1x!tpu.dma_semaphore, #tpu.memory_space<semaphore_mem>>
      %1603 = tpu.memref_squeeze %1602 : memref<1x!tpu.dma_semaphore, #tpu.memory_space<semaphore_mem>> -> memref<!tpu.dma_semaphore, #tpu.memory_space<semaphore_mem>>
      tpu.enqueue_dma source(%1599 : memref<128xf32, #tpu.memory_space<any>>) target(%1601 : memref<128xf32, #tpu.memory_space<vmem>>) target_semaphore(%1603 : memref<!tpu.dma_semaphore, #tpu.memory_space<semaphore_mem>>)
    } else {
    }
    %c0_i32_469 = arith.constant 0 : i32
    %c0_i32_470 = arith.constant 0 : i32
    %c0_i32_471 = arith.constant 0 : i32
    %c0_i32_472 = arith.constant 0 : i32
    %610 = tpu.memref_slice %arg3[%c0_i32_469, %c0_i32_472] : memref<50x128xf32, #tpu.memory_space<any>> -> memref<1x128xf32, #tpu.memory_space<any>>
    %611 = tpu.memref_squeeze %610 : memref<1x128xf32, #tpu.memory_space<any>> -> memref<128xf32, #tpu.memory_space<any>>
    %c0_i32_473 = arith.constant 0 : i32
    %612 = tpu.memref_slice %arg5[%605, %c0_i32_470, %c0_i32_471, %c0_i32_473] : memref<2x8x8x128xf32, #tpu.memory_space<vmem>> -> memref<1x1x1x128xf32, #tpu.memory_space<vmem>>
    %613 = tpu.memref_squeeze %612 : memref<1x1x1x128xf32, #tpu.memory_space<vmem>> -> memref<128xf32, #tpu.memory_space<vmem>>
    %614 = tpu.memref_slice %arg6[%605] : memref<2x!tpu.dma_semaphore, #tpu.memory_space<semaphore_mem>> -> memref<1x!tpu.dma_semaphore, #tpu.memory_space<semaphore_mem>>
    %615 = tpu.memref_squeeze %614 : memref<1x!tpu.dma_semaphore, #tpu.memory_space<semaphore_mem>> -> memref<!tpu.dma_semaphore, #tpu.memory_space<semaphore_mem>>
    tpu.wait_dma2 semaphore(%615 : memref<!tpu.dma_semaphore, #tpu.memory_space<semaphore_mem>>) src(%611 : memref<128xf32, #tpu.memory_space<any>>) dst(%613 : memref<128xf32, #tpu.memory_space<vmem>>)
    %c0_i32_474 = arith.constant 0 : i32
    %c0_i32_475 = arith.constant 0 : i32
    %c0_i32_476 = arith.constant 0 : i32
    %c0_i32_477 = arith.constant 0 : i32
    %616 = tpu.memref_slice %arg3[%c0_i32_474, %c0_i32_477] : memref<50x128xf32, #tpu.memory_space<any>> -> memref<1x128xf32, #tpu.memory_space<any>>
    %617 = tpu.memref_squeeze %616 : memref<1x128xf32, #tpu.memory_space<any>> -> memref<128xf32, #tpu.memory_space<any>>
    %c0_i32_478 = arith.constant 0 : i32
    %618 = tpu.memref_slice %arg5[%605, %c0_i32_475, %c0_i32_476, %c0_i32_478] : memref<2x8x8x128xf32, #tpu.memory_space<vmem>> -> memref<1x1x1x128xf32, #tpu.memory_space<vmem>>
    %619 = tpu.memref_squeeze %618 : memref<1x1x1x128xf32, #tpu.memory_space<vmem>> -> memref<128xf32, #tpu.memory_space<vmem>>
    %620 = tpu.memref_slice %arg6[%605] : memref<2x!tpu.dma_semaphore, #tpu.memory_space<semaphore_mem>> -> memref<1x!tpu.dma_semaphore, #tpu.memory_space<semaphore_mem>>
    %621 = tpu.memref_squeeze %620 : memref<1x!tpu.dma_semaphore, #tpu.memory_space<semaphore_mem>> -> memref<!tpu.dma_semaphore, #tpu.memory_space<semaphore_mem>>
    tpu.wait_dma2 semaphore(%621 : memref<!tpu.dma_semaphore, #tpu.memory_space<semaphore_mem>>) src(%617 : memref<128xf32, #tpu.memory_space<any>>) dst(%619 : memref<128xf32, #tpu.memory_space<vmem>>)
    %c0_i32_479 = arith.constant 0 : i32
    %c0_i32_480 = arith.constant 0 : i32
    %c0_i32_481 = arith.constant 0 : i32
    %c0_i32_482 = arith.constant 0 : i32
    %622 = tpu.memref_slice %arg3[%c0_i32_479, %c0_i32_482] : memref<50x128xf32, #tpu.memory_space<any>> -> memref<1x128xf32, #tpu.memory_space<any>>
    %623 = tpu.memref_squeeze %622 : memref<1x128xf32, #tpu.memory_space<any>> -> memref<128xf32, #tpu.memory_space<any>>
    %c0_i32_483 = arith.constant 0 : i32
    %624 = tpu.memref_slice %arg5[%605, %c0_i32_480, %c0_i32_481, %c0_i32_483] : memref<2x8x8x128xf32, #tpu.memory_space<vmem>> -> memref<1x1x1x128xf32, #tpu.memory_space<vmem>>
    %625 = tpu.memref_squeeze %624 : memref<1x1x1x128xf32, #tpu.memory_space<vmem>> -> memref<128xf32, #tpu.memory_space<vmem>>
    %626 = tpu.memref_slice %arg6[%605] : memref<2x!tpu.dma_semaphore, #tpu.memory_space<semaphore_mem>> -> memref<1x!tpu.dma_semaphore, #tpu.memory_space<semaphore_mem>>
    %627 = tpu.memref_squeeze %626 : memref<1x!tpu.dma_semaphore, #tpu.memory_space<semaphore_mem>> -> memref<!tpu.dma_semaphore, #tpu.memory_space<semaphore_mem>>
    tpu.wait_dma2 semaphore(%627 : memref<!tpu.dma_semaphore, #tpu.memory_space<semaphore_mem>>) src(%623 : memref<128xf32, #tpu.memory_space<any>>) dst(%625 : memref<128xf32, #tpu.memory_space<vmem>>)
    %c0_i32_484 = arith.constant 0 : i32
    %c0_i32_485 = arith.constant 0 : i32
    %c0_i32_486 = arith.constant 0 : i32
    %c0_i32_487 = arith.constant 0 : i32
    %628 = tpu.memref_slice %arg3[%c0_i32_484, %c0_i32_487] : memref<50x128xf32, #tpu.memory_space<any>> -> memref<1x128xf32, #tpu.memory_space<any>>
    %629 = tpu.memref_squeeze %628 : memref<1x128xf32, #tpu.memory_space<any>> -> memref<128xf32, #tpu.memory_space<any>>
    %c0_i32_488 = arith.constant 0 : i32
    %630 = tpu.memref_slice %arg5[%605, %c0_i32_485, %c0_i32_486, %c0_i32_488] : memref<2x8x8x128xf32, #tpu.memory_space<vmem>> -> memref<1x1x1x128xf32, #tpu.memory_space<vmem>>
    %631 = tpu.memref_squeeze %630 : memref<1x1x1x128xf32, #tpu.memory_space<vmem>> -> memref<128xf32, #tpu.memory_space<vmem>>
    %632 = tpu.memref_slice %arg6[%605] : memref<2x!tpu.dma_semaphore, #tpu.memory_space<semaphore_mem>> -> memref<1x!tpu.dma_semaphore, #tpu.memory_space<semaphore_mem>>
    %633 = tpu.memref_squeeze %632 : memref<1x!tpu.dma_semaphore, #tpu.memory_space<semaphore_mem>> -> memref<!tpu.dma_semaphore, #tpu.memory_space<semaphore_mem>>
    tpu.wait_dma2 semaphore(%633 : memref<!tpu.dma_semaphore, #tpu.memory_space<semaphore_mem>>) src(%629 : memref<128xf32, #tpu.memory_space<any>>) dst(%631 : memref<128xf32, #tpu.memory_space<vmem>>)
    %c0_i32_489 = arith.constant 0 : i32
    %c0_i32_490 = arith.constant 0 : i32
    %c0_i32_491 = arith.constant 0 : i32
    %c0_i32_492 = arith.constant 0 : i32
    %634 = tpu.memref_slice %arg3[%c0_i32_489, %c0_i32_492] : memref<50x128xf32, #tpu.memory_space<any>> -> memref<1x128xf32, #tpu.memory_space<any>>
    %635 = tpu.memref_squeeze %634 : memref<1x128xf32, #tpu.memory_space<any>> -> memref<128xf32, #tpu.memory_space<any>>
    %c0_i32_493 = arith.constant 0 : i32
    %636 = tpu.memref_slice %arg5[%605, %c0_i32_490, %c0_i32_491, %c0_i32_493] : memref<2x8x8x128xf32, #tpu.memory_space<vmem>> -> memref<1x1x1x128xf32, #tpu.memory_space<vmem>>
    %637 = tpu.memref_squeeze %636 : memref<1x1x1x128xf32, #tpu.memory_space<vmem>> -> memref<128xf32, #tpu.memory_space<vmem>>
    %638 = tpu.memref_slice %arg6[%605] : memref<2x!tpu.dma_semaphore, #tpu.memory_space<semaphore_mem>> -> memref<1x!tpu.dma_semaphore, #tpu.memory_space<semaphore_mem>>
    %639 = tpu.memref_squeeze %638 : memref<1x!tpu.dma_semaphore, #tpu.memory_space<semaphore_mem>> -> memref<!tpu.dma_semaphore, #tpu.memory_space<semaphore_mem>>
    tpu.wait_dma2 semaphore(%639 : memref<!tpu.dma_semaphore, #tpu.memory_space<semaphore_mem>>) src(%635 : memref<128xf32, #tpu.memory_space<any>>) dst(%637 : memref<128xf32, #tpu.memory_space<vmem>>)
    %c0_i32_494 = arith.constant 0 : i32
    %c0_i32_495 = arith.constant 0 : i32
    %c0_i32_496 = arith.constant 0 : i32
    %c0_i32_497 = arith.constant 0 : i32
    %640 = tpu.memref_slice %arg3[%c0_i32_494, %c0_i32_497] : memref<50x128xf32, #tpu.memory_space<any>> -> memref<1x128xf32, #tpu.memory_space<any>>
    %641 = tpu.memref_squeeze %640 : memref<1x128xf32, #tpu.memory_space<any>> -> memref<128xf32, #tpu.memory_space<any>>
    %c0_i32_498 = arith.constant 0 : i32
    %642 = tpu.memref_slice %arg5[%605, %c0_i32_495, %c0_i32_496, %c0_i32_498] : memref<2x8x8x128xf32, #tpu.memory_space<vmem>> -> memref<1x1x1x128xf32, #tpu.memory_space<vmem>>
    %643 = tpu.memref_squeeze %642 : memref<1x1x1x128xf32, #tpu.memory_space<vmem>> -> memref<128xf32, #tpu.memory_space<vmem>>
    %644 = tpu.memref_slice %arg6[%605] : memref<2x!tpu.dma_semaphore, #tpu.memory_space<semaphore_mem>> -> memref<1x!tpu.dma_semaphore, #tpu.memory_space<semaphore_mem>>
    %645 = tpu.memref_squeeze %644 : memref<1x!tpu.dma_semaphore, #tpu.memory_space<semaphore_mem>> -> memref<!tpu.dma_semaphore, #tpu.memory_space<semaphore_mem>>
    tpu.wait_dma2 semaphore(%645 : memref<!tpu.dma_semaphore, #tpu.memory_space<semaphore_mem>>) src(%641 : memref<128xf32, #tpu.memory_space<any>>) dst(%643 : memref<128xf32, #tpu.memory_space<vmem>>)
    %c0_i32_499 = arith.constant 0 : i32
    %c0_i32_500 = arith.constant 0 : i32
    %c0_i32_501 = arith.constant 0 : i32
    %c0_i32_502 = arith.constant 0 : i32
    %646 = tpu.memref_slice %arg3[%c0_i32_499, %c0_i32_502] : memref<50x128xf32, #tpu.memory_space<any>> -> memref<1x128xf32, #tpu.memory_space<any>>
    %647 = tpu.memref_squeeze %646 : memref<1x128xf32, #tpu.memory_space<any>> -> memref<128xf32, #tpu.memory_space<any>>
    %c0_i32_503 = arith.constant 0 : i32
    %648 = tpu.memref_slice %arg5[%605, %c0_i32_500, %c0_i32_501, %c0_i32_503] : memref<2x8x8x128xf32, #tpu.memory_space<vmem>> -> memref<1x1x1x128xf32, #tpu.memory_space<vmem>>
    %649 = tpu.memref_squeeze %648 : memref<1x1x1x128xf32, #tpu.memory_space<vmem>> -> memref<128xf32, #tpu.memory_space<vmem>>
    %650 = tpu.memref_slice %arg6[%605] : memref<2x!tpu.dma_semaphore, #tpu.memory_space<semaphore_mem>> -> memref<1x!tpu.dma_semaphore, #tpu.memory_space<semaphore_mem>>
    %651 = tpu.memref_squeeze %650 : memref<1x!tpu.dma_semaphore, #tpu.memory_space<semaphore_mem>> -> memref<!tpu.dma_semaphore, #tpu.memory_space<semaphore_mem>>
    tpu.wait_dma2 semaphore(%651 : memref<!tpu.dma_semaphore, #tpu.memory_space<semaphore_mem>>) src(%647 : memref<128xf32, #tpu.memory_space<any>>) dst(%649 : memref<128xf32, #tpu.memory_space<vmem>>)
    %c0_i32_504 = arith.constant 0 : i32
    %c0_i32_505 = arith.constant 0 : i32
    %c0_i32_506 = arith.constant 0 : i32
    %c0_i32_507 = arith.constant 0 : i32
    %652 = tpu.memref_slice %arg3[%c0_i32_504, %c0_i32_507] : memref<50x128xf32, #tpu.memory_space<any>> -> memref<1x128xf32, #tpu.memory_space<any>>
    %653 = tpu.memref_squeeze %652 : memref<1x128xf32, #tpu.memory_space<any>> -> memref<128xf32, #tpu.memory_space<any>>
    %c0_i32_508 = arith.constant 0 : i32
    %654 = tpu.memref_slice %arg5[%605, %c0_i32_505, %c0_i32_506, %c0_i32_508] : memref<2x8x8x128xf32, #tpu.memory_space<vmem>> -> memref<1x1x1x128xf32, #tpu.memory_space<vmem>>
    %655 = tpu.memref_squeeze %654 : memref<1x1x1x128xf32, #tpu.memory_space<vmem>> -> memref<128xf32, #tpu.memory_space<vmem>>
    %656 = tpu.memref_slice %arg6[%605] : memref<2x!tpu.dma_semaphore, #tpu.memory_space<semaphore_mem>> -> memref<1x!tpu.dma_semaphore, #tpu.memory_space<semaphore_mem>>
    %657 = tpu.memref_squeeze %656 : memref<1x!tpu.dma_semaphore, #tpu.memory_space<semaphore_mem>> -> memref<!tpu.dma_semaphore, #tpu.memory_space<semaphore_mem>>
    tpu.wait_dma2 semaphore(%657 : memref<!tpu.dma_semaphore, #tpu.memory_space<semaphore_mem>>) src(%653 : memref<128xf32, #tpu.memory_space<any>>) dst(%655 : memref<128xf32, #tpu.memory_space<vmem>>)
    %c0_i32_509 = arith.constant 0 : i32
    %c0_i32_510 = arith.constant 0 : i32
    %c0_i32_511 = arith.constant 0 : i32
    %c0_i32_512 = arith.constant 0 : i32
    %658 = tpu.memref_slice %arg3[%c0_i32_509, %c0_i32_512] : memref<50x128xf32, #tpu.memory_space<any>> -> memref<1x128xf32, #tpu.memory_space<any>>
    %659 = tpu.memref_squeeze %658 : memref<1x128xf32, #tpu.memory_space<any>> -> memref<128xf32, #tpu.memory_space<any>>
    %c0_i32_513 = arith.constant 0 : i32
    %660 = tpu.memref_slice %arg5[%605, %c0_i32_510, %c0_i32_511, %c0_i32_513] : memref<2x8x8x128xf32, #tpu.memory_space<vmem>> -> memref<1x1x1x128xf32, #tpu.memory_space<vmem>>
    %661 = tpu.memref_squeeze %660 : memref<1x1x1x128xf32, #tpu.memory_space<vmem>> -> memref<128xf32, #tpu.memory_space<vmem>>
    %662 = tpu.memref_slice %arg6[%605] : memref<2x!tpu.dma_semaphore, #tpu.memory_space<semaphore_mem>> -> memref<1x!tpu.dma_semaphore, #tpu.memory_space<semaphore_mem>>
    %663 = tpu.memref_squeeze %662 : memref<1x!tpu.dma_semaphore, #tpu.memory_space<semaphore_mem>> -> memref<!tpu.dma_semaphore, #tpu.memory_space<semaphore_mem>>
    tpu.wait_dma2 semaphore(%663 : memref<!tpu.dma_semaphore, #tpu.memory_space<semaphore_mem>>) src(%659 : memref<128xf32, #tpu.memory_space<any>>) dst(%661 : memref<128xf32, #tpu.memory_space<vmem>>)
    %c0_i32_514 = arith.constant 0 : i32
    %c0_i32_515 = arith.constant 0 : i32
    %c0_i32_516 = arith.constant 0 : i32
    %c0_i32_517 = arith.constant 0 : i32
    %664 = tpu.memref_slice %arg3[%c0_i32_514, %c0_i32_517] : memref<50x128xf32, #tpu.memory_space<any>> -> memref<1x128xf32, #tpu.memory_space<any>>
    %665 = tpu.memref_squeeze %664 : memref<1x128xf32, #tpu.memory_space<any>> -> memref<128xf32, #tpu.memory_space<any>>
    %c0_i32_518 = arith.constant 0 : i32
    %666 = tpu.memref_slice %arg5[%605, %c0_i32_515, %c0_i32_516, %c0_i32_518] : memref<2x8x8x128xf32, #tpu.memory_space<vmem>> -> memref<1x1x1x128xf32, #tpu.memory_space<vmem>>
    %667 = tpu.memref_squeeze %666 : memref<1x1x1x128xf32, #tpu.memory_space<vmem>> -> memref<128xf32, #tpu.memory_space<vmem>>
    %668 = tpu.memref_slice %arg6[%605] : memref<2x!tpu.dma_semaphore, #tpu.memory_space<semaphore_mem>> -> memref<1x!tpu.dma_semaphore, #tpu.memory_space<semaphore_mem>>
    %669 = tpu.memref_squeeze %668 : memref<1x!tpu.dma_semaphore, #tpu.memory_space<semaphore_mem>> -> memref<!tpu.dma_semaphore, #tpu.memory_space<semaphore_mem>>
    tpu.wait_dma2 semaphore(%669 : memref<!tpu.dma_semaphore, #tpu.memory_space<semaphore_mem>>) src(%665 : memref<128xf32, #tpu.memory_space<any>>) dst(%667 : memref<128xf32, #tpu.memory_space<vmem>>)
    %c0_i32_519 = arith.constant 0 : i32
    %c0_i32_520 = arith.constant 0 : i32
    %c0_i32_521 = arith.constant 0 : i32
    %c0_i32_522 = arith.constant 0 : i32
    %670 = tpu.memref_slice %arg3[%c0_i32_519, %c0_i32_522] : memref<50x128xf32, #tpu.memory_space<any>> -> memref<1x128xf32, #tpu.memory_space<any>>
    %671 = tpu.memref_squeeze %670 : memref<1x128xf32, #tpu.memory_space<any>> -> memref<128xf32, #tpu.memory_space<any>>
    %c0_i32_523 = arith.constant 0 : i32
    %672 = tpu.memref_slice %arg5[%605, %c0_i32_520, %c0_i32_521, %c0_i32_523] : memref<2x8x8x128xf32, #tpu.memory_space<vmem>> -> memref<1x1x1x128xf32, #tpu.memory_space<vmem>>
    %673 = tpu.memref_squeeze %672 : memref<1x1x1x128xf32, #tpu.memory_space<vmem>> -> memref<128xf32, #tpu.memory_space<vmem>>
    %674 = tpu.memref_slice %arg6[%605] : memref<2x!tpu.dma_semaphore, #tpu.memory_space<semaphore_mem>> -> memref<1x!tpu.dma_semaphore, #tpu.memory_space<semaphore_mem>>
    %675 = tpu.memref_squeeze %674 : memref<1x!tpu.dma_semaphore, #tpu.memory_space<semaphore_mem>> -> memref<!tpu.dma_semaphore, #tpu.memory_space<semaphore_mem>>
    tpu.wait_dma2 semaphore(%675 : memref<!tpu.dma_semaphore, #tpu.memory_space<semaphore_mem>>) src(%671 : memref<128xf32, #tpu.memory_space<any>>) dst(%673 : memref<128xf32, #tpu.memory_space<vmem>>)
    %c0_i32_524 = arith.constant 0 : i32
    %c0_i32_525 = arith.constant 0 : i32
    %c0_i32_526 = arith.constant 0 : i32
    %c0_i32_527 = arith.constant 0 : i32
    %676 = tpu.memref_slice %arg3[%c0_i32_524, %c0_i32_527] : memref<50x128xf32, #tpu.memory_space<any>> -> memref<1x128xf32, #tpu.memory_space<any>>
    %677 = tpu.memref_squeeze %676 : memref<1x128xf32, #tpu.memory_space<any>> -> memref<128xf32, #tpu.memory_space<any>>
    %c0_i32_528 = arith.constant 0 : i32
    %678 = tpu.memref_slice %arg5[%605, %c0_i32_525, %c0_i32_526, %c0_i32_528] : memref<2x8x8x128xf32, #tpu.memory_space<vmem>> -> memref<1x1x1x128xf32, #tpu.memory_space<vmem>>
    %679 = tpu.memref_squeeze %678 : memref<1x1x1x128xf32, #tpu.memory_space<vmem>> -> memref<128xf32, #tpu.memory_space<vmem>>
    %680 = tpu.memref_slice %arg6[%605] : memref<2x!tpu.dma_semaphore, #tpu.memory_space<semaphore_mem>> -> memref<1x!tpu.dma_semaphore, #tpu.memory_space<semaphore_mem>>
    %681 = tpu.memref_squeeze %680 : memref<1x!tpu.dma_semaphore, #tpu.memory_space<semaphore_mem>> -> memref<!tpu.dma_semaphore, #tpu.memory_space<semaphore_mem>>
    tpu.wait_dma2 semaphore(%681 : memref<!tpu.dma_semaphore, #tpu.memory_space<semaphore_mem>>) src(%677 : memref<128xf32, #tpu.memory_space<any>>) dst(%679 : memref<128xf32, #tpu.memory_space<vmem>>)
    %c0_i32_529 = arith.constant 0 : i32
    %c0_i32_530 = arith.constant 0 : i32
    %c0_i32_531 = arith.constant 0 : i32
    %c0_i32_532 = arith.constant 0 : i32
    %682 = tpu.memref_slice %arg3[%c0_i32_529, %c0_i32_532] : memref<50x128xf32, #tpu.memory_space<any>> -> memref<1x128xf32, #tpu.memory_space<any>>
    %683 = tpu.memref_squeeze %682 : memref<1x128xf32, #tpu.memory_space<any>> -> memref<128xf32, #tpu.memory_space<any>>
    %c0_i32_533 = arith.constant 0 : i32
    %684 = tpu.memref_slice %arg5[%605, %c0_i32_530, %c0_i32_531, %c0_i32_533] : memref<2x8x8x128xf32, #tpu.memory_space<vmem>> -> memref<1x1x1x128xf32, #tpu.memory_space<vmem>>
    %685 = tpu.memref_squeeze %684 : memref<1x1x1x128xf32, #tpu.memory_space<vmem>> -> memref<128xf32, #tpu.memory_space<vmem>>
    %686 = tpu.memref_slice %arg6[%605] : memref<2x!tpu.dma_semaphore, #tpu.memory_space<semaphore_mem>> -> memref<1x!tpu.dma_semaphore, #tpu.memory_space<semaphore_mem>>
    %687 = tpu.memref_squeeze %686 : memref<1x!tpu.dma_semaphore, #tpu.memory_space<semaphore_mem>> -> memref<!tpu.dma_semaphore, #tpu.memory_space<semaphore_mem>>
    tpu.wait_dma2 semaphore(%687 : memref<!tpu.dma_semaphore, #tpu.memory_space<semaphore_mem>>) src(%683 : memref<128xf32, #tpu.memory_space<any>>) dst(%685 : memref<128xf32, #tpu.memory_space<vmem>>)
    %c0_i32_534 = arith.constant 0 : i32
    %c0_i32_535 = arith.constant 0 : i32
    %c0_i32_536 = arith.constant 0 : i32
    %c0_i32_537 = arith.constant 0 : i32
    %688 = tpu.memref_slice %arg3[%c0_i32_534, %c0_i32_537] : memref<50x128xf32, #tpu.memory_space<any>> -> memref<1x128xf32, #tpu.memory_space<any>>
    %689 = tpu.memref_squeeze %688 : memref<1x128xf32, #tpu.memory_space<any>> -> memref<128xf32, #tpu.memory_space<any>>
    %c0_i32_538 = arith.constant 0 : i32
    %690 = tpu.memref_slice %arg5[%605, %c0_i32_535, %c0_i32_536, %c0_i32_538] : memref<2x8x8x128xf32, #tpu.memory_space<vmem>> -> memref<1x1x1x128xf32, #tpu.memory_space<vmem>>
    %691 = tpu.memref_squeeze %690 : memref<1x1x1x128xf32, #tpu.memory_space<vmem>> -> memref<128xf32, #tpu.memory_space<vmem>>
    %692 = tpu.memref_slice %arg6[%605] : memref<2x!tpu.dma_semaphore, #tpu.memory_space<semaphore_mem>> -> memref<1x!tpu.dma_semaphore, #tpu.memory_space<semaphore_mem>>
    %693 = tpu.memref_squeeze %692 : memref<1x!tpu.dma_semaphore, #tpu.memory_space<semaphore_mem>> -> memref<!tpu.dma_semaphore, #tpu.memory_space<semaphore_mem>>
    tpu.wait_dma2 semaphore(%693 : memref<!tpu.dma_semaphore, #tpu.memory_space<semaphore_mem>>) src(%689 : memref<128xf32, #tpu.memory_space<any>>) dst(%691 : memref<128xf32, #tpu.memory_space<vmem>>)
    %c0_i32_539 = arith.constant 0 : i32
    %c0_i32_540 = arith.constant 0 : i32
    %c0_i32_541 = arith.constant 0 : i32
    %c0_i32_542 = arith.constant 0 : i32
    %694 = tpu.memref_slice %arg3[%c0_i32_539, %c0_i32_542] : memref<50x128xf32, #tpu.memory_space<any>> -> memref<1x128xf32, #tpu.memory_space<any>>
    %695 = tpu.memref_squeeze %694 : memref<1x128xf32, #tpu.memory_space<any>> -> memref<128xf32, #tpu.memory_space<any>>
    %c0_i32_543 = arith.constant 0 : i32
    %696 = tpu.memref_slice %arg5[%605, %c0_i32_540, %c0_i32_541, %c0_i32_543] : memref<2x8x8x128xf32, #tpu.memory_space<vmem>> -> memref<1x1x1x128xf32, #tpu.memory_space<vmem>>
    %697 = tpu.memref_squeeze %696 : memref<1x1x1x128xf32, #tpu.memory_space<vmem>> -> memref<128xf32, #tpu.memory_space<vmem>>
    %698 = tpu.memref_slice %arg6[%605] : memref<2x!tpu.dma_semaphore, #tpu.memory_space<semaphore_mem>> -> memref<1x!tpu.dma_semaphore, #tpu.memory_space<semaphore_mem>>
    %699 = tpu.memref_squeeze %698 : memref<1x!tpu.dma_semaphore, #tpu.memory_space<semaphore_mem>> -> memref<!tpu.dma_semaphore, #tpu.memory_space<semaphore_mem>>
    tpu.wait_dma2 semaphore(%699 : memref<!tpu.dma_semaphore, #tpu.memory_space<semaphore_mem>>) src(%695 : memref<128xf32, #tpu.memory_space<any>>) dst(%697 : memref<128xf32, #tpu.memory_space<vmem>>)
    %c0_i32_544 = arith.constant 0 : i32
    %c0_i32_545 = arith.constant 0 : i32
    %c0_i32_546 = arith.constant 0 : i32
    %c0_i32_547 = arith.constant 0 : i32
    %700 = tpu.memref_slice %arg3[%c0_i32_544, %c0_i32_547] : memref<50x128xf32, #tpu.memory_space<any>> -> memref<1x128xf32, #tpu.memory_space<any>>
    %701 = tpu.memref_squeeze %700 : memref<1x128xf32, #tpu.memory_space<any>> -> memref<128xf32, #tpu.memory_space<any>>
    %c0_i32_548 = arith.constant 0 : i32
    %702 = tpu.memref_slice %arg5[%605, %c0_i32_545, %c0_i32_546, %c0_i32_548] : memref<2x8x8x128xf32, #tpu.memory_space<vmem>> -> memref<1x1x1x128xf32, #tpu.memory_space<vmem>>
    %703 = tpu.memref_squeeze %702 : memref<1x1x1x128xf32, #tpu.memory_space<vmem>> -> memref<128xf32, #tpu.memory_space<vmem>>
    %704 = tpu.memref_slice %arg6[%605] : memref<2x!tpu.dma_semaphore, #tpu.memory_space<semaphore_mem>> -> memref<1x!tpu.dma_semaphore, #tpu.memory_space<semaphore_mem>>
    %705 = tpu.memref_squeeze %704 : memref<1x!tpu.dma_semaphore, #tpu.memory_space<semaphore_mem>> -> memref<!tpu.dma_semaphore, #tpu.memory_space<semaphore_mem>>
    tpu.wait_dma2 semaphore(%705 : memref<!tpu.dma_semaphore, #tpu.memory_space<semaphore_mem>>) src(%701 : memref<128xf32, #tpu.memory_space<any>>) dst(%703 : memref<128xf32, #tpu.memory_space<vmem>>)
    %c0_i32_549 = arith.constant 0 : i32
    %c0_i32_550 = arith.constant 0 : i32
    %c0_i32_551 = arith.constant 0 : i32
    %c0_i32_552 = arith.constant 0 : i32
    %706 = tpu.memref_slice %arg3[%c0_i32_549, %c0_i32_552] : memref<50x128xf32, #tpu.memory_space<any>> -> memref<1x128xf32, #tpu.memory_space<any>>
    %707 = tpu.memref_squeeze %706 : memref<1x128xf32, #tpu.memory_space<any>> -> memref<128xf32, #tpu.memory_space<any>>
    %c0_i32_553 = arith.constant 0 : i32
    %708 = tpu.memref_slice %arg5[%605, %c0_i32_550, %c0_i32_551, %c0_i32_553] : memref<2x8x8x128xf32, #tpu.memory_space<vmem>> -> memref<1x1x1x128xf32, #tpu.memory_space<vmem>>
    %709 = tpu.memref_squeeze %708 : memref<1x1x1x128xf32, #tpu.memory_space<vmem>> -> memref<128xf32, #tpu.memory_space<vmem>>
    %710 = tpu.memref_slice %arg6[%605] : memref<2x!tpu.dma_semaphore, #tpu.memory_space<semaphore_mem>> -> memref<1x!tpu.dma_semaphore, #tpu.memory_space<semaphore_mem>>
    %711 = tpu.memref_squeeze %710 : memref<1x!tpu.dma_semaphore, #tpu.memory_space<semaphore_mem>> -> memref<!tpu.dma_semaphore, #tpu.memory_space<semaphore_mem>>
    tpu.wait_dma2 semaphore(%711 : memref<!tpu.dma_semaphore, #tpu.memory_space<semaphore_mem>>) src(%707 : memref<128xf32, #tpu.memory_space<any>>) dst(%709 : memref<128xf32, #tpu.memory_space<vmem>>)
    %c0_i32_554 = arith.constant 0 : i32
    %c0_i32_555 = arith.constant 0 : i32
    %c0_i32_556 = arith.constant 0 : i32
    %c0_i32_557 = arith.constant 0 : i32
    %712 = tpu.memref_slice %arg3[%c0_i32_554, %c0_i32_557] : memref<50x128xf32, #tpu.memory_space<any>> -> memref<1x128xf32, #tpu.memory_space<any>>
    %713 = tpu.memref_squeeze %712 : memref<1x128xf32, #tpu.memory_space<any>> -> memref<128xf32, #tpu.memory_space<any>>
    %c0_i32_558 = arith.constant 0 : i32
    %714 = tpu.memref_slice %arg5[%605, %c0_i32_555, %c0_i32_556, %c0_i32_558] : memref<2x8x8x128xf32, #tpu.memory_space<vmem>> -> memref<1x1x1x128xf32, #tpu.memory_space<vmem>>
    %715 = tpu.memref_squeeze %714 : memref<1x1x1x128xf32, #tpu.memory_space<vmem>> -> memref<128xf32, #tpu.memory_space<vmem>>
    %716 = tpu.memref_slice %arg6[%605] : memref<2x!tpu.dma_semaphore, #tpu.memory_space<semaphore_mem>> -> memref<1x!tpu.dma_semaphore, #tpu.memory_space<semaphore_mem>>
    %717 = tpu.memref_squeeze %716 : memref<1x!tpu.dma_semaphore, #tpu.memory_space<semaphore_mem>> -> memref<!tpu.dma_semaphore, #tpu.memory_space<semaphore_mem>>
    tpu.wait_dma2 semaphore(%717 : memref<!tpu.dma_semaphore, #tpu.memory_space<semaphore_mem>>) src(%713 : memref<128xf32, #tpu.memory_space<any>>) dst(%715 : memref<128xf32, #tpu.memory_space<vmem>>)
    %c0_i32_559 = arith.constant 0 : i32
    %c0_i32_560 = arith.constant 0 : i32
    %c0_i32_561 = arith.constant 0 : i32
    %c0_i32_562 = arith.constant 0 : i32
    %718 = tpu.memref_slice %arg3[%c0_i32_559, %c0_i32_562] : memref<50x128xf32, #tpu.memory_space<any>> -> memref<1x128xf32, #tpu.memory_space<any>>
    %719 = tpu.memref_squeeze %718 : memref<1x128xf32, #tpu.memory_space<any>> -> memref<128xf32, #tpu.memory_space<any>>
    %c0_i32_563 = arith.constant 0 : i32
    %720 = tpu.memref_slice %arg5[%605, %c0_i32_560, %c0_i32_561, %c0_i32_563] : memref<2x8x8x128xf32, #tpu.memory_space<vmem>> -> memref<1x1x1x128xf32, #tpu.memory_space<vmem>>
    %721 = tpu.memref_squeeze %720 : memref<1x1x1x128xf32, #tpu.memory_space<vmem>> -> memref<128xf32, #tpu.memory_space<vmem>>
    %722 = tpu.memref_slice %arg6[%605] : memref<2x!tpu.dma_semaphore, #tpu.memory_space<semaphore_mem>> -> memref<1x!tpu.dma_semaphore, #tpu.memory_space<semaphore_mem>>
    %723 = tpu.memref_squeeze %722 : memref<1x!tpu.dma_semaphore, #tpu.memory_space<semaphore_mem>> -> memref<!tpu.dma_semaphore, #tpu.memory_space<semaphore_mem>>
    tpu.wait_dma2 semaphore(%723 : memref<!tpu.dma_semaphore, #tpu.memory_space<semaphore_mem>>) src(%719 : memref<128xf32, #tpu.memory_space<any>>) dst(%721 : memref<128xf32, #tpu.memory_space<vmem>>)
    %c0_i32_564 = arith.constant 0 : i32
    %c0_i32_565 = arith.constant 0 : i32
    %c0_i32_566 = arith.constant 0 : i32
    %c0_i32_567 = arith.constant 0 : i32
    %724 = tpu.memref_slice %arg3[%c0_i32_564, %c0_i32_567] : memref<50x128xf32, #tpu.memory_space<any>> -> memref<1x128xf32, #tpu.memory_space<any>>
    %725 = tpu.memref_squeeze %724 : memref<1x128xf32, #tpu.memory_space<any>> -> memref<128xf32, #tpu.memory_space<any>>
    %c0_i32_568 = arith.constant 0 : i32
    %726 = tpu.memref_slice %arg5[%605, %c0_i32_565, %c0_i32_566, %c0_i32_568] : memref<2x8x8x128xf32, #tpu.memory_space<vmem>> -> memref<1x1x1x128xf32, #tpu.memory_space<vmem>>
    %727 = tpu.memref_squeeze %726 : memref<1x1x1x128xf32, #tpu.memory_space<vmem>> -> memref<128xf32, #tpu.memory_space<vmem>>
    %728 = tpu.memref_slice %arg6[%605] : memref<2x!tpu.dma_semaphore, #tpu.memory_space<semaphore_mem>> -> memref<1x!tpu.dma_semaphore, #tpu.memory_space<semaphore_mem>>
    %729 = tpu.memref_squeeze %728 : memref<1x!tpu.dma_semaphore, #tpu.memory_space<semaphore_mem>> -> memref<!tpu.dma_semaphore, #tpu.memory_space<semaphore_mem>>
    tpu.wait_dma2 semaphore(%729 : memref<!tpu.dma_semaphore, #tpu.memory_space<semaphore_mem>>) src(%725 : memref<128xf32, #tpu.memory_space<any>>) dst(%727 : memref<128xf32, #tpu.memory_space<vmem>>)
    %c0_i32_569 = arith.constant 0 : i32
    %c0_i32_570 = arith.constant 0 : i32
    %c0_i32_571 = arith.constant 0 : i32
    %c0_i32_572 = arith.constant 0 : i32
    %730 = tpu.memref_slice %arg3[%c0_i32_569, %c0_i32_572] : memref<50x128xf32, #tpu.memory_space<any>> -> memref<1x128xf32, #tpu.memory_space<any>>
    %731 = tpu.memref_squeeze %730 : memref<1x128xf32, #tpu.memory_space<any>> -> memref<128xf32, #tpu.memory_space<any>>
    %c0_i32_573 = arith.constant 0 : i32
    %732 = tpu.memref_slice %arg5[%605, %c0_i32_570, %c0_i32_571, %c0_i32_573] : memref<2x8x8x128xf32, #tpu.memory_space<vmem>> -> memref<1x1x1x128xf32, #tpu.memory_space<vmem>>
    %733 = tpu.memref_squeeze %732 : memref<1x1x1x128xf32, #tpu.memory_space<vmem>> -> memref<128xf32, #tpu.memory_space<vmem>>
    %734 = tpu.memref_slice %arg6[%605] : memref<2x!tpu.dma_semaphore, #tpu.memory_space<semaphore_mem>> -> memref<1x!tpu.dma_semaphore, #tpu.memory_space<semaphore_mem>>
    %735 = tpu.memref_squeeze %734 : memref<1x!tpu.dma_semaphore, #tpu.memory_space<semaphore_mem>> -> memref<!tpu.dma_semaphore, #tpu.memory_space<semaphore_mem>>
    tpu.wait_dma2 semaphore(%735 : memref<!tpu.dma_semaphore, #tpu.memory_space<semaphore_mem>>) src(%731 : memref<128xf32, #tpu.memory_space<any>>) dst(%733 : memref<128xf32, #tpu.memory_space<vmem>>)
    %c0_i32_574 = arith.constant 0 : i32
    %c0_i32_575 = arith.constant 0 : i32
    %c0_i32_576 = arith.constant 0 : i32
    %c0_i32_577 = arith.constant 0 : i32
    %736 = tpu.memref_slice %arg3[%c0_i32_574, %c0_i32_577] : memref<50x128xf32, #tpu.memory_space<any>> -> memref<1x128xf32, #tpu.memory_space<any>>
    %737 = tpu.memref_squeeze %736 : memref<1x128xf32, #tpu.memory_space<any>> -> memref<128xf32, #tpu.memory_space<any>>
    %c0_i32_578 = arith.constant 0 : i32
    %738 = tpu.memref_slice %arg5[%605, %c0_i32_575, %c0_i32_576, %c0_i32_578] : memref<2x8x8x128xf32, #tpu.memory_space<vmem>> -> memref<1x1x1x128xf32, #tpu.memory_space<vmem>>
    %739 = tpu.memref_squeeze %738 : memref<1x1x1x128xf32, #tpu.memory_space<vmem>> -> memref<128xf32, #tpu.memory_space<vmem>>
    %740 = tpu.memref_slice %arg6[%605] : memref<2x!tpu.dma_semaphore, #tpu.memory_space<semaphore_mem>> -> memref<1x!tpu.dma_semaphore, #tpu.memory_space<semaphore_mem>>
    %741 = tpu.memref_squeeze %740 : memref<1x!tpu.dma_semaphore, #tpu.memory_space<semaphore_mem>> -> memref<!tpu.dma_semaphore, #tpu.memory_space<semaphore_mem>>
    tpu.wait_dma2 semaphore(%741 : memref<!tpu.dma_semaphore, #tpu.memory_space<semaphore_mem>>) src(%737 : memref<128xf32, #tpu.memory_space<any>>) dst(%739 : memref<128xf32, #tpu.memory_space<vmem>>)
    %c0_i32_579 = arith.constant 0 : i32
    %c0_i32_580 = arith.constant 0 : i32
    %c0_i32_581 = arith.constant 0 : i32
    %c0_i32_582 = arith.constant 0 : i32
    %742 = tpu.memref_slice %arg3[%c0_i32_579, %c0_i32_582] : memref<50x128xf32, #tpu.memory_space<any>> -> memref<1x128xf32, #tpu.memory_space<any>>
    %743 = tpu.memref_squeeze %742 : memref<1x128xf32, #tpu.memory_space<any>> -> memref<128xf32, #tpu.memory_space<any>>
    %c0_i32_583 = arith.constant 0 : i32
    %744 = tpu.memref_slice %arg5[%605, %c0_i32_580, %c0_i32_581, %c0_i32_583] : memref<2x8x8x128xf32, #tpu.memory_space<vmem>> -> memref<1x1x1x128xf32, #tpu.memory_space<vmem>>
    %745 = tpu.memref_squeeze %744 : memref<1x1x1x128xf32, #tpu.memory_space<vmem>> -> memref<128xf32, #tpu.memory_space<vmem>>
    %746 = tpu.memref_slice %arg6[%605] : memref<2x!tpu.dma_semaphore, #tpu.memory_space<semaphore_mem>> -> memref<1x!tpu.dma_semaphore, #tpu.memory_space<semaphore_mem>>
    %747 = tpu.memref_squeeze %746 : memref<1x!tpu.dma_semaphore, #tpu.memory_space<semaphore_mem>> -> memref<!tpu.dma_semaphore, #tpu.memory_space<semaphore_mem>>
    tpu.wait_dma2 semaphore(%747 : memref<!tpu.dma_semaphore, #tpu.memory_space<semaphore_mem>>) src(%743 : memref<128xf32, #tpu.memory_space<any>>) dst(%745 : memref<128xf32, #tpu.memory_space<vmem>>)
    %c0_i32_584 = arith.constant 0 : i32
    %c0_i32_585 = arith.constant 0 : i32
    %c0_i32_586 = arith.constant 0 : i32
    %c0_i32_587 = arith.constant 0 : i32
    %748 = tpu.memref_slice %arg3[%c0_i32_584, %c0_i32_587] : memref<50x128xf32, #tpu.memory_space<any>> -> memref<1x128xf32, #tpu.memory_space<any>>
    %749 = tpu.memref_squeeze %748 : memref<1x128xf32, #tpu.memory_space<any>> -> memref<128xf32, #tpu.memory_space<any>>
    %c0_i32_588 = arith.constant 0 : i32
    %750 = tpu.memref_slice %arg5[%605, %c0_i32_585, %c0_i32_586, %c0_i32_588] : memref<2x8x8x128xf32, #tpu.memory_space<vmem>> -> memref<1x1x1x128xf32, #tpu.memory_space<vmem>>
    %751 = tpu.memref_squeeze %750 : memref<1x1x1x128xf32, #tpu.memory_space<vmem>> -> memref<128xf32, #tpu.memory_space<vmem>>
    %752 = tpu.memref_slice %arg6[%605] : memref<2x!tpu.dma_semaphore, #tpu.memory_space<semaphore_mem>> -> memref<1x!tpu.dma_semaphore, #tpu.memory_space<semaphore_mem>>
    %753 = tpu.memref_squeeze %752 : memref<1x!tpu.dma_semaphore, #tpu.memory_space<semaphore_mem>> -> memref<!tpu.dma_semaphore, #tpu.memory_space<semaphore_mem>>
    tpu.wait_dma2 semaphore(%753 : memref<!tpu.dma_semaphore, #tpu.memory_space<semaphore_mem>>) src(%749 : memref<128xf32, #tpu.memory_space<any>>) dst(%751 : memref<128xf32, #tpu.memory_space<vmem>>)
    %c0_i32_589 = arith.constant 0 : i32
    %c0_i32_590 = arith.constant 0 : i32
    %c0_i32_591 = arith.constant 0 : i32
    %c0_i32_592 = arith.constant 0 : i32
    %754 = tpu.memref_slice %arg3[%c0_i32_589, %c0_i32_592] : memref<50x128xf32, #tpu.memory_space<any>> -> memref<1x128xf32, #tpu.memory_space<any>>
    %755 = tpu.memref_squeeze %754 : memref<1x128xf32, #tpu.memory_space<any>> -> memref<128xf32, #tpu.memory_space<any>>
    %c0_i32_593 = arith.constant 0 : i32
    %756 = tpu.memref_slice %arg5[%605, %c0_i32_590, %c0_i32_591, %c0_i32_593] : memref<2x8x8x128xf32, #tpu.memory_space<vmem>> -> memref<1x1x1x128xf32, #tpu.memory_space<vmem>>
    %757 = tpu.memref_squeeze %756 : memref<1x1x1x128xf32, #tpu.memory_space<vmem>> -> memref<128xf32, #tpu.memory_space<vmem>>
    %758 = tpu.memref_slice %arg6[%605] : memref<2x!tpu.dma_semaphore, #tpu.memory_space<semaphore_mem>> -> memref<1x!tpu.dma_semaphore, #tpu.memory_space<semaphore_mem>>
    %759 = tpu.memref_squeeze %758 : memref<1x!tpu.dma_semaphore, #tpu.memory_space<semaphore_mem>> -> memref<!tpu.dma_semaphore, #tpu.memory_space<semaphore_mem>>
    tpu.wait_dma2 semaphore(%759 : memref<!tpu.dma_semaphore, #tpu.memory_space<semaphore_mem>>) src(%755 : memref<128xf32, #tpu.memory_space<any>>) dst(%757 : memref<128xf32, #tpu.memory_space<vmem>>)
    %c0_i32_594 = arith.constant 0 : i32
    %c0_i32_595 = arith.constant 0 : i32
    %c0_i32_596 = arith.constant 0 : i32
    %c0_i32_597 = arith.constant 0 : i32
    %760 = tpu.memref_slice %arg3[%c0_i32_594, %c0_i32_597] : memref<50x128xf32, #tpu.memory_space<any>> -> memref<1x128xf32, #tpu.memory_space<any>>
    %761 = tpu.memref_squeeze %760 : memref<1x128xf32, #tpu.memory_space<any>> -> memref<128xf32, #tpu.memory_space<any>>
    %c0_i32_598 = arith.constant 0 : i32
    %762 = tpu.memref_slice %arg5[%605, %c0_i32_595, %c0_i32_596, %c0_i32_598] : memref<2x8x8x128xf32, #tpu.memory_space<vmem>> -> memref<1x1x1x128xf32, #tpu.memory_space<vmem>>
    %763 = tpu.memref_squeeze %762 : memref<1x1x1x128xf32, #tpu.memory_space<vmem>> -> memref<128xf32, #tpu.memory_space<vmem>>
    %764 = tpu.memref_slice %arg6[%605] : memref<2x!tpu.dma_semaphore, #tpu.memory_space<semaphore_mem>> -> memref<1x!tpu.dma_semaphore, #tpu.memory_space<semaphore_mem>>
    %765 = tpu.memref_squeeze %764 : memref<1x!tpu.dma_semaphore, #tpu.memory_space<semaphore_mem>> -> memref<!tpu.dma_semaphore, #tpu.memory_space<semaphore_mem>>
    tpu.wait_dma2 semaphore(%765 : memref<!tpu.dma_semaphore, #tpu.memory_space<semaphore_mem>>) src(%761 : memref<128xf32, #tpu.memory_space<any>>) dst(%763 : memref<128xf32, #tpu.memory_space<vmem>>)
    %c0_i32_599 = arith.constant 0 : i32
    %c0_i32_600 = arith.constant 0 : i32
    %c0_i32_601 = arith.constant 0 : i32
    %c0_i32_602 = arith.constant 0 : i32
    %766 = tpu.memref_slice %arg3[%c0_i32_599, %c0_i32_602] : memref<50x128xf32, #tpu.memory_space<any>> -> memref<1x128xf32, #tpu.memory_space<any>>
    %767 = tpu.memref_squeeze %766 : memref<1x128xf32, #tpu.memory_space<any>> -> memref<128xf32, #tpu.memory_space<any>>
    %c0_i32_603 = arith.constant 0 : i32
    %768 = tpu.memref_slice %arg5[%605, %c0_i32_600, %c0_i32_601, %c0_i32_603] : memref<2x8x8x128xf32, #tpu.memory_space<vmem>> -> memref<1x1x1x128xf32, #tpu.memory_space<vmem>>
    %769 = tpu.memref_squeeze %768 : memref<1x1x1x128xf32, #tpu.memory_space<vmem>> -> memref<128xf32, #tpu.memory_space<vmem>>
    %770 = tpu.memref_slice %arg6[%605] : memref<2x!tpu.dma_semaphore, #tpu.memory_space<semaphore_mem>> -> memref<1x!tpu.dma_semaphore, #tpu.memory_space<semaphore_mem>>
    %771 = tpu.memref_squeeze %770 : memref<1x!tpu.dma_semaphore, #tpu.memory_space<semaphore_mem>> -> memref<!tpu.dma_semaphore, #tpu.memory_space<semaphore_mem>>
    tpu.wait_dma2 semaphore(%771 : memref<!tpu.dma_semaphore, #tpu.memory_space<semaphore_mem>>) src(%767 : memref<128xf32, #tpu.memory_space<any>>) dst(%769 : memref<128xf32, #tpu.memory_space<vmem>>)
    %c0_i32_604 = arith.constant 0 : i32
    %c0_i32_605 = arith.constant 0 : i32
    %c0_i32_606 = arith.constant 0 : i32
    %c0_i32_607 = arith.constant 0 : i32
    %772 = tpu.memref_slice %arg3[%c0_i32_604, %c0_i32_607] : memref<50x128xf32, #tpu.memory_space<any>> -> memref<1x128xf32, #tpu.memory_space<any>>
    %773 = tpu.memref_squeeze %772 : memref<1x128xf32, #tpu.memory_space<any>> -> memref<128xf32, #tpu.memory_space<any>>
    %c0_i32_608 = arith.constant 0 : i32
    %774 = tpu.memref_slice %arg5[%605, %c0_i32_605, %c0_i32_606, %c0_i32_608] : memref<2x8x8x128xf32, #tpu.memory_space<vmem>> -> memref<1x1x1x128xf32, #tpu.memory_space<vmem>>
    %775 = tpu.memref_squeeze %774 : memref<1x1x1x128xf32, #tpu.memory_space<vmem>> -> memref<128xf32, #tpu.memory_space<vmem>>
    %776 = tpu.memref_slice %arg6[%605] : memref<2x!tpu.dma_semaphore, #tpu.memory_space<semaphore_mem>> -> memref<1x!tpu.dma_semaphore, #tpu.memory_space<semaphore_mem>>
    %777 = tpu.memref_squeeze %776 : memref<1x!tpu.dma_semaphore, #tpu.memory_space<semaphore_mem>> -> memref<!tpu.dma_semaphore, #tpu.memory_space<semaphore_mem>>
    tpu.wait_dma2 semaphore(%777 : memref<!tpu.dma_semaphore, #tpu.memory_space<semaphore_mem>>) src(%773 : memref<128xf32, #tpu.memory_space<any>>) dst(%775 : memref<128xf32, #tpu.memory_space<vmem>>)
    %c0_i32_609 = arith.constant 0 : i32
    %c0_i32_610 = arith.constant 0 : i32
    %c0_i32_611 = arith.constant 0 : i32
    %c0_i32_612 = arith.constant 0 : i32
    %778 = tpu.memref_slice %arg3[%c0_i32_609, %c0_i32_612] : memref<50x128xf32, #tpu.memory_space<any>> -> memref<1x128xf32, #tpu.memory_space<any>>
    %779 = tpu.memref_squeeze %778 : memref<1x128xf32, #tpu.memory_space<any>> -> memref<128xf32, #tpu.memory_space<any>>
    %c0_i32_613 = arith.constant 0 : i32
    %780 = tpu.memref_slice %arg5[%605, %c0_i32_610, %c0_i32_611, %c0_i32_613] : memref<2x8x8x128xf32, #tpu.memory_space<vmem>> -> memref<1x1x1x128xf32, #tpu.memory_space<vmem>>
    %781 = tpu.memref_squeeze %780 : memref<1x1x1x128xf32, #tpu.memory_space<vmem>> -> memref<128xf32, #tpu.memory_space<vmem>>
    %782 = tpu.memref_slice %arg6[%605] : memref<2x!tpu.dma_semaphore, #tpu.memory_space<semaphore_mem>> -> memref<1x!tpu.dma_semaphore, #tpu.memory_space<semaphore_mem>>
    %783 = tpu.memref_squeeze %782 : memref<1x!tpu.dma_semaphore, #tpu.memory_space<semaphore_mem>> -> memref<!tpu.dma_semaphore, #tpu.memory_space<semaphore_mem>>
    tpu.wait_dma2 semaphore(%783 : memref<!tpu.dma_semaphore, #tpu.memory_space<semaphore_mem>>) src(%779 : memref<128xf32, #tpu.memory_space<any>>) dst(%781 : memref<128xf32, #tpu.memory_space<vmem>>)
    %c0_i32_614 = arith.constant 0 : i32
    %c0_i32_615 = arith.constant 0 : i32
    %c0_i32_616 = arith.constant 0 : i32
    %c0_i32_617 = arith.constant 0 : i32
    %784 = tpu.memref_slice %arg3[%c0_i32_614, %c0_i32_617] : memref<50x128xf32, #tpu.memory_space<any>> -> memref<1x128xf32, #tpu.memory_space<any>>
    %785 = tpu.memref_squeeze %784 : memref<1x128xf32, #tpu.memory_space<any>> -> memref<128xf32, #tpu.memory_space<any>>
    %c0_i32_618 = arith.constant 0 : i32
    %786 = tpu.memref_slice %arg5[%605, %c0_i32_615, %c0_i32_616, %c0_i32_618] : memref<2x8x8x128xf32, #tpu.memory_space<vmem>> -> memref<1x1x1x128xf32, #tpu.memory_space<vmem>>
    %787 = tpu.memref_squeeze %786 : memref<1x1x1x128xf32, #tpu.memory_space<vmem>> -> memref<128xf32, #tpu.memory_space<vmem>>
    %788 = tpu.memref_slice %arg6[%605] : memref<2x!tpu.dma_semaphore, #tpu.memory_space<semaphore_mem>> -> memref<1x!tpu.dma_semaphore, #tpu.memory_space<semaphore_mem>>
    %789 = tpu.memref_squeeze %788 : memref<1x!tpu.dma_semaphore, #tpu.memory_space<semaphore_mem>> -> memref<!tpu.dma_semaphore, #tpu.memory_space<semaphore_mem>>
    tpu.wait_dma2 semaphore(%789 : memref<!tpu.dma_semaphore, #tpu.memory_space<semaphore_mem>>) src(%785 : memref<128xf32, #tpu.memory_space<any>>) dst(%787 : memref<128xf32, #tpu.memory_space<vmem>>)
    %c0_i32_619 = arith.constant 0 : i32
    %c0_i32_620 = arith.constant 0 : i32
    %c0_i32_621 = arith.constant 0 : i32
    %c0_i32_622 = arith.constant 0 : i32
    %790 = tpu.memref_slice %arg3[%c0_i32_619, %c0_i32_622] : memref<50x128xf32, #tpu.memory_space<any>> -> memref<1x128xf32, #tpu.memory_space<any>>
    %791 = tpu.memref_squeeze %790 : memref<1x128xf32, #tpu.memory_space<any>> -> memref<128xf32, #tpu.memory_space<any>>
    %c0_i32_623 = arith.constant 0 : i32
    %792 = tpu.memref_slice %arg5[%605, %c0_i32_620, %c0_i32_621, %c0_i32_623] : memref<2x8x8x128xf32, #tpu.memory_space<vmem>> -> memref<1x1x1x128xf32, #tpu.memory_space<vmem>>
    %793 = tpu.memref_squeeze %792 : memref<1x1x1x128xf32, #tpu.memory_space<vmem>> -> memref<128xf32, #tpu.memory_space<vmem>>
    %794 = tpu.memref_slice %arg6[%605] : memref<2x!tpu.dma_semaphore, #tpu.memory_space<semaphore_mem>> -> memref<1x!tpu.dma_semaphore, #tpu.memory_space<semaphore_mem>>
    %795 = tpu.memref_squeeze %794 : memref<1x!tpu.dma_semaphore, #tpu.memory_space<semaphore_mem>> -> memref<!tpu.dma_semaphore, #tpu.memory_space<semaphore_mem>>
    tpu.wait_dma2 semaphore(%795 : memref<!tpu.dma_semaphore, #tpu.memory_space<semaphore_mem>>) src(%791 : memref<128xf32, #tpu.memory_space<any>>) dst(%793 : memref<128xf32, #tpu.memory_space<vmem>>)
    %c0_i32_624 = arith.constant 0 : i32
    %c0_i32_625 = arith.constant 0 : i32
    %c0_i32_626 = arith.constant 0 : i32
    %c0_i32_627 = arith.constant 0 : i32
    %796 = tpu.memref_slice %arg3[%c0_i32_624, %c0_i32_627] : memref<50x128xf32, #tpu.memory_space<any>> -> memref<1x128xf32, #tpu.memory_space<any>>
    %797 = tpu.memref_squeeze %796 : memref<1x128xf32, #tpu.memory_space<any>> -> memref<128xf32, #tpu.memory_space<any>>
    %c0_i32_628 = arith.constant 0 : i32
    %798 = tpu.memref_slice %arg5[%605, %c0_i32_625, %c0_i32_626, %c0_i32_628] : memref<2x8x8x128xf32, #tpu.memory_space<vmem>> -> memref<1x1x1x128xf32, #tpu.memory_space<vmem>>
    %799 = tpu.memref_squeeze %798 : memref<1x1x1x128xf32, #tpu.memory_space<vmem>> -> memref<128xf32, #tpu.memory_space<vmem>>
    %800 = tpu.memref_slice %arg6[%605] : memref<2x!tpu.dma_semaphore, #tpu.memory_space<semaphore_mem>> -> memref<1x!tpu.dma_semaphore, #tpu.memory_space<semaphore_mem>>
    %801 = tpu.memref_squeeze %800 : memref<1x!tpu.dma_semaphore, #tpu.memory_space<semaphore_mem>> -> memref<!tpu.dma_semaphore, #tpu.memory_space<semaphore_mem>>
    tpu.wait_dma2 semaphore(%801 : memref<!tpu.dma_semaphore, #tpu.memory_space<semaphore_mem>>) src(%797 : memref<128xf32, #tpu.memory_space<any>>) dst(%799 : memref<128xf32, #tpu.memory_space<vmem>>)
    %c0_i32_629 = arith.constant 0 : i32
    %c0_i32_630 = arith.constant 0 : i32
    %c0_i32_631 = arith.constant 0 : i32
    %c0_i32_632 = arith.constant 0 : i32
    %802 = tpu.memref_slice %arg3[%c0_i32_629, %c0_i32_632] : memref<50x128xf32, #tpu.memory_space<any>> -> memref<1x128xf32, #tpu.memory_space<any>>
    %803 = tpu.memref_squeeze %802 : memref<1x128xf32, #tpu.memory_space<any>> -> memref<128xf32, #tpu.memory_space<any>>
    %c0_i32_633 = arith.constant 0 : i32
    %804 = tpu.memref_slice %arg5[%605, %c0_i32_630, %c0_i32_631, %c0_i32_633] : memref<2x8x8x128xf32, #tpu.memory_space<vmem>> -> memref<1x1x1x128xf32, #tpu.memory_space<vmem>>
    %805 = tpu.memref_squeeze %804 : memref<1x1x1x128xf32, #tpu.memory_space<vmem>> -> memref<128xf32, #tpu.memory_space<vmem>>
    %806 = tpu.memref_slice %arg6[%605] : memref<2x!tpu.dma_semaphore, #tpu.memory_space<semaphore_mem>> -> memref<1x!tpu.dma_semaphore, #tpu.memory_space<semaphore_mem>>
    %807 = tpu.memref_squeeze %806 : memref<1x!tpu.dma_semaphore, #tpu.memory_space<semaphore_mem>> -> memref<!tpu.dma_semaphore, #tpu.memory_space<semaphore_mem>>
    tpu.wait_dma2 semaphore(%807 : memref<!tpu.dma_semaphore, #tpu.memory_space<semaphore_mem>>) src(%803 : memref<128xf32, #tpu.memory_space<any>>) dst(%805 : memref<128xf32, #tpu.memory_space<vmem>>)
    %c0_i32_634 = arith.constant 0 : i32
    %c0_i32_635 = arith.constant 0 : i32
    %c0_i32_636 = arith.constant 0 : i32
    %c0_i32_637 = arith.constant 0 : i32
    %808 = tpu.memref_slice %arg3[%c0_i32_634, %c0_i32_637] : memref<50x128xf32, #tpu.memory_space<any>> -> memref<1x128xf32, #tpu.memory_space<any>>
    %809 = tpu.memref_squeeze %808 : memref<1x128xf32, #tpu.memory_space<any>> -> memref<128xf32, #tpu.memory_space<any>>
    %c0_i32_638 = arith.constant 0 : i32
    %810 = tpu.memref_slice %arg5[%605, %c0_i32_635, %c0_i32_636, %c0_i32_638] : memref<2x8x8x128xf32, #tpu.memory_space<vmem>> -> memref<1x1x1x128xf32, #tpu.memory_space<vmem>>
    %811 = tpu.memref_squeeze %810 : memref<1x1x1x128xf32, #tpu.memory_space<vmem>> -> memref<128xf32, #tpu.memory_space<vmem>>
    %812 = tpu.memref_slice %arg6[%605] : memref<2x!tpu.dma_semaphore, #tpu.memory_space<semaphore_mem>> -> memref<1x!tpu.dma_semaphore, #tpu.memory_space<semaphore_mem>>
    %813 = tpu.memref_squeeze %812 : memref<1x!tpu.dma_semaphore, #tpu.memory_space<semaphore_mem>> -> memref<!tpu.dma_semaphore, #tpu.memory_space<semaphore_mem>>
    tpu.wait_dma2 semaphore(%813 : memref<!tpu.dma_semaphore, #tpu.memory_space<semaphore_mem>>) src(%809 : memref<128xf32, #tpu.memory_space<any>>) dst(%811 : memref<128xf32, #tpu.memory_space<vmem>>)
    %c0_i32_639 = arith.constant 0 : i32
    %c0_i32_640 = arith.constant 0 : i32
    %c0_i32_641 = arith.constant 0 : i32
    %c0_i32_642 = arith.constant 0 : i32
    %814 = tpu.memref_slice %arg3[%c0_i32_639, %c0_i32_642] : memref<50x128xf32, #tpu.memory_space<any>> -> memref<1x128xf32, #tpu.memory_space<any>>
    %815 = tpu.memref_squeeze %814 : memref<1x128xf32, #tpu.memory_space<any>> -> memref<128xf32, #tpu.memory_space<any>>
    %c0_i32_643 = arith.constant 0 : i32
    %816 = tpu.memref_slice %arg5[%605, %c0_i32_640, %c0_i32_641, %c0_i32_643] : memref<2x8x8x128xf32, #tpu.memory_space<vmem>> -> memref<1x1x1x128xf32, #tpu.memory_space<vmem>>
    %817 = tpu.memref_squeeze %816 : memref<1x1x1x128xf32, #tpu.memory_space<vmem>> -> memref<128xf32, #tpu.memory_space<vmem>>
    %818 = tpu.memref_slice %arg6[%605] : memref<2x!tpu.dma_semaphore, #tpu.memory_space<semaphore_mem>> -> memref<1x!tpu.dma_semaphore, #tpu.memory_space<semaphore_mem>>
    %819 = tpu.memref_squeeze %818 : memref<1x!tpu.dma_semaphore, #tpu.memory_space<semaphore_mem>> -> memref<!tpu.dma_semaphore, #tpu.memory_space<semaphore_mem>>
    tpu.wait_dma2 semaphore(%819 : memref<!tpu.dma_semaphore, #tpu.memory_space<semaphore_mem>>) src(%815 : memref<128xf32, #tpu.memory_space<any>>) dst(%817 : memref<128xf32, #tpu.memory_space<vmem>>)
    %c0_i32_644 = arith.constant 0 : i32
    %c0_i32_645 = arith.constant 0 : i32
    %c0_i32_646 = arith.constant 0 : i32
    %c0_i32_647 = arith.constant 0 : i32
    %820 = tpu.memref_slice %arg3[%c0_i32_644, %c0_i32_647] : memref<50x128xf32, #tpu.memory_space<any>> -> memref<1x128xf32, #tpu.memory_space<any>>
    %821 = tpu.memref_squeeze %820 : memref<1x128xf32, #tpu.memory_space<any>> -> memref<128xf32, #tpu.memory_space<any>>
    %c0_i32_648 = arith.constant 0 : i32
    %822 = tpu.memref_slice %arg5[%605, %c0_i32_645, %c0_i32_646, %c0_i32_648] : memref<2x8x8x128xf32, #tpu.memory_space<vmem>> -> memref<1x1x1x128xf32, #tpu.memory_space<vmem>>
    %823 = tpu.memref_squeeze %822 : memref<1x1x1x128xf32, #tpu.memory_space<vmem>> -> memref<128xf32, #tpu.memory_space<vmem>>
    %824 = tpu.memref_slice %arg6[%605] : memref<2x!tpu.dma_semaphore, #tpu.memory_space<semaphore_mem>> -> memref<1x!tpu.dma_semaphore, #tpu.memory_space<semaphore_mem>>
    %825 = tpu.memref_squeeze %824 : memref<1x!tpu.dma_semaphore, #tpu.memory_space<semaphore_mem>> -> memref<!tpu.dma_semaphore, #tpu.memory_space<semaphore_mem>>
    tpu.wait_dma2 semaphore(%825 : memref<!tpu.dma_semaphore, #tpu.memory_space<semaphore_mem>>) src(%821 : memref<128xf32, #tpu.memory_space<any>>) dst(%823 : memref<128xf32, #tpu.memory_space<vmem>>)
    %c0_i32_649 = arith.constant 0 : i32
    %c0_i32_650 = arith.constant 0 : i32
    %c0_i32_651 = arith.constant 0 : i32
    %c0_i32_652 = arith.constant 0 : i32
    %826 = tpu.memref_slice %arg3[%c0_i32_649, %c0_i32_652] : memref<50x128xf32, #tpu.memory_space<any>> -> memref<1x128xf32, #tpu.memory_space<any>>
    %827 = tpu.memref_squeeze %826 : memref<1x128xf32, #tpu.memory_space<any>> -> memref<128xf32, #tpu.memory_space<any>>
    %c0_i32_653 = arith.constant 0 : i32
    %828 = tpu.memref_slice %arg5[%605, %c0_i32_650, %c0_i32_651, %c0_i32_653] : memref<2x8x8x128xf32, #tpu.memory_space<vmem>> -> memref<1x1x1x128xf32, #tpu.memory_space<vmem>>
    %829 = tpu.memref_squeeze %828 : memref<1x1x1x128xf32, #tpu.memory_space<vmem>> -> memref<128xf32, #tpu.memory_space<vmem>>
    %830 = tpu.memref_slice %arg6[%605] : memref<2x!tpu.dma_semaphore, #tpu.memory_space<semaphore_mem>> -> memref<1x!tpu.dma_semaphore, #tpu.memory_space<semaphore_mem>>
    %831 = tpu.memref_squeeze %830 : memref<1x!tpu.dma_semaphore, #tpu.memory_space<semaphore_mem>> -> memref<!tpu.dma_semaphore, #tpu.memory_space<semaphore_mem>>
    tpu.wait_dma2 semaphore(%831 : memref<!tpu.dma_semaphore, #tpu.memory_space<semaphore_mem>>) src(%827 : memref<128xf32, #tpu.memory_space<any>>) dst(%829 : memref<128xf32, #tpu.memory_space<vmem>>)
    %c0_i32_654 = arith.constant 0 : i32
    %c0_i32_655 = arith.constant 0 : i32
    %c0_i32_656 = arith.constant 0 : i32
    %c0_i32_657 = arith.constant 0 : i32
    %832 = tpu.memref_slice %arg3[%c0_i32_654, %c0_i32_657] : memref<50x128xf32, #tpu.memory_space<any>> -> memref<1x128xf32, #tpu.memory_space<any>>
    %833 = tpu.memref_squeeze %832 : memref<1x128xf32, #tpu.memory_space<any>> -> memref<128xf32, #tpu.memory_space<any>>
    %c0_i32_658 = arith.constant 0 : i32
    %834 = tpu.memref_slice %arg5[%605, %c0_i32_655, %c0_i32_656, %c0_i32_658] : memref<2x8x8x128xf32, #tpu.memory_space<vmem>> -> memref<1x1x1x128xf32, #tpu.memory_space<vmem>>
    %835 = tpu.memref_squeeze %834 : memref<1x1x1x128xf32, #tpu.memory_space<vmem>> -> memref<128xf32, #tpu.memory_space<vmem>>
    %836 = tpu.memref_slice %arg6[%605] : memref<2x!tpu.dma_semaphore, #tpu.memory_space<semaphore_mem>> -> memref<1x!tpu.dma_semaphore, #tpu.memory_space<semaphore_mem>>
    %837 = tpu.memref_squeeze %836 : memref<1x!tpu.dma_semaphore, #tpu.memory_space<semaphore_mem>> -> memref<!tpu.dma_semaphore, #tpu.memory_space<semaphore_mem>>
    tpu.wait_dma2 semaphore(%837 : memref<!tpu.dma_semaphore, #tpu.memory_space<semaphore_mem>>) src(%833 : memref<128xf32, #tpu.memory_space<any>>) dst(%835 : memref<128xf32, #tpu.memory_space<vmem>>)
    %c0_i32_659 = arith.constant 0 : i32
    %c0_i32_660 = arith.constant 0 : i32
    %c0_i32_661 = arith.constant 0 : i32
    %c0_i32_662 = arith.constant 0 : i32
    %838 = tpu.memref_slice %arg3[%c0_i32_659, %c0_i32_662] : memref<50x128xf32, #tpu.memory_space<any>> -> memref<1x128xf32, #tpu.memory_space<any>>
    %839 = tpu.memref_squeeze %838 : memref<1x128xf32, #tpu.memory_space<any>> -> memref<128xf32, #tpu.memory_space<any>>
    %c0_i32_663 = arith.constant 0 : i32
    %840 = tpu.memref_slice %arg5[%605, %c0_i32_660, %c0_i32_661, %c0_i32_663] : memref<2x8x8x128xf32, #tpu.memory_space<vmem>> -> memref<1x1x1x128xf32, #tpu.memory_space<vmem>>
    %841 = tpu.memref_squeeze %840 : memref<1x1x1x128xf32, #tpu.memory_space<vmem>> -> memref<128xf32, #tpu.memory_space<vmem>>
    %842 = tpu.memref_slice %arg6[%605] : memref<2x!tpu.dma_semaphore, #tpu.memory_space<semaphore_mem>> -> memref<1x!tpu.dma_semaphore, #tpu.memory_space<semaphore_mem>>
    %843 = tpu.memref_squeeze %842 : memref<1x!tpu.dma_semaphore, #tpu.memory_space<semaphore_mem>> -> memref<!tpu.dma_semaphore, #tpu.memory_space<semaphore_mem>>
    tpu.wait_dma2 semaphore(%843 : memref<!tpu.dma_semaphore, #tpu.memory_space<semaphore_mem>>) src(%839 : memref<128xf32, #tpu.memory_space<any>>) dst(%841 : memref<128xf32, #tpu.memory_space<vmem>>)
    %c0_i32_664 = arith.constant 0 : i32
    %c0_i32_665 = arith.constant 0 : i32
    %c0_i32_666 = arith.constant 0 : i32
    %c0_i32_667 = arith.constant 0 : i32
    %844 = tpu.memref_slice %arg3[%c0_i32_664, %c0_i32_667] : memref<50x128xf32, #tpu.memory_space<any>> -> memref<1x128xf32, #tpu.memory_space<any>>
    %845 = tpu.memref_squeeze %844 : memref<1x128xf32, #tpu.memory_space<any>> -> memref<128xf32, #tpu.memory_space<any>>
    %c0_i32_668 = arith.constant 0 : i32
    %846 = tpu.memref_slice %arg5[%605, %c0_i32_665, %c0_i32_666, %c0_i32_668] : memref<2x8x8x128xf32, #tpu.memory_space<vmem>> -> memref<1x1x1x128xf32, #tpu.memory_space<vmem>>
    %847 = tpu.memref_squeeze %846 : memref<1x1x1x128xf32, #tpu.memory_space<vmem>> -> memref<128xf32, #tpu.memory_space<vmem>>
    %848 = tpu.memref_slice %arg6[%605] : memref<2x!tpu.dma_semaphore, #tpu.memory_space<semaphore_mem>> -> memref<1x!tpu.dma_semaphore, #tpu.memory_space<semaphore_mem>>
    %849 = tpu.memref_squeeze %848 : memref<1x!tpu.dma_semaphore, #tpu.memory_space<semaphore_mem>> -> memref<!tpu.dma_semaphore, #tpu.memory_space<semaphore_mem>>
    tpu.wait_dma2 semaphore(%849 : memref<!tpu.dma_semaphore, #tpu.memory_space<semaphore_mem>>) src(%845 : memref<128xf32, #tpu.memory_space<any>>) dst(%847 : memref<128xf32, #tpu.memory_space<vmem>>)
    %c0_i32_669 = arith.constant 0 : i32
    %c0_i32_670 = arith.constant 0 : i32
    %c0_i32_671 = arith.constant 0 : i32
    %c0_i32_672 = arith.constant 0 : i32
    %850 = tpu.memref_slice %arg3[%c0_i32_669, %c0_i32_672] : memref<50x128xf32, #tpu.memory_space<any>> -> memref<1x128xf32, #tpu.memory_space<any>>
    %851 = tpu.memref_squeeze %850 : memref<1x128xf32, #tpu.memory_space<any>> -> memref<128xf32, #tpu.memory_space<any>>
    %c0_i32_673 = arith.constant 0 : i32
    %852 = tpu.memref_slice %arg5[%605, %c0_i32_670, %c0_i32_671, %c0_i32_673] : memref<2x8x8x128xf32, #tpu.memory_space<vmem>> -> memref<1x1x1x128xf32, #tpu.memory_space<vmem>>
    %853 = tpu.memref_squeeze %852 : memref<1x1x1x128xf32, #tpu.memory_space<vmem>> -> memref<128xf32, #tpu.memory_space<vmem>>
    %854 = tpu.memref_slice %arg6[%605] : memref<2x!tpu.dma_semaphore, #tpu.memory_space<semaphore_mem>> -> memref<1x!tpu.dma_semaphore, #tpu.memory_space<semaphore_mem>>
    %855 = tpu.memref_squeeze %854 : memref<1x!tpu.dma_semaphore, #tpu.memory_space<semaphore_mem>> -> memref<!tpu.dma_semaphore, #tpu.memory_space<semaphore_mem>>
    tpu.wait_dma2 semaphore(%855 : memref<!tpu.dma_semaphore, #tpu.memory_space<semaphore_mem>>) src(%851 : memref<128xf32, #tpu.memory_space<any>>) dst(%853 : memref<128xf32, #tpu.memory_space<vmem>>)
    %c0_i32_674 = arith.constant 0 : i32
    %c0_i32_675 = arith.constant 0 : i32
    %c0_i32_676 = arith.constant 0 : i32
    %c0_i32_677 = arith.constant 0 : i32
    %856 = tpu.memref_slice %arg3[%c0_i32_674, %c0_i32_677] : memref<50x128xf32, #tpu.memory_space<any>> -> memref<1x128xf32, #tpu.memory_space<any>>
    %857 = tpu.memref_squeeze %856 : memref<1x128xf32, #tpu.memory_space<any>> -> memref<128xf32, #tpu.memory_space<any>>
    %c0_i32_678 = arith.constant 0 : i32
    %858 = tpu.memref_slice %arg5[%605, %c0_i32_675, %c0_i32_676, %c0_i32_678] : memref<2x8x8x128xf32, #tpu.memory_space<vmem>> -> memref<1x1x1x128xf32, #tpu.memory_space<vmem>>
    %859 = tpu.memref_squeeze %858 : memref<1x1x1x128xf32, #tpu.memory_space<vmem>> -> memref<128xf32, #tpu.memory_space<vmem>>
    %860 = tpu.memref_slice %arg6[%605] : memref<2x!tpu.dma_semaphore, #tpu.memory_space<semaphore_mem>> -> memref<1x!tpu.dma_semaphore, #tpu.memory_space<semaphore_mem>>
    %861 = tpu.memref_squeeze %860 : memref<1x!tpu.dma_semaphore, #tpu.memory_space<semaphore_mem>> -> memref<!tpu.dma_semaphore, #tpu.memory_space<semaphore_mem>>
    tpu.wait_dma2 semaphore(%861 : memref<!tpu.dma_semaphore, #tpu.memory_space<semaphore_mem>>) src(%857 : memref<128xf32, #tpu.memory_space<any>>) dst(%859 : memref<128xf32, #tpu.memory_space<vmem>>)
    %c0_i32_679 = arith.constant 0 : i32
    %c0_i32_680 = arith.constant 0 : i32
    %c0_i32_681 = arith.constant 0 : i32
    %c0_i32_682 = arith.constant 0 : i32
    %862 = tpu.memref_slice %arg3[%c0_i32_679, %c0_i32_682] : memref<50x128xf32, #tpu.memory_space<any>> -> memref<1x128xf32, #tpu.memory_space<any>>
    %863 = tpu.memref_squeeze %862 : memref<1x128xf32, #tpu.memory_space<any>> -> memref<128xf32, #tpu.memory_space<any>>
    %c0_i32_683 = arith.constant 0 : i32
    %864 = tpu.memref_slice %arg5[%605, %c0_i32_680, %c0_i32_681, %c0_i32_683] : memref<2x8x8x128xf32, #tpu.memory_space<vmem>> -> memref<1x1x1x128xf32, #tpu.memory_space<vmem>>
    %865 = tpu.memref_squeeze %864 : memref<1x1x1x128xf32, #tpu.memory_space<vmem>> -> memref<128xf32, #tpu.memory_space<vmem>>
    %866 = tpu.memref_slice %arg6[%605] : memref<2x!tpu.dma_semaphore, #tpu.memory_space<semaphore_mem>> -> memref<1x!tpu.dma_semaphore, #tpu.memory_space<semaphore_mem>>
    %867 = tpu.memref_squeeze %866 : memref<1x!tpu.dma_semaphore, #tpu.memory_space<semaphore_mem>> -> memref<!tpu.dma_semaphore, #tpu.memory_space<semaphore_mem>>
    tpu.wait_dma2 semaphore(%867 : memref<!tpu.dma_semaphore, #tpu.memory_space<semaphore_mem>>) src(%863 : memref<128xf32, #tpu.memory_space<any>>) dst(%865 : memref<128xf32, #tpu.memory_space<vmem>>)
    %c0_i32_684 = arith.constant 0 : i32
    %c0_i32_685 = arith.constant 0 : i32
    %c0_i32_686 = arith.constant 0 : i32
    %c0_i32_687 = arith.constant 0 : i32
    %868 = tpu.memref_slice %arg3[%c0_i32_684, %c0_i32_687] : memref<50x128xf32, #tpu.memory_space<any>> -> memref<1x128xf32, #tpu.memory_space<any>>
    %869 = tpu.memref_squeeze %868 : memref<1x128xf32, #tpu.memory_space<any>> -> memref<128xf32, #tpu.memory_space<any>>
    %c0_i32_688 = arith.constant 0 : i32
    %870 = tpu.memref_slice %arg5[%605, %c0_i32_685, %c0_i32_686, %c0_i32_688] : memref<2x8x8x128xf32, #tpu.memory_space<vmem>> -> memref<1x1x1x128xf32, #tpu.memory_space<vmem>>
    %871 = tpu.memref_squeeze %870 : memref<1x1x1x128xf32, #tpu.memory_space<vmem>> -> memref<128xf32, #tpu.memory_space<vmem>>
    %872 = tpu.memref_slice %arg6[%605] : memref<2x!tpu.dma_semaphore, #tpu.memory_space<semaphore_mem>> -> memref<1x!tpu.dma_semaphore, #tpu.memory_space<semaphore_mem>>
    %873 = tpu.memref_squeeze %872 : memref<1x!tpu.dma_semaphore, #tpu.memory_space<semaphore_mem>> -> memref<!tpu.dma_semaphore, #tpu.memory_space<semaphore_mem>>
    tpu.wait_dma2 semaphore(%873 : memref<!tpu.dma_semaphore, #tpu.memory_space<semaphore_mem>>) src(%869 : memref<128xf32, #tpu.memory_space<any>>) dst(%871 : memref<128xf32, #tpu.memory_space<vmem>>)
    %c0_i32_689 = arith.constant 0 : i32
    %c0_i32_690 = arith.constant 0 : i32
    %c0_i32_691 = arith.constant 0 : i32
    %c0_i32_692 = arith.constant 0 : i32
    %874 = tpu.memref_slice %arg3[%c0_i32_689, %c0_i32_692] : memref<50x128xf32, #tpu.memory_space<any>> -> memref<1x128xf32, #tpu.memory_space<any>>
    %875 = tpu.memref_squeeze %874 : memref<1x128xf32, #tpu.memory_space<any>> -> memref<128xf32, #tpu.memory_space<any>>
    %c0_i32_693 = arith.constant 0 : i32
    %876 = tpu.memref_slice %arg5[%605, %c0_i32_690, %c0_i32_691, %c0_i32_693] : memref<2x8x8x128xf32, #tpu.memory_space<vmem>> -> memref<1x1x1x128xf32, #tpu.memory_space<vmem>>
    %877 = tpu.memref_squeeze %876 : memref<1x1x1x128xf32, #tpu.memory_space<vmem>> -> memref<128xf32, #tpu.memory_space<vmem>>
    %878 = tpu.memref_slice %arg6[%605] : memref<2x!tpu.dma_semaphore, #tpu.memory_space<semaphore_mem>> -> memref<1x!tpu.dma_semaphore, #tpu.memory_space<semaphore_mem>>
    %879 = tpu.memref_squeeze %878 : memref<1x!tpu.dma_semaphore, #tpu.memory_space<semaphore_mem>> -> memref<!tpu.dma_semaphore, #tpu.memory_space<semaphore_mem>>
    tpu.wait_dma2 semaphore(%879 : memref<!tpu.dma_semaphore, #tpu.memory_space<semaphore_mem>>) src(%875 : memref<128xf32, #tpu.memory_space<any>>) dst(%877 : memref<128xf32, #tpu.memory_space<vmem>>)
    %c0_i32_694 = arith.constant 0 : i32
    %c0_i32_695 = arith.constant 0 : i32
    %c0_i32_696 = arith.constant 0 : i32
    %c0_i32_697 = arith.constant 0 : i32
    %880 = tpu.memref_slice %arg3[%c0_i32_694, %c0_i32_697] : memref<50x128xf32, #tpu.memory_space<any>> -> memref<1x128xf32, #tpu.memory_space<any>>
    %881 = tpu.memref_squeeze %880 : memref<1x128xf32, #tpu.memory_space<any>> -> memref<128xf32, #tpu.memory_space<any>>
    %c0_i32_698 = arith.constant 0 : i32
    %882 = tpu.memref_slice %arg5[%605, %c0_i32_695, %c0_i32_696, %c0_i32_698] : memref<2x8x8x128xf32, #tpu.memory_space<vmem>> -> memref<1x1x1x128xf32, #tpu.memory_space<vmem>>
    %883 = tpu.memref_squeeze %882 : memref<1x1x1x128xf32, #tpu.memory_space<vmem>> -> memref<128xf32, #tpu.memory_space<vmem>>
    %884 = tpu.memref_slice %arg6[%605] : memref<2x!tpu.dma_semaphore, #tpu.memory_space<semaphore_mem>> -> memref<1x!tpu.dma_semaphore, #tpu.memory_space<semaphore_mem>>
    %885 = tpu.memref_squeeze %884 : memref<1x!tpu.dma_semaphore, #tpu.memory_space<semaphore_mem>> -> memref<!tpu.dma_semaphore, #tpu.memory_space<semaphore_mem>>
    tpu.wait_dma2 semaphore(%885 : memref<!tpu.dma_semaphore, #tpu.memory_space<semaphore_mem>>) src(%881 : memref<128xf32, #tpu.memory_space<any>>) dst(%883 : memref<128xf32, #tpu.memory_space<vmem>>)
    %c0_i32_699 = arith.constant 0 : i32
    %c0_i32_700 = arith.constant 0 : i32
    %c0_i32_701 = arith.constant 0 : i32
    %c0_i32_702 = arith.constant 0 : i32
    %886 = tpu.memref_slice %arg3[%c0_i32_699, %c0_i32_702] : memref<50x128xf32, #tpu.memory_space<any>> -> memref<1x128xf32, #tpu.memory_space<any>>
    %887 = tpu.memref_squeeze %886 : memref<1x128xf32, #tpu.memory_space<any>> -> memref<128xf32, #tpu.memory_space<any>>
    %c0_i32_703 = arith.constant 0 : i32
    %888 = tpu.memref_slice %arg5[%605, %c0_i32_700, %c0_i32_701, %c0_i32_703] : memref<2x8x8x128xf32, #tpu.memory_space<vmem>> -> memref<1x1x1x128xf32, #tpu.memory_space<vmem>>
    %889 = tpu.memref_squeeze %888 : memref<1x1x1x128xf32, #tpu.memory_space<vmem>> -> memref<128xf32, #tpu.memory_space<vmem>>
    %890 = tpu.memref_slice %arg6[%605] : memref<2x!tpu.dma_semaphore, #tpu.memory_space<semaphore_mem>> -> memref<1x!tpu.dma_semaphore, #tpu.memory_space<semaphore_mem>>
    %891 = tpu.memref_squeeze %890 : memref<1x!tpu.dma_semaphore, #tpu.memory_space<semaphore_mem>> -> memref<!tpu.dma_semaphore, #tpu.memory_space<semaphore_mem>>
    tpu.wait_dma2 semaphore(%891 : memref<!tpu.dma_semaphore, #tpu.memory_space<semaphore_mem>>) src(%887 : memref<128xf32, #tpu.memory_space<any>>) dst(%889 : memref<128xf32, #tpu.memory_space<vmem>>)
    %c0_i32_704 = arith.constant 0 : i32
    %c0_i32_705 = arith.constant 0 : i32
    %c0_i32_706 = arith.constant 0 : i32
    %c0_i32_707 = arith.constant 0 : i32
    %892 = tpu.memref_slice %arg3[%c0_i32_704, %c0_i32_707] : memref<50x128xf32, #tpu.memory_space<any>> -> memref<1x128xf32, #tpu.memory_space<any>>
    %893 = tpu.memref_squeeze %892 : memref<1x128xf32, #tpu.memory_space<any>> -> memref<128xf32, #tpu.memory_space<any>>
    %c0_i32_708 = arith.constant 0 : i32
    %894 = tpu.memref_slice %arg5[%605, %c0_i32_705, %c0_i32_706, %c0_i32_708] : memref<2x8x8x128xf32, #tpu.memory_space<vmem>> -> memref<1x1x1x128xf32, #tpu.memory_space<vmem>>
    %895 = tpu.memref_squeeze %894 : memref<1x1x1x128xf32, #tpu.memory_space<vmem>> -> memref<128xf32, #tpu.memory_space<vmem>>
    %896 = tpu.memref_slice %arg6[%605] : memref<2x!tpu.dma_semaphore, #tpu.memory_space<semaphore_mem>> -> memref<1x!tpu.dma_semaphore, #tpu.memory_space<semaphore_mem>>
    %897 = tpu.memref_squeeze %896 : memref<1x!tpu.dma_semaphore, #tpu.memory_space<semaphore_mem>> -> memref<!tpu.dma_semaphore, #tpu.memory_space<semaphore_mem>>
    tpu.wait_dma2 semaphore(%897 : memref<!tpu.dma_semaphore, #tpu.memory_space<semaphore_mem>>) src(%893 : memref<128xf32, #tpu.memory_space<any>>) dst(%895 : memref<128xf32, #tpu.memory_space<vmem>>)
    %c0_i32_709 = arith.constant 0 : i32
    %c0_i32_710 = arith.constant 0 : i32
    %c0_i32_711 = arith.constant 0 : i32
    %c0_i32_712 = arith.constant 0 : i32
    %898 = tpu.memref_slice %arg3[%c0_i32_709, %c0_i32_712] : memref<50x128xf32, #tpu.memory_space<any>> -> memref<1x128xf32, #tpu.memory_space<any>>
    %899 = tpu.memref_squeeze %898 : memref<1x128xf32, #tpu.memory_space<any>> -> memref<128xf32, #tpu.memory_space<any>>
    %c0_i32_713 = arith.constant 0 : i32
    %900 = tpu.memref_slice %arg5[%605, %c0_i32_710, %c0_i32_711, %c0_i32_713] : memref<2x8x8x128xf32, #tpu.memory_space<vmem>> -> memref<1x1x1x128xf32, #tpu.memory_space<vmem>>
    %901 = tpu.memref_squeeze %900 : memref<1x1x1x128xf32, #tpu.memory_space<vmem>> -> memref<128xf32, #tpu.memory_space<vmem>>
    %902 = tpu.memref_slice %arg6[%605] : memref<2x!tpu.dma_semaphore, #tpu.memory_space<semaphore_mem>> -> memref<1x!tpu.dma_semaphore, #tpu.memory_space<semaphore_mem>>
    %903 = tpu.memref_squeeze %902 : memref<1x!tpu.dma_semaphore, #tpu.memory_space<semaphore_mem>> -> memref<!tpu.dma_semaphore, #tpu.memory_space<semaphore_mem>>
    tpu.wait_dma2 semaphore(%903 : memref<!tpu.dma_semaphore, #tpu.memory_space<semaphore_mem>>) src(%899 : memref<128xf32, #tpu.memory_space<any>>) dst(%901 : memref<128xf32, #tpu.memory_space<vmem>>)
    %c0_i32_714 = arith.constant 0 : i32
    %c0_i32_715 = arith.constant 0 : i32
    %c0_i32_716 = arith.constant 0 : i32
    %c0_i32_717 = arith.constant 0 : i32
    %904 = tpu.memref_slice %arg3[%c0_i32_714, %c0_i32_717] : memref<50x128xf32, #tpu.memory_space<any>> -> memref<1x128xf32, #tpu.memory_space<any>>
    %905 = tpu.memref_squeeze %904 : memref<1x128xf32, #tpu.memory_space<any>> -> memref<128xf32, #tpu.memory_space<any>>
    %c0_i32_718 = arith.constant 0 : i32
    %906 = tpu.memref_slice %arg5[%605, %c0_i32_715, %c0_i32_716, %c0_i32_718] : memref<2x8x8x128xf32, #tpu.memory_space<vmem>> -> memref<1x1x1x128xf32, #tpu.memory_space<vmem>>
    %907 = tpu.memref_squeeze %906 : memref<1x1x1x128xf32, #tpu.memory_space<vmem>> -> memref<128xf32, #tpu.memory_space<vmem>>
    %908 = tpu.memref_slice %arg6[%605] : memref<2x!tpu.dma_semaphore, #tpu.memory_space<semaphore_mem>> -> memref<1x!tpu.dma_semaphore, #tpu.memory_space<semaphore_mem>>
    %909 = tpu.memref_squeeze %908 : memref<1x!tpu.dma_semaphore, #tpu.memory_space<semaphore_mem>> -> memref<!tpu.dma_semaphore, #tpu.memory_space<semaphore_mem>>
    tpu.wait_dma2 semaphore(%909 : memref<!tpu.dma_semaphore, #tpu.memory_space<semaphore_mem>>) src(%905 : memref<128xf32, #tpu.memory_space<any>>) dst(%907 : memref<128xf32, #tpu.memory_space<vmem>>)
    %c0_i32_719 = arith.constant 0 : i32
    %c0_i32_720 = arith.constant 0 : i32
    %c0_i32_721 = arith.constant 0 : i32
    %c0_i32_722 = arith.constant 0 : i32
    %910 = tpu.memref_slice %arg3[%c0_i32_719, %c0_i32_722] : memref<50x128xf32, #tpu.memory_space<any>> -> memref<1x128xf32, #tpu.memory_space<any>>
    %911 = tpu.memref_squeeze %910 : memref<1x128xf32, #tpu.memory_space<any>> -> memref<128xf32, #tpu.memory_space<any>>
    %c0_i32_723 = arith.constant 0 : i32
    %912 = tpu.memref_slice %arg5[%605, %c0_i32_720, %c0_i32_721, %c0_i32_723] : memref<2x8x8x128xf32, #tpu.memory_space<vmem>> -> memref<1x1x1x128xf32, #tpu.memory_space<vmem>>
    %913 = tpu.memref_squeeze %912 : memref<1x1x1x128xf32, #tpu.memory_space<vmem>> -> memref<128xf32, #tpu.memory_space<vmem>>
    %914 = tpu.memref_slice %arg6[%605] : memref<2x!tpu.dma_semaphore, #tpu.memory_space<semaphore_mem>> -> memref<1x!tpu.dma_semaphore, #tpu.memory_space<semaphore_mem>>
    %915 = tpu.memref_squeeze %914 : memref<1x!tpu.dma_semaphore, #tpu.memory_space<semaphore_mem>> -> memref<!tpu.dma_semaphore, #tpu.memory_space<semaphore_mem>>
    tpu.wait_dma2 semaphore(%915 : memref<!tpu.dma_semaphore, #tpu.memory_space<semaphore_mem>>) src(%911 : memref<128xf32, #tpu.memory_space<any>>) dst(%913 : memref<128xf32, #tpu.memory_space<vmem>>)
    %c0_i32_724 = arith.constant 0 : i32
    %c0_i32_725 = arith.constant 0 : i32
    %c0_i32_726 = arith.constant 0 : i32
    %c0_i32_727 = arith.constant 0 : i32
    %916 = tpu.memref_slice %arg3[%c0_i32_724, %c0_i32_727] : memref<50x128xf32, #tpu.memory_space<any>> -> memref<1x128xf32, #tpu.memory_space<any>>
    %917 = tpu.memref_squeeze %916 : memref<1x128xf32, #tpu.memory_space<any>> -> memref<128xf32, #tpu.memory_space<any>>
    %c0_i32_728 = arith.constant 0 : i32
    %918 = tpu.memref_slice %arg5[%605, %c0_i32_725, %c0_i32_726, %c0_i32_728] : memref<2x8x8x128xf32, #tpu.memory_space<vmem>> -> memref<1x1x1x128xf32, #tpu.memory_space<vmem>>
    %919 = tpu.memref_squeeze %918 : memref<1x1x1x128xf32, #tpu.memory_space<vmem>> -> memref<128xf32, #tpu.memory_space<vmem>>
    %920 = tpu.memref_slice %arg6[%605] : memref<2x!tpu.dma_semaphore, #tpu.memory_space<semaphore_mem>> -> memref<1x!tpu.dma_semaphore, #tpu.memory_space<semaphore_mem>>
    %921 = tpu.memref_squeeze %920 : memref<1x!tpu.dma_semaphore, #tpu.memory_space<semaphore_mem>> -> memref<!tpu.dma_semaphore, #tpu.memory_space<semaphore_mem>>
    tpu.wait_dma2 semaphore(%921 : memref<!tpu.dma_semaphore, #tpu.memory_space<semaphore_mem>>) src(%917 : memref<128xf32, #tpu.memory_space<any>>) dst(%919 : memref<128xf32, #tpu.memory_space<vmem>>)
    %c0_i32_729 = arith.constant 0 : i32
    %c0_i32_730 = arith.constant 0 : i32
    %c0_i32_731 = arith.constant 0 : i32
    %c0_i32_732 = arith.constant 0 : i32
    %922 = tpu.memref_slice %arg3[%c0_i32_729, %c0_i32_732] : memref<50x128xf32, #tpu.memory_space<any>> -> memref<1x128xf32, #tpu.memory_space<any>>
    %923 = tpu.memref_squeeze %922 : memref<1x128xf32, #tpu.memory_space<any>> -> memref<128xf32, #tpu.memory_space<any>>
    %c0_i32_733 = arith.constant 0 : i32
    %924 = tpu.memref_slice %arg5[%605, %c0_i32_730, %c0_i32_731, %c0_i32_733] : memref<2x8x8x128xf32, #tpu.memory_space<vmem>> -> memref<1x1x1x128xf32, #tpu.memory_space<vmem>>
    %925 = tpu.memref_squeeze %924 : memref<1x1x1x128xf32, #tpu.memory_space<vmem>> -> memref<128xf32, #tpu.memory_space<vmem>>
    %926 = tpu.memref_slice %arg6[%605] : memref<2x!tpu.dma_semaphore, #tpu.memory_space<semaphore_mem>> -> memref<1x!tpu.dma_semaphore, #tpu.memory_space<semaphore_mem>>
    %927 = tpu.memref_squeeze %926 : memref<1x!tpu.dma_semaphore, #tpu.memory_space<semaphore_mem>> -> memref<!tpu.dma_semaphore, #tpu.memory_space<semaphore_mem>>
    tpu.wait_dma2 semaphore(%927 : memref<!tpu.dma_semaphore, #tpu.memory_space<semaphore_mem>>) src(%923 : memref<128xf32, #tpu.memory_space<any>>) dst(%925 : memref<128xf32, #tpu.memory_space<vmem>>)
    %c0_i32_734 = arith.constant 0 : i32
    %c0_i32_735 = arith.constant 0 : i32
    %c0_i32_736 = arith.constant 0 : i32
    %c0_i32_737 = arith.constant 0 : i32
    %928 = tpu.memref_slice %arg3[%c0_i32_734, %c0_i32_737] : memref<50x128xf32, #tpu.memory_space<any>> -> memref<1x128xf32, #tpu.memory_space<any>>
    %929 = tpu.memref_squeeze %928 : memref<1x128xf32, #tpu.memory_space<any>> -> memref<128xf32, #tpu.memory_space<any>>
    %c0_i32_738 = arith.constant 0 : i32
    %930 = tpu.memref_slice %arg5[%605, %c0_i32_735, %c0_i32_736, %c0_i32_738] : memref<2x8x8x128xf32, #tpu.memory_space<vmem>> -> memref<1x1x1x128xf32, #tpu.memory_space<vmem>>
    %931 = tpu.memref_squeeze %930 : memref<1x1x1x128xf32, #tpu.memory_space<vmem>> -> memref<128xf32, #tpu.memory_space<vmem>>
    %932 = tpu.memref_slice %arg6[%605] : memref<2x!tpu.dma_semaphore, #tpu.memory_space<semaphore_mem>> -> memref<1x!tpu.dma_semaphore, #tpu.memory_space<semaphore_mem>>
    %933 = tpu.memref_squeeze %932 : memref<1x!tpu.dma_semaphore, #tpu.memory_space<semaphore_mem>> -> memref<!tpu.dma_semaphore, #tpu.memory_space<semaphore_mem>>
    tpu.wait_dma2 semaphore(%933 : memref<!tpu.dma_semaphore, #tpu.memory_space<semaphore_mem>>) src(%929 : memref<128xf32, #tpu.memory_space<any>>) dst(%931 : memref<128xf32, #tpu.memory_space<vmem>>)
    %c0_i32_739 = arith.constant 0 : i32
    %c0_i32_740 = arith.constant 0 : i32
    %c0_i32_741 = arith.constant 0 : i32
    %c0_i32_742 = arith.constant 0 : i32
    %934 = tpu.memref_slice %arg3[%c0_i32_739, %c0_i32_742] : memref<50x128xf32, #tpu.memory_space<any>> -> memref<1x128xf32, #tpu.memory_space<any>>
    %935 = tpu.memref_squeeze %934 : memref<1x128xf32, #tpu.memory_space<any>> -> memref<128xf32, #tpu.memory_space<any>>
    %c0_i32_743 = arith.constant 0 : i32
    %936 = tpu.memref_slice %arg5[%605, %c0_i32_740, %c0_i32_741, %c0_i32_743] : memref<2x8x8x128xf32, #tpu.memory_space<vmem>> -> memref<1x1x1x128xf32, #tpu.memory_space<vmem>>
    %937 = tpu.memref_squeeze %936 : memref<1x1x1x128xf32, #tpu.memory_space<vmem>> -> memref<128xf32, #tpu.memory_space<vmem>>
    %938 = tpu.memref_slice %arg6[%605] : memref<2x!tpu.dma_semaphore, #tpu.memory_space<semaphore_mem>> -> memref<1x!tpu.dma_semaphore, #tpu.memory_space<semaphore_mem>>
    %939 = tpu.memref_squeeze %938 : memref<1x!tpu.dma_semaphore, #tpu.memory_space<semaphore_mem>> -> memref<!tpu.dma_semaphore, #tpu.memory_space<semaphore_mem>>
    tpu.wait_dma2 semaphore(%939 : memref<!tpu.dma_semaphore, #tpu.memory_space<semaphore_mem>>) src(%935 : memref<128xf32, #tpu.memory_space<any>>) dst(%937 : memref<128xf32, #tpu.memory_space<vmem>>)
    %c0_i32_744 = arith.constant 0 : i32
    %c0_i32_745 = arith.constant 0 : i32
    %c0_i32_746 = arith.constant 0 : i32
    %c0_i32_747 = arith.constant 0 : i32
    %940 = tpu.memref_slice %arg3[%c0_i32_744, %c0_i32_747] : memref<50x128xf32, #tpu.memory_space<any>> -> memref<1x128xf32, #tpu.memory_space<any>>
    %941 = tpu.memref_squeeze %940 : memref<1x128xf32, #tpu.memory_space<any>> -> memref<128xf32, #tpu.memory_space<any>>
    %c0_i32_748 = arith.constant 0 : i32
    %942 = tpu.memref_slice %arg5[%605, %c0_i32_745, %c0_i32_746, %c0_i32_748] : memref<2x8x8x128xf32, #tpu.memory_space<vmem>> -> memref<1x1x1x128xf32, #tpu.memory_space<vmem>>
    %943 = tpu.memref_squeeze %942 : memref<1x1x1x128xf32, #tpu.memory_space<vmem>> -> memref<128xf32, #tpu.memory_space<vmem>>
    %944 = tpu.memref_slice %arg6[%605] : memref<2x!tpu.dma_semaphore, #tpu.memory_space<semaphore_mem>> -> memref<1x!tpu.dma_semaphore, #tpu.memory_space<semaphore_mem>>
    %945 = tpu.memref_squeeze %944 : memref<1x!tpu.dma_semaphore, #tpu.memory_space<semaphore_mem>> -> memref<!tpu.dma_semaphore, #tpu.memory_space<semaphore_mem>>
    tpu.wait_dma2 semaphore(%945 : memref<!tpu.dma_semaphore, #tpu.memory_space<semaphore_mem>>) src(%941 : memref<128xf32, #tpu.memory_space<any>>) dst(%943 : memref<128xf32, #tpu.memory_space<vmem>>)
    %c0_i32_749 = arith.constant 0 : i32
    %c0_i32_750 = arith.constant 0 : i32
    %c0_i32_751 = arith.constant 0 : i32
    %c0_i32_752 = arith.constant 0 : i32
    %946 = tpu.memref_slice %arg3[%c0_i32_749, %c0_i32_752] : memref<50x128xf32, #tpu.memory_space<any>> -> memref<1x128xf32, #tpu.memory_space<any>>
    %947 = tpu.memref_squeeze %946 : memref<1x128xf32, #tpu.memory_space<any>> -> memref<128xf32, #tpu.memory_space<any>>
    %c0_i32_753 = arith.constant 0 : i32
    %948 = tpu.memref_slice %arg5[%605, %c0_i32_750, %c0_i32_751, %c0_i32_753] : memref<2x8x8x128xf32, #tpu.memory_space<vmem>> -> memref<1x1x1x128xf32, #tpu.memory_space<vmem>>
    %949 = tpu.memref_squeeze %948 : memref<1x1x1x128xf32, #tpu.memory_space<vmem>> -> memref<128xf32, #tpu.memory_space<vmem>>
    %950 = tpu.memref_slice %arg6[%605] : memref<2x!tpu.dma_semaphore, #tpu.memory_space<semaphore_mem>> -> memref<1x!tpu.dma_semaphore, #tpu.memory_space<semaphore_mem>>
    %951 = tpu.memref_squeeze %950 : memref<1x!tpu.dma_semaphore, #tpu.memory_space<semaphore_mem>> -> memref<!tpu.dma_semaphore, #tpu.memory_space<semaphore_mem>>
    tpu.wait_dma2 semaphore(%951 : memref<!tpu.dma_semaphore, #tpu.memory_space<semaphore_mem>>) src(%947 : memref<128xf32, #tpu.memory_space<any>>) dst(%949 : memref<128xf32, #tpu.memory_space<vmem>>)
    %c0_i32_754 = arith.constant 0 : i32
    %c0_i32_755 = arith.constant 0 : i32
    %c0_i32_756 = arith.constant 0 : i32
    %c0_i32_757 = arith.constant 0 : i32
    %952 = tpu.memref_slice %arg3[%c0_i32_754, %c0_i32_757] : memref<50x128xf32, #tpu.memory_space<any>> -> memref<1x128xf32, #tpu.memory_space<any>>
    %953 = tpu.memref_squeeze %952 : memref<1x128xf32, #tpu.memory_space<any>> -> memref<128xf32, #tpu.memory_space<any>>
    %c0_i32_758 = arith.constant 0 : i32
    %954 = tpu.memref_slice %arg5[%605, %c0_i32_755, %c0_i32_756, %c0_i32_758] : memref<2x8x8x128xf32, #tpu.memory_space<vmem>> -> memref<1x1x1x128xf32, #tpu.memory_space<vmem>>
    %955 = tpu.memref_squeeze %954 : memref<1x1x1x128xf32, #tpu.memory_space<vmem>> -> memref<128xf32, #tpu.memory_space<vmem>>
    %956 = tpu.memref_slice %arg6[%605] : memref<2x!tpu.dma_semaphore, #tpu.memory_space<semaphore_mem>> -> memref<1x!tpu.dma_semaphore, #tpu.memory_space<semaphore_mem>>
    %957 = tpu.memref_squeeze %956 : memref<1x!tpu.dma_semaphore, #tpu.memory_space<semaphore_mem>> -> memref<!tpu.dma_semaphore, #tpu.memory_space<semaphore_mem>>
    tpu.wait_dma2 semaphore(%957 : memref<!tpu.dma_semaphore, #tpu.memory_space<semaphore_mem>>) src(%953 : memref<128xf32, #tpu.memory_space<any>>) dst(%955 : memref<128xf32, #tpu.memory_space<vmem>>)
    %c0_i32_759 = arith.constant 0 : i32
    %c0_i32_760 = arith.constant 0 : i32
    %c0_i32_761 = arith.constant 0 : i32
    %c0_i32_762 = arith.constant 0 : i32
    %958 = tpu.memref_slice %arg3[%c0_i32_759, %c0_i32_762] : memref<50x128xf32, #tpu.memory_space<any>> -> memref<1x128xf32, #tpu.memory_space<any>>
    %959 = tpu.memref_squeeze %958 : memref<1x128xf32, #tpu.memory_space<any>> -> memref<128xf32, #tpu.memory_space<any>>
    %c0_i32_763 = arith.constant 0 : i32
    %960 = tpu.memref_slice %arg5[%605, %c0_i32_760, %c0_i32_761, %c0_i32_763] : memref<2x8x8x128xf32, #tpu.memory_space<vmem>> -> memref<1x1x1x128xf32, #tpu.memory_space<vmem>>
    %961 = tpu.memref_squeeze %960 : memref<1x1x1x128xf32, #tpu.memory_space<vmem>> -> memref<128xf32, #tpu.memory_space<vmem>>
    %962 = tpu.memref_slice %arg6[%605] : memref<2x!tpu.dma_semaphore, #tpu.memory_space<semaphore_mem>> -> memref<1x!tpu.dma_semaphore, #tpu.memory_space<semaphore_mem>>
    %963 = tpu.memref_squeeze %962 : memref<1x!tpu.dma_semaphore, #tpu.memory_space<semaphore_mem>> -> memref<!tpu.dma_semaphore, #tpu.memory_space<semaphore_mem>>
    tpu.wait_dma2 semaphore(%963 : memref<!tpu.dma_semaphore, #tpu.memory_space<semaphore_mem>>) src(%959 : memref<128xf32, #tpu.memory_space<any>>) dst(%961 : memref<128xf32, #tpu.memory_space<vmem>>)
    %c0_i32_764 = arith.constant 0 : i32
    %c0_i32_765 = arith.constant 0 : i32
    %c0_i32_766 = arith.constant 0 : i32
    %c0_i32_767 = arith.constant 0 : i32
    %964 = tpu.memref_slice %arg3[%c0_i32_764, %c0_i32_767] : memref<50x128xf32, #tpu.memory_space<any>> -> memref<1x128xf32, #tpu.memory_space<any>>
    %965 = tpu.memref_squeeze %964 : memref<1x128xf32, #tpu.memory_space<any>> -> memref<128xf32, #tpu.memory_space<any>>
    %c0_i32_768 = arith.constant 0 : i32
    %966 = tpu.memref_slice %arg5[%605, %c0_i32_765, %c0_i32_766, %c0_i32_768] : memref<2x8x8x128xf32, #tpu.memory_space<vmem>> -> memref<1x1x1x128xf32, #tpu.memory_space<vmem>>
    %967 = tpu.memref_squeeze %966 : memref<1x1x1x128xf32, #tpu.memory_space<vmem>> -> memref<128xf32, #tpu.memory_space<vmem>>
    %968 = tpu.memref_slice %arg6[%605] : memref<2x!tpu.dma_semaphore, #tpu.memory_space<semaphore_mem>> -> memref<1x!tpu.dma_semaphore, #tpu.memory_space<semaphore_mem>>
    %969 = tpu.memref_squeeze %968 : memref<1x!tpu.dma_semaphore, #tpu.memory_space<semaphore_mem>> -> memref<!tpu.dma_semaphore, #tpu.memory_space<semaphore_mem>>
    tpu.wait_dma2 semaphore(%969 : memref<!tpu.dma_semaphore, #tpu.memory_space<semaphore_mem>>) src(%965 : memref<128xf32, #tpu.memory_space<any>>) dst(%967 : memref<128xf32, #tpu.memory_space<vmem>>)
    %c0_i32_769 = arith.constant 0 : i32
    %c0_i32_770 = arith.constant 0 : i32
    %c0_i32_771 = arith.constant 0 : i32
    %c0_i32_772 = arith.constant 0 : i32
    %970 = tpu.memref_slice %arg3[%c0_i32_769, %c0_i32_772] : memref<50x128xf32, #tpu.memory_space<any>> -> memref<1x128xf32, #tpu.memory_space<any>>
    %971 = tpu.memref_squeeze %970 : memref<1x128xf32, #tpu.memory_space<any>> -> memref<128xf32, #tpu.memory_space<any>>
    %c0_i32_773 = arith.constant 0 : i32
    %972 = tpu.memref_slice %arg5[%605, %c0_i32_770, %c0_i32_771, %c0_i32_773] : memref<2x8x8x128xf32, #tpu.memory_space<vmem>> -> memref<1x1x1x128xf32, #tpu.memory_space<vmem>>
    %973 = tpu.memref_squeeze %972 : memref<1x1x1x128xf32, #tpu.memory_space<vmem>> -> memref<128xf32, #tpu.memory_space<vmem>>
    %974 = tpu.memref_slice %arg6[%605] : memref<2x!tpu.dma_semaphore, #tpu.memory_space<semaphore_mem>> -> memref<1x!tpu.dma_semaphore, #tpu.memory_space<semaphore_mem>>
    %975 = tpu.memref_squeeze %974 : memref<1x!tpu.dma_semaphore, #tpu.memory_space<semaphore_mem>> -> memref<!tpu.dma_semaphore, #tpu.memory_space<semaphore_mem>>
    tpu.wait_dma2 semaphore(%975 : memref<!tpu.dma_semaphore, #tpu.memory_space<semaphore_mem>>) src(%971 : memref<128xf32, #tpu.memory_space<any>>) dst(%973 : memref<128xf32, #tpu.memory_space<vmem>>)
    %c0_i32_774 = arith.constant 0 : i32
    %c0_i32_775 = arith.constant 0 : i32
    %c0_i32_776 = arith.constant 0 : i32
    %c0_i32_777 = arith.constant 0 : i32
    %976 = tpu.memref_slice %arg3[%c0_i32_774, %c0_i32_777] : memref<50x128xf32, #tpu.memory_space<any>> -> memref<1x128xf32, #tpu.memory_space<any>>
    %977 = tpu.memref_squeeze %976 : memref<1x128xf32, #tpu.memory_space<any>> -> memref<128xf32, #tpu.memory_space<any>>
    %c0_i32_778 = arith.constant 0 : i32
    %978 = tpu.memref_slice %arg5[%605, %c0_i32_775, %c0_i32_776, %c0_i32_778] : memref<2x8x8x128xf32, #tpu.memory_space<vmem>> -> memref<1x1x1x128xf32, #tpu.memory_space<vmem>>
    %979 = tpu.memref_squeeze %978 : memref<1x1x1x128xf32, #tpu.memory_space<vmem>> -> memref<128xf32, #tpu.memory_space<vmem>>
    %980 = tpu.memref_slice %arg6[%605] : memref<2x!tpu.dma_semaphore, #tpu.memory_space<semaphore_mem>> -> memref<1x!tpu.dma_semaphore, #tpu.memory_space<semaphore_mem>>
    %981 = tpu.memref_squeeze %980 : memref<1x!tpu.dma_semaphore, #tpu.memory_space<semaphore_mem>> -> memref<!tpu.dma_semaphore, #tpu.memory_space<semaphore_mem>>
    tpu.wait_dma2 semaphore(%981 : memref<!tpu.dma_semaphore, #tpu.memory_space<semaphore_mem>>) src(%977 : memref<128xf32, #tpu.memory_space<any>>) dst(%979 : memref<128xf32, #tpu.memory_space<vmem>>)
    %c0_i32_779 = arith.constant 0 : i32
    %c0_i32_780 = arith.constant 0 : i32
    %c0_i32_781 = arith.constant 0 : i32
    %c0_i32_782 = arith.constant 0 : i32
    %982 = tpu.memref_slice %arg3[%c0_i32_779, %c0_i32_782] : memref<50x128xf32, #tpu.memory_space<any>> -> memref<1x128xf32, #tpu.memory_space<any>>
    %983 = tpu.memref_squeeze %982 : memref<1x128xf32, #tpu.memory_space<any>> -> memref<128xf32, #tpu.memory_space<any>>
    %c0_i32_783 = arith.constant 0 : i32
    %984 = tpu.memref_slice %arg5[%605, %c0_i32_780, %c0_i32_781, %c0_i32_783] : memref<2x8x8x128xf32, #tpu.memory_space<vmem>> -> memref<1x1x1x128xf32, #tpu.memory_space<vmem>>
    %985 = tpu.memref_squeeze %984 : memref<1x1x1x128xf32, #tpu.memory_space<vmem>> -> memref<128xf32, #tpu.memory_space<vmem>>
    %986 = tpu.memref_slice %arg6[%605] : memref<2x!tpu.dma_semaphore, #tpu.memory_space<semaphore_mem>> -> memref<1x!tpu.dma_semaphore, #tpu.memory_space<semaphore_mem>>
    %987 = tpu.memref_squeeze %986 : memref<1x!tpu.dma_semaphore, #tpu.memory_space<semaphore_mem>> -> memref<!tpu.dma_semaphore, #tpu.memory_space<semaphore_mem>>
    tpu.wait_dma2 semaphore(%987 : memref<!tpu.dma_semaphore, #tpu.memory_space<semaphore_mem>>) src(%983 : memref<128xf32, #tpu.memory_space<any>>) dst(%985 : memref<128xf32, #tpu.memory_space<vmem>>)
    %c0_i32_784 = arith.constant 0 : i32
    %c0_i32_785 = arith.constant 0 : i32
    %c0_i32_786 = arith.constant 0 : i32
    %c0_i32_787 = arith.constant 0 : i32
    %988 = tpu.memref_slice %arg3[%c0_i32_784, %c0_i32_787] : memref<50x128xf32, #tpu.memory_space<any>> -> memref<1x128xf32, #tpu.memory_space<any>>
    %989 = tpu.memref_squeeze %988 : memref<1x128xf32, #tpu.memory_space<any>> -> memref<128xf32, #tpu.memory_space<any>>
    %c0_i32_788 = arith.constant 0 : i32
    %990 = tpu.memref_slice %arg5[%605, %c0_i32_785, %c0_i32_786, %c0_i32_788] : memref<2x8x8x128xf32, #tpu.memory_space<vmem>> -> memref<1x1x1x128xf32, #tpu.memory_space<vmem>>
    %991 = tpu.memref_squeeze %990 : memref<1x1x1x128xf32, #tpu.memory_space<vmem>> -> memref<128xf32, #tpu.memory_space<vmem>>
    %992 = tpu.memref_slice %arg6[%605] : memref<2x!tpu.dma_semaphore, #tpu.memory_space<semaphore_mem>> -> memref<1x!tpu.dma_semaphore, #tpu.memory_space<semaphore_mem>>
    %993 = tpu.memref_squeeze %992 : memref<1x!tpu.dma_semaphore, #tpu.memory_space<semaphore_mem>> -> memref<!tpu.dma_semaphore, #tpu.memory_space<semaphore_mem>>
    tpu.wait_dma2 semaphore(%993 : memref<!tpu.dma_semaphore, #tpu.memory_space<semaphore_mem>>) src(%989 : memref<128xf32, #tpu.memory_space<any>>) dst(%991 : memref<128xf32, #tpu.memory_space<vmem>>)
    %994 = arith.index_cast %605 : i32 to index
    %c0 = arith.constant 0 : index
    %c0_789 = arith.constant 0 : index
    %c0_790 = arith.constant 0 : index
    %995 = vector.load %arg5[%994, %c0, %c0_789, %c0_790] : memref<2x8x8x128xf32, #tpu.memory_space<vmem>>, vector<1x8x8x128xf32>
    %996 = vector.shape_cast %995 : vector<1x8x8x128xf32> to vector<8x8x128xf32>
    %cst = arith.constant dense<0.000000e+00> : vector<8x128xf32>
    %997 = vector.multi_reduction <add>, %996, %cst [0] : vector<8x8x128xf32> to vector<8x128xf32>
    %c8_i32_791 = arith.constant 8 : i32
    %998 = arith.muli %595, %c8_i32_791 : i32
    %999 = tpu.assume_multiple %998, 8 : i32
    %1000 = arith.index_cast %999 : i32 to index
    %c0_792 = arith.constant 0 : index
    %1001 = vector.load %arg2[%1000, %c0_792] : memref<8x1xf32, #tpu.memory_space<vmem>>, vector<8x1xf32>
    %1002 = tpu.reciprocal %1001 : vector<8x1xf32> -> vector<8x1xf32>
    %1003 = vector.broadcast %1002 : vector<8x1xf32> to vector<8x128xf32>
    %1004 = arith.mulf %997, %1003 : vector<8x128xf32>
    %1005 = arith.index_cast %999 : i32 to index
    %c0_793 = arith.constant 0 : index
    %1006 = vector.load %arg4[%1005, %c0_793] : memref<8x128xf32, #tpu.memory_space<vmem>>, vector<8x128xf32>
    tpu.vector_store %arg4[%1005, %c0_793], %1004 {strides = array<i32>} : memref<8x128xf32, #tpu.memory_space<vmem>>, vector<8x128xf32>,
    %c1_i32_794 = arith.constant 1 : i32
    return
  }
  func.func @transform_0(%arg0: i32, %arg1: memref<64xi32, #tpu.memory_space<smem>>) -> (i32, i32) {
    %c0_i32 = arith.constant 0 : i32
    %c0_i32_0 = arith.constant 0 : i32
    return %arg0, %c0_i32 : i32, i32
  }
  func.func @transform_2(%arg0: i32, %arg1: memref<64xi32, #tpu.memory_space<smem>>) -> (i32, i32) {
    %c0_i32 = arith.constant 0 : i32
    %c0_i32_0 = arith.constant 0 : i32
    return %arg0, %c0_i32 : i32, i32
  }
}

</mosaic_0001>

<bundles_post_ra>
// kernel: tpu_custom_call.1
= control target key start
LH: loop header
LB: loop body
LE: loop exit
PB: predicated region body
PF: predicated region fallthrough
CT: control target
= control target key end

     0   :  { %s4266_s0 = inlined_call_operand.vmem [shape: s32[64], index: 0, kind: input, shape index: {}]   ;;  %s4267_s1 = inlined_call_operand.vmem [shape: f32[8,1], index: 1, kind: input, shape index: {}]   ;;  %s4268_s2 = inlined_call_operand.hbm [shape: f32[50,128], index: 2, kind: input, shape index: {}]   ;;  %s4269_s3 = inlined_call_operand.hbm [shape: f32[8,128], index: 3, kind: output, shape index: {}]  }
   0x1   :  { %s8_s14 = sshll.u32 %s4266_s0, 4  ;;  %s9_s14 = int_to_ptr.vmem [resolvable:$true] %s8_s14 }
   0x2   :  { %s1554_s15 = scalar_lea.vmem %s9_s14, 16  ;;  %p1559_p1 = scmp.lt.s32.totalorder %s9_s14, %s9_s14 }
   0x3   :  { %p1555_p0 = scmp.ne.s32.totalorder %s9_s14, %s1554_s15  ;;  %p1560_p2 = scmp.lt.s32.totalorder %s1554_s15, %s1554_s15 }
   0x5   :  { %p1561_p3 = por %p1560_p2, %p1559_p1 }
   0x7   :  { %p1562_p4 = pnand %p1561_p3, %p1555_p0 }
   0x9   :  { %1565 = shalt.err (!%p1562_p4)  }
   0xa   :  { %s3130_s16 = smov [#allocation5]  }
   0xb   :  { %11 = dma.vmem_to_smem %s9_s14, 16, %s3130_s16, [#allocation4] }
   0xc   :  { %3124 = dma.done.wait [#allocation4], 16 }
   0xd   :  { %3125 = vsyncadd [#allocation4], 4294967280 }
   0xe   :  { %13 = sfence }
   0xf   :  { %14 = vsyncpa [#allocation7], 0  ;;  %s19_s17 = sld [smem:[#allocation5]]  ;;  %s3131_s18 = smov [#allocation2]  }
  0x10   :  { %s29_s19 = sshll.u32 %s3131_s18, 4  ;;  %s3220_s20 = sld [smem:[#allocation5 + $0x1]]  ;;  %s3222_s19 = int_to_ptr.vmem [resolvable:$true] %s29_s19 }
  0x11   :  { %s3132_s0 = smov [#allocation2 + $0x8]   ;;  %s3224_s22 = sld [smem:[#allocation5 + $0x2]] }
  0x12   :  { %s45_s21 = sshll.u32 %s3132_s0, 4  ;;  %s3133_s23 = smov [#allocation2 + $0x10]   ;;  %s3226_s21 = int_to_ptr.vmem [resolvable:$true] %s45_s21 }
  0x13   :  { %s61_s24 = sshll.u32 %s3133_s23, 4  ;;  %s3228_s25 = sld [smem:[#allocation5 + $0x3]]  ;;  %s3230_s24 = int_to_ptr.vmem [resolvable:$true] %s61_s24 }
  0x14   :  { %s3239_s7 = scalar_lea.hbm %s4268_s2, 896 }
  0x15   :  { %s1355_s26 = sshll.u32 %s19_s17, 4 }
  0x16   :  { %s21_s29 = scalar_lea.hbm %s4268_s2, %s1355_s26  ;;  %s1357_s30 = sshll.u32 %s3220_s20, 4 }
  0x17   :  { %s1566_s4 = scalar_lea.hbm %s21_s29, 16  ;;  %p1569_p6 = scmp.lt.u32.totalorder %s21_s29, %s4268_s2 }
  0x18   :  { %p1567_p5 = scmp.ne.s32.totalorder %s21_s29, %s1566_s4  ;;  %p1570_p7 = scmp.lt.u32.totalorder %s3239_s7, %s1566_s4 }
  0x19   :  { %p1572_p9 = scmp.lt.u32.totalorder %s1566_s4, %s21_s29 }
  0x1a   :  { %p1571_p8 = por %p1570_p7, %p1569_p6 }
  0x1c   :  { %p1573_p10 = por %p1572_p9, %p1571_p8 }
  0x1e   :  { %p1574_p11 = pnand %p1573_p10, %p1567_p5 }
  0x20   :  { %1577 = shalt.err (!%p1574_p11)  }
  0x21   :  { %s1578_s10 = scalar_lea.vmem %s3222_s19, 16  ;;  %s3248_s11 = scalar_lea.vmem %s3222_s19, 2048 }
  0x22   :  { %p1579_p12 = scmp.ne.s32.totalorder %s3222_s19, %s1578_s10  ;;  %p1583_p13 = scmp.lt.s32.totalorder %s3222_s19, %s3222_s19 }
  0x23   :  { %p1584_p0 = scmp.lt.s32.totalorder %s3248_s11, %s1578_s10 }
  0x25   :  { %p1585_p1 = por %p1584_p0, %p1583_p13 }
  0x27   :  { %p1586_p2 = pnand %p1585_p1, %p1579_p12 }
  0x29   :  { %1589 = shalt.err (!%p1586_p2)  }
  0x2a   :  { %32 = dma.hbm_to_vmem [thread:$0]  %s21_s29, 16, %s3222_s19, [#allocation3] }
  0x2b   :  { %s36_s14 = scalar_lea.hbm %s4268_s2, %s1357_s30  ;;  %s1359_s15 = sshll.u32 %s3224_s22, 4 }
  0x2c   :  { %s1590_s16 = scalar_lea.hbm %s36_s14, 16  ;;  %p1593_p4 = scmp.lt.u32.totalorder %s36_s14, %s4268_s2 }
  0x2d   :  { %p1591_p3 = scmp.ne.s32.totalorder %s36_s14, %s1590_s16  ;;  %p1594_p5 = scmp.lt.u32.totalorder %s3239_s7, %s1590_s16 }
  0x2e   :  { %p1596_p7 = scmp.lt.u32.totalorder %s1590_s16, %s36_s14 }
  0x2f   :  { %p1595_p6 = por %p1594_p5, %p1593_p4 }
  0x31   :  { %p1597_p8 = por %p1596_p7, %p1595_p6 }
  0x33   :  { %p1598_p9 = pnand %p1597_p8, %p1591_p3 }
  0x35   :  { %1601 = shalt.err (!%p1598_p9)  }
  0x36   :  { %s1602_s20 = scalar_lea.vmem %s3226_s21, 16  ;;  %p1607_p11 = scmp.lt.s32.totalorder %s3226_s21, %s3222_s19 }
  0x37   :  { %p1603_p10 = scmp.ne.s32.totalorder %s3226_s21, %s1602_s20  ;;  %p1608_p12 = scmp.lt.s32.totalorder %s3248_s11, %s1602_s20 }
  0x39   :  { %p1609_p13 = por %p1608_p12, %p1607_p11 }
  0x3b   :  { %p1610_p0 = pnand %p1609_p13, %p1603_p10 }
  0x3d   :  { %1613 = shalt.err (!%p1610_p0)  }
  0x3e   :  { %48 = dma.hbm_to_vmem [thread:$0]  %s36_s14, 16, %s3226_s21, [#allocation3] }
  0x3f   :  { %s52_s23 = scalar_lea.hbm %s4268_s2, %s1359_s15  ;;  %s1361_s26 = sshll.u32 %s3228_s25, 4 }
  0x40   :  { %s1614_s27 = scalar_lea.hbm %s52_s23, 16  ;;  %p1617_p2 = scmp.lt.u32.totalorder %s52_s23, %s4268_s2 }
  0x41   :  { %p1615_p1 = scmp.ne.s32.totalorder %s52_s23, %s1614_s27  ;;  %p1618_p3 = scmp.lt.u32.totalorder %s3239_s7, %s1614_s27 }
  0x42   :  { %p1620_p5 = scmp.lt.u32.totalorder %s1614_s27, %s52_s23 }
  0x43   :  { %p1619_p4 = por %p1618_p3, %p1617_p2 }
  0x45   :  { %p1621_p6 = por %p1620_p5, %p1619_p4 }
  0x47   :  { %p1622_p7 = pnand %p1621_p6, %p1615_p1 }
  0x49   :  { %1625 = shalt.err (!%p1622_p7)  }
  0x4a   :  { %s1626_s21 = scalar_lea.vmem %s3230_s24, 16  ;;  %p1631_p9 = scmp.lt.s32.totalorder %s3230_s24, %s3222_s19 }
  0x4b   :  { %p1627_p8 = scmp.ne.s32.totalorder %s3230_s24, %s1626_s21  ;;  %p1632_p10 = scmp.lt.s32.totalorder %s3248_s11, %s1626_s21 }
  0x4d   :  { %p1633_p11 = por %p1632_p10, %p1631_p9 }
  0x4f   :  { %p1634_p12 = pnand %p1633_p11, %p1627_p8 }
  0x51   :  { %1637 = shalt.err (!%p1634_p12)  }
  0x52   :  { %64 = dma.hbm_to_vmem [thread:$0]  %s52_s23, 16, %s3230_s24, [#allocation3] }
  0x53   :  { %s68_s4 = scalar_lea.hbm %s4268_s2, %s1361_s26  ;;  %s3134_s5 = smov [#allocation2 + $0x18]  }
  0x54   :  { %s77_s6 = sshll.u32 %s3134_s5, 4  ;;  %s3285_s8 = sld [smem:[#allocation5 + $0x4]]  ;;  %s78_s6 = int_to_ptr.vmem [resolvable:$true] %s77_s6 }
  0x55   :  { %s1638_s9 = scalar_lea.hbm %s68_s4, 16  ;;  %p1641_p0 = scmp.lt.u32.totalorder %s68_s4, %s4268_s2 }
  0x56   :  { %p1639_p13 = scmp.ne.s32.totalorder %s68_s4, %s1638_s9  ;;  %p1642_p1 = scmp.lt.u32.totalorder %s3239_s7, %s1638_s9 }
  0x57   :  { %p1644_p3 = scmp.lt.u32.totalorder %s1638_s9, %s68_s4 }
  0x58   :  { %p1643_p2 = por %p1642_p1, %p1641_p0 }
  0x5a   :  { %p1645_p4 = por %p1644_p3, %p1643_p2 }
  0x5c   :  { %p1646_p5 = pnand %p1645_p4, %p1639_p13 }
  0x5e   :  { %1649 = shalt.err (!%p1646_p5)  }
  0x5f   :  { %s1650_s24 = scalar_lea.vmem %s78_s6, 16  ;;  %p1655_p7 = scmp.lt.s32.totalorder %s78_s6, %s3222_s19 }
  0x60   :  { %p1651_p6 = scmp.ne.s32.totalorder %s78_s6, %s1650_s24  ;;  %p1656_p8 = scmp.lt.s32.totalorder %s3248_s11, %s1650_s24 }
  0x62   :  { %p1657_p9 = por %p1656_p8, %p1655_p7 }
  0x64   :  { %p1658_p10 = pnand %p1657_p9, %p1651_p6 }
  0x66   :  { %1661 = shalt.err (!%p1658_p10)  }
  0x67   :  { %80 = dma.hbm_to_vmem [thread:$0]  %s68_s4, 16, %s78_s6, [#allocation3] }
  0x68   :  { %s3135_s13 = smov [#allocation2 + $0x20]   ;;  %s3293_s15 = sld [smem:[#allocation5 + $0x5]] }
  0x69   :  { %s93_s14 = sshll.u32 %s3135_s13, 4  ;;  %s3136_s16 = smov [#allocation2 + $0x28]   ;;  %s94_s14 = int_to_ptr.vmem [resolvable:$true] %s93_s14 }
  0x6a   :  { %s109_s17 = sshll.u32 %s3136_s16, 4  ;;  %s3295_s18 = sld [smem:[#allocation5 + $0x6]]  ;;  %s3298_s17 = int_to_ptr.vmem [resolvable:$true] %s109_s17 }
  0x6b   :  { %s1363_s20 = sshll.u32 %s3285_s8, 4 }
  0x6c   :  { %s84_s23 = scalar_lea.hbm %s4268_s2, %s1363_s20 }
  0x6d   :  { %s1662_s26 = scalar_lea.hbm %s84_s23, 16  ;;  %p1665_p12 = scmp.lt.u32.totalorder %s84_s23, %s4268_s2 }
  0x6e   :  { %p1663_p11 = scmp.ne.s32.totalorder %s84_s23, %s1662_s26  ;;  %p1666_p13 = scmp.lt.u32.totalorder %s3239_s7, %s1662_s26 }
  0x6f   :  { %p1668_p1 = scmp.lt.u32.totalorder %s1662_s26, %s84_s23 }
  0x70   :  { %p1667_p0 = por %p1666_p13, %p1665_p12 }
  0x72   :  { %p1669_p2 = por %p1668_p1, %p1667_p0 }
  0x74   :  { %p1670_p3 = pnand %p1669_p2, %p1663_p11 }
  0x76   :  { %1673 = shalt.err (!%p1670_p3)  }
  0x77   :  { %s1674_s29 = scalar_lea.vmem %s94_s14, 16  ;;  %p1679_p5 = scmp.lt.s32.totalorder %s94_s14, %s3222_s19 }
  0x78   :  { %p1675_p4 = scmp.ne.s32.totalorder %s94_s14, %s1674_s29  ;;  %p1680_p6 = scmp.lt.s32.totalorder %s3248_s11, %s1674_s29 }
  0x7a   :  { %p1681_p7 = por %p1680_p6, %p1679_p5 }
  0x7c   :  { %p1682_p8 = pnand %p1681_p7, %p1675_p4 }
  0x7e   :  { %1685 = shalt.err (!%p1682_p8)  }
  0x7f   :  { %96 = dma.hbm_to_vmem [thread:$0]  %s84_s23, 16, %s94_s14, [#allocation3] }
  0x80   :  { %s1365_s21 = sshll.u32 %s3293_s15, 4  ;;  %s3137_s25 = smov [#allocation2 + $0x30]  }
  0x81   :  { %s125_s30 = sshll.u32 %s3137_s25, 4  ;;  %s100_s6 = scalar_lea.hbm %s4268_s2, %s1365_s21  ;;  %s3313_s30 = int_to_ptr.vmem [resolvable:$true] %s125_s30 }
  0x82   :  { %s1686_s8 = scalar_lea.hbm %s100_s6, 16  ;;  %p1689_p10 = scmp.lt.u32.totalorder %s100_s6, %s4268_s2 }
  0x83   :  { %p1687_p9 = scmp.ne.s32.totalorder %s100_s6, %s1686_s8  ;;  %p1690_p11 = scmp.lt.u32.totalorder %s3239_s7, %s1686_s8 }
  0x84   :  { %p1692_p13 = scmp.lt.u32.totalorder %s1686_s8, %s100_s6 }
  0x85   :  { %p1691_p12 = por %p1690_p11, %p1689_p10 }
  0x87   :  { %p1693_p0 = por %p1692_p13, %p1691_p12 }
  0x89   :  { %p1694_p1 = pnand %p1693_p0, %p1687_p9 }
  0x8b   :  { %1697 = shalt.err (!%p1694_p1)  }
  0x8c   :  { %s1698_s12 = scalar_lea.vmem %s3298_s17, 16  ;;  %p1703_p3 = scmp.lt.s32.totalorder %s3298_s17, %s3222_s19 }
  0x8d   :  { %p1699_p2 = scmp.ne.s32.totalorder %s3298_s17, %s1698_s12  ;;  %p1704_p4 = scmp.lt.s32.totalorder %s3248_s11, %s1698_s12 }
  0x8f   :  { %p1705_p5 = por %p1704_p4, %p1703_p3 }
  0x91   :  { %p1706_p6 = pnand %p1705_p5, %p1699_p2 }
  0x93   :  { %1709 = shalt.err (!%p1706_p6)  }
  0x94   :  { %112 = dma.hbm_to_vmem [thread:$0]  %s100_s6, 16, %s3298_s17, [#allocation3] }
  0x95   :  { %s1367_s24 = sshll.u32 %s3295_s18, 4  ;;  %s3326_s13 = sld [smem:[#allocation5 + $0x7]] }
  0x96   :  { %s116_s16 = scalar_lea.hbm %s4268_s2, %s1367_s24 }
  0x97   :  { %s1710_s20 = scalar_lea.hbm %s116_s16, 16  ;;  %p1713_p8 = scmp.lt.u32.totalorder %s116_s16, %s4268_s2 }
  0x98   :  { %p1711_p7 = scmp.ne.s32.totalorder %s116_s16, %s1710_s20  ;;  %p1714_p9 = scmp.lt.u32.totalorder %s3239_s7, %s1710_s20 }
  0x99   :  { %p1716_p11 = scmp.lt.u32.totalorder %s1710_s20, %s116_s16 }
  0x9a   :  { %p1715_p10 = por %p1714_p9, %p1713_p8 }
  0x9c   :  { %p1717_p12 = por %p1716_p11, %p1715_p10 }
  0x9e   :  { %p1718_p13 = pnand %p1717_p12, %p1711_p7 }
  0xa0   :  { %1721 = shalt.err (!%p1718_p13)  }
  0xa1   :  { %s1722_s17 = scalar_lea.vmem %s3313_s30, 16  ;;  %p1727_p1 = scmp.lt.s32.totalorder %s3313_s30, %s3222_s19 }
  0xa2   :  { %p1723_p0 = scmp.ne.s32.totalorder %s3313_s30, %s1722_s17  ;;  %p1728_p2 = scmp.lt.s32.totalorder %s3248_s11, %s1722_s17 }
  0xa4   :  { %p1729_p3 = por %p1728_p2, %p1727_p1 }
  0xa6   :  { %p1730_p4 = pnand %p1729_p3, %p1723_p0 }
  0xa8   :  { %1733 = shalt.err (!%p1730_p4)  }
  0xa9   :  { %128 = dma.hbm_to_vmem [thread:$0]  %s116_s16, 16, %s3313_s30, [#allocation3] }
  0xaa   :  { %s3138_s18 = smov [#allocation2 + $0x38]   ;;  %s3341_s26 = sld [smem:[#allocation5 + $0x8]] }
  0xab   :  { %s141_s23 = sshll.u32 %s3138_s18, 4  ;;  %s3139_s27 = smov [#allocation2 + $0x1]   ;;  %s142_s23 = int_to_ptr.vmem [resolvable:$true] %s141_s23 }
  0xac   :  { %s158_s28 = sshll.u32 %s3139_s27, 4  ;;  %s3343_s29 = sld [smem:[#allocation5 + $0x9]]  ;;  %s3346_s28 = int_to_ptr.vmem [resolvable:$true] %s158_s28 }
  0xad   :  { %s1369_s21 = sshll.u32 %s3326_s13, 4 }
  0xae   :  { %s132_s5 = scalar_lea.hbm %s4268_s2, %s1369_s21 }
  0xaf   :  { %s1734_s6 = scalar_lea.hbm %s132_s5, 16  ;;  %p1737_p6 = scmp.lt.u32.totalorder %s132_s5, %s4268_s2 }
  0xb0   :  { %p1735_p5 = scmp.ne.s32.totalorder %s132_s5, %s1734_s6  ;;  %p1738_p7 = scmp.lt.u32.totalorder %s3239_s7, %s1734_s6 }
  0xb1   :  { %p1740_p9 = scmp.lt.u32.totalorder %s1734_s6, %s132_s5 }
  0xb2   :  { %p1739_p8 = por %p1738_p7, %p1737_p6 }
  0xb4   :  { %p1741_p10 = por %p1740_p9, %p1739_p8 }
  0xb6   :  { %p1742_p11 = pnand %p1741_p10, %p1735_p5 }
  0xb8   :  { %1745 = shalt.err (!%p1742_p11)  }
  0xb9   :  { %s1746_s9 = scalar_lea.vmem %s142_s23, 16  ;;  %p1751_p13 = scmp.lt.s32.totalorder %s142_s23, %s3222_s19 }
  0xba   :  { %p1747_p12 = scmp.ne.s32.totalorder %s142_s23, %s1746_s9  ;;  %p1752_p0 = scmp.lt.s32.totalorder %s3248_s11, %s1746_s9 }
  0xbc   :  { %p1753_p1 = por %p1752_p0, %p1751_p13 }
  0xbe   :  { %p1754_p2 = pnand %p1753_p1, %p1747_p12 }
  0xc0   :  { %1757 = shalt.err (!%p1754_p2)  }
  0xc1   :  { %144 = dma.hbm_to_vmem [thread:$0]  %s132_s5, 16, %s142_s23, [#allocation3] }
  0xc2   :  { %s1371_s10 = sshll.u32 %s3341_s26, 4  ;;  %s3140_s12 = smov [#allocation2 + $0x9]  }
  0xc3   :  { %s174_s24 = sshll.u32 %s3140_s12, 4  ;;  %s149_s15 = scalar_lea.hbm %s4268_s2, %s1371_s10  ;;  %s3361_s24 = int_to_ptr.vmem [resolvable:$true] %s174_s24 }
  0xc4   :  { %s1758_s16 = scalar_lea.hbm %s149_s15, 16  ;;  %p1761_p4 = scmp.lt.u32.totalorder %s149_s15, %s4268_s2 }
  0xc5   :  { %p1759_p3 = scmp.ne.s32.totalorder %s149_s15, %s1758_s16  ;;  %p1762_p5 = scmp.lt.u32.totalorder %s3239_s7, %s1758_s16 }
  0xc6   :  { %p1764_p7 = scmp.lt.u32.totalorder %s1758_s16, %s149_s15 }
  0xc7   :  { %p1763_p6 = por %p1762_p5, %p1761_p4 }
  0xc9   :  { %p1765_p8 = por %p1764_p7, %p1763_p6 }
  0xcb   :  { %p1766_p9 = pnand %p1765_p8, %p1759_p3 }
  0xcd   :  { %1769 = shalt.err (!%p1766_p9)  }
  0xce   :  { %s1770_s22 = scalar_lea.vmem %s3346_s28, 16  ;;  %p1775_p11 = scmp.lt.s32.totalorder %s3346_s28, %s3222_s19 }
  0xcf   :  { %p1771_p10 = scmp.ne.s32.totalorder %s3346_s28, %s1770_s22  ;;  %p1776_p12 = scmp.lt.s32.totalorder %s3248_s11, %s1770_s22 }
  0xd1   :  { %p1777_p13 = por %p1776_p12, %p1775_p11 }
  0xd3   :  { %p1778_p0 = pnand %p1777_p13, %p1771_p10 }
  0xd5   :  { %1781 = shalt.err (!%p1778_p0)  }
  0xd6   :  { %161 = dma.hbm_to_vmem [thread:$0]  %s149_s15, 16, %s3346_s28, [#allocation3] }
  0xd7   :  { %s1373_s17 = sshll.u32 %s3343_s29, 4  ;;  %s3374_s18 = sld [smem:[#allocation5 + $0xa]] }
  0xd8   :  { %s165_s27 = scalar_lea.hbm %s4268_s2, %s1373_s17 }
  0xd9   :  { %s1782_s21 = scalar_lea.hbm %s165_s27, 16  ;;  %p1785_p2 = scmp.lt.u32.totalorder %s165_s27, %s4268_s2 }
  0xda   :  { %p1783_p1 = scmp.ne.s32.totalorder %s165_s27, %s1782_s21  ;;  %p1786_p3 = scmp.lt.u32.totalorder %s3239_s7, %s1782_s21 }
  0xdb   :  { %p1788_p5 = scmp.lt.u32.totalorder %s1782_s21, %s165_s27 }
  0xdc   :  { %p1787_p4 = por %p1786_p3, %p1785_p2 }
  0xde   :  { %p1789_p6 = por %p1788_p5, %p1787_p4 }
  0xe0   :  { %p1790_p7 = pnand %p1789_p6, %p1783_p1 }
  0xe2   :  { %1793 = shalt.err (!%p1790_p7)  }
  0xe3   :  { %s1794_s28 = scalar_lea.vmem %s3361_s24, 16  ;;  %p1799_p9 = scmp.lt.s32.totalorder %s3361_s24, %s3222_s19 }
  0xe4   :  { %p1795_p8 = scmp.ne.s32.totalorder %s3361_s24, %s1794_s28  ;;  %p1800_p10 = scmp.lt.s32.totalorder %s3248_s11, %s1794_s28 }
  0xe6   :  { %p1801_p11 = por %p1800_p10, %p1799_p9 }
  0xe8   :  { %p1802_p12 = pnand %p1801_p11, %p1795_p8 }
  0xea   :  { %1805 = shalt.err (!%p1802_p12)  }
  0xeb   :  { %177 = dma.hbm_to_vmem [thread:$0]  %s165_s27, 16, %s3361_s24, [#allocation3] }
  0xec   :  { %s3141_s29 = smov [#allocation2 + $0x11]   ;;  %s3389_s6 = sld [smem:[#allocation5 + $0xb]] }
  0xed   :  { %s190_s5 = sshll.u32 %s3141_s29, 4  ;;  %s3142_s8 = smov [#allocation2 + $0x19]   ;;  %s191_s5 = int_to_ptr.vmem [resolvable:$true] %s190_s5 }
  0xee   :  { %s206_s30 = sshll.u32 %s3142_s8, 4  ;;  %s3391_s9 = sld [smem:[#allocation5 + $0xc]]  ;;  %s3394_s30 = int_to_ptr.vmem [resolvable:$true] %s206_s30 }
  0xef   :  { %s1375_s10 = sshll.u32 %s3374_s18, 4 }
  0xf0   :  { %s181_s14 = scalar_lea.hbm %s4268_s2, %s1375_s10 }
  0xf1   :  { %s1806_s15 = scalar_lea.hbm %s181_s14, 16  ;;  %p1809_p0 = scmp.lt.u32.totalorder %s181_s14, %s4268_s2 }
  0xf2   :  { %p1807_p13 = scmp.ne.s32.totalorder %s181_s14, %s1806_s15  ;;  %p1810_p1 = scmp.lt.u32.totalorder %s3239_s7, %s1806_s15 }
  0xf3   :  { %p1812_p3 = scmp.lt.u32.totalorder %s1806_s15, %s181_s14 }
  0xf4   :  { %p1811_p2 = por %p1810_p1, %p1809_p0 }
  0xf6   :  { %p1813_p4 = por %p1812_p3, %p1811_p2 }
  0xf8   :  { %p1814_p5 = pnand %p1813_p4, %p1807_p13 }
  0xfa   :  { %1817 = shalt.err (!%p1814_p5)  }
  0xfb   :  { %s1818_s20 = scalar_lea.vmem %s191_s5, 16  ;;  %p1823_p7 = scmp.lt.s32.totalorder %s191_s5, %s3222_s19 }
  0xfc   :  { %p1819_p6 = scmp.ne.s32.totalorder %s191_s5, %s1818_s20  ;;  %p1824_p8 = scmp.lt.s32.totalorder %s3248_s11, %s1818_s20 }
  0xfe   :  { %p1825_p9 = por %p1824_p8, %p1823_p7 }
 0x100   :  { %p1826_p10 = pnand %p1825_p9, %p1819_p6 }
 0x102   :  { %1829 = shalt.err (!%p1826_p10)  }
 0x103   :  { %193 = dma.hbm_to_vmem [thread:$0]  %s181_s14, 16, %s191_s5, [#allocation3] }
 0x104   :  { %s1377_s0 = sshll.u32 %s3389_s6, 4  ;;  %s3143_s22 = smov [#allocation2 + $0x21]  }
 0x105   :  { %s222_s17 = sshll.u32 %s3143_s22, 4  ;;  %s197_s26 = scalar_lea.hbm %s4268_s2, %s1377_s0  ;;  %s3409_s17 = int_to_ptr.vmem [resolvable:$true] %s222_s17 }
 0x106   :  { %s1830_s27 = scalar_lea.hbm %s197_s26, 16  ;;  %p1833_p12 = scmp.lt.u32.totalorder %s197_s26, %s4268_s2 }
 0x107   :  { %p1831_p11 = scmp.ne.s32.totalorder %s197_s26, %s1830_s27  ;;  %p1834_p13 = scmp.lt.u32.totalorder %s3239_s7, %s1830_s27 }
 0x108   :  { %p1836_p1 = scmp.lt.u32.totalorder %s1830_s27, %s197_s26 }
 0x109   :  { %p1835_p0 = por %p1834_p13, %p1833_p12 }
 0x10b   :  { %p1837_p2 = por %p1836_p1, %p1835_p0 }
 0x10d   :  { %p1838_p3 = pnand %p1837_p2, %p1831_p11 }
 0x10f   :  { %1841 = shalt.err (!%p1838_p3)  }
 0x110   :  { %s1842_s4 = scalar_lea.vmem %s3394_s30, 16  ;;  %p1847_p5 = scmp.lt.s32.totalorder %s3394_s30, %s3222_s19 }
 0x111   :  { %p1843_p4 = scmp.ne.s32.totalorder %s3394_s30, %s1842_s4  ;;  %p1848_p6 = scmp.lt.s32.totalorder %s3248_s11, %s1842_s4 }
 0x113   :  { %p1849_p7 = por %p1848_p6, %p1847_p5 }
 0x115   :  { %p1850_p8 = pnand %p1849_p7, %p1843_p4 }
 0x117   :  { %1853 = shalt.err (!%p1850_p8)  }
 0x118   :  { %209 = dma.hbm_to_vmem [thread:$0]  %s197_s26, 16, %s3394_s30, [#allocation3] }
 0x119   :  { %s1379_s28 = sshll.u32 %s3391_s9, 4  ;;  %s3422_s29 = sld [smem:[#allocation5 + $0xd]] }
 0x11a   :  { %s213_s8 = scalar_lea.hbm %s4268_s2, %s1379_s28 }
 0x11b   :  { %s1854_s10 = scalar_lea.hbm %s213_s8, 16  ;;  %p1857_p10 = scmp.lt.u32.totalorder %s213_s8, %s4268_s2 }
 0x11c   :  { %p1855_p9 = scmp.ne.s32.totalorder %s213_s8, %s1854_s10  ;;  %p1858_p11 = scmp.lt.u32.totalorder %s3239_s7, %s1854_s10 }
 0x11d   :  { %p1860_p13 = scmp.lt.u32.totalorder %s1854_s10, %s213_s8 }
 0x11e   :  { %p1859_p12 = por %p1858_p11, %p1857_p10 }
 0x120   :  { %p1861_p0 = por %p1860_p13, %p1859_p12 }
 0x122   :  { %p1862_p1 = pnand %p1861_p0, %p1855_p9 }
 0x124   :  { %1865 = shalt.err (!%p1862_p1)  }
 0x125   :  { %s1866_s30 = scalar_lea.vmem %s3409_s17, 16  ;;  %p1871_p3 = scmp.lt.s32.totalorder %s3409_s17, %s3222_s19 }
 0x126   :  { %p1867_p2 = scmp.ne.s32.totalorder %s3409_s17, %s1866_s30  ;;  %p1872_p4 = scmp.lt.s32.totalorder %s3248_s11, %s1866_s30 }
 0x128   :  { %p1873_p5 = por %p1872_p4, %p1871_p3 }
 0x12a   :  { %p1874_p6 = pnand %p1873_p5, %p1867_p2 }
 0x12c   :  { %1877 = shalt.err (!%p1874_p6)  }
 0x12d   :  { %225 = dma.hbm_to_vmem [thread:$0]  %s213_s8, 16, %s3409_s17, [#allocation3] }
 0x12e   :  { %s3144_s9 = smov [#allocation2 + $0x29]   ;;  %s3437_s15 = sld [smem:[#allocation5 + $0xe]] }
 0x12f   :  { %s238_s14 = sshll.u32 %s3144_s9, 4  ;;  %s3145_s16 = smov [#allocation2 + $0x31]   ;;  %s239_s14 = int_to_ptr.vmem [resolvable:$true] %s238_s14 }
 0x130   :  { %s254_s24 = sshll.u32 %s3145_s16, 4  ;;  %s3439_s20 = sld [smem:[#allocation5 + $0xf]]  ;;  %s3442_s24 = int_to_ptr.vmem [resolvable:$true] %s254_s24 }
 0x131   :  { %s1381_s0 = sshll.u32 %s3422_s29, 4 }
 0x132   :  { %s229_s23 = scalar_lea.hbm %s4268_s2, %s1381_s0 }
 0x133   :  { %s1878_s26 = scalar_lea.hbm %s229_s23, 16  ;;  %p1881_p8 = scmp.lt.u32.totalorder %s229_s23, %s4268_s2 }
 0x134   :  { %p1879_p7 = scmp.ne.s32.totalorder %s229_s23, %s1878_s26  ;;  %p1882_p9 = scmp.lt.u32.totalorder %s3239_s7, %s1878_s26 }
 0x135   :  { %p1884_p11 = scmp.lt.u32.totalorder %s1878_s26, %s229_s23 }
 0x136   :  { %p1883_p10 = por %p1882_p9, %p1881_p8 }
 0x138   :  { %p1885_p12 = por %p1884_p11, %p1883_p10 }
 0x13a   :  { %p1886_p13 = pnand %p1885_p12, %p1879_p7 }
 0x13c   :  { %1889 = shalt.err (!%p1886_p13)  }
 0x13d   :  { %s1890_s21 = scalar_lea.vmem %s239_s14, 16  ;;  %p1895_p1 = scmp.lt.s32.totalorder %s239_s14, %s3222_s19 }
 0x13e   :  { %p1891_p0 = scmp.ne.s32.totalorder %s239_s14, %s1890_s21  ;;  %p1896_p2 = scmp.lt.s32.totalorder %s3248_s11, %s1890_s21 }
 0x140   :  { %p1897_p3 = por %p1896_p2, %p1895_p1 }
 0x142   :  { %p1898_p4 = pnand %p1897_p3, %p1891_p0 }
 0x144   :  { %1901 = shalt.err (!%p1898_p4)  }
 0x145   :  { %241 = dma.hbm_to_vmem [thread:$0]  %s229_s23, 16, %s239_s14, [#allocation3] }
 0x146   :  { %s1383_s25 = sshll.u32 %s3437_s15, 4  ;;  %s3146_s4 = smov [#allocation2 + $0x39]  }
 0x147   :  { %s270_s28 = sshll.u32 %s3146_s4, 4  ;;  %s245_s6 = scalar_lea.hbm %s4268_s2, %s1383_s25  ;;  %s3457_s28 = int_to_ptr.vmem [resolvable:$true] %s270_s28 }
 0x148   :  { %s1902_s8 = scalar_lea.hbm %s245_s6, 16  ;;  %p1905_p6 = scmp.lt.u32.totalorder %s245_s6, %s4268_s2 }
 0x149   :  { %p1903_p5 = scmp.ne.s32.totalorder %s245_s6, %s1902_s8  ;;  %p1906_p7 = scmp.lt.u32.totalorder %s3239_s7, %s1902_s8 }
 0x14a   :  { %p1908_p9 = scmp.lt.u32.totalorder %s1902_s8, %s245_s6 }
 0x14b   :  { %p1907_p8 = por %p1906_p7, %p1905_p6 }
 0x14d   :  { %p1909_p10 = por %p1908_p9, %p1907_p8 }
 0x14f   :  { %p1910_p11 = pnand %p1909_p10, %p1903_p5 }
 0x151   :  { %1913 = shalt.err (!%p1910_p11)  }
 0x152   :  { %s1914_s13 = scalar_lea.vmem %s3442_s24, 16  ;;  %p1919_p13 = scmp.lt.s32.totalorder %s3442_s24, %s3222_s19 }
 0x153   :  { %p1915_p12 = scmp.ne.s32.totalorder %s3442_s24, %s1914_s13  ;;  %p1920_p0 = scmp.lt.s32.totalorder %s3248_s11, %s1914_s13 }
 0x155   :  { %p1921_p1 = por %p1920_p0, %p1919_p13 }
 0x157   :  { %p1922_p2 = pnand %p1921_p1, %p1915_p12 }
 0x159   :  { %1925 = shalt.err (!%p1922_p2)  }
 0x15a   :  { %257 = dma.hbm_to_vmem [thread:$0]  %s245_s6, 16, %s3442_s24, [#allocation3] }
 0x15b   :  { %s1385_s30 = sshll.u32 %s3439_s20, 4  ;;  %s3470_s9 = sld [smem:[#allocation5 + $0x10]] }
 0x15c   :  { %s261_s16 = scalar_lea.hbm %s4268_s2, %s1385_s30 }
 0x15d   :  { %s1926_s0 = scalar_lea.hbm %s261_s16, 16  ;;  %p1929_p4 = scmp.lt.u32.totalorder %s261_s16, %s4268_s2 }
 0x15e   :  { %p1927_p3 = scmp.ne.s32.totalorder %s261_s16, %s1926_s0  ;;  %p1930_p5 = scmp.lt.u32.totalorder %s3239_s7, %s1926_s0 }
 0x15f   :  { %p1932_p7 = scmp.lt.u32.totalorder %s1926_s0, %s261_s16 }
 0x160   :  { %p1931_p6 = por %p1930_p5, %p1929_p4 }
 0x162   :  { %p1933_p8 = por %p1932_p7, %p1931_p6 }
 0x164   :  { %p1934_p9 = pnand %p1933_p8, %p1927_p3 }
 0x166   :  { %1937 = shalt.err (!%p1934_p9)  }
 0x167   :  { %s1938_s24 = scalar_lea.vmem %s3457_s28, 16  ;;  %p1943_p11 = scmp.lt.s32.totalorder %s3457_s28, %s3222_s19 }
 0x168   :  { %p1939_p10 = scmp.ne.s32.totalorder %s3457_s28, %s1938_s24  ;;  %p1944_p12 = scmp.lt.s32.totalorder %s3248_s11, %s1938_s24 }
 0x16a   :  { %p1945_p13 = por %p1944_p12, %p1943_p11 }
 0x16c   :  { %p1946_p0 = pnand %p1945_p13, %p1939_p10 }
 0x16e   :  { %1949 = shalt.err (!%p1946_p0)  }
 0x16f   :  { %273 = dma.hbm_to_vmem [thread:$0]  %s261_s16, 16, %s3457_s28, [#allocation3] }
 0x170   :  { %s3147_s20 = smov [#allocation2 + $0x2]   ;;  %s3485_s26 = sld [smem:[#allocation5 + $0x11]] }
 0x171   :  { %s287_s23 = sshll.u32 %s3147_s20, 4  ;;  %s3148_s27 = smov [#allocation2 + $0xa]   ;;  %s288_s23 = int_to_ptr.vmem [resolvable:$true] %s287_s23 }
 0x172   :  { %s303_s17 = sshll.u32 %s3148_s27, 4  ;;  %s3487_s21 = sld [smem:[#allocation5 + $0x12]]  ;;  %s3490_s17 = int_to_ptr.vmem [resolvable:$true] %s303_s17 }
 0x173   :  { %s1387_s25 = sshll.u32 %s3470_s9, 4 }
 0x174   :  { %s278_s5 = scalar_lea.hbm %s4268_s2, %s1387_s25 }
 0x175   :  { %s1950_s6 = scalar_lea.hbm %s278_s5, 16  ;;  %p1953_p2 = scmp.lt.u32.totalorder %s278_s5, %s4268_s2 }
 0x176   :  { %p1951_p1 = scmp.ne.s32.totalorder %s278_s5, %s1950_s6  ;;  %p1954_p3 = scmp.lt.u32.totalorder %s3239_s7, %s1950_s6 }
 0x177   :  { %p1956_p5 = scmp.lt.u32.totalorder %s1950_s6, %s278_s5 }
 0x178   :  { %p1955_p4 = por %p1954_p3, %p1953_p2 }
 0x17a   :  { %p1957_p6 = por %p1956_p5, %p1955_p4 }
 0x17c   :  { %p1958_p7 = pnand %p1957_p6, %p1951_p1 }
 0x17e   :  { %1961 = shalt.err (!%p1958_p7)  }
 0x17f   :  { %s1962_s10 = scalar_lea.vmem %s288_s23, 16  ;;  %p1967_p9 = scmp.lt.s32.totalorder %s288_s23, %s3222_s19 }
 0x180   :  { %p1963_p8 = scmp.ne.s32.totalorder %s288_s23, %s1962_s10  ;;  %p1968_p10 = scmp.lt.s32.totalorder %s3248_s11, %s1962_s10 }
 0x182   :  { %p1969_p11 = por %p1968_p10, %p1967_p9 }
 0x184   :  { %p1970_p12 = pnand %p1969_p11, %p1963_p8 }
 0x186   :  { %1973 = shalt.err (!%p1970_p12)  }
 0x187   :  { %290 = dma.hbm_to_vmem [thread:$0]  %s278_s5, 16, %s288_s23, [#allocation3] }
 0x188   :  { %s1389_s12 = sshll.u32 %s3485_s26, 4  ;;  %s3149_s13 = smov [#allocation2 + $0x12]  }
 0x189   :  { %s319_s30 = sshll.u32 %s3149_s13, 4  ;;  %s294_s15 = scalar_lea.hbm %s4268_s2, %s1389_s12  ;;  %s3505_s30 = int_to_ptr.vmem [resolvable:$true] %s319_s30 }
 0x18a   :  { %s1974_s16 = scalar_lea.hbm %s294_s15, 16  ;;  %p1977_p0 = scmp.lt.u32.totalorder %s294_s15, %s4268_s2 }
 0x18b   :  { %p1975_p13 = scmp.ne.s32.totalorder %s294_s15, %s1974_s16  ;;  %p1978_p1 = scmp.lt.u32.totalorder %s3239_s7, %s1974_s16 }
 0x18c   :  { %p1980_p3 = scmp.lt.u32.totalorder %s1974_s16, %s294_s15 }
 0x18d   :  { %p1979_p2 = por %p1978_p1, %p1977_p0 }
 0x18f   :  { %p1981_p4 = por %p1980_p3, %p1979_p2 }
 0x191   :  { %p1982_p5 = pnand %p1981_p4, %p1975_p13 }
 0x193   :  { %1985 = shalt.err (!%p1982_p5)  }
 0x194   :  { %s1986_s18 = scalar_lea.vmem %s3490_s17, 16  ;;  %p1991_p7 = scmp.lt.s32.totalorder %s3490_s17, %s3222_s19 }
 0x195   :  { %p1987_p6 = scmp.ne.s32.totalorder %s3490_s17, %s1986_s18  ;;  %p1992_p8 = scmp.lt.s32.totalorder %s3248_s11, %s1986_s18 }
 0x197   :  { %p1993_p9 = por %p1992_p8, %p1991_p7 }
 0x199   :  { %p1994_p10 = pnand %p1993_p9, %p1987_p6 }
 0x19b   :  { %1997 = shalt.err (!%p1994_p10)  }
 0x19c   :  { %306 = dma.hbm_to_vmem [thread:$0]  %s294_s15, 16, %s3490_s17, [#allocation3] }
 0x19d   :  { %s1391_s24 = sshll.u32 %s3487_s21, 4  ;;  %s3518_s20 = sld [smem:[#allocation5 + $0x13]] }
 0x19e   :  { %s310_s27 = scalar_lea.hbm %s4268_s2, %s1391_s24 }
 0x19f   :  { %s1998_s25 = scalar_lea.hbm %s310_s27, 16  ;;  %p2001_p12 = scmp.lt.u32.totalorder %s310_s27, %s4268_s2 }
 0x1a0   :  { %p1999_p11 = scmp.ne.s32.totalorder %s310_s27, %s1998_s25  ;;  %p2002_p13 = scmp.lt.u32.totalorder %s3239_s7, %s1998_s25 }
 0x1a1   :  { %p2004_p1 = scmp.lt.u32.totalorder %s1998_s25, %s310_s27 }
 0x1a2   :  { %p2003_p0 = por %p2002_p13, %p2001_p12 }
 0x1a4   :  { %p2005_p2 = por %p2004_p1, %p2003_p0 }
 0x1a6   :  { %p2006_p3 = pnand %p2005_p2, %p1999_p11 }
 0x1a8   :  { %2009 = shalt.err (!%p2006_p3)  }
 0x1a9   :  { %s2010_s17 = scalar_lea.vmem %s3505_s30, 16  ;;  %p2015_p5 = scmp.lt.s32.totalorder %s3505_s30, %s3222_s19 }
 0x1aa   :  { %p2011_p4 = scmp.ne.s32.totalorder %s3505_s30, %s2010_s17  ;;  %p2016_p6 = scmp.lt.s32.totalorder %s3248_s11, %s2010_s17 }
 0x1ac   :  { %p2017_p7 = por %p2016_p6, %p2015_p5 }
 0x1ae   :  { %p2018_p8 = pnand %p2017_p7, %p2011_p4 }
 0x1b0   :  { %2021 = shalt.err (!%p2018_p8)  }
 0x1b1   :  { %322 = dma.hbm_to_vmem [thread:$0]  %s310_s27, 16, %s3505_s30, [#allocation3] }
 0x1b2   :  { %s3150_s21 = smov [#allocation2 + $0x1a]   ;;  %s3533_s6 = sld [smem:[#allocation5 + $0x14]] }
 0x1b3   :  { %s335_s5 = sshll.u32 %s3150_s21, 4  ;;  %s3151_s8 = smov [#allocation2 + $0x22]   ;;  %s336_s5 = int_to_ptr.vmem [resolvable:$true] %s335_s5 }
 0x1b4   :  { %s351_s28 = sshll.u32 %s3151_s8, 4  ;;  %s3535_s10 = sld [smem:[#allocation5 + $0x15]]  ;;  %s3538_s28 = int_to_ptr.vmem [resolvable:$true] %s351_s28 }
 0x1b5   :  { %s1393_s12 = sshll.u32 %s3518_s20, 4 }
 0x1b6   :  { %s326_s14 = scalar_lea.hbm %s4268_s2, %s1393_s12 }
 0x1b7   :  { %s2022_s15 = scalar_lea.hbm %s326_s14, 16  ;;  %p2025_p10 = scmp.lt.u32.totalorder %s326_s14, %s4268_s2 }
 0x1b8   :  { %p2023_p9 = scmp.ne.s32.totalorder %s326_s14, %s2022_s15  ;;  %p2026_p11 = scmp.lt.u32.totalorder %s3239_s7, %s2022_s15 }
 0x1b9   :  { %p2028_p13 = scmp.lt.u32.totalorder %s2022_s15, %s326_s14 }
 0x1ba   :  { %p2027_p12 = por %p2026_p11, %p2025_p10 }
 0x1bc   :  { %p2029_p0 = por %p2028_p13, %p2027_p12 }
 0x1be   :  { %p2030_p1 = pnand %p2029_p0, %p2023_p9 }
 0x1c0   :  { %2033 = shalt.err (!%p2030_p1)  }
 0x1c1   :  { %s2034_s0 = scalar_lea.vmem %s336_s5, 16  ;;  %p2039_p3 = scmp.lt.s32.totalorder %s336_s5, %s3222_s19 }
 0x1c2   :  { %p2035_p2 = scmp.ne.s32.totalorder %s336_s5, %s2034_s0  ;;  %p2040_p4 = scmp.lt.s32.totalorder %s3248_s11, %s2034_s0 }
 0x1c4   :  { %p2041_p5 = por %p2040_p4, %p2039_p3 }
 0x1c6   :  { %p2042_p6 = pnand %p2041_p5, %p2035_p2 }
 0x1c8   :  { %2045 = shalt.err (!%p2042_p6)  }
 0x1c9   :  { %338 = dma.hbm_to_vmem [thread:$0]  %s326_s14, 16, %s336_s5, [#allocation3] }
 0x1ca   :  { %s1395_s22 = sshll.u32 %s3533_s6, 4  ;;  %s3152_s18 = smov [#allocation2 + $0x2a]  }
 0x1cb   :  { %s367_s24 = sshll.u32 %s3152_s18, 4  ;;  %s342_s26 = scalar_lea.hbm %s4268_s2, %s1395_s22  ;;  %s3553_s24 = int_to_ptr.vmem [resolvable:$true] %s367_s24 }
 0x1cc   :  { %s2046_s27 = scalar_lea.hbm %s342_s26, 16  ;;  %p2049_p8 = scmp.lt.u32.totalorder %s342_s26, %s4268_s2 }
 0x1cd   :  { %p2047_p7 = scmp.ne.s32.totalorder %s342_s26, %s2046_s27  ;;  %p2050_p9 = scmp.lt.u32.totalorder %s3239_s7, %s2046_s27 }
 0x1ce   :  { %p2052_p11 = scmp.lt.u32.totalorder %s2046_s27, %s342_s26 }
 0x1cf   :  { %p2051_p10 = por %p2050_p9, %p2049_p8 }
 0x1d1   :  { %p2053_p12 = por %p2052_p11, %p2051_p10 }
 0x1d3   :  { %p2054_p13 = pnand %p2053_p12, %p2047_p7 }
 0x1d5   :  { %2057 = shalt.err (!%p2054_p13)  }
 0x1d6   :  { %s2058_s29 = scalar_lea.vmem %s3538_s28, 16  ;;  %p2063_p1 = scmp.lt.s32.totalorder %s3538_s28, %s3222_s19 }
 0x1d7   :  { %p2059_p0 = scmp.ne.s32.totalorder %s3538_s28, %s2058_s29  ;;  %p2064_p2 = scmp.lt.s32.totalorder %s3248_s11, %s2058_s29 }
 0x1d9   :  { %p2065_p3 = por %p2064_p2, %p2063_p1 }
 0x1db   :  { %p2066_p4 = pnand %p2065_p3, %p2059_p0 }
 0x1dd   :  { %2069 = shalt.err (!%p2066_p4)  }
 0x1de   :  { %354 = dma.hbm_to_vmem [thread:$0]  %s342_s26, 16, %s3538_s28, [#allocation3] }
 0x1df   :  { %s1397_s17 = sshll.u32 %s3535_s10, 4  ;;  %s3566_s21 = sld [smem:[#allocation5 + $0x16]] }
 0x1e0   :  { %s358_s8 = scalar_lea.hbm %s4268_s2, %s1397_s17 }
 0x1e1   :  { %s2070_s12 = scalar_lea.hbm %s358_s8, 16  ;;  %p2073_p6 = scmp.lt.u32.totalorder %s358_s8, %s4268_s2 }
 0x1e2   :  { %p2071_p5 = scmp.ne.s32.totalorder %s358_s8, %s2070_s12  ;;  %p2074_p7 = scmp.lt.u32.totalorder %s3239_s7, %s2070_s12 }
 0x1e3   :  { %p2076_p9 = scmp.lt.u32.totalorder %s2070_s12, %s358_s8 }
 0x1e4   :  { %p2075_p8 = por %p2074_p7, %p2073_p6 }
 0x1e6   :  { %p2077_p10 = por %p2076_p9, %p2075_p8 }
 0x1e8   :  { %p2078_p11 = pnand %p2077_p10, %p2071_p5 }
 0x1ea   :  { %2081 = shalt.err (!%p2078_p11)  }
 0x1eb   :  { %s2082_s28 = scalar_lea.vmem %s3553_s24, 16  ;;  %p2087_p13 = scmp.lt.s32.totalorder %s3553_s24, %s3222_s19 }
 0x1ec   :  { %p2083_p12 = scmp.ne.s32.totalorder %s3553_s24, %s2082_s28  ;;  %p2088_p0 = scmp.lt.s32.totalorder %s3248_s11, %s2082_s28 }
 0x1ee   :  { %p2089_p1 = por %p2088_p0, %p2087_p13 }
 0x1f0   :  { %p2090_p2 = pnand %p2089_p1, %p2083_p12 }
 0x1f2   :  { %2093 = shalt.err (!%p2090_p2)  }
 0x1f3   :  { %370 = dma.hbm_to_vmem [thread:$0]  %s358_s8, 16, %s3553_s24, [#allocation3] }
 0x1f4   :  { %s3153_s10 = smov [#allocation2 + $0x32]   ;;  %s3581_s15 = sld [smem:[#allocation5 + $0x17]] }
 0x1f5   :  { %s383_s14 = sshll.u32 %s3153_s10, 4  ;;  %s3154_s16 = smov [#allocation2 + $0x3a]   ;;  %s384_s14 = int_to_ptr.vmem [resolvable:$true] %s383_s14 }
 0x1f6   :  { %s399_s30 = sshll.u32 %s3154_s16, 4  ;;  %s3583_s0 = sld [smem:[#allocation5 + $0x18]]  ;;  %s3586_s30 = int_to_ptr.vmem [resolvable:$true] %s399_s30 }
 0x1f7   :  { %s1399_s22 = sshll.u32 %s3566_s21, 4 }
 0x1f8   :  { %s374_s23 = scalar_lea.hbm %s4268_s2, %s1399_s22 }
 0x1f9   :  { %s2094_s26 = scalar_lea.hbm %s374_s23, 16  ;;  %p2097_p4 = scmp.lt.u32.totalorder %s374_s23, %s4268_s2 }
 0x1fa   :  { %p2095_p3 = scmp.ne.s32.totalorder %s374_s23, %s2094_s26  ;;  %p2098_p5 = scmp.lt.u32.totalorder %s3239_s7, %s2094_s26 }
 0x1fb   :  { %p2100_p7 = scmp.lt.u32.totalorder %s2094_s26, %s374_s23 }
 0x1fc   :  { %p2099_p6 = por %p2098_p5, %p2097_p4 }
 0x1fe   :  { %p2101_p8 = por %p2100_p7, %p2099_p6 }
 0x200   :  { %p2102_p9 = pnand %p2101_p8, %p2095_p3 }
 0x202   :  { %2105 = shalt.err (!%p2102_p9)  }
 0x203   :  { %s2106_s25 = scalar_lea.vmem %s384_s14, 16  ;;  %p2111_p11 = scmp.lt.s32.totalorder %s384_s14, %s3222_s19 }
 0x204   :  { %p2107_p10 = scmp.ne.s32.totalorder %s384_s14, %s2106_s25  ;;  %p2112_p12 = scmp.lt.s32.totalorder %s3248_s11, %s2106_s25 }
 0x206   :  { %p2113_p13 = por %p2112_p12, %p2111_p11 }
 0x208   :  { %p2114_p0 = pnand %p2113_p13, %p2107_p10 }
 0x20a   :  { %2117 = shalt.err (!%p2114_p0)  }
 0x20b   :  { %386 = dma.hbm_to_vmem [thread:$0]  %s374_s23, 16, %s384_s14, [#allocation3] }
 0x20c   :  { %s1401_s4 = sshll.u32 %s3581_s15, 4  ;;  %s3155_s29 = smov [#allocation2 + $0x3]  }
 0x20d   :  { %s416_s17 = sshll.u32 %s3155_s29, 4  ;;  %s390_s6 = scalar_lea.hbm %s4268_s2, %s1401_s4  ;;  %s3601_s17 = int_to_ptr.vmem [resolvable:$true] %s416_s17 }
 0x20e   :  { %s2118_s8 = scalar_lea.hbm %s390_s6, 16  ;;  %p2121_p2 = scmp.lt.u32.totalorder %s390_s6, %s4268_s2 }
 0x20f   :  { %p2119_p1 = scmp.ne.s32.totalorder %s390_s6, %s2118_s8  ;;  %p2122_p3 = scmp.lt.u32.totalorder %s3239_s7, %s2118_s8 }
 0x210   :  { %p2124_p5 = scmp.lt.u32.totalorder %s2118_s8, %s390_s6 }
 0x211   :  { %p2123_p4 = por %p2122_p3, %p2121_p2 }
 0x213   :  { %p2125_p6 = por %p2124_p5, %p2123_p4 }
 0x215   :  { %p2126_p7 = pnand %p2125_p6, %p2119_p1 }
 0x217   :  { %2129 = shalt.err (!%p2126_p7)  }
 0x218   :  { %s2130_s9 = scalar_lea.vmem %s3586_s30, 16  ;;  %p2135_p9 = scmp.lt.s32.totalorder %s3586_s30, %s3222_s19 }
 0x219   :  { %p2131_p8 = scmp.ne.s32.totalorder %s3586_s30, %s2130_s9  ;;  %p2136_p10 = scmp.lt.s32.totalorder %s3248_s11, %s2130_s9 }
 0x21b   :  { %p2137_p11 = por %p2136_p10, %p2135_p9 }
 0x21d   :  { %p2138_p12 = pnand %p2137_p11, %p2131_p8 }
 0x21f   :  { %2141 = shalt.err (!%p2138_p12)  }
 0x220   :  { %402 = dma.hbm_to_vmem [thread:$0]  %s390_s6, 16, %s3586_s30, [#allocation3] }
 0x221   :  { %s1403_s28 = sshll.u32 %s3583_s0, 4  ;;  %s3614_s10 = sld [smem:[#allocation5 + $0x19]] }
 0x222   :  { %s407_s16 = scalar_lea.hbm %s4268_s2, %s1403_s28 }
 0x223   :  { %s2142_s22 = scalar_lea.hbm %s407_s16, 16  ;;  %p2145_p0 = scmp.lt.u32.totalorder %s407_s16, %s4268_s2 }
 0x224   :  { %p2143_p13 = scmp.ne.s32.totalorder %s407_s16, %s2142_s22  ;;  %p2146_p1 = scmp.lt.u32.totalorder %s3239_s7, %s2142_s22 }
 0x225   :  { %p2148_p3 = scmp.lt.u32.totalorder %s2142_s22, %s407_s16 }
 0x226   :  { %p2147_p2 = por %p2146_p1, %p2145_p0 }
 0x228   :  { %p2149_p4 = por %p2148_p3, %p2147_p2 }
 0x22a   :  { %p2150_p5 = pnand %p2149_p4, %p2143_p13 }
 0x22c   :  { %2153 = shalt.err (!%p2150_p5)  }
 0x22d   :  { %s2154_s30 = scalar_lea.vmem %s3601_s17, 16  ;;  %p2159_p7 = scmp.lt.s32.totalorder %s3601_s17, %s3222_s19 }
 0x22e   :  { %p2155_p6 = scmp.ne.s32.totalorder %s3601_s17, %s2154_s30  ;;  %p2160_p8 = scmp.lt.s32.totalorder %s3248_s11, %s2154_s30 }
 0x230   :  { %p2161_p9 = por %p2160_p8, %p2159_p7 }
 0x232   :  { %p2162_p10 = pnand %p2161_p9, %p2155_p6 }
 0x234   :  { %2165 = shalt.err (!%p2162_p10)  }
 0x235   :  { %419 = dma.hbm_to_vmem [thread:$0]  %s407_s16, 16, %s3601_s17, [#allocation3] }
 0x236   :  { %s3156_s0 = smov [#allocation2 + $0xb]   ;;  %s3629_s26 = sld [smem:[#allocation5 + $0x1a]] }
 0x237   :  { %s432_s23 = sshll.u32 %s3156_s0, 4  ;;  %s3157_s27 = smov [#allocation2 + $0x13]   ;;  %s433_s23 = int_to_ptr.vmem [resolvable:$true] %s432_s23 }
 0x238   :  { %s448_s24 = sshll.u32 %s3157_s27, 4  ;;  %s3631_s25 = sld [smem:[#allocation5 + $0x1b]]  ;;  %s3634_s24 = int_to_ptr.vmem [resolvable:$true] %s448_s24 }
 0x239   :  { %s1405_s4 = sshll.u32 %s3614_s10, 4 }
 0x23a   :  { %s423_s5 = scalar_lea.hbm %s4268_s2, %s1405_s4 }
 0x23b   :  { %s2166_s6 = scalar_lea.hbm %s423_s5, 16  ;;  %p2169_p12 = scmp.lt.u32.totalorder %s423_s5, %s4268_s2 }
 0x23c   :  { %p2167_p11 = scmp.ne.s32.totalorder %s423_s5, %s2166_s6  ;;  %p2170_p13 = scmp.lt.u32.totalorder %s3239_s7, %s2166_s6 }
 0x23d   :  { %p2172_p1 = scmp.lt.u32.totalorder %s2166_s6, %s423_s5 }
 0x23e   :  { %p2171_p0 = por %p2170_p13, %p2169_p12 }
 0x240   :  { %p2173_p2 = por %p2172_p1, %p2171_p0 }
 0x242   :  { %p2174_p3 = pnand %p2173_p2, %p2167_p11 }
 0x244   :  { %2177 = shalt.err (!%p2174_p3)  }
 0x245   :  { %s2178_s12 = scalar_lea.vmem %s433_s23, 16  ;;  %p2183_p5 = scmp.lt.s32.totalorder %s433_s23, %s3222_s19 }
 0x246   :  { %p2179_p4 = scmp.ne.s32.totalorder %s433_s23, %s2178_s12  ;;  %p2184_p6 = scmp.lt.s32.totalorder %s3248_s11, %s2178_s12 }
 0x248   :  { %p2185_p7 = por %p2184_p6, %p2183_p5 }
 0x24a   :  { %p2186_p8 = pnand %p2185_p7, %p2179_p4 }
 0x24c   :  { %2189 = shalt.err (!%p2186_p8)  }
 0x24d   :  { %435 = dma.hbm_to_vmem [thread:$0]  %s423_s5, 16, %s433_s23, [#allocation3] }
 0x24e   :  { %s1407_s13 = sshll.u32 %s3629_s26, 4  ;;  %s3158_s9 = smov [#allocation2 + $0x1b]  }
 0x24f   :  { %s464_s28 = sshll.u32 %s3158_s9, 4  ;;  %s439_s15 = scalar_lea.hbm %s4268_s2, %s1407_s13  ;;  %s3649_s28 = int_to_ptr.vmem [resolvable:$true] %s464_s28 }
 0x250   :  { %s2190_s16 = scalar_lea.hbm %s439_s15, 16  ;;  %p2193_p10 = scmp.lt.u32.totalorder %s439_s15, %s4268_s2 }
 0x251   :  { %p2191_p9 = scmp.ne.s32.totalorder %s439_s15, %s2190_s16  ;;  %p2194_p11 = scmp.lt.u32.totalorder %s3239_s7, %s2190_s16 }
 0x252   :  { %p2196_p13 = scmp.lt.u32.totalorder %s2190_s16, %s439_s15 }
 0x253   :  { %p2195_p12 = por %p2194_p11, %p2193_p10 }
 0x255   :  { %p2197_p0 = por %p2196_p13, %p2195_p12 }
 0x257   :  { %p2198_p1 = pnand %p2197_p0, %p2191_p9 }
 0x259   :  { %2201 = shalt.err (!%p2198_p1)  }
 0x25a   :  { %s2202_s20 = scalar_lea.vmem %s3634_s24, 16  ;;  %p2207_p3 = scmp.lt.s32.totalorder %s3634_s24, %s3222_s19 }
 0x25b   :  { %p2203_p2 = scmp.ne.s32.totalorder %s3634_s24, %s2202_s20  ;;  %p2208_p4 = scmp.lt.s32.totalorder %s3248_s11, %s2202_s20 }
 0x25d   :  { %p2209_p5 = por %p2208_p4, %p2207_p3 }
 0x25f   :  { %p2210_p6 = pnand %p2209_p5, %p2203_p2 }
 0x261   :  { %2213 = shalt.err (!%p2210_p6)  }
 0x262   :  { %451 = dma.hbm_to_vmem [thread:$0]  %s439_s15, 16, %s3634_s24, [#allocation3] }
 0x263   :  { %s1409_s30 = sshll.u32 %s3631_s25, 4  ;;  %s3662_s0 = sld [smem:[#allocation5 + $0x1c]] }
 0x264   :  { %s455_s27 = scalar_lea.hbm %s4268_s2, %s1409_s30 }
 0x265   :  { %s2214_s4 = scalar_lea.hbm %s455_s27, 16  ;;  %p2217_p8 = scmp.lt.u32.totalorder %s455_s27, %s4268_s2 }
 0x266   :  { %p2215_p7 = scmp.ne.s32.totalorder %s455_s27, %s2214_s4  ;;  %p2218_p9 = scmp.lt.u32.totalorder %s3239_s7, %s2214_s4 }
 0x267   :  { %p2220_p11 = scmp.lt.u32.totalorder %s2214_s4, %s455_s27 }
 0x268   :  { %p2219_p10 = por %p2218_p9, %p2217_p8 }
 0x26a   :  { %p2221_p12 = por %p2220_p11, %p2219_p10 }
 0x26c   :  { %p2222_p13 = pnand %p2221_p12, %p2215_p7 }
 0x26e   :  { %2225 = shalt.err (!%p2222_p13)  }
 0x26f   :  { %s2226_s24 = scalar_lea.vmem %s3649_s28, 16  ;;  %p2231_p1 = scmp.lt.s32.totalorder %s3649_s28, %s3222_s19 }
 0x270   :  { %p2227_p0 = scmp.ne.s32.totalorder %s3649_s28, %s2226_s24  ;;  %p2232_p2 = scmp.lt.s32.totalorder %s3248_s11, %s2226_s24 }
 0x272   :  { %p2233_p3 = por %p2232_p2, %p2231_p1 }
 0x274   :  { %p2234_p4 = pnand %p2233_p3, %p2227_p0 }
 0x276   :  { %2237 = shalt.err (!%p2234_p4)  }
 0x277   :  { %467 = dma.hbm_to_vmem [thread:$0]  %s455_s27, 16, %s3649_s28, [#allocation3] }
 0x278   :  { %s3159_s25 = smov [#allocation2 + $0x23]   ;;  %s3677_s6 = sld [smem:[#allocation5 + $0x1d]] }
 0x279   :  { %s480_s5 = sshll.u32 %s3159_s25, 4  ;;  %s3160_s8 = smov [#allocation2 + $0x2b]   ;;  %s481_s5 = int_to_ptr.vmem [resolvable:$true] %s480_s5 }
 0x27a   :  { %s496_s17 = sshll.u32 %s3160_s8, 4  ;;  %s3679_s12 = sld [smem:[#allocation5 + $0x1e]]  ;;  %s3682_s17 = int_to_ptr.vmem [resolvable:$true] %s496_s17 }
 0x27b   :  { %s1411_s13 = sshll.u32 %s3662_s0, 4 }
 0x27c   :  { %s471_s14 = scalar_lea.hbm %s4268_s2, %s1411_s13 }
 0x27d   :  { %s2238_s15 = scalar_lea.hbm %s471_s14, 16  ;;  %p2241_p6 = scmp.lt.u32.totalorder %s471_s14, %s4268_s2 }
 0x27e   :  { %p2239_p5 = scmp.ne.s32.totalorder %s471_s14, %s2238_s15  ;;  %p2242_p7 = scmp.lt.u32.totalorder %s3239_s7, %s2238_s15 }
 0x27f   :  { %p2244_p9 = scmp.lt.u32.totalorder %s2238_s15, %s471_s14 }
 0x280   :  { %p2243_p8 = por %p2242_p7, %p2241_p6 }
 0x282   :  { %p2245_p10 = por %p2244_p9, %p2243_p8 }
 0x284   :  { %p2246_p11 = pnand %p2245_p10, %p2239_p5 }
 0x286   :  { %2249 = shalt.err (!%p2246_p11)  }
 0x287   :  { %s2250_s22 = scalar_lea.vmem %s481_s5, 16  ;;  %p2255_p13 = scmp.lt.s32.totalorder %s481_s5, %s3222_s19 }
 0x288   :  { %p2251_p12 = scmp.ne.s32.totalorder %s481_s5, %s2250_s22  ;;  %p2256_p0 = scmp.lt.s32.totalorder %s3248_s11, %s2250_s22 }
 0x28a   :  { %p2257_p1 = por %p2256_p0, %p2255_p13 }
 0x28c   :  { %p2258_p2 = pnand %p2257_p1, %p2251_p12 }
 0x28e   :  { %2261 = shalt.err (!%p2258_p2)  }
 0x28f   :  { %483 = dma.hbm_to_vmem [thread:$0]  %s471_s14, 16, %s481_s5, [#allocation3] }
 0x290   :  { %s1413_s18 = sshll.u32 %s3677_s6, 4  ;;  %s3161_s20 = smov [#allocation2 + $0x33]  }
 0x291   :  { %s512_s30 = sshll.u32 %s3161_s20, 4  ;;  %s487_s26 = scalar_lea.hbm %s4268_s2, %s1413_s18  ;;  %s3697_s30 = int_to_ptr.vmem [resolvable:$true] %s512_s30 }
 0x292   :  { %s2262_s27 = scalar_lea.hbm %s487_s26, 16  ;;  %p2265_p4 = scmp.lt.u32.totalorder %s487_s26, %s4268_s2 }
 0x293   :  { %p2263_p3 = scmp.ne.s32.totalorder %s487_s26, %s2262_s27  ;;  %p2266_p5 = scmp.lt.u32.totalorder %s3239_s7, %s2262_s27 }
 0x294   :  { %p2268_p7 = scmp.lt.u32.totalorder %s2262_s27, %s487_s26 }
 0x295   :  { %p2267_p6 = por %p2266_p5, %p2265_p4 }
 0x297   :  { %p2269_p8 = por %p2268_p7, %p2267_p6 }
 0x299   :  { %p2270_p9 = pnand %p2269_p8, %p2263_p3 }
 0x29b   :  { %2273 = shalt.err (!%p2270_p9)  }
 0x29c   :  { %s2274_s21 = scalar_lea.vmem %s3682_s17, 16  ;;  %p2279_p11 = scmp.lt.s32.totalorder %s3682_s17, %s3222_s19 }
 0x29d   :  { %p2275_p10 = scmp.ne.s32.totalorder %s3682_s17, %s2274_s21  ;;  %p2280_p12 = scmp.lt.s32.totalorder %s3248_s11, %s2274_s21 }
 0x29f   :  { %p2281_p13 = por %p2280_p12, %p2279_p11 }
 0x2a1   :  { %p2282_p0 = pnand %p2281_p13, %p2275_p10 }
 0x2a3   :  { %2285 = shalt.err (!%p2282_p0)  }
 0x2a4   :  { %499 = dma.hbm_to_vmem [thread:$0]  %s487_s26, 16, %s3682_s17, [#allocation3] }
 0x2a5   :  { %s1415_s24 = sshll.u32 %s3679_s12, 4  ;;  %s3710_s25 = sld [smem:[#allocation5 + $0x1f]] }
 0x2a6   :  { %s503_s8 = scalar_lea.hbm %s4268_s2, %s1415_s24 }
 0x2a7   :  { %s2286_s13 = scalar_lea.hbm %s503_s8, 16  ;;  %p2289_p2 = scmp.lt.u32.totalorder %s503_s8, %s4268_s2 }
 0x2a8   :  { %p2287_p1 = scmp.ne.s32.totalorder %s503_s8, %s2286_s13  ;;  %p2290_p3 = scmp.lt.u32.totalorder %s3239_s7, %s2286_s13 }
 0x2a9   :  { %p2292_p5 = scmp.lt.u32.totalorder %s2286_s13, %s503_s8 }
 0x2aa   :  { %p2291_p4 = por %p2290_p3, %p2289_p2 }
 0x2ac   :  { %p2293_p6 = por %p2292_p5, %p2291_p4 }
 0x2ae   :  { %p2294_p7 = pnand %p2293_p6, %p2287_p1 }
 0x2b0   :  { %2297 = shalt.err (!%p2294_p7)  }
 0x2b1   :  { %s2298_s17 = scalar_lea.vmem %s3697_s30, 16  ;;  %p2303_p9 = scmp.lt.s32.totalorder %s3697_s30, %s3222_s19 }
 0x2b2   :  { %p2299_p8 = scmp.ne.s32.totalorder %s3697_s30, %s2298_s17  ;;  %p2304_p10 = scmp.lt.s32.totalorder %s3248_s11, %s2298_s17 }
 0x2b4   :  { %p2305_p11 = por %p2304_p10, %p2303_p9 }
 0x2b6   :  { %p2306_p12 = pnand %p2305_p11, %p2299_p8 }
 0x2b8   :  { %2309 = shalt.err (!%p2306_p12)  }
 0x2b9   :  { %515 = dma.hbm_to_vmem [thread:$0]  %s503_s8, 16, %s3697_s30, [#allocation3] }
 0x2ba   :  { %s3162_s12 = smov [#allocation2 + $0x3b]   ;;  %s3725_s15 = sld [smem:[#allocation5 + $0x20]] }
 0x2bb   :  { %s528_s14 = sshll.u32 %s3162_s12, 4  ;;  %s3163_s16 = smov [#allocation2 + $0x4]   ;;  %s529_s14 = int_to_ptr.vmem [resolvable:$true] %s528_s14 }
 0x2bc   :  { %s545_s28 = sshll.u32 %s3163_s16, 4  ;;  %s3727_s22 = sld [smem:[#allocation5 + $0x21]]  ;;  %s3730_s28 = int_to_ptr.vmem [resolvable:$true] %s545_s28 }
 0x2bd   :  { %s1417_s18 = sshll.u32 %s3710_s25, 4 }
 0x2be   :  { %s519_s23 = scalar_lea.hbm %s4268_s2, %s1417_s18 }
 0x2bf   :  { %s2310_s26 = scalar_lea.hbm %s519_s23, 16  ;;  %p2313_p0 = scmp.lt.u32.totalorder %s519_s23, %s4268_s2 }
 0x2c0   :  { %p2311_p13 = scmp.ne.s32.totalorder %s519_s23, %s2310_s26  ;;  %p2314_p1 = scmp.lt.u32.totalorder %s3239_s7, %s2310_s26 }
 0x2c1   :  { %p2316_p3 = scmp.lt.u32.totalorder %s2310_s26, %s519_s23 }
 0x2c2   :  { %p2315_p2 = por %p2314_p1, %p2313_p0 }
 0x2c4   :  { %p2317_p4 = por %p2316_p3, %p2315_p2 }
 0x2c6   :  { %p2318_p5 = pnand %p2317_p4, %p2311_p13 }
 0x2c8   :  { %2321 = shalt.err (!%p2318_p5)  }
 0x2c9   :  { %s2322_s4 = scalar_lea.vmem %s529_s14, 16  ;;  %p2327_p7 = scmp.lt.s32.totalorder %s529_s14, %s3222_s19 }
 0x2ca   :  { %p2323_p6 = scmp.ne.s32.totalorder %s529_s14, %s2322_s4  ;;  %p2328_p8 = scmp.lt.s32.totalorder %s3248_s11, %s2322_s4 }
 0x2cc   :  { %p2329_p9 = por %p2328_p8, %p2327_p7 }
 0x2ce   :  { %p2330_p10 = pnand %p2329_p9, %p2323_p6 }
 0x2d0   :  { %2333 = shalt.err (!%p2330_p10)  }
 0x2d1   :  { %531 = dma.hbm_to_vmem [thread:$0]  %s519_s23, 16, %s529_s14, [#allocation3] }
 0x2d2   :  { %s1419_s29 = sshll.u32 %s3725_s15, 4  ;;  %s3164_s21 = smov [#allocation2 + $0xc]  }
 0x2d3   :  { %s561_s24 = sshll.u32 %s3164_s21, 4  ;;  %s536_s6 = scalar_lea.hbm %s4268_s2, %s1419_s29  ;;  %s3745_s24 = int_to_ptr.vmem [resolvable:$true] %s561_s24 }
 0x2d4   :  { %s2334_s8 = scalar_lea.hbm %s536_s6, 16  ;;  %p2337_p12 = scmp.lt.u32.totalorder %s536_s6, %s4268_s2 }
 0x2d5   :  { %p2335_p11 = scmp.ne.s32.totalorder %s536_s6, %s2334_s8  ;;  %p2338_p13 = scmp.lt.u32.totalorder %s3239_s7, %s2334_s8 }
 0x2d6   :  { %p2340_p1 = scmp.lt.u32.totalorder %s2334_s8, %s536_s6 }
 0x2d7   :  { %p2339_p0 = por %p2338_p13, %p2337_p12 }
 0x2d9   :  { %p2341_p2 = por %p2340_p1, %p2339_p0 }
 0x2db   :  { %p2342_p3 = pnand %p2341_p2, %p2335_p11 }
 0x2dd   :  { %2345 = shalt.err (!%p2342_p3)  }
 0x2de   :  { %s2346_s10 = scalar_lea.vmem %s3730_s28, 16  ;;  %p2351_p5 = scmp.lt.s32.totalorder %s3730_s28, %s3222_s19 }
 0x2df   :  { %p2347_p4 = scmp.ne.s32.totalorder %s3730_s28, %s2346_s10  ;;  %p2352_p6 = scmp.lt.s32.totalorder %s3248_s11, %s2346_s10 }
 0x2e1   :  { %p2353_p7 = por %p2352_p6, %p2351_p5 }
 0x2e3   :  { %p2354_p8 = pnand %p2353_p7, %p2347_p4 }
 0x2e5   :  { %2357 = shalt.err (!%p2354_p8)  }
 0x2e6   :  { %548 = dma.hbm_to_vmem [thread:$0]  %s536_s6, 16, %s3730_s28, [#allocation3] }
 0x2e7   :  { %s1421_s17 = sshll.u32 %s3727_s22, 4  ;;  %s3758_s12 = sld [smem:[#allocation5 + $0x22]] }
 0x2e8   :  { %s552_s16 = scalar_lea.hbm %s4268_s2, %s1421_s17 }
 0x2e9   :  { %s2358_s18 = scalar_lea.hbm %s552_s16, 16  ;;  %p2361_p10 = scmp.lt.u32.totalorder %s552_s16, %s4268_s2 }
 0x2ea   :  { %p2359_p9 = scmp.ne.s32.totalorder %s552_s16, %s2358_s18  ;;  %p2362_p11 = scmp.lt.u32.totalorder %s3239_s7, %s2358_s18 }
 0x2eb   :  { %p2364_p13 = scmp.lt.u32.totalorder %s2358_s18, %s552_s16 }
 0x2ec   :  { %p2363_p12 = por %p2362_p11, %p2361_p10 }
 0x2ee   :  { %p2365_p0 = por %p2364_p13, %p2363_p12 }
 0x2f0   :  { %p2366_p1 = pnand %p2365_p0, %p2359_p9 }
 0x2f2   :  { %2369 = shalt.err (!%p2366_p1)  }
 0x2f3   :  { %s2370_s28 = scalar_lea.vmem %s3745_s24, 16  ;;  %p2375_p3 = scmp.lt.s32.totalorder %s3745_s24, %s3222_s19 }
 0x2f4   :  { %p2371_p2 = scmp.ne.s32.totalorder %s3745_s24, %s2370_s28  ;;  %p2376_p4 = scmp.lt.s32.totalorder %s3248_s11, %s2370_s28 }
 0x2f6   :  { %p2377_p5 = por %p2376_p4, %p2375_p3 }
 0x2f8   :  { %p2378_p6 = pnand %p2377_p5, %p2371_p2 }
 0x2fa   :  { %2381 = shalt.err (!%p2378_p6)  }
 0x2fb   :  { %564 = dma.hbm_to_vmem [thread:$0]  %s552_s16, 16, %s3745_s24, [#allocation3] }
 0x2fc   :  { %s3165_s22 = smov [#allocation2 + $0x14]   ;;  %s3773_s26 = sld [smem:[#allocation5 + $0x23]] }
 0x2fd   :  { %s577_s23 = sshll.u32 %s3165_s22, 4  ;;  %s3166_s27 = smov [#allocation2 + $0x1c]   ;;  %s578_s23 = int_to_ptr.vmem [resolvable:$true] %s577_s23 }
 0x2fe   :  { %s593_s30 = sshll.u32 %s3166_s27, 4  ;;  %s3775_s4 = sld [smem:[#allocation5 + $0x24]]  ;;  %s3778_s30 = int_to_ptr.vmem [resolvable:$true] %s593_s30 }
 0x2ff   :  { %s1423_s29 = sshll.u32 %s3758_s12, 4 }
 0x300   :  { %s568_s5 = scalar_lea.hbm %s4268_s2, %s1423_s29 }
 0x301   :  { %s2382_s6 = scalar_lea.hbm %s568_s5, 16  ;;  %p2385_p8 = scmp.lt.u32.totalorder %s568_s5, %s4268_s2 }
 0x302   :  { %p2383_p7 = scmp.ne.s32.totalorder %s568_s5, %s2382_s6  ;;  %p2386_p9 = scmp.lt.u32.totalorder %s3239_s7, %s2382_s6 }
 0x303   :  { %p2388_p11 = scmp.lt.u32.totalorder %s2382_s6, %s568_s5 }
 0x304   :  { %p2387_p10 = por %p2386_p9, %p2385_p8 }
 0x306   :  { %p2389_p12 = por %p2388_p11, %p2387_p10 }
 0x308   :  { %p2390_p13 = pnand %p2389_p12, %p2383_p7 }
 0x30a   :  { %2393 = shalt.err (!%p2390_p13)  }
 0x30b   :  { %s2394_s13 = scalar_lea.vmem %s578_s23, 16  ;;  %p2399_p1 = scmp.lt.s32.totalorder %s578_s23, %s3222_s19 }
 0x30c   :  { %p2395_p0 = scmp.ne.s32.totalorder %s578_s23, %s2394_s13  ;;  %p2400_p2 = scmp.lt.s32.totalorder %s3248_s11, %s2394_s13 }
 0x30e   :  { %p2401_p3 = por %p2400_p2, %p2399_p1 }
 0x310   :  { %p2402_p4 = pnand %p2401_p3, %p2395_p0 }
 0x312   :  { %2405 = shalt.err (!%p2402_p4)  }
 0x313   :  { %580 = dma.hbm_to_vmem [thread:$0]  %s568_s5, 16, %s578_s23, [#allocation3] }
 0x314   :  { %s1425_s9 = sshll.u32 %s3773_s26, 4  ;;  %s3167_s10 = smov [#allocation2 + $0x24]  }
 0x315   :  { %s609_s17 = sshll.u32 %s3167_s10, 4  ;;  %s584_s15 = scalar_lea.hbm %s4268_s2, %s1425_s9  ;;  %s3793_s17 = int_to_ptr.vmem [resolvable:$true] %s609_s17 }
 0x316   :  { %s2406_s16 = scalar_lea.hbm %s584_s15, 16  ;;  %p2409_p6 = scmp.lt.u32.totalorder %s584_s15, %s4268_s2 }
 0x317   :  { %p2407_p5 = scmp.ne.s32.totalorder %s584_s15, %s2406_s16  ;;  %p2410_p7 = scmp.lt.u32.totalorder %s3239_s7, %s2406_s16 }
 0x318   :  { %p2412_p9 = scmp.lt.u32.totalorder %s2406_s16, %s584_s15 }
 0x319   :  { %p2411_p8 = por %p2410_p7, %p2409_p6 }
 0x31b   :  { %p2413_p10 = por %p2412_p9, %p2411_p8 }
 0x31d   :  { %p2414_p11 = pnand %p2413_p10, %p2407_p5 }
 0x31f   :  { %2417 = shalt.err (!%p2414_p11)  }
 0x320   :  { %s2418_s0 = scalar_lea.vmem %s3778_s30, 16  ;;  %p2423_p13 = scmp.lt.s32.totalorder %s3778_s30, %s3222_s19 }
 0x321   :  { %p2419_p12 = scmp.ne.s32.totalorder %s3778_s30, %s2418_s0  ;;  %p2424_p0 = scmp.lt.s32.totalorder %s3248_s11, %s2418_s0 }
 0x323   :  { %p2425_p1 = por %p2424_p0, %p2423_p13 }
 0x325   :  { %p2426_p2 = pnand %p2425_p1, %p2419_p12 }
 0x327   :  { %2429 = shalt.err (!%p2426_p2)  }
 0x328   :  { %596 = dma.hbm_to_vmem [thread:$0]  %s584_s15, 16, %s3778_s30, [#allocation3] }
 0x329   :  { %s1427_s28 = sshll.u32 %s3775_s4, 4  ;;  %s3806_s22 = sld [smem:[#allocation5 + $0x25]] }
 0x32a   :  { %s600_s27 = scalar_lea.hbm %s4268_s2, %s1427_s28 }
 0x32b   :  { %s2430_s29 = scalar_lea.hbm %s600_s27, 16  ;;  %p2433_p4 = scmp.lt.u32.totalorder %s600_s27, %s4268_s2 }
 0x32c   :  { %p2431_p3 = scmp.ne.s32.totalorder %s600_s27, %s2430_s29  ;;  %p2434_p5 = scmp.lt.u32.totalorder %s3239_s7, %s2430_s29 }
 0x32d   :  { %p2436_p7 = scmp.lt.u32.totalorder %s2430_s29, %s600_s27 }
 0x32e   :  { %p2435_p6 = por %p2434_p5, %p2433_p4 }
 0x330   :  { %p2437_p8 = por %p2436_p7, %p2435_p6 }
 0x332   :  { %p2438_p9 = pnand %p2437_p8, %p2431_p3 }
 0x334   :  { %2441 = shalt.err (!%p2438_p9)  }
 0x335   :  { %s2442_s30 = scalar_lea.vmem %s3793_s17, 16  ;;  %p2447_p11 = scmp.lt.s32.totalorder %s3793_s17, %s3222_s19 }
 0x336   :  { %p2443_p10 = scmp.ne.s32.totalorder %s3793_s17, %s2442_s30  ;;  %p2448_p12 = scmp.lt.s32.totalorder %s3248_s11, %s2442_s30 }
 0x338   :  { %p2449_p13 = por %p2448_p12, %p2447_p11 }
 0x33a   :  { %p2450_p0 = pnand %p2449_p13, %p2443_p10 }
 0x33c   :  { %2453 = shalt.err (!%p2450_p0)  }
 0x33d   :  { %612 = dma.hbm_to_vmem [thread:$0]  %s600_s27, 16, %s3793_s17, [#allocation3] }
 0x33e   :  { %s3168_s4 = smov [#allocation2 + $0x2c]   ;;  %s3821_s6 = sld [smem:[#allocation5 + $0x26]] }
 0x33f   :  { %s625_s5 = sshll.u32 %s3168_s4, 4  ;;  %s3169_s8 = smov [#allocation2 + $0x34]   ;;  %s626_s5 = int_to_ptr.vmem [resolvable:$true] %s625_s5 }
 0x340   :  { %s641_s24 = sshll.u32 %s3169_s8, 4  ;;  %s3823_s13 = sld [smem:[#allocation5 + $0x27]]  ;;  %s3826_s24 = int_to_ptr.vmem [resolvable:$true] %s641_s24 }
 0x341   :  { %s1429_s9 = sshll.u32 %s3806_s22, 4 }
 0x342   :  { %s616_s14 = scalar_lea.hbm %s4268_s2, %s1429_s9 }
 0x343   :  { %s2454_s15 = scalar_lea.hbm %s616_s14, 16  ;;  %p2457_p2 = scmp.lt.u32.totalorder %s616_s14, %s4268_s2 }
 0x344   :  { %p2455_p1 = scmp.ne.s32.totalorder %s616_s14, %s2454_s15  ;;  %p2458_p3 = scmp.lt.u32.totalorder %s3239_s7, %s2454_s15 }
 0x345   :  { %p2460_p5 = scmp.lt.u32.totalorder %s2454_s15, %s616_s14 }
 0x346   :  { %p2459_p4 = por %p2458_p3, %p2457_p2 }
 0x348   :  { %p2461_p6 = por %p2460_p5, %p2459_p4 }
 0x34a   :  { %p2462_p7 = pnand %p2461_p6, %p2455_p1 }
 0x34c   :  { %2465 = shalt.err (!%p2462_p7)  }
 0x34d   :  { %s2466_s18 = scalar_lea.vmem %s626_s5, 16  ;;  %p2471_p9 = scmp.lt.s32.totalorder %s626_s5, %s3222_s19 }
 0x34e   :  { %p2467_p8 = scmp.ne.s32.totalorder %s626_s5, %s2466_s18  ;;  %p2472_p10 = scmp.lt.s32.totalorder %s3248_s11, %s2466_s18 }
 0x350   :  { %p2473_p11 = por %p2472_p10, %p2471_p9 }
 0x352   :  { %p2474_p12 = pnand %p2473_p11, %p2467_p8 }
 0x354   :  { %2477 = shalt.err (!%p2474_p12)  }
 0x355   :  { %628 = dma.hbm_to_vmem [thread:$0]  %s616_s14, 16, %s626_s5, [#allocation3] }
 0x356   :  { %s1431_s20 = sshll.u32 %s3821_s6, 4  ;;  %s3170_s0 = smov [#allocation2 + $0x3c]  }
 0x357   :  { %s657_s28 = sshll.u32 %s3170_s0, 4  ;;  %s632_s26 = scalar_lea.hbm %s4268_s2, %s1431_s20  ;;  %s3841_s28 = int_to_ptr.vmem [resolvable:$true] %s657_s28 }
 0x358   :  { %s2478_s27 = scalar_lea.hbm %s632_s26, 16  ;;  %p2481_p0 = scmp.lt.u32.totalorder %s632_s26, %s4268_s2 }
 0x359   :  { %p2479_p13 = scmp.ne.s32.totalorder %s632_s26, %s2478_s27  ;;  %p2482_p1 = scmp.lt.u32.totalorder %s3239_s7, %s2478_s27 }
 0x35a   :  { %p2484_p3 = scmp.lt.u32.totalorder %s2478_s27, %s632_s26 }
 0x35b   :  { %p2483_p2 = por %p2482_p1, %p2481_p0 }
 0x35d   :  { %p2485_p4 = por %p2484_p3, %p2483_p2 }
 0x35f   :  { %p2486_p5 = pnand %p2485_p4, %p2479_p13 }
 0x361   :  { %2489 = shalt.err (!%p2486_p5)  }
 0x362   :  { %s2490_s25 = scalar_lea.vmem %s3826_s24, 16  ;;  %p2495_p7 = scmp.lt.s32.totalorder %s3826_s24, %s3222_s19 }
 0x363   :  { %p2491_p6 = scmp.ne.s32.totalorder %s3826_s24, %s2490_s25  ;;  %p2496_p8 = scmp.lt.s32.totalorder %s3248_s11, %s2490_s25 }
 0x365   :  { %p2497_p9 = por %p2496_p8, %p2495_p7 }
 0x367   :  { %p2498_p10 = pnand %p2497_p9, %p2491_p6 }
 0x369   :  { %2501 = shalt.err (!%p2498_p10)  }
 0x36a   :  { %644 = dma.hbm_to_vmem [thread:$0]  %s632_s26, 16, %s3826_s24, [#allocation3] }
 0x36b   :  { %s1433_s30 = sshll.u32 %s3823_s13, 4  ;;  %s3854_s4 = sld [smem:[#allocation5 + $0x28]] }
 0x36c   :  { %s648_s8 = scalar_lea.hbm %s4268_s2, %s1433_s30 }
 0x36d   :  { %s2502_s9 = scalar_lea.hbm %s648_s8, 16  ;;  %p2505_p12 = scmp.lt.u32.totalorder %s648_s8, %s4268_s2 }
 0x36e   :  { %p2503_p11 = scmp.ne.s32.totalorder %s648_s8, %s2502_s9  ;;  %p2506_p13 = scmp.lt.u32.totalorder %s3239_s7, %s2502_s9 }
 0x36f   :  { %p2508_p1 = scmp.lt.u32.totalorder %s2502_s9, %s648_s8 }
 0x370   :  { %p2507_p0 = por %p2506_p13, %p2505_p12 }
 0x372   :  { %p2509_p2 = por %p2508_p1, %p2507_p0 }
 0x374   :  { %p2510_p3 = pnand %p2509_p2, %p2503_p11 }
 0x376   :  { %2513 = shalt.err (!%p2510_p3)  }
 0x377   :  { %s2514_s24 = scalar_lea.vmem %s3841_s28, 16  ;;  %p2519_p5 = scmp.lt.s32.totalorder %s3841_s28, %s3222_s19 }
 0x378   :  { %p2515_p4 = scmp.ne.s32.totalorder %s3841_s28, %s2514_s24  ;;  %p2520_p6 = scmp.lt.s32.totalorder %s3248_s11, %s2514_s24 }
 0x37a   :  { %p2521_p7 = por %p2520_p6, %p2519_p5 }
 0x37c   :  { %p2522_p8 = pnand %p2521_p7, %p2515_p4 }
 0x37e   :  { %2525 = shalt.err (!%p2522_p8)  }
 0x37f   :  { %660 = dma.hbm_to_vmem [thread:$0]  %s648_s8, 16, %s3841_s28, [#allocation3] }
 0x380   :  { %s3171_s13 = smov [#allocation2 + $0x5]   ;;  %s3869_s15 = sld [smem:[#allocation5 + $0x29]] }
 0x381   :  { %s674_s14 = sshll.u32 %s3171_s13, 4  ;;  %s3172_s16 = smov [#allocation2 + $0xd]   ;;  %s675_s14 = int_to_ptr.vmem [resolvable:$true] %s674_s14 }
 0x382   :  { %s690_s17 = sshll.u32 %s3172_s16, 4  ;;  %s3871_s18 = sld [smem:[#allocation5 + $0x2a]]  ;;  %s3874_s17 = int_to_ptr.vmem [resolvable:$true] %s690_s17 }
 0x383   :  { %s1435_s20 = sshll.u32 %s3854_s4, 4 }
 0x384   :  { %s665_s23 = scalar_lea.hbm %s4268_s2, %s1435_s20 }
 0x385   :  { %s2526_s26 = scalar_lea.hbm %s665_s23, 16  ;;  %p2529_p10 = scmp.lt.u32.totalorder %s665_s23, %s4268_s2 }
 0x386   :  { %p2527_p9 = scmp.ne.s32.totalorder %s665_s23, %s2526_s26  ;;  %p2530_p11 = scmp.lt.u32.totalorder %s3239_s7, %s2526_s26 }
 0x387   :  { %p2532_p13 = scmp.lt.u32.totalorder %s2526_s26, %s665_s23 }
 0x388   :  { %p2531_p12 = por %p2530_p11, %p2529_p10 }
 0x38a   :  { %p2533_p0 = por %p2532_p13, %p2531_p12 }
 0x38c   :  { %p2534_p1 = pnand %p2533_p0, %p2527_p9 }
 0x38e   :  { %2537 = shalt.err (!%p2534_p1)  }
 0x38f   :  { %s2538_s29 = scalar_lea.vmem %s675_s14, 16  ;;  %p2543_p3 = scmp.lt.s32.totalorder %s675_s14, %s3222_s19 }
 0x390   :  { %p2539_p2 = scmp.ne.s32.totalorder %s675_s14, %s2538_s29  ;;  %p2544_p4 = scmp.lt.s32.totalorder %s3248_s11, %s2538_s29 }
 0x392   :  { %p2545_p5 = por %p2544_p4, %p2543_p3 }
 0x394   :  { %p2546_p6 = pnand %p2545_p5, %p2539_p2 }
 0x396   :  { %2549 = shalt.err (!%p2546_p6)  }
 0x397   :  { %677 = dma.hbm_to_vmem [thread:$0]  %s665_s23, 16, %s675_s14, [#allocation3] }
 0x398   :  { %s1437_s21 = sshll.u32 %s3869_s15, 4  ;;  %s3173_s25 = smov [#allocation2 + $0x15]  }
 0x399   :  { %s706_s30 = sshll.u32 %s3173_s25, 4  ;;  %s681_s6 = scalar_lea.hbm %s4268_s2, %s1437_s21  ;;  %s3889_s30 = int_to_ptr.vmem [resolvable:$true] %s706_s30 }
 0x39a   :  { %s2550_s8 = scalar_lea.hbm %s681_s6, 16  ;;  %p2553_p8 = scmp.lt.u32.totalorder %s681_s6, %s4268_s2 }
 0x39b   :  { %p2551_p7 = scmp.ne.s32.totalorder %s681_s6, %s2550_s8  ;;  %p2554_p9 = scmp.lt.u32.totalorder %s3239_s7, %s2550_s8 }
 0x39c   :  { %p2556_p11 = scmp.lt.u32.totalorder %s2550_s8, %s681_s6 }
 0x39d   :  { %p2555_p10 = por %p2554_p9, %p2553_p8 }
 0x39f   :  { %p2557_p12 = por %p2556_p11, %p2555_p10 }
 0x3a1   :  { %p2558_p13 = pnand %p2557_p12, %p2551_p7 }
 0x3a3   :  { %2561 = shalt.err (!%p2558_p13)  }
 0x3a4   :  { %s2562_s12 = scalar_lea.vmem %s3874_s17, 16  ;;  %p2567_p1 = scmp.lt.s32.totalorder %s3874_s17, %s3222_s19 }
 0x3a5   :  { %p2563_p0 = scmp.ne.s32.totalorder %s3874_s17, %s2562_s12  ;;  %p2568_p2 = scmp.lt.s32.totalorder %s3248_s11, %s2562_s12 }
 0x3a7   :  { %p2569_p3 = por %p2568_p2, %p2567_p1 }
 0x3a9   :  { %p2570_p4 = pnand %p2569_p3, %p2563_p0 }
 0x3ab   :  { %2573 = shalt.err (!%p2570_p4)  }
 0x3ac   :  { %693 = dma.hbm_to_vmem [thread:$0]  %s681_s6, 16, %s3874_s17, [#allocation3] }
 0x3ad   :  { %s1439_s24 = sshll.u32 %s3871_s18, 4  ;;  %s3902_s13 = sld [smem:[#allocation5 + $0x2b]] }
 0x3ae   :  { %s697_s16 = scalar_lea.hbm %s4268_s2, %s1439_s24 }
 0x3af   :  { %s2574_s20 = scalar_lea.hbm %s697_s16, 16  ;;  %p2577_p6 = scmp.lt.u32.totalorder %s697_s16, %s4268_s2 }
 0x3b0   :  { %p2575_p5 = scmp.ne.s32.totalorder %s697_s16, %s2574_s20  ;;  %p2578_p7 = scmp.lt.u32.totalorder %s3239_s7, %s2574_s20 }
 0x3b1   :  { %p2580_p9 = scmp.lt.u32.totalorder %s2574_s20, %s697_s16 }
 0x3b2   :  { %p2579_p8 = por %p2578_p7, %p2577_p6 }
 0x3b4   :  { %p2581_p10 = por %p2580_p9, %p2579_p8 }
 0x3b6   :  { %p2582_p11 = pnand %p2581_p10, %p2575_p5 }
 0x3b8   :  { %2585 = shalt.err (!%p2582_p11)  }
 0x3b9   :  { %s2586_s17 = scalar_lea.vmem %s3889_s30, 16  ;;  %p2591_p13 = scmp.lt.s32.totalorder %s3889_s30, %s3222_s19 }
 0x3ba   :  { %p2587_p12 = scmp.ne.s32.totalorder %s3889_s30, %s2586_s17  ;;  %p2592_p0 = scmp.lt.s32.totalorder %s3248_s11, %s2586_s17 }
 0x3bc   :  { %p2593_p1 = por %p2592_p0, %p2591_p13 }
 0x3be   :  { %p2594_p2 = pnand %p2593_p1, %p2587_p12 }
 0x3c0   :  { %2597 = shalt.err (!%p2594_p2)  }
 0x3c1   :  { %709 = dma.hbm_to_vmem [thread:$0]  %s697_s16, 16, %s3889_s30, [#allocation3] }
 0x3c2   :  { %s3174_s18 = smov [#allocation2 + $0x1d]   ;;  %s3917_s26 = sld [smem:[#allocation5 + $0x2c]] }
 0x3c3   :  { %s722_s23 = sshll.u32 %s3174_s18, 4  ;;  %s3175_s27 = smov [#allocation2 + $0x25]   ;;  %s723_s23 = int_to_ptr.vmem [resolvable:$true] %s722_s23 }
 0x3c4   :  { %s738_s28 = sshll.u32 %s3175_s27, 4  ;;  %s3919_s29 = sld [smem:[#allocation5 + $0x2d]]  ;;  %s3922_s28 = int_to_ptr.vmem [resolvable:$true] %s738_s28 }
 0x3c5   :  { %s1441_s21 = sshll.u32 %s3902_s13, 4 }
 0x3c6   :  { %s713_s5 = scalar_lea.hbm %s4268_s2, %s1441_s21 }
 0x3c7   :  { %s2598_s6 = scalar_lea.hbm %s713_s5, 16  ;;  %p2601_p4 = scmp.lt.u32.totalorder %s713_s5, %s4268_s2 }
 0x3c8   :  { %p2599_p3 = scmp.ne.s32.totalorder %s713_s5, %s2598_s6  ;;  %p2602_p5 = scmp.lt.u32.totalorder %s3239_s7, %s2598_s6 }
 0x3c9   :  { %p2604_p7 = scmp.lt.u32.totalorder %s2598_s6, %s713_s5 }
 0x3ca   :  { %p2603_p6 = por %p2602_p5, %p2601_p4 }
 0x3cc   :  { %p2605_p8 = por %p2604_p7, %p2603_p6 }
 0x3ce   :  { %p2606_p9 = pnand %p2605_p8, %p2599_p3 }
 0x3d0   :  { %2609 = shalt.err (!%p2606_p9)  }
 0x3d1   :  { %s2610_s9 = scalar_lea.vmem %s723_s23, 16  ;;  %p2615_p11 = scmp.lt.s32.totalorder %s723_s23, %s3222_s19 }
 0x3d2   :  { %p2611_p10 = scmp.ne.s32.totalorder %s723_s23, %s2610_s9  ;;  %p2616_p12 = scmp.lt.s32.totalorder %s3248_s11, %s2610_s9 }
 0x3d4   :  { %p2617_p13 = por %p2616_p12, %p2615_p11 }
 0x3d6   :  { %p2618_p0 = pnand %p2617_p13, %p2611_p10 }
 0x3d8   :  { %2621 = shalt.err (!%p2618_p0)  }
 0x3d9   :  { %725 = dma.hbm_to_vmem [thread:$0]  %s713_s5, 16, %s723_s23, [#allocation3] }
 0x3da   :  { %s1443_s10 = sshll.u32 %s3917_s26, 4  ;;  %s3176_s12 = smov [#allocation2 + $0x2d]  }
 0x3db   :  { %s754_s24 = sshll.u32 %s3176_s12, 4  ;;  %s729_s15 = scalar_lea.hbm %s4268_s2, %s1443_s10  ;;  %s3937_s24 = int_to_ptr.vmem [resolvable:$true] %s754_s24 }
 0x3dc   :  { %s2622_s16 = scalar_lea.hbm %s729_s15, 16  ;;  %p2625_p2 = scmp.lt.u32.totalorder %s729_s15, %s4268_s2 }
 0x3dd   :  { %p2623_p1 = scmp.ne.s32.totalorder %s729_s15, %s2622_s16  ;;  %p2626_p3 = scmp.lt.u32.totalorder %s3239_s7, %s2622_s16 }
 0x3de   :  { %p2628_p5 = scmp.lt.u32.totalorder %s2622_s16, %s729_s15 }
 0x3df   :  { %p2627_p4 = por %p2626_p3, %p2625_p2 }
 0x3e1   :  { %p2629_p6 = por %p2628_p5, %p2627_p4 }
 0x3e3   :  { %p2630_p7 = pnand %p2629_p6, %p2623_p1 }
 0x3e5   :  { %2633 = shalt.err (!%p2630_p7)  }
 0x3e6   :  { %s2634_s22 = scalar_lea.vmem %s3922_s28, 16  ;;  %p2639_p9 = scmp.lt.s32.totalorder %s3922_s28, %s3222_s19 }
 0x3e7   :  { %p2635_p8 = scmp.ne.s32.totalorder %s3922_s28, %s2634_s22  ;;  %p2640_p10 = scmp.lt.s32.totalorder %s3248_s11, %s2634_s22 }
 0x3e9   :  { %p2641_p11 = por %p2640_p10, %p2639_p9 }
 0x3eb   :  { %p2642_p12 = pnand %p2641_p11, %p2635_p8 }
 0x3ed   :  { %2645 = shalt.err (!%p2642_p12)  }
 0x3ee   :  { %741 = dma.hbm_to_vmem [thread:$0]  %s729_s15, 16, %s3922_s28, [#allocation3] }
 0x3ef   :  { %s1445_s17 = sshll.u32 %s3919_s29, 4  ;;  %s3950_s18 = sld [smem:[#allocation5 + $0x2e]] }
 0x3f0   :  { %s745_s27 = scalar_lea.hbm %s4268_s2, %s1445_s17 }
 0x3f1   :  { %s2646_s21 = scalar_lea.hbm %s745_s27, 16  ;;  %p2649_p0 = scmp.lt.u32.totalorder %s745_s27, %s4268_s2 }
 0x3f2   :  { %p2647_p13 = scmp.ne.s32.totalorder %s745_s27, %s2646_s21  ;;  %p2650_p1 = scmp.lt.u32.totalorder %s3239_s7, %s2646_s21 }
 0x3f3   :  { %p2652_p3 = scmp.lt.u32.totalorder %s2646_s21, %s745_s27 }
 0x3f4   :  { %p2651_p2 = por %p2650_p1, %p2649_p0 }
 0x3f6   :  { %p2653_p4 = por %p2652_p3, %p2651_p2 }
 0x3f8   :  { %p2654_p5 = pnand %p2653_p4, %p2647_p13 }
 0x3fa   :  { %2657 = shalt.err (!%p2654_p5)  }
 0x3fb   :  { %s2658_s28 = scalar_lea.vmem %s3937_s24, 16  ;;  %p2663_p7 = scmp.lt.s32.totalorder %s3937_s24, %s3222_s19 }
 0x3fc   :  { %p2659_p6 = scmp.ne.s32.totalorder %s3937_s24, %s2658_s28  ;;  %p2664_p8 = scmp.lt.s32.totalorder %s3248_s11, %s2658_s28 }
 0x3fe   :  { %p2665_p9 = por %p2664_p8, %p2663_p7 }
 0x400   :  { %p2666_p10 = pnand %p2665_p9, %p2659_p6 }
 0x402   :  { %2669 = shalt.err (!%p2666_p10)  }
 0x403   :  { %757 = dma.hbm_to_vmem [thread:$0]  %s745_s27, 16, %s3937_s24, [#allocation3] }
 0x404   :  { %s3177_s29 = smov [#allocation2 + $0x35]   ;;  %s3965_s6 = sld [smem:[#allocation5 + $0x2f]] }
 0x405   :  { %s770_s5 = sshll.u32 %s3177_s29, 4  ;;  %s3178_s8 = smov [#allocation2 + $0x3d]   ;;  %s771_s5 = int_to_ptr.vmem [resolvable:$true] %s770_s5 }
 0x406   :  { %s786_s30 = sshll.u32 %s3178_s8, 4  ;;  %s3967_s9 = sld [smem:[#allocation5 + $0x30]]  ;;  %s3970_s30 = int_to_ptr.vmem [resolvable:$true] %s786_s30 }
 0x407   :  { %s1447_s10 = sshll.u32 %s3950_s18, 4 }
 0x408   :  { %s761_s14 = scalar_lea.hbm %s4268_s2, %s1447_s10 }
 0x409   :  { %s2670_s15 = scalar_lea.hbm %s761_s14, 16  ;;  %p2673_p12 = scmp.lt.u32.totalorder %s761_s14, %s4268_s2 }
 0x40a   :  { %p2671_p11 = scmp.ne.s32.totalorder %s761_s14, %s2670_s15  ;;  %p2674_p13 = scmp.lt.u32.totalorder %s3239_s7, %s2670_s15 }
 0x40b   :  { %p2676_p1 = scmp.lt.u32.totalorder %s2670_s15, %s761_s14 }
 0x40c   :  { %p2675_p0 = por %p2674_p13, %p2673_p12 }
 0x40e   :  { %p2677_p2 = por %p2676_p1, %p2675_p0 }
 0x410   :  { %p2678_p3 = pnand %p2677_p2, %p2671_p11 }
 0x412   :  { %2681 = shalt.err (!%p2678_p3)  }
 0x413   :  { %s2682_s20 = scalar_lea.vmem %s771_s5, 16  ;;  %p2687_p5 = scmp.lt.s32.totalorder %s771_s5, %s3222_s19 }
 0x414   :  { %p2683_p4 = scmp.ne.s32.totalorder %s771_s5, %s2682_s20  ;;  %p2688_p6 = scmp.lt.s32.totalorder %s3248_s11, %s2682_s20 }
 0x416   :  { %p2689_p7 = por %p2688_p6, %p2687_p5 }
 0x418   :  { %p2690_p8 = pnand %p2689_p7, %p2683_p4 }
 0x41a   :  { %2693 = shalt.err (!%p2690_p8)  }
 0x41b   :  { %773 = dma.hbm_to_vmem [thread:$0]  %s761_s14, 16, %s771_s5, [#allocation3] }
 0x41c   :  { %s1449_s0 = sshll.u32 %s3965_s6, 4  ;;  %s3179_s22 = smov [#allocation2 + $0x6]  }
 0x41d   :  { %s803_s17 = sshll.u32 %s3179_s22, 4  ;;  %s777_s26 = scalar_lea.hbm %s4268_s2, %s1449_s0  ;;  %s3985_s17 = int_to_ptr.vmem [resolvable:$true] %s803_s17 }
 0x41e   :  { %s2694_s27 = scalar_lea.hbm %s777_s26, 16  ;;  %p2697_p10 = scmp.lt.u32.totalorder %s777_s26, %s4268_s2 }
 0x41f   :  { %p2695_p9 = scmp.ne.s32.totalorder %s777_s26, %s2694_s27  ;;  %p2698_p11 = scmp.lt.u32.totalorder %s3239_s7, %s2694_s27 }
 0x420   :  { %p2700_p13 = scmp.lt.u32.totalorder %s2694_s27, %s777_s26 }
 0x421   :  { %p2699_p12 = por %p2698_p11, %p2697_p10 }
 0x423   :  { %p2701_p0 = por %p2700_p13, %p2699_p12 }
 0x425   :  { %p2702_p1 = pnand %p2701_p0, %p2695_p9 }
 0x427   :  { %2705 = shalt.err (!%p2702_p1)  }
 0x428   :  { %s2706_s4 = scalar_lea.vmem %s3970_s30, 16  ;;  %p2711_p3 = scmp.lt.s32.totalorder %s3970_s30, %s3222_s19 }
 0x429   :  { %p2707_p2 = scmp.ne.s32.totalorder %s3970_s30, %s2706_s4  ;;  %p2712_p4 = scmp.lt.s32.totalorder %s3248_s11, %s2706_s4 }
 0x42b   :  { %p2713_p5 = por %p2712_p4, %p2711_p3 }
 0x42d   :  { %p2714_p6 = pnand %p2713_p5, %p2707_p2 }
 0x42f   :  { %2717 = shalt.err (!%p2714_p6)  }
 0x430   :  { %789 = dma.hbm_to_vmem [thread:$0]  %s777_s26, 16, %s3970_s30, [#allocation3] }
 0x431   :  { %s1451_s28 = sshll.u32 %s3967_s9, 4  ;;  %s3998_s29 = sld [smem:[#allocation5 + $0x31]] }
 0x432   :  { %s794_s8 = scalar_lea.hbm %s4268_s2, %s1451_s28 }
 0x433   :  { %s2718_s10 = scalar_lea.hbm %s794_s8, 16  ;;  %p2721_p8 = scmp.lt.u32.totalorder %s794_s8, %s4268_s2 }
 0x434   :  { %p2719_p7 = scmp.ne.s32.totalorder %s794_s8, %s2718_s10  ;;  %p2722_p9 = scmp.lt.u32.totalorder %s3239_s7, %s2718_s10 }
 0x435   :  { %p2724_p11 = scmp.lt.u32.totalorder %s2718_s10, %s794_s8 }
 0x436   :  { %p2723_p10 = por %p2722_p9, %p2721_p8 }
 0x438   :  { %p2725_p12 = por %p2724_p11, %p2723_p10 }
 0x43a   :  { %p2726_p13 = pnand %p2725_p12, %p2719_p7 }
 0x43c   :  { %2729 = shalt.err (!%p2726_p13)  }
 0x43d   :  { %s2730_s30 = scalar_lea.vmem %s3985_s17, 16  ;;  %p2735_p1 = scmp.lt.s32.totalorder %s3985_s17, %s3222_s19 }
 0x43e   :  { %p2731_p0 = scmp.ne.s32.totalorder %s3985_s17, %s2730_s30  ;;  %p2736_p2 = scmp.lt.s32.totalorder %s3248_s11, %s2730_s30 }
 0x440   :  { %p2737_p3 = por %p2736_p2, %p2735_p1 }
 0x442   :  { %p2738_p4 = pnand %p2737_p3, %p2731_p0 }
 0x444   :  { %2741 = shalt.err (!%p2738_p4)  }
 0x445   :  { %806 = dma.hbm_to_vmem [thread:$0]  %s794_s8, 16, %s3985_s17, [#allocation3] }
 0x446   :  { %s3180_s9 = smov [#allocation2 + $0xe]   ;;  %s4013_s15 = sld [smem:[#allocation5 + $0x32]] }
 0x447   :  { %s819_s14 = sshll.u32 %s3180_s9, 4  ;;  %s3181_s16 = smov [#allocation2 + $0x16]   ;;  %s820_s14 = int_to_ptr.vmem [resolvable:$true] %s819_s14 }
 0x448   :  { %s835_s24 = sshll.u32 %s3181_s16, 4  ;;  %s4015_s20 = sld [smem:[#allocation5 + $0x33]]  ;;  %s4018_s24 = int_to_ptr.vmem [resolvable:$true] %s835_s24 }
 0x449   :  { %s1453_s0 = sshll.u32 %s3998_s29, 4 }
 0x44a   :  { %s810_s23 = scalar_lea.hbm %s4268_s2, %s1453_s0 }
 0x44b   :  { %s2742_s26 = scalar_lea.hbm %s810_s23, 16  ;;  %p2745_p6 = scmp.lt.u32.totalorder %s810_s23, %s4268_s2 }
 0x44c   :  { %p2743_p5 = scmp.ne.s32.totalorder %s810_s23, %s2742_s26  ;;  %p2746_p7 = scmp.lt.u32.totalorder %s3239_s7, %s2742_s26 }
 0x44d   :  { %p2748_p9 = scmp.lt.u32.totalorder %s2742_s26, %s810_s23 }
 0x44e   :  { %p2747_p8 = por %p2746_p7, %p2745_p6 }
 0x450   :  { %p2749_p10 = por %p2748_p9, %p2747_p8 }
 0x452   :  { %p2750_p11 = pnand %p2749_p10, %p2743_p5 }
 0x454   :  { %2753 = shalt.err (!%p2750_p11)  }
 0x455   :  { %s2754_s21 = scalar_lea.vmem %s820_s14, 16  ;;  %p2759_p13 = scmp.lt.s32.totalorder %s820_s14, %s3222_s19 }
 0x456   :  { %p2755_p12 = scmp.ne.s32.totalorder %s820_s14, %s2754_s21  ;;  %p2760_p0 = scmp.lt.s32.totalorder %s3248_s11, %s2754_s21 }
 0x458   :  { %p2761_p1 = por %p2760_p0, %p2759_p13 }
 0x45a   :  { %p2762_p2 = pnand %p2761_p1, %p2755_p12 }
 0x45c   :  { %2765 = shalt.err (!%p2762_p2)  }
 0x45d   :  { %822 = dma.hbm_to_vmem [thread:$0]  %s810_s23, 16, %s820_s14, [#allocation3] }
 0x45e   :  { %s1455_s25 = sshll.u32 %s4013_s15, 4  ;;  %s3182_s4 = smov [#allocation2 + $0x1e]  }
 0x45f   :  { %s851_s28 = sshll.u32 %s3182_s4, 4  ;;  %s826_s6 = scalar_lea.hbm %s4268_s2, %s1455_s25  ;;  %s4033_s28 = int_to_ptr.vmem [resolvable:$true] %s851_s28 }
 0x460   :  { %s2766_s8 = scalar_lea.hbm %s826_s6, 16  ;;  %p2769_p4 = scmp.lt.u32.totalorder %s826_s6, %s4268_s2 }
 0x461   :  { %p2767_p3 = scmp.ne.s32.totalorder %s826_s6, %s2766_s8  ;;  %p2770_p5 = scmp.lt.u32.totalorder %s3239_s7, %s2766_s8 }
 0x462   :  { %p2772_p7 = scmp.lt.u32.totalorder %s2766_s8, %s826_s6 }
 0x463   :  { %p2771_p6 = por %p2770_p5, %p2769_p4 }
 0x465   :  { %p2773_p8 = por %p2772_p7, %p2771_p6 }
 0x467   :  { %p2774_p9 = pnand %p2773_p8, %p2767_p3 }
 0x469   :  { %2777 = shalt.err (!%p2774_p9)  }
 0x46a   :  { %s2778_s13 = scalar_lea.vmem %s4018_s24, 16  ;;  %p2783_p11 = scmp.lt.s32.totalorder %s4018_s24, %s3222_s19 }
 0x46b   :  { %p2779_p10 = scmp.ne.s32.totalorder %s4018_s24, %s2778_s13  ;;  %p2784_p12 = scmp.lt.s32.totalorder %s3248_s11, %s2778_s13 }
 0x46d   :  { %p2785_p13 = por %p2784_p12, %p2783_p11 }
 0x46f   :  { %p2786_p0 = pnand %p2785_p13, %p2779_p10 }
 0x471   :  { %2789 = shalt.err (!%p2786_p0)  }
 0x472   :  { %838 = dma.hbm_to_vmem [thread:$0]  %s826_s6, 16, %s4018_s24, [#allocation3] }
 0x473   :  { %s1457_s30 = sshll.u32 %s4015_s20, 4  ;;  %s4046_s9 = sld [smem:[#allocation5 + $0x34]] }
 0x474   :  { %s842_s16 = scalar_lea.hbm %s4268_s2, %s1457_s30 }
 0x475   :  { %s2790_s0 = scalar_lea.hbm %s842_s16, 16  ;;  %p2793_p2 = scmp.lt.u32.totalorder %s842_s16, %s4268_s2 }
 0x476   :  { %p2791_p1 = scmp.ne.s32.totalorder %s842_s16, %s2790_s0  ;;  %p2794_p3 = scmp.lt.u32.totalorder %s3239_s7, %s2790_s0 }
 0x477   :  { %p2796_p5 = scmp.lt.u32.totalorder %s2790_s0, %s842_s16 }
 0x478   :  { %p2795_p4 = por %p2794_p3, %p2793_p2 }
 0x47a   :  { %p2797_p6 = por %p2796_p5, %p2795_p4 }
 0x47c   :  { %p2798_p7 = pnand %p2797_p6, %p2791_p1 }
 0x47e   :  { %2801 = shalt.err (!%p2798_p7)  }
 0x47f   :  { %s2802_s24 = scalar_lea.vmem %s4033_s28, 16  ;;  %p2807_p9 = scmp.lt.s32.totalorder %s4033_s28, %s3222_s19 }
 0x480   :  { %p2803_p8 = scmp.ne.s32.totalorder %s4033_s28, %s2802_s24  ;;  %p2808_p10 = scmp.lt.s32.totalorder %s3248_s11, %s2802_s24 }
 0x482   :  { %p2809_p11 = por %p2808_p10, %p2807_p9 }
 0x484   :  { %p2810_p12 = pnand %p2809_p11, %p2803_p8 }
 0x486   :  { %2813 = shalt.err (!%p2810_p12)  }
 0x487   :  { %854 = dma.hbm_to_vmem [thread:$0]  %s842_s16, 16, %s4033_s28, [#allocation3] }
 0x488   :  { %s3183_s20 = smov [#allocation2 + $0x26]   ;;  %s4061_s26 = sld [smem:[#allocation5 + $0x35]] }
 0x489   :  { %s867_s23 = sshll.u32 %s3183_s20, 4  ;;  %s3184_s27 = smov [#allocation2 + $0x2e]   ;;  %s868_s23 = int_to_ptr.vmem [resolvable:$true] %s867_s23 }
 0x48a   :  { %s883_s17 = sshll.u32 %s3184_s27, 4  ;;  %s4063_s21 = sld [smem:[#allocation5 + $0x36]]  ;;  %s4066_s17 = int_to_ptr.vmem [resolvable:$true] %s883_s17 }
 0x48b   :  { %s1459_s25 = sshll.u32 %s4046_s9, 4 }
 0x48c   :  { %s858_s5 = scalar_lea.hbm %s4268_s2, %s1459_s25 }
 0x48d   :  { %s2814_s6 = scalar_lea.hbm %s858_s5, 16  ;;  %p2817_p0 = scmp.lt.u32.totalorder %s858_s5, %s4268_s2 }
 0x48e   :  { %p2815_p13 = scmp.ne.s32.totalorder %s858_s5, %s2814_s6  ;;  %p2818_p1 = scmp.lt.u32.totalorder %s3239_s7, %s2814_s6 }
 0x48f   :  { %p2820_p3 = scmp.lt.u32.totalorder %s2814_s6, %s858_s5 }
 0x490   :  { %p2819_p2 = por %p2818_p1, %p2817_p0 }
 0x492   :  { %p2821_p4 = por %p2820_p3, %p2819_p2 }
 0x494   :  { %p2822_p5 = pnand %p2821_p4, %p2815_p13 }
 0x496   :  { %2825 = shalt.err (!%p2822_p5)  }
 0x497   :  { %s2826_s10 = scalar_lea.vmem %s868_s23, 16  ;;  %p2831_p7 = scmp.lt.s32.totalorder %s868_s23, %s3222_s19 }
 0x498   :  { %p2827_p6 = scmp.ne.s32.totalorder %s868_s23, %s2826_s10  ;;  %p2832_p8 = scmp.lt.s32.totalorder %s3248_s11, %s2826_s10 }
 0x49a   :  { %p2833_p9 = por %p2832_p8, %p2831_p7 }
 0x49c   :  { %p2834_p10 = pnand %p2833_p9, %p2827_p6 }
 0x49e   :  { %2837 = shalt.err (!%p2834_p10)  }
 0x49f   :  { %870 = dma.hbm_to_vmem [thread:$0]  %s858_s5, 16, %s868_s23, [#allocation3] }
 0x4a0   :  { %s1461_s12 = sshll.u32 %s4061_s26, 4  ;;  %s3185_s13 = smov [#allocation2 + $0x36]  }
 0x4a1   :  { %s899_s30 = sshll.u32 %s3185_s13, 4  ;;  %s874_s15 = scalar_lea.hbm %s4268_s2, %s1461_s12  ;;  %s4081_s30 = int_to_ptr.vmem [resolvable:$true] %s899_s30 }
 0x4a2   :  { %s2838_s16 = scalar_lea.hbm %s874_s15, 16  ;;  %p2841_p12 = scmp.lt.u32.totalorder %s874_s15, %s4268_s2 }
 0x4a3   :  { %p2839_p11 = scmp.ne.s32.totalorder %s874_s15, %s2838_s16  ;;  %p2842_p13 = scmp.lt.u32.totalorder %s3239_s7, %s2838_s16 }
 0x4a4   :  { %p2844_p1 = scmp.lt.u32.totalorder %s2838_s16, %s874_s15 }
 0x4a5   :  { %p2843_p0 = por %p2842_p13, %p2841_p12 }
 0x4a7   :  { %p2845_p2 = por %p2844_p1, %p2843_p0 }
 0x4a9   :  { %p2846_p3 = pnand %p2845_p2, %p2839_p11 }
 0x4ab   :  { %2849 = shalt.err (!%p2846_p3)  }
 0x4ac   :  { %s2850_s18 = scalar_lea.vmem %s4066_s17, 16  ;;  %p2855_p5 = scmp.lt.s32.totalorder %s4066_s17, %s3222_s19 }
 0x4ad   :  { %p2851_p4 = scmp.ne.s32.totalorder %s4066_s17, %s2850_s18  ;;  %p2856_p6 = scmp.lt.s32.totalorder %s3248_s11, %s2850_s18 }
 0x4af   :  { %p2857_p7 = por %p2856_p6, %p2855_p5 }
 0x4b1   :  { %p2858_p8 = pnand %p2857_p7, %p2851_p4 }
 0x4b3   :  { %2861 = shalt.err (!%p2858_p8)  }
 0x4b4   :  { %886 = dma.hbm_to_vmem [thread:$0]  %s874_s15, 16, %s4066_s17, [#allocation3] }
 0x4b5   :  { %s1463_s24 = sshll.u32 %s4063_s21, 4  ;;  %s4094_s20 = sld [smem:[#allocation5 + $0x37]] }
 0x4b6   :  { %s890_s27 = scalar_lea.hbm %s4268_s2, %s1463_s24 }
 0x4b7   :  { %s2862_s25 = scalar_lea.hbm %s890_s27, 16  ;;  %p2865_p10 = scmp.lt.u32.totalorder %s890_s27, %s4268_s2 }
 0x4b8   :  { %p2863_p9 = scmp.ne.s32.totalorder %s890_s27, %s2862_s25  ;;  %p2866_p11 = scmp.lt.u32.totalorder %s3239_s7, %s2862_s25 }
 0x4b9   :  { %p2868_p13 = scmp.lt.u32.totalorder %s2862_s25, %s890_s27 }
 0x4ba   :  { %p2867_p12 = por %p2866_p11, %p2865_p10 }
 0x4bc   :  { %p2869_p0 = por %p2868_p13, %p2867_p12 }
 0x4be   :  { %p2870_p1 = pnand %p2869_p0, %p2863_p9 }
 0x4c0   :  { %2873 = shalt.err (!%p2870_p1)  }
 0x4c1   :  { %s2874_s17 = scalar_lea.vmem %s4081_s30, 16  ;;  %p2879_p3 = scmp.lt.s32.totalorder %s4081_s30, %s3222_s19 }
 0x4c2   :  { %p2875_p2 = scmp.ne.s32.totalorder %s4081_s30, %s2874_s17  ;;  %p2880_p4 = scmp.lt.s32.totalorder %s3248_s11, %s2874_s17 }
 0x4c4   :  { %p2881_p5 = por %p2880_p4, %p2879_p3 }
 0x4c6   :  { %p2882_p6 = pnand %p2881_p5, %p2875_p2 }
 0x4c8   :  { %2885 = shalt.err (!%p2882_p6)  }
 0x4c9   :  { %902 = dma.hbm_to_vmem [thread:$0]  %s890_s27, 16, %s4081_s30, [#allocation3] }
 0x4ca   :  { %s3186_s21 = smov [#allocation2 + $0x3e]   ;;  %s4109_s6 = sld [smem:[#allocation5 + $0x38]] }
 0x4cb   :  { %s915_s5 = sshll.u32 %s3186_s21, 4  ;;  %s3187_s8 = smov [#allocation2 + $0x7]   ;;  %s916_s5 = int_to_ptr.vmem [resolvable:$true] %s915_s5 }
 0x4cc   :  { %s932_s28 = sshll.u32 %s3187_s8, 4  ;;  %s4111_s10 = sld [smem:[#allocation5 + $0x39]]  ;;  %s4114_s28 = int_to_ptr.vmem [resolvable:$true] %s932_s28 }
 0x4cd   :  { %s1465_s12 = sshll.u32 %s4094_s20, 4 }
 0x4ce   :  { %s906_s14 = scalar_lea.hbm %s4268_s2, %s1465_s12 }
 0x4cf   :  { %s2886_s15 = scalar_lea.hbm %s906_s14, 16  ;;  %p2889_p8 = scmp.lt.u32.totalorder %s906_s14, %s4268_s2 }
 0x4d0   :  { %p2887_p7 = scmp.ne.s32.totalorder %s906_s14, %s2886_s15  ;;  %p2890_p9 = scmp.lt.u32.totalorder %s3239_s7, %s2886_s15 }
 0x4d1   :  { %p2892_p11 = scmp.lt.u32.totalorder %s2886_s15, %s906_s14 }
 0x4d2   :  { %p2891_p10 = por %p2890_p9, %p2889_p8 }
 0x4d4   :  { %p2893_p12 = por %p2892_p11, %p2891_p10 }
 0x4d6   :  { %p2894_p13 = pnand %p2893_p12, %p2887_p7 }
 0x4d8   :  { %2897 = shalt.err (!%p2894_p13)  }
 0x4d9   :  { %s2898_s0 = scalar_lea.vmem %s916_s5, 16  ;;  %p2903_p1 = scmp.lt.s32.totalorder %s916_s5, %s3222_s19 }
 0x4da   :  { %p2899_p0 = scmp.ne.s32.totalorder %s916_s5, %s2898_s0  ;;  %p2904_p2 = scmp.lt.s32.totalorder %s3248_s11, %s2898_s0 }
 0x4dc   :  { %p2905_p3 = por %p2904_p2, %p2903_p1 }
 0x4de   :  { %p2906_p4 = pnand %p2905_p3, %p2899_p0 }
 0x4e0   :  { %2909 = shalt.err (!%p2906_p4)  }
 0x4e1   :  { %918 = dma.hbm_to_vmem [thread:$0]  %s906_s14, 16, %s916_s5, [#allocation3] }
 0x4e2   :  { %s1467_s22 = sshll.u32 %s4109_s6, 4  ;;  %s3188_s18 = smov [#allocation2 + $0xf]  }
 0x4e3   :  { %s948_s24 = sshll.u32 %s3188_s18, 4  ;;  %s923_s26 = scalar_lea.hbm %s4268_s2, %s1467_s22  ;;  %s4129_s24 = int_to_ptr.vmem [resolvable:$true] %s948_s24 }
 0x4e4   :  { %s2910_s27 = scalar_lea.hbm %s923_s26, 16  ;;  %p2913_p6 = scmp.lt.u32.totalorder %s923_s26, %s4268_s2 }
 0x4e5   :  { %p2911_p5 = scmp.ne.s32.totalorder %s923_s26, %s2910_s27  ;;  %p2914_p7 = scmp.lt.u32.totalorder %s3239_s7, %s2910_s27 }
 0x4e6   :  { %p2916_p9 = scmp.lt.u32.totalorder %s2910_s27, %s923_s26 }
 0x4e7   :  { %p2915_p8 = por %p2914_p7, %p2913_p6 }
 0x4e9   :  { %p2917_p10 = por %p2916_p9, %p2915_p8 }
 0x4eb   :  { %p2918_p11 = pnand %p2917_p10, %p2911_p5 }
 0x4ed   :  { %2921 = shalt.err (!%p2918_p11)  }
 0x4ee   :  { %s2922_s29 = scalar_lea.vmem %s4114_s28, 16  ;;  %p2927_p13 = scmp.lt.s32.totalorder %s4114_s28, %s3222_s19 }
 0x4ef   :  { %p2923_p12 = scmp.ne.s32.totalorder %s4114_s28, %s2922_s29  ;;  %p2928_p0 = scmp.lt.s32.totalorder %s3248_s11, %s2922_s29 }
 0x4f1   :  { %p2929_p1 = por %p2928_p0, %p2927_p13 }
 0x4f3   :  { %p2930_p2 = pnand %p2929_p1, %p2923_p12 }
 0x4f5   :  { %2933 = shalt.err (!%p2930_p2)  }
 0x4f6   :  { %935 = dma.hbm_to_vmem [thread:$0]  %s923_s26, 16, %s4114_s28, [#allocation3] }
 0x4f7   :  { %s1469_s17 = sshll.u32 %s4111_s10, 4  ;;  %s4142_s21 = sld [smem:[#allocation5 + $0x3a]] }
 0x4f8   :  { %s939_s8 = scalar_lea.hbm %s4268_s2, %s1469_s17 }
 0x4f9   :  { %s2934_s12 = scalar_lea.hbm %s939_s8, 16  ;;  %p2937_p4 = scmp.lt.u32.totalorder %s939_s8, %s4268_s2 }
 0x4fa   :  { %p2935_p3 = scmp.ne.s32.totalorder %s939_s8, %s2934_s12  ;;  %p2938_p5 = scmp.lt.u32.totalorder %s3239_s7, %s2934_s12 }
 0x4fb   :  { %p2940_p7 = scmp.lt.u32.totalorder %s2934_s12, %s939_s8 }
 0x4fc   :  { %p2939_p6 = por %p2938_p5, %p2937_p4 }
 0x4fe   :  { %p2941_p8 = por %p2940_p7, %p2939_p6 }
 0x500   :  { %p2942_p9 = pnand %p2941_p8, %p2935_p3 }
 0x502   :  { %2945 = shalt.err (!%p2942_p9)  }
 0x503   :  { %s2946_s28 = scalar_lea.vmem %s4129_s24, 16  ;;  %p2951_p11 = scmp.lt.s32.totalorder %s4129_s24, %s3222_s19 }
 0x504   :  { %p2947_p10 = scmp.ne.s32.totalorder %s4129_s24, %s2946_s28  ;;  %p2952_p12 = scmp.lt.s32.totalorder %s3248_s11, %s2946_s28 }
 0x506   :  { %p2953_p13 = por %p2952_p12, %p2951_p11 }
 0x508   :  { %p2954_p0 = pnand %p2953_p13, %p2947_p10 }
 0x50a   :  { %2957 = shalt.err (!%p2954_p0)  }
 0x50b   :  { %951 = dma.hbm_to_vmem [thread:$0]  %s939_s8, 16, %s4129_s24, [#allocation3] }
 0x50c   :  { %s3189_s10 = smov [#allocation2 + $0x17]   ;;  %s4157_s15 = sld [smem:[#allocation5 + $0x3b]] }
 0x50d   :  { %s964_s14 = sshll.u32 %s3189_s10, 4  ;;  %s3190_s16 = smov [#allocation2 + $0x1f]   ;;  %s965_s14 = int_to_ptr.vmem [resolvable:$true] %s964_s14 }
 0x50e   :  { %s980_s30 = sshll.u32 %s3190_s16, 4  ;;  %s4159_s0 = sld [smem:[#allocation5 + $0x3c]]  ;;  %s4162_s30 = int_to_ptr.vmem [resolvable:$true] %s980_s30 }
 0x50f   :  { %s1471_s22 = sshll.u32 %s4142_s21, 4 }
 0x510   :  { %s955_s23 = scalar_lea.hbm %s4268_s2, %s1471_s22 }
 0x511   :  { %s2958_s26 = scalar_lea.hbm %s955_s23, 16  ;;  %p2961_p2 = scmp.lt.u32.totalorder %s955_s23, %s4268_s2 }
 0x512   :  { %p2959_p1 = scmp.ne.s32.totalorder %s955_s23, %s2958_s26  ;;  %p2962_p3 = scmp.lt.u32.totalorder %s3239_s7, %s2958_s26 }
 0x513   :  { %p2964_p5 = scmp.lt.u32.totalorder %s2958_s26, %s955_s23 }
 0x514   :  { %p2963_p4 = por %p2962_p3, %p2961_p2 }
 0x516   :  { %p2965_p6 = por %p2964_p5, %p2963_p4 }
 0x518   :  { %p2966_p7 = pnand %p2965_p6, %p2959_p1 }
 0x51a   :  { %2969 = shalt.err (!%p2966_p7)  }
 0x51b   :  { %s2970_s25 = scalar_lea.vmem %s965_s14, 16  ;;  %p2975_p9 = scmp.lt.s32.totalorder %s965_s14, %s3222_s19 }
 0x51c   :  { %p2971_p8 = scmp.ne.s32.totalorder %s965_s14, %s2970_s25  ;;  %p2976_p10 = scmp.lt.s32.totalorder %s3248_s11, %s2970_s25 }
 0x51e   :  { %p2977_p11 = por %p2976_p10, %p2975_p9 }
 0x520   :  { %p2978_p12 = pnand %p2977_p11, %p2971_p8 }
 0x522   :  { %2981 = shalt.err (!%p2978_p12)  }
 0x523   :  { %967 = dma.hbm_to_vmem [thread:$0]  %s955_s23, 16, %s965_s14, [#allocation3] }
 0x524   :  { %s1473_s4 = sshll.u32 %s4157_s15, 4  ;;  %s3191_s29 = smov [#allocation2 + $0x27]  }
 0x525   :  { %s996_s17 = sshll.u32 %s3191_s29, 4  ;;  %s971_s6 = scalar_lea.hbm %s4268_s2, %s1473_s4  ;;  %s4177_s17 = int_to_ptr.vmem [resolvable:$true] %s996_s17 }
 0x526   :  { %s2982_s8 = scalar_lea.hbm %s971_s6, 16  ;;  %p2985_p0 = scmp.lt.u32.totalorder %s971_s6, %s4268_s2 }
 0x527   :  { %p2983_p13 = scmp.ne.s32.totalorder %s971_s6, %s2982_s8  ;;  %p2986_p1 = scmp.lt.u32.totalorder %s3239_s7, %s2982_s8 }
 0x528   :  { %p2988_p3 = scmp.lt.u32.totalorder %s2982_s8, %s971_s6 }
 0x529   :  { %p2987_p2 = por %p2986_p1, %p2985_p0 }
 0x52b   :  { %p2989_p4 = por %p2988_p3, %p2987_p2 }
 0x52d   :  { %p2990_p5 = pnand %p2989_p4, %p2983_p13 }
 0x52f   :  { %2993 = shalt.err (!%p2990_p5)  }
 0x530   :  { %s2994_s9 = scalar_lea.vmem %s4162_s30, 16  ;;  %p2999_p7 = scmp.lt.s32.totalorder %s4162_s30, %s3222_s19 }
 0x531   :  { %p2995_p6 = scmp.ne.s32.totalorder %s4162_s30, %s2994_s9  ;;  %p3000_p8 = scmp.lt.s32.totalorder %s3248_s11, %s2994_s9 }
 0x533   :  { %p3001_p9 = por %p3000_p8, %p2999_p7 }
 0x535   :  { %p3002_p10 = pnand %p3001_p9, %p2995_p6 }
 0x537   :  { %3005 = shalt.err (!%p3002_p10)  }
 0x538   :  { %983 = dma.hbm_to_vmem [thread:$0]  %s971_s6, 16, %s4162_s30, [#allocation3] }
 0x539   :  { %s1475_s28 = sshll.u32 %s4159_s0, 4  ;;  %s4190_s10 = sld [smem:[#allocation5 + $0x3d]] }
 0x53a   :  { %s987_s16 = scalar_lea.hbm %s4268_s2, %s1475_s28 }
 0x53b   :  { %s3006_s22 = scalar_lea.hbm %s987_s16, 16  ;;  %p3009_p12 = scmp.lt.u32.totalorder %s987_s16, %s4268_s2 }
 0x53c   :  { %p3007_p11 = scmp.ne.s32.totalorder %s987_s16, %s3006_s22  ;;  %p3010_p13 = scmp.lt.u32.totalorder %s3239_s7, %s3006_s22 }
 0x53d   :  { %p3012_p1 = scmp.lt.u32.totalorder %s3006_s22, %s987_s16 }
 0x53e   :  { %p3011_p0 = por %p3010_p13, %p3009_p12 }
 0x540   :  { %p3013_p2 = por %p3012_p1, %p3011_p0 }
 0x542   :  { %p3014_p3 = pnand %p3013_p2, %p3007_p11 }
 0x544   :  { %3017 = shalt.err (!%p3014_p3)  }
 0x545   :  { %s3018_s30 = scalar_lea.vmem %s4177_s17, 16  ;;  %p3023_p5 = scmp.lt.s32.totalorder %s4177_s17, %s3222_s19 }
 0x546   :  { %p3019_p4 = scmp.ne.s32.totalorder %s4177_s17, %s3018_s30  ;;  %p3024_p6 = scmp.lt.s32.totalorder %s3248_s11, %s3018_s30 }
 0x548   :  { %p3025_p7 = por %p3024_p6, %p3023_p5 }
 0x54a   :  { %p3026_p8 = pnand %p3025_p7, %p3019_p4 }
 0x54c   :  { %3029 = shalt.err (!%p3026_p8)  }
 0x54d   :  { %999 = dma.hbm_to_vmem [thread:$0]  %s987_s16, 16, %s4177_s17, [#allocation3] }
 0x54e   :  { %s3192_s0 = smov [#allocation2 + $0x2f]   ;;  %s4205_s26 = sld [smem:[#allocation5 + $0x3e]] }
 0x54f   :  { %s1012_s23 = sshll.u32 %s3192_s0, 4  ;;  %s3193_s27 = smov [#allocation2 + $0x37]   ;;  %s1013_s23 = int_to_ptr.vmem [resolvable:$true] %s1012_s23 }
 0x550   :  { %s1028_s24 = sshll.u32 %s3193_s27, 4  ;;  %s4207_s25 = sld [smem:[#allocation5 + $0x3f]]  ;;  %s4210_s24 = int_to_ptr.vmem [resolvable:$true] %s1028_s24 }
 0x551   :  { %s1477_s4 = sshll.u32 %s4190_s10, 4 }
 0x552   :  { %s1003_s5 = scalar_lea.hbm %s4268_s2, %s1477_s4 }
 0x553   :  { %s3030_s6 = scalar_lea.hbm %s1003_s5, 16  ;;  %p3033_p10 = scmp.lt.u32.totalorder %s1003_s5, %s4268_s2 }
 0x554   :  { %p3031_p9 = scmp.ne.s32.totalorder %s1003_s5, %s3030_s6  ;;  %p3034_p11 = scmp.lt.u32.totalorder %s3239_s7, %s3030_s6 }
 0x555   :  { %p3036_p13 = scmp.lt.u32.totalorder %s3030_s6, %s1003_s5 }
 0x556   :  { %p3035_p12 = por %p3034_p11, %p3033_p10 }
 0x558   :  { %p3037_p0 = por %p3036_p13, %p3035_p12 }
 0x55a   :  { %p3038_p1 = pnand %p3037_p0, %p3031_p9 }
 0x55c   :  { %3041 = shalt.err (!%p3038_p1)  }
 0x55d   :  { %s3042_s12 = scalar_lea.vmem %s1013_s23, 16  ;;  %p3047_p3 = scmp.lt.s32.totalorder %s1013_s23, %s3222_s19 }
 0x55e   :  { %p3043_p2 = scmp.ne.s32.totalorder %s1013_s23, %s3042_s12  ;;  %p3048_p4 = scmp.lt.s32.totalorder %s3248_s11, %s3042_s12 }
 0x560   :  { %p3049_p5 = por %p3048_p4, %p3047_p3 }
 0x562   :  { %p3050_p6 = pnand %p3049_p5, %p3043_p2 }
 0x564   :  { %3053 = shalt.err (!%p3050_p6)  }
 0x565   :  { %1015 = dma.hbm_to_vmem [thread:$0]  %s1003_s5, 16, %s1013_s23, [#allocation3] }
 0x566   :  { %s1479_s13 = sshll.u32 %s4205_s26, 4  ;;  %s3194_s9 = smov [#allocation2 + $0x3f]  }
 0x567   :  { %s1044_s28 = sshll.u32 %s3194_s9, 4  ;;  %s1019_s15 = scalar_lea.hbm %s4268_s2, %s1479_s13  ;;  %s4225_s28 = int_to_ptr.vmem [resolvable:$true] %s1044_s28 }
 0x568   :  { %s3054_s16 = scalar_lea.hbm %s1019_s15, 16  ;;  %p3057_p8 = scmp.lt.u32.totalorder %s1019_s15, %s4268_s2 }
 0x569   :  { %p3055_p7 = scmp.ne.s32.totalorder %s1019_s15, %s3054_s16  ;;  %p3058_p9 = scmp.lt.u32.totalorder %s3239_s7, %s3054_s16 }
 0x56a   :  { %p3060_p11 = scmp.lt.u32.totalorder %s3054_s16, %s1019_s15 }
 0x56b   :  { %p3059_p10 = por %p3058_p9, %p3057_p8 }
 0x56d   :  { %p3061_p12 = por %p3060_p11, %p3059_p10 }
 0x56f   :  { %p3062_p13 = pnand %p3061_p12, %p3055_p7 }
 0x571   :  { %3065 = shalt.err (!%p3062_p13)  }
 0x572   :  { %s3066_s20 = scalar_lea.vmem %s4210_s24, 16  ;;  %p3071_p1 = scmp.lt.s32.totalorder %s4210_s24, %s3222_s19 }
 0x573   :  { %p3067_p0 = scmp.ne.s32.totalorder %s4210_s24, %s3066_s20  ;;  %p3072_p2 = scmp.lt.s32.totalorder %s3248_s11, %s3066_s20 }
 0x575   :  { %p3073_p3 = por %p3072_p2, %p3071_p1 }
 0x577   :  { %p3074_p4 = pnand %p3073_p3, %p3067_p0 }
 0x579   :  { %3077 = shalt.err (!%p3074_p4)  }
 0x57a   :  { %1031 = dma.hbm_to_vmem [thread:$0]  %s1019_s15, 16, %s4210_s24, [#allocation3] }
 0x57b   :  { %s1481_s30 = sshll.u32 %s4207_s25, 4 }
 0x57c   :  { %s1035_s26 = scalar_lea.hbm %s4268_s2, %s1481_s30 }
 0x57d   :  { %s3078_s27 = scalar_lea.hbm %s1035_s26, 16  ;;  %p3081_p6 = scmp.lt.u32.totalorder %s1035_s26, %s4268_s2 }
 0x57e   :  { %p3079_p5 = scmp.ne.s32.totalorder %s1035_s26, %s3078_s27  ;;  %p3082_p7 = scmp.lt.u32.totalorder %s3239_s7, %s3078_s27 }
 0x57f   :  { %p3084_p9 = scmp.lt.u32.totalorder %s3078_s27, %s1035_s26 }
 0x580   :  { %p3083_p8 = por %p3082_p7, %p3081_p6 }
 0x582   :  { %p3085_p10 = por %p3084_p9, %p3083_p8 }
 0x584   :  { %p3086_p11 = pnand %p3085_p10, %p3079_p5 }
 0x586   :  { %3089 = shalt.err (!%p3086_p11)  }
 0x587   :  { %s3090_s24 = scalar_lea.vmem %s4225_s28, 16  ;;  %p3095_p13 = scmp.lt.s32.totalorder %s4225_s28, %s3222_s19 }
 0x588   :  { %p3091_p12 = scmp.ne.s32.totalorder %s4225_s28, %s3090_s24  ;;  %p3096_p0 = scmp.lt.s32.totalorder %s3248_s11, %s3090_s24 }
 0x58a   :  { %p3097_p1 = por %p3096_p0, %p3095_p13 }
 0x58c   :  { %p3098_p2 = pnand %p3097_p1, %p3091_p12 }
 0x58e   :  { %3101 = shalt.err (!%p3098_p2)  }
 0x58f   :  { %1047 = dma.hbm_to_vmem [thread:$0]  %s1035_s26, 16, %s4225_s28, [#allocation3] }
 0x590   :  { %3126 = dma.done.wait [#allocation3], 1024 }
 0x591   :  { %3127 = vsyncadd [#allocation3], 4294966272  ;;  %v3195_v0 = vmov 0   ;;  %v1191_v1 = vld [vmem:[%s4267_s1] sm:$0xff]  ;;  %v1177_v4 = vld [vmem:[#allocation2 + $0x8] sm:$0xff]  ;;  %s3196_s19 = smov [#allocation6]  }
 0x592   :  { %1551 = vset.pattern.permute.xlu0 %v3195_v0  ;;  %1552 = vrcp.f32 %v1191_v1  ;;  %v1176_v3 = vld [vmem:[#allocation2] sm:$0xff]  ;;  %v1178_v6 = vld [vmem:[#allocation2 + $0x10] sm:$0xff]  ;;  %v1179_v8 = vld [vmem:[#allocation2 + $0x18] sm:$0xff]  ;;  %s1206_s1 = sshll.u32 %s3196_s19, 4  ;;  %s1207_s1 = int_to_ptr.vmem [resolvable:$true] %s1206_s1 }
 0x593   :  { %v1184_v5 = vadd.f32 %v1177_v4, %v1176_v3  ;;  %v1180_v10 = vld [vmem:[#allocation2 + $0x20] sm:$0xff]  ;;  %v1181_v12 = vld [vmem:[#allocation2 + $0x28] sm:$0xff]  ;;  %v1182_v14 = vld [vmem:[#allocation2 + $0x30] sm:$0xff]  ;;  %s3102_s11 = scalar_lea.vmem %s1207_s1, 128  ;;  %p3107_p4 = scmp.lt.s32.totalorder %s1207_s1, %s1207_s1 }
 0x594   :  { %v1183_v16 = vld [vmem:[#allocation2 + $0x38] sm:$0xff]  ;;  %p3103_p3 = scmp.ne.s32.totalorder %s1207_s1, %s3102_s11  ;;  %p3108_p5 = scmp.lt.s32.totalorder %s3102_s11, %s3102_s11 }
 0x595   :  { %v1185_v7 = vadd.f32 %v1184_v5, %v1178_v6 }
 0x596   :  { %p3109_p6 = por %p3108_p5, %p3107_p4 }
 0x597   :  { %v1186_v9 = vadd.f32 %v1185_v7, %v1179_v8 }
 0x598   :  { %p3110_p7 = pnand %p3109_p6, %p3103_p3 }
 0x599   :  { %v1187_v11 = vadd.f32 %v1186_v9, %v1180_v10 }
 0x59b   :  { %v1188_v13 = vadd.f32 %v1187_v11, %v1181_v12 }
 0x59c   :  { %v1553_v2 = vpop.eup %1552 }
 0x59d   :  { %1195 = vperm.xlu0 %1551, %v1553_v2   ;;  %v1189_v15 = vadd.f32 %v1188_v13, %v1182_v14 }
 0x59f   :  { %v1190_v17 = vadd.f32 %v1189_v15, %v1183_v16 }
 0x61c   :  { %v1196_v18 = vpop.permute.xlu0 %1195 }
 0x61d   :  { %v1198_v19 = vmul.f32 %v1196_v18, %v1190_v17 }
 0x61f   :  { %1199 = vst [vmem:[#allocation6] sm:$0xff] %v1198_v19 }
 0x620   :  { %3113 = shalt.err (!%p3110_p7)
}
 0x621   :  { %s3114_s5 = scalar_lea.hbm %s4269_s3, 128 }
 0x622   :  { %p3115_p8 = scmp.ne.s32.totalorder %s4269_s3, %s3114_s5  ;;  %p3118_p9 = scmp.lt.u32.totalorder %s3114_s5, %s4269_s3 }
 0x624   :  { %p3120_p10 = pnand %p3118_p9, %p3115_p8 }
 0x626   :  { %3123 = shalt.err (!%p3120_p10)
}
 0x627   :  { %1209 = dma.vmem_to_hbm [thread:$0]  %s1207_s1, 128, %s4269_s3, [#allocation7]  }
 0x628   :  { %3128 = dma.done.wait [#allocation7], 128  }
 0x629   :  { %3129 = vsyncadd [#allocation7], 4294967168 }
 0x62a   :  { %1213 = vsyncpa [#allocation7], 1 }
 0x62b   :  { %1214 = vsyncmov [#allocation3] }
 0x62e   :  { %s1215_s28 = vpop.sfrf %1214 }
 0x62f   :  { %p1482_p11 = scmp.ne.s32.totalorder %s1215_s28, 0 }
 0x631   :  { %1219 = shalt.err (%p1482_p11)  }
 0x632   :  { %1221 = vsyncmov [#allocation3 + $0x1] }
 0x635   :  { %s1222_s10 = vpop.sfrf %1221 }
 0x636   :  { %p1483_p12 = scmp.ne.s32.totalorder %s1222_s10, 0 }
 0x638   :  { %1226 = shalt.err (%p1483_p12)  }

</bundles_post_ra>
